<compile_context>
chip_gen: v6e
topology: v6e:2x2x1
jax: 0.10.0
libtpu: 0.0.40
codegen_flags: <defaults>
</compile_context>

<pallas_src>
import functools

import jax
import jax.numpy as jnp
from jax.experimental import pallas as pl
from jax.experimental.pallas import tpu as pltpu


# ---------------------------------------------------------------------------
# In-kernel math helpers (traced inside the Pallas kernel)
# ---------------------------------------------------------------------------
def _log_sigmoid(x):
    # numerically stable log(sigmoid(x)) = min(x, 0) - log(1 + exp(-|x|))
    return jnp.minimum(x, 0.0) - jnp.log(1.0 + jnp.exp(-jnp.abs(x)))


def _l2_normalize(x, eps=1e-12):
    # torch.nn.functional.normalize(x, p=2, dim=1): x / max(||x||, eps)
    # == x * rsqrt(max(||x||^2, eps^2))   (rsqrt lands on the EUP slot)
    n2 = jnp.sum(x * x, axis=1, keepdims=True)
    return x * jax.lax.rsqrt(jnp.maximum(n2, eps * eps))


def _round_up(x, m):
    return ((x + m - 1) // m) * m


def _cdiv(a, b):
    return (a + b - 1) // b


def _vmem_limit_bytes():
    try:
        cap = int(pltpu.get_tpu_info().vmem_capacity_bytes)
    except Exception:
        cap = 128 * 1024 * 1024
    # 128 MiB parts (v5e/v6e): 64 MiB scoped; 64 MiB parts (v7x per-TC): 32 MiB.
    return 64 * 1024 * 1024 if cap >= 100 * 1024 * 1024 else 32 * 1024 * 1024


def _choose_tiles(kg_batch, cf_batch, d, r_dim, n_rel, n_pad, tile_b=None):
    """Pick a shared tile count and per-stream tile sizes (multiples of 8)."""
    if tile_b is None:
        limit = _vmem_limit_bytes()
        resident = (d * n_pad + n_pad * r_dim) * 4           # W_all + fold in VMEM
        kg_row = (3 * d + r_dim + 1) * 4                     # double-buffered blocks
        cf_row = 5 * d * 4
        tmp_row = (4 * n_pad + 10 * r_dim + 6 * d) * 4       # in-kernel temporaries
        per_row = 2 * (kg_row + cf_row) + tmp_row
        budget = max(limit // 2 - 2 * resident, 64 * per_row)
        tile_b = max(8, min(4096, ((budget // per_row) // 8) * 8))
    tile_b = max(8, int(tile_b))
    n_tiles = max(_cdiv(kg_batch, tile_b), _cdiv(cf_batch, tile_b), 1)
    tile_kg = _round_up(max(_cdiv(kg_batch, n_tiles), 8), 8)
    tile_cf = _round_up(max(_cdiv(cf_batch, n_tiles), 8), 8)
    return int(n_tiles), int(tile_kg), int(tile_cf)


# ---------------------------------------------------------------------------
# Fused Pallas kernel (KG TransR/BPR loss + CF BPR loss partials per tile)
# ---------------------------------------------------------------------------
def _cke_fused_kernel(h_ref, pos_ref, neg_ref, re_ref, rel_ref, w_ref, fold_ref,
                      u_ref, ip_ref, ineg_ref, ipk_ref, ink_ref, out_ref,
                      *, tile_kg, tile_cf, kg_batch, cf_batch, r_dim):
    pid = pl.program_id(0)
    n_pad = w_ref.shape[1]

    # ---------------- KG stream ----------------
    w_all = w_ref[...].astype(jnp.float32)        # (D, n_rel*R padded to 128)
    fold = fold_ref[...].astype(jnp.float32)      # (n_pad, R) zeros/ones

    # Per-row relation column-range mask (single VPU iota compare, no n_rel loop).
    rel = rel_ref[...]                            # (TBk, 1) int32
    lane = jax.lax.broadcasted_iota(jnp.int32, (tile_kg, n_pad), 1)
    lo = rel * r_dim
    sel = ((lane >= lo) & (lane < lo + r_dim)).astype(jnp.float32)   # (TBk, n_pad)

    def project(x_ref):
        # bmm(e.unsqueeze(1), trans_M[r]).squeeze(1) == one flattened MXU matmul
        # followed by per-row slice selection (mask * fold matmul).
        proj = jnp.dot(x_ref[...].astype(jnp.float32), w_all,
                       preferred_element_type=jnp.float32)            # (TBk, n_pad)
        return jnp.dot(proj * sel, fold,
                       preferred_element_type=jnp.float32)            # (TBk, R)

    r_n = _l2_normalize(re_ref[...].astype(jnp.float32))
    h_n = _l2_normalize(project(h_ref))
    p_n = _l2_normalize(project(pos_ref))
    t_n = _l2_normalize(project(neg_ref))

    pos_score = jnp.sum((h_n + r_n - p_n) ** 2, axis=1, keepdims=True)   # (TBk, 1)
    neg_score = jnp.sum((h_n + r_n - t_n) ** 2, axis=1, keepdims=True)   # (TBk, 1)

    # Padded rows gather row 0 / relation 0 and compute garbage scores; they are
    # masked out here (do NOT remove this mask).
    row_k = pid * tile_kg + jax.lax.broadcasted_iota(jnp.int32, (tile_kg, 1), 0)
    valid_k = (row_k < kg_batch).astype(jnp.float32)

    kg_bpr = jnp.sum(valid_k * (-_log_sigmoid(neg_score - pos_score)))
    kg_l2 = jnp.sum(valid_k * (0.5 * (
        jnp.sum(h_n * h_n, axis=1, keepdims=True)
        + jnp.sum(r_n * r_n, axis=1, keepdims=True)
        + jnp.sum(p_n * p_n, axis=1, keepdims=True)
        + jnp.sum(t_n * t_n, axis=1, keepdims=True))))

    # ---------------- CF stream ----------------
    u = u_ref[...].astype(jnp.float32)
    pos_cf = ip_ref[...].astype(jnp.float32) + ipk_ref[...].astype(jnp.float32)
    neg_cf = ineg_ref[...].astype(jnp.float32) + ink_ref[...].astype(jnp.float32)

    ps = jnp.sum(u * pos_cf, axis=1, keepdims=True)                      # (TBc, 1)
    ns = jnp.sum(u * neg_cf, axis=1, keepdims=True)

    row_c = pid * tile_cf + jax.lax.broadcasted_iota(jnp.int32, (tile_cf, 1), 0)
    valid_c = (row_c < cf_batch).astype(jnp.float32)

    cf_bpr = jnp.sum(valid_c * (-_log_sigmoid(ps - ns)))
    cf_l2 = jnp.sum(valid_c * (0.5 * (
        jnp.sum(u * u, axis=1, keepdims=True)
        + jnp.sum(pos_cf * pos_cf, axis=1, keepdims=True)
        + jnp.sum(neg_cf * neg_cf, axis=1, keepdims=True))))

    # ---------------- per-tile partials -> lane-dense (8,128) output block ------
    sub = jax.lax.broadcasted_iota(jnp.int32, (8, 128), 0)
    ln = jax.lax.broadcasted_iota(jnp.int32, (8, 128), 1)
    slot = jnp.where(sub == 0, ln, -1)
    out_ref[...] = (jnp.where(slot == 0, kg_bpr, 0.0)
                    + jnp.where(slot == 1, kg_l2, 0.0)
                    + jnp.where(slot == 2, cf_bpr, 0.0)
                    + jnp.where(slot == 3, cf_l2, 0.0))


# ---------------------------------------------------------------------------
# Wrapper (padding, gathers, flattened weights, grid setup, final combine)
# ---------------------------------------------------------------------------
def cke_loss_pallas(user_embed, item_embed, entity_embed, relation_embed, trans_M,
                    user_ids, item_pos_ids, item_neg_ids, h, r, pos_t, neg_t,
                    cf_lambda, kg_lambda, tile_b=None):
    kg_batch = int(h.shape[0])
    cf_batch = int(user_ids.shape[0])
    n_rel, d, r_dim = (int(s) for s in trans_M.shape)
    n_flat = n_rel * r_dim
    n_pad = _round_up(n_flat, 128)

    n_tiles, tile_kg, tile_cf = _choose_tiles(kg_batch, cf_batch, d, r_dim, n_rel,
                                              n_pad, tile_b)
    kg_pad = n_tiles * tile_kg
    cf_pad = n_tiles * tile_cf

    def pad_idx(idx, n):
        return jnp.pad(idx.astype(jnp.int32), (0, n - idx.shape[0]))

    h_p = pad_idx(h, kg_pad)
    r_p = pad_idx(r, kg_pad)
    pos_p = pad_idx(pos_t, kg_pad)
    neg_p = pad_idx(neg_t, kg_pad)
    u_p = pad_idx(user_ids, cf_pad)
    ip_p = pad_idx(item_pos_ids, cf_pad)
    in_p = pad_idx(item_neg_ids, cf_pad)

    # Embedding gathers stay in XLA glue; allow_input_fusion lets them fuse into
    # the pallas_call operands under jit instead of being materialized in HBM.
    h_e = jnp.take(entity_embed, h_p, axis=0)        # (kg_pad, D)
    pos_e = jnp.take(entity_embed, pos_p, axis=0)    # (kg_pad, D)
    neg_e = jnp.take(entity_embed, neg_p, axis=0)    # (kg_pad, D)
    r_e = jnp.take(relation_embed, r_p, axis=0)      # (kg_pad, R)
    rel_ids = r_p.reshape(kg_pad, 1)                 # (kg_pad, 1) contiguous int32

    u_e = jnp.take(user_embed, u_p, axis=0)          # (cf_pad, D)
    ip_e = jnp.take(item_embed, ip_p, axis=0)
    in_e = jnp.take(item_embed, in_p, axis=0)
    ipk_e = jnp.take(entity_embed, ip_p, axis=0)
    ink_e = jnp.take(entity_embed, in_p, axis=0)

    # Relation-flattened projection weights W_all[d, n*R + j] = trans_M[n, d, j],
    # padded to a 128-lane multiple -> one MXU matmul replaces the n_rel loop.
    w_all = jnp.transpose(trans_M, (1, 0, 2)).reshape(d, n_flat)
    w_all = jnp.pad(w_all, ((0, 0), (0, n_pad - n_flat))).astype(jnp.float32)
    # Fold matrix: picks column j out of the selected relation block.
    cols = jnp.arange(n_pad)
    fold = ((cols[:, None] % r_dim == jnp.arange(r_dim)[None, :])
            & (cols[:, None] < n_flat)).astype(jnp.float32)          # (n_pad, R)

    kernel = functools.partial(
        _cke_fused_kernel, tile_kg=tile_kg, tile_cf=tile_cf,
        kg_batch=kg_batch, cf_batch=cf_batch, r_dim=r_dim)

    kg_flops = (6 * kg_pad * d * n_pad + 6 * kg_pad * n_pad * r_dim
                + 60 * kg_pad * (d + r_dim))
    cf_flops = 16 * cf_pad * d
    bytes_accessed = 4 * (kg_pad * (3 * d + r_dim + 1) + cf_pad * 5 * d
                          + d * n_pad + n_pad * r_dim + n_tiles * 8 * 128)

    out = pl.pallas_call(
        kernel,
        out_shape=jax.ShapeDtypeStruct((n_tiles * 8, 128), jnp.float32),
        grid_spec=pltpu.PrefetchScalarGridSpec(
            num_scalar_prefetch=0,
            grid=(n_tiles,),
            in_specs=[
                pl.BlockSpec((tile_kg, d), lambda i: (i, 0)),       # h_e
                pl.BlockSpec((tile_kg, d), lambda i: (i, 0)),       # pos_e
                pl.BlockSpec((tile_kg, d), lambda i: (i, 0)),       # neg_e
                pl.BlockSpec((tile_kg, r_dim), lambda i: (i, 0)),   # r_e
                pl.BlockSpec((tile_kg, 1), lambda i: (i, 0)),       # relation ids
                pl.BlockSpec((d, n_pad), lambda i: (0, 0)),         # W_all (resident)
                pl.BlockSpec((n_pad, r_dim), lambda i: (0, 0)),     # fold  (resident)
                pl.BlockSpec((tile_cf, d), lambda i: (i, 0)),       # user
                pl.BlockSpec((tile_cf, d), lambda i: (i, 0)),       # item pos
                pl.BlockSpec((tile_cf, d), lambda i: (i, 0)),       # item neg
                pl.BlockSpec((tile_cf, d), lambda i: (i, 0)),       # entity pos
                pl.BlockSpec((tile_cf, d), lambda i: (i, 0)),       # entity neg
            ],
            out_specs=pl.BlockSpec((8, 128), lambda i: (i, 0)),
        ),
        compiler_params=pltpu.CompilerParams(
            dimension_semantics=("parallel",),          # shards tiles across TCs on v7x
            vmem_limit_bytes=_vmem_limit_bytes(),
            allow_input_fusion=[True] * 5 + [False] * 2 + [True] * 5,
        ),
        cost_estimate=pl.CostEstimate(
            flops=int(kg_flops + cf_flops),
            transcendentals=int(6 * kg_pad + 2 * cf_pad),
            bytes_accessed=int(bytes_accessed)),
    )(h_e, pos_e, neg_e, r_e, rel_ids, w_all, fold,
      u_e, ip_e, in_e, ipk_e, ink_e)

    # Final combine (tiny) in JAX: sum per-tile partials, mean + lambda scaling.
    partials = jnp.sum(out, axis=0)                     # (128,)
    kg_loss = (partials[0] + kg_lambda * partials[1]) / kg_batch
    cf_loss = (partials[2] + cf_lambda * partials[3]) / cf_batch
    return kg_loss + cf_loss


# ---------------------------------------------------------------------------
# CKE model (parameters + forward glue)
# ---------------------------------------------------------------------------
def _xavier_uniform(key, shape, gain):
    # matches torch.nn.init.xavier_uniform_ fan computation (incl. 3-D trans_M)
    if len(shape) == 2:
        fan_in, fan_out = shape[1], shape[0]
    else:
        receptive = 1
        for s in shape[2:]:
            receptive *= s
        fan_in, fan_out = shape[1] * receptive, shape[0] * receptive
    bound = gain * (6.0 / (fan_in + fan_out)) ** 0.5
    return jax.random.uniform(key, shape, jnp.float32, -bound, bound)


class CKEPallas:
    """CKE (KGAT-pytorch) with the calc_loss hot path fused into one Pallas kernel."""

    def __init__(self, n_users, n_items, n_entities, n_relations,
                 embed_dim, relation_dim, cf_l2loss_lambda, kg_l2loss_lambda,
                 key, tile_b=None):
        self.cf_l2loss_lambda = cf_l2loss_lambda
        self.kg_l2loss_lambda = kg_l2loss_lambda
        self.tile_b = tile_b

        gain = 2.0 ** 0.5  # nn.init.calculate_gain('relu')
        ks = jax.random.split(key, 5)
        self.user_embed = _xavier_uniform(ks[0], (n_users, embed_dim), gain)
        self.item_embed = _xavier_uniform(ks[1], (n_items, embed_dim), gain)
        self.entity_embed = _xavier_uniform(ks[2], (n_entities, embed_dim), gain)
        self.relation_embed = _xavier_uniform(ks[3], (n_relations, relation_dim), gain)
        self.trans_M = _xavier_uniform(ks[4], (n_relations, embed_dim, relation_dim), gain)

    def calc_loss(self, user_ids, item_pos_ids, item_neg_ids, h, r, pos_t, neg_t):
        return cke_loss_pallas(self.user_embed, self.item_embed, self.entity_embed,
                               self.relation_embed, self.trans_M,
                               user_ids, item_pos_ids, item_neg_ids,
                               h, r, pos_t, neg_t,
                               self.cf_l2loss_lambda, self.kg_l2loss_lambda,
                               tile_b=self.tile_b)

    def forward(self, mode, *inputs):
        assert mode == 'train'
        return self.calc_loss(*inputs)


# ---------------------------------------------------------------------------
# Pure-JAX reference (same math, no Pallas) for a sanity check
# ---------------------------------------------------------------------------
def _reference_loss(model, user_ids, item_pos_ids, item_neg_ids, h, r, pos_t, neg_t):
    def l2n(x):
        return x / jnp.maximum(jnp.linalg.norm(x, axis=1, keepdims=True), 1e-12)

    def l2m(x):
        return jnp.mean(jnp.sum(x ** 2, axis=1) / 2.0)

    def logsig(x):
        return jnp.minimum(x, 0.0) - jnp.log(1.0 + jnp.exp(-jnp.abs(x)))

    r_e = model.relation_embed[r]
    W_r = model.trans_M[r]
    h_e = model.entity_embed[h]
    p_e = model.entity_embed[pos_t]
    n_e = model.entity_embed[neg_t]
    rh = jnp.sum(h_e[:, :, None] * W_r, axis=1)
    rp = jnp.sum(p_e[:, :, None] * W_r, axis=1)
    rn = jnp.sum(n_e[:, :, None] * W_r, axis=1)
    r_e, rh, rp, rn = l2n(r_e), l2n(rh), l2n(rp), l2n(rn)
    pos_s = jnp.sum((rh + r_e - rp) ** 2, axis=1)
    neg_s = jnp.sum((rh + r_e - rn) ** 2, axis=1)
    kg = jnp.mean(-logsig(neg_s - pos_s)) + model.kg_l2loss_lambda * (
        l2m(rh) + l2m(r_e) + l2m(rp) + l2m(rn))

    u = model.user_embed[user_ids]
    pc = model.item_embed[item_pos_ids] + model.entity_embed[item_pos_ids]
    nc = model.item_embed[item_neg_ids] + model.entity_embed[item_neg_ids]
    ps = jnp.sum(u * pc, axis=1)
    ns = jnp.sum(u * nc, axis=1)
    cf = jnp.mean(-logsig(ps - ns)) + model.cf_l2loss_lambda * (
        l2m(u) + l2m(pc) + l2m(nc))
    return kg + cf


# ---------------------------------------------------------------------------
if __name__ == "__main__":
    key = jax.random.PRNGKey(0)
    k_model, k_u, k_ip, k_in, k_h, k_r, k_pt, k_nt = jax.random.split(key, 8)

    n_users, n_items, n_entities, n_relations = 40, 50, 80, 5
    embed_dim, relation_dim = 32, 16
    cf_batch, kg_batch = 200, 300   # not tile multiples -> exercises padding/masking

    # tile_b=128 forces a multi-tile grid (3 tiles; kg tile 104, cf tile 72).
    model = CKEPallas(n_users, n_items, n_entities, n_relations,
                      embed_dim, relation_dim,
                      cf_l2loss_lambda=1e-5, kg_l2loss_lambda=1e-5,
                      key=k_model, tile_b=128)

    user_ids = jax.random.randint(k_u, (cf_batch,), 0, n_users)
    item_pos_ids = jax.random.randint(k_ip, (cf_batch,), 0, n_items)
    item_neg_ids = jax.random.randint(k_in, (cf_batch,), 0, n_items)
    h = jax.random.randint(k_h, (kg_batch,), 0, n_entities)
    r = jax.random.randint(k_r, (kg_batch,), 0, n_relations)
    pos_t = jax.random.randint(k_pt, (kg_batch,), 0, n_entities)
    neg_t = jax.random.randint(k_nt, (kg_batch,), 0, n_entities)

    run = jax.jit(functools.partial(model.forward, 'train'))
    loss = run(user_ids, item_pos_ids, item_neg_ids, h, r, pos_t, neg_t)
    loss = jax.block_until_ready(loss)

    ref = _reference_loss(model, user_ids, item_pos_ids, item_neg_ids,
                          h, r, pos_t, neg_t)
    assert jnp.isfinite(loss), "loss is not finite"
    assert jnp.allclose(loss, ref, rtol=5e-3, atol=2e-3), (float(loss), float(ref))

    print("KERNEL_OK")
</pallas_src>

<mosaic_0001>
module attributes {stable_mosaic.version = 11 : i64} {
  func.func @_cke_fused_kernel(%arg0: i32, %arg1: memref<104x32xf32, #tpu.memory_space<vmem>>, %arg2: memref<104x32xf32, #tpu.memory_space<vmem>>, %arg3: memref<104x32xf32, #tpu.memory_space<vmem>>, %arg4: memref<104x16xf32, #tpu.memory_space<vmem>>, %arg5: memref<104x1xi32, #tpu.memory_space<vmem>>, %arg6: memref<32x128xf32, #tpu.memory_space<vmem>>, %arg7: memref<128x16xf32, #tpu.memory_space<vmem>>, %arg8: memref<72x32xf32, #tpu.memory_space<vmem>>, %arg9: memref<72x32xf32, #tpu.memory_space<vmem>>, %arg10: memref<72x32xf32, #tpu.memory_space<vmem>>, %arg11: memref<72x32xf32, #tpu.memory_space<vmem>>, %arg12: memref<72x32xf32, #tpu.memory_space<vmem>>, %arg13: memref<8x128xf32, #tpu.memory_space<vmem>>) attributes {dimension_semantics = [#tpu.dimension_semantics<parallel>], iteration_bounds = array<i64: 3>, scalar_prefetch = 0 : i64, scratch_operands = 0 : i64, tpu.core_type = #tpu.core_type<tc>, window_params = [{transform_indices = @transform_0, window_bounds = array<i64: 104, 32>}, {transform_indices = @transform_1, window_bounds = array<i64: 104, 32>}, {transform_indices = @transform_2, window_bounds = array<i64: 104, 32>}, {transform_indices = @transform_3, window_bounds = array<i64: 104, 16>}, {transform_indices = @transform_4, window_bounds = array<i64: 104, 1>}, {pipeline_mode = #tpu.pipeline_mode<synchronous>, transform_indices = @transform_5, window_bounds = array<i64: 32, 128>}, {pipeline_mode = #tpu.pipeline_mode<synchronous>, transform_indices = @transform_6, window_bounds = array<i64: 128, 16>}, {transform_indices = @transform_7, window_bounds = array<i64: 72, 32>}, {transform_indices = @transform_8, window_bounds = array<i64: 72, 32>}, {transform_indices = @transform_9, window_bounds = array<i64: 72, 32>}, {transform_indices = @transform_10, window_bounds = array<i64: 72, 32>}, {transform_indices = @transform_11, window_bounds = array<i64: 72, 32>}, {transform_indices = @transform_12, window_bounds = array<i64: 8, 128>}]} {
    %c0 = arith.constant 0 : index
    %c0_0 = arith.constant 0 : index
    %0 = vector.load %arg6[%c0, %c0_0] : memref<32x128xf32, #tpu.memory_space<vmem>>, vector<32x128xf32>
    %c0_1 = arith.constant 0 : index
    %c0_2 = arith.constant 0 : index
    %1 = vector.load %arg7[%c0_1, %c0_2] : memref<128x16xf32, #tpu.memory_space<vmem>>, vector<128x16xf32>
    %c0_3 = arith.constant 0 : index
    %c0_4 = arith.constant 0 : index
    %2 = vector.load %arg5[%c0_3, %c0_4] : memref<104x1xi32, #tpu.memory_space<vmem>>, vector<104x1xi32>
    %3 = tpu.iota {dimensions = array<i32: 1>} : vector<104x128xi32>
    %c16_i32 = arith.constant 16 : i32
    %4 = vector.broadcast %c16_i32 : i32 to vector<104x1xi32>
    %5 = arith.muli %2, %4 : vector<104x1xi32>
    %6 = vector.broadcast %5 : vector<104x1xi32> to vector<104x128xi32>
    %7 = arith.cmpi sge, %3, %6 : vector<104x128xi32>
    %c16_i32_5 = arith.constant 16 : i32
    %8 = vector.broadcast %c16_i32_5 : i32 to vector<104x1xi32>
    %9 = arith.addi %5, %8 : vector<104x1xi32>
    %10 = vector.broadcast %9 : vector<104x1xi32> to vector<104x128xi32>
    %11 = arith.cmpi slt, %3, %10 : vector<104x128xi32>
    %12 = arith.andi %7, %11 : vector<104x128xi1>
    %13 = arith.extui %12 : vector<104x128xi1> to vector<104x128xi32>
    %14 = arith.sitofp %13 : vector<104x128xi32> to vector<104x128xf32>
    %c0_6 = arith.constant 0 : index
    %c0_7 = arith.constant 0 : index
    %15 = vector.load %arg4[%c0_6, %c0_7] : memref<104x16xf32, #tpu.memory_space<vmem>>, vector<104x16xf32>
    %16 = arith.mulf %15, %15 : vector<104x16xf32>
    %cst = arith.constant dense<0.000000e+00> : vector<104xf32>
    %17 = vector.multi_reduction <add>, %16, %cst [1] : vector<104x16xf32> to vector<104xf32>
    %18 = vector.shape_cast %17 : vector<104xf32> to vector<104x1xf32>
    %cst_8 = arith.constant 1.000000e-24 : f32
    %19 = vector.broadcast %cst_8 : f32 to vector<104x1xf32>
    %20 = arith.maximumf %18, %19 : vector<104x1xf32>
    %21 = math.rsqrt %20 : vector<104x1xf32>
    %22 = vector.broadcast %21 : vector<104x1xf32> to vector<104x16xf32>
    %23 = arith.mulf %15, %22 : vector<104x16xf32>
    %c0_9 = arith.constant 0 : index
    %c0_10 = arith.constant 0 : index
    %24 = vector.load %arg1[%c0_9, %c0_10] : memref<104x32xf32, #tpu.memory_space<vmem>>, vector<104x32xf32>
    %cst_11 = arith.constant dense<0.000000e+00> : vector<104x128xf32>
    %25 = tpu.matmul %24, %0, %cst_11 {dimension_numbers = #tpu.dot_dimension_numbers<[1], [0], [0], [1], [0, 0, 1, 1], [], []>} : vector<104x32xf32>, vector<32x128xf32>, vector<104x128xf32> -> vector<104x128xf32>
    %26 = arith.mulf %25, %14 : vector<104x128xf32>
    %cst_12 = arith.constant dense<0.000000e+00> : vector<104x16xf32>
    %27 = tpu.matmul %26, %1, %cst_12 {dimension_numbers = #tpu.dot_dimension_numbers<[1], [0], [0], [1], [0, 0, 1, 1], [], []>} : vector<104x128xf32>, vector<128x16xf32>, vector<104x16xf32> -> vector<104x16xf32>
    %28 = arith.mulf %27, %27 : vector<104x16xf32>
    %cst_13 = arith.constant dense<0.000000e+00> : vector<104xf32>
    %29 = vector.multi_reduction <add>, %28, %cst_13 [1] : vector<104x16xf32> to vector<104xf32>
    %30 = vector.shape_cast %29 : vector<104xf32> to vector<104x1xf32>
    %cst_14 = arith.constant 1.000000e-24 : f32
    %31 = vector.broadcast %cst_14 : f32 to vector<104x1xf32>
    %32 = arith.maximumf %30, %31 : vector<104x1xf32>
    %33 = math.rsqrt %32 : vector<104x1xf32>
    %34 = vector.broadcast %33 : vector<104x1xf32> to vector<104x16xf32>
    %35 = arith.mulf %27, %34 : vector<104x16xf32>
    %c0_15 = arith.constant 0 : index
    %c0_16 = arith.constant 0 : index
    %36 = vector.load %arg2[%c0_15, %c0_16] : memref<104x32xf32, #tpu.memory_space<vmem>>, vector<104x32xf32>
    %cst_17 = arith.constant dense<0.000000e+00> : vector<104x128xf32>
    %37 = tpu.matmul %36, %0, %cst_17 {dimension_numbers = #tpu.dot_dimension_numbers<[1], [0], [0], [1], [0, 0, 1, 1], [], []>} : vector<104x32xf32>, vector<32x128xf32>, vector<104x128xf32> -> vector<104x128xf32>
    %38 = arith.mulf %37, %14 : vector<104x128xf32>
    %cst_18 = arith.constant dense<0.000000e+00> : vector<104x16xf32>
    %39 = tpu.matmul %38, %1, %cst_18 {dimension_numbers = #tpu.dot_dimension_numbers<[1], [0], [0], [1], [0, 0, 1, 1], [], []>} : vector<104x128xf32>, vector<128x16xf32>, vector<104x16xf32> -> vector<104x16xf32>
    %40 = arith.mulf %39, %39 : vector<104x16xf32>
    %cst_19 = arith.constant dense<0.000000e+00> : vector<104xf32>
    %41 = vector.multi_reduction <add>, %40, %cst_19 [1] : vector<104x16xf32> to vector<104xf32>
    %42 = vector.shape_cast %41 : vector<104xf32> to vector<104x1xf32>
    %cst_20 = arith.constant 1.000000e-24 : f32
    %43 = vector.broadcast %cst_20 : f32 to vector<104x1xf32>
    %44 = arith.maximumf %42, %43 : vector<104x1xf32>
    %45 = math.rsqrt %44 : vector<104x1xf32>
    %46 = vector.broadcast %45 : vector<104x1xf32> to vector<104x16xf32>
    %47 = arith.mulf %39, %46 : vector<104x16xf32>
    %c0_21 = arith.constant 0 : index
    %c0_22 = arith.constant 0 : index
    %48 = vector.load %arg3[%c0_21, %c0_22] : memref<104x32xf32, #tpu.memory_space<vmem>>, vector<104x32xf32>
    %cst_23 = arith.constant dense<0.000000e+00> : vector<104x128xf32>
    %49 = tpu.matmul %48, %0, %cst_23 {dimension_numbers = #tpu.dot_dimension_numbers<[1], [0], [0], [1], [0, 0, 1, 1], [], []>} : vector<104x32xf32>, vector<32x128xf32>, vector<104x128xf32> -> vector<104x128xf32>
    %50 = arith.mulf %49, %14 : vector<104x128xf32>
    %cst_24 = arith.constant dense<0.000000e+00> : vector<104x16xf32>
    %51 = tpu.matmul %50, %1, %cst_24 {dimension_numbers = #tpu.dot_dimension_numbers<[1], [0], [0], [1], [0, 0, 1, 1], [], []>} : vector<104x128xf32>, vector<128x16xf32>, vector<104x16xf32> -> vector<104x16xf32>
    %52 = arith.mulf %51, %51 : vector<104x16xf32>
    %cst_25 = arith.constant dense<0.000000e+00> : vector<104xf32>
    %53 = vector.multi_reduction <add>, %52, %cst_25 [1] : vector<104x16xf32> to vector<104xf32>
    %54 = vector.shape_cast %53 : vector<104xf32> to vector<104x1xf32>
    %cst_26 = arith.constant 1.000000e-24 : f32
    %55 = vector.broadcast %cst_26 : f32 to vector<104x1xf32>
    %56 = arith.maximumf %54, %55 : vector<104x1xf32>
    %57 = math.rsqrt %56 : vector<104x1xf32>
    %58 = vector.broadcast %57 : vector<104x1xf32> to vector<104x16xf32>
    %59 = arith.mulf %51, %58 : vector<104x16xf32>
    %60 = arith.addf %35, %23 : vector<104x16xf32>
    %61 = arith.subf %60, %47 : vector<104x16xf32>
    %62 = arith.mulf %61, %61 : vector<104x16xf32>
    %cst_27 = arith.constant dense<0.000000e+00> : vector<104xf32>
    %63 = vector.multi_reduction <add>, %62, %cst_27 [1] : vector<104x16xf32> to vector<104xf32>
    %64 = vector.shape_cast %63 : vector<104xf32> to vector<104x1xf32>
    %65 = arith.addf %35, %23 : vector<104x16xf32>
    %66 = arith.subf %65, %59 : vector<104x16xf32>
    %67 = arith.mulf %66, %66 : vector<104x16xf32>
    %cst_28 = arith.constant dense<0.000000e+00> : vector<104xf32>
    %68 = vector.multi_reduction <add>, %67, %cst_28 [1] : vector<104x16xf32> to vector<104xf32>
    %69 = vector.shape_cast %68 : vector<104xf32> to vector<104x1xf32>
    %c104_i32 = arith.constant 104 : i32
    %70 = arith.muli %arg0, %c104_i32 : i32
    %71 = tpu.iota {dimensions = array<i32: 0>} : vector<104x1xi32>
    %72 = vector.broadcast %70 : i32 to vector<104x1xi32>
    %73 = arith.addi %72, %71 : vector<104x1xi32>
    %c300_i32 = arith.constant 300 : i32
    %74 = vector.broadcast %c300_i32 : i32 to vector<104x1xi32>
    %75 = arith.cmpi slt, %73, %74 : vector<104x1xi32>
    %76 = arith.extui %75 : vector<104x1xi1> to vector<104x1xi32>
    %77 = arith.sitofp %76 : vector<104x1xi32> to vector<104x1xf32>
    %78 = arith.subf %69, %64 : vector<104x1xf32>
    %cst_29 = arith.constant 0.000000e+00 : f32
    %79 = vector.broadcast %cst_29 : f32 to vector<104x1xf32>
    %80 = arith.minimumf %78, %79 : vector<104x1xf32>
    %81 = math.absf %78 : vector<104x1xf32>
    %cst_30 = arith.constant 0.000000e+00 : f32
    %82 = vector.broadcast %cst_30 : f32 to vector<104x1xf32>
    %83 = arith.subf %82, %81 : vector<104x1xf32>
    %84 = math.exp %83 : vector<104x1xf32>
    %cst_31 = arith.constant 1.000000e+00 : f32
    %85 = vector.broadcast %cst_31 : f32 to vector<104x1xf32>
    %86 = arith.addf %85, %84 : vector<104x1xf32>
    %87 = math.log %86 : vector<104x1xf32>
    %88 = arith.subf %80, %87 : vector<104x1xf32>
    %cst_32 = arith.constant 0.000000e+00 : f32
    %89 = vector.broadcast %cst_32 : f32 to vector<104x1xf32>
    %90 = arith.subf %89, %88 : vector<104x1xf32>
    %91 = arith.mulf %77, %90 : vector<104x1xf32>
    %92 = vector.shape_cast %91 : vector<104x1xf32> to vector<1x104x1xf32>
    %cst_33 = arith.constant dense<0.000000e+00> : vector<1xf32>
    %93 = vector.multi_reduction <add>, %92, %cst_33 [1, 2] : vector<1x104x1xf32> to vector<1xf32>
    %94 = vector.shape_cast %93 : vector<1xf32> to vector<1x1x1xf32>
    %95 = vector.extract %94[0, 0, 0] : f32 from vector<1x1x1xf32>
    %96 = arith.mulf %35, %35 : vector<104x16xf32>
    %cst_34 = arith.constant dense<0.000000e+00> : vector<104xf32>
    %97 = vector.multi_reduction <add>, %96, %cst_34 [1] : vector<104x16xf32> to vector<104xf32>
    %98 = vector.shape_cast %97 : vector<104xf32> to vector<104x1xf32>
    %99 = arith.mulf %23, %23 : vector<104x16xf32>
    %cst_35 = arith.constant dense<0.000000e+00> : vector<104xf32>
    %100 = vector.multi_reduction <add>, %99, %cst_35 [1] : vector<104x16xf32> to vector<104xf32>
    %101 = vector.shape_cast %100 : vector<104xf32> to vector<104x1xf32>
    %102 = arith.addf %98, %101 : vector<104x1xf32>
    %103 = arith.mulf %47, %47 : vector<104x16xf32>
    %cst_36 = arith.constant dense<0.000000e+00> : vector<104xf32>
    %104 = vector.multi_reduction <add>, %103, %cst_36 [1] : vector<104x16xf32> to vector<104xf32>
    %105 = vector.shape_cast %104 : vector<104xf32> to vector<104x1xf32>
    %106 = arith.addf %102, %105 : vector<104x1xf32>
    %107 = arith.mulf %59, %59 : vector<104x16xf32>
    %cst_37 = arith.constant dense<0.000000e+00> : vector<104xf32>
    %108 = vector.multi_reduction <add>, %107, %cst_37 [1] : vector<104x16xf32> to vector<104xf32>
    %109 = vector.shape_cast %108 : vector<104xf32> to vector<104x1xf32>
    %110 = arith.addf %106, %109 : vector<104x1xf32>
    %cst_38 = arith.constant 5.000000e-01 : f32
    %111 = vector.broadcast %cst_38 : f32 to vector<104x1xf32>
    %112 = arith.mulf %111, %110 : vector<104x1xf32>
    %113 = arith.mulf %77, %112 : vector<104x1xf32>
    %114 = vector.shape_cast %113 : vector<104x1xf32> to vector<1x104x1xf32>
    %cst_39 = arith.constant dense<0.000000e+00> : vector<1xf32>
    %115 = vector.multi_reduction <add>, %114, %cst_39 [1, 2] : vector<1x104x1xf32> to vector<1xf32>
    %116 = vector.shape_cast %115 : vector<1xf32> to vector<1x1x1xf32>
    %117 = vector.extract %116[0, 0, 0] : f32 from vector<1x1x1xf32>
    %c0_40 = arith.constant 0 : index
    %c0_41 = arith.constant 0 : index
    %118 = vector.load %arg8[%c0_40, %c0_41] : memref<72x32xf32, #tpu.memory_space<vmem>>, vector<72x32xf32>
    %c0_42 = arith.constant 0 : index
    %c0_43 = arith.constant 0 : index
    %119 = vector.load %arg9[%c0_42, %c0_43] : memref<72x32xf32, #tpu.memory_space<vmem>>, vector<72x32xf32>
    %c0_44 = arith.constant 0 : index
    %c0_45 = arith.constant 0 : index
    %120 = vector.load %arg11[%c0_44, %c0_45] : memref<72x32xf32, #tpu.memory_space<vmem>>, vector<72x32xf32>
    %121 = arith.addf %119, %120 : vector<72x32xf32>
    %c0_46 = arith.constant 0 : index
    %c0_47 = arith.constant 0 : index
    %122 = vector.load %arg10[%c0_46, %c0_47] : memref<72x32xf32, #tpu.memory_space<vmem>>, vector<72x32xf32>
    %c0_48 = arith.constant 0 : index
    %c0_49 = arith.constant 0 : index
    %123 = vector.load %arg12[%c0_48, %c0_49] : memref<72x32xf32, #tpu.memory_space<vmem>>, vector<72x32xf32>
    %124 = arith.addf %122, %123 : vector<72x32xf32>
    %125 = arith.mulf %118, %121 : vector<72x32xf32>
    %cst_50 = arith.constant dense<0.000000e+00> : vector<72xf32>
    %126 = vector.multi_reduction <add>, %125, %cst_50 [1] : vector<72x32xf32> to vector<72xf32>
    %127 = vector.shape_cast %126 : vector<72xf32> to vector<72x1xf32>
    %128 = arith.mulf %118, %124 : vector<72x32xf32>
    %cst_51 = arith.constant dense<0.000000e+00> : vector<72xf32>
    %129 = vector.multi_reduction <add>, %128, %cst_51 [1] : vector<72x32xf32> to vector<72xf32>
    %130 = vector.shape_cast %129 : vector<72xf32> to vector<72x1xf32>
    %c72_i32 = arith.constant 72 : i32
    %131 = arith.muli %arg0, %c72_i32 : i32
    %132 = tpu.iota {dimensions = array<i32: 0>} : vector<72x1xi32>
    %133 = vector.broadcast %131 : i32 to vector<72x1xi32>
    %134 = arith.addi %133, %132 : vector<72x1xi32>
    %c200_i32 = arith.constant 200 : i32
    %135 = vector.broadcast %c200_i32 : i32 to vector<72x1xi32>
    %136 = arith.cmpi slt, %134, %135 : vector<72x1xi32>
    %137 = arith.extui %136 : vector<72x1xi1> to vector<72x1xi32>
    %138 = arith.sitofp %137 : vector<72x1xi32> to vector<72x1xf32>
    %139 = arith.subf %127, %130 : vector<72x1xf32>
    %cst_52 = arith.constant 0.000000e+00 : f32
    %140 = vector.broadcast %cst_52 : f32 to vector<72x1xf32>
    %141 = arith.minimumf %139, %140 : vector<72x1xf32>
    %142 = math.absf %139 : vector<72x1xf32>
    %cst_53 = arith.constant 0.000000e+00 : f32
    %143 = vector.broadcast %cst_53 : f32 to vector<72x1xf32>
    %144 = arith.subf %143, %142 : vector<72x1xf32>
    %145 = math.exp %144 : vector<72x1xf32>
    %cst_54 = arith.constant 1.000000e+00 : f32
    %146 = vector.broadcast %cst_54 : f32 to vector<72x1xf32>
    %147 = arith.addf %146, %145 : vector<72x1xf32>
    %148 = math.log %147 : vector<72x1xf32>
    %149 = arith.subf %141, %148 : vector<72x1xf32>
    %cst_55 = arith.constant 0.000000e+00 : f32
    %150 = vector.broadcast %cst_55 : f32 to vector<72x1xf32>
    %151 = arith.subf %150, %149 : vector<72x1xf32>
    %152 = arith.mulf %138, %151 : vector<72x1xf32>
    %153 = vector.shape_cast %152 : vector<72x1xf32> to vector<1x72x1xf32>
    %cst_56 = arith.constant dense<0.000000e+00> : vector<1xf32>
    %154 = vector.multi_reduction <add>, %153, %cst_56 [1, 2] : vector<1x72x1xf32> to vector<1xf32>
    %155 = vector.shape_cast %154 : vector<1xf32> to vector<1x1x1xf32>
    %156 = vector.extract %155[0, 0, 0] : f32 from vector<1x1x1xf32>
    %157 = arith.mulf %118, %118 : vector<72x32xf32>
    %cst_57 = arith.constant dense<0.000000e+00> : vector<72xf32>
    %158 = vector.multi_reduction <add>, %157, %cst_57 [1] : vector<72x32xf32> to vector<72xf32>
    %159 = vector.shape_cast %158 : vector<72xf32> to vector<72x1xf32>
    %160 = arith.mulf %121, %121 : vector<72x32xf32>
    %cst_58 = arith.constant dense<0.000000e+00> : vector<72xf32>
    %161 = vector.multi_reduction <add>, %160, %cst_58 [1] : vector<72x32xf32> to vector<72xf32>
    %162 = vector.shape_cast %161 : vector<72xf32> to vector<72x1xf32>
    %163 = arith.addf %159, %162 : vector<72x1xf32>
    %164 = arith.mulf %124, %124 : vector<72x32xf32>
    %cst_59 = arith.constant dense<0.000000e+00> : vector<72xf32>
    %165 = vector.multi_reduction <add>, %164, %cst_59 [1] : vector<72x32xf32> to vector<72xf32>
    %166 = vector.shape_cast %165 : vector<72xf32> to vector<72x1xf32>
    %167 = arith.addf %163, %166 : vector<72x1xf32>
    %cst_60 = arith.constant 5.000000e-01 : f32
    %168 = vector.broadcast %cst_60 : f32 to vector<72x1xf32>
    %169 = arith.mulf %168, %167 : vector<72x1xf32>
    %170 = arith.mulf %138, %169 : vector<72x1xf32>
    %171 = vector.shape_cast %170 : vector<72x1xf32> to vector<1x72x1xf32>
    %cst_61 = arith.constant dense<0.000000e+00> : vector<1xf32>
    %172 = vector.multi_reduction <add>, %171, %cst_61 [1, 2] : vector<1x72x1xf32> to vector<1xf32>
    %173 = vector.shape_cast %172 : vector<1xf32> to vector<1x1x1xf32>
    %174 = vector.extract %173[0, 0, 0] : f32 from vector<1x1x1xf32>
    %175 = tpu.iota {dimensions = array<i32: 0>} : vector<8x128xi32>
    %176 = tpu.iota {dimensions = array<i32: 1>} : vector<8x128xi32>
    %c0_i32 = arith.constant 0 : i32
    %177 = vector.broadcast %c0_i32 : i32 to vector<8x128xi32>
    %178 = arith.cmpi eq, %175, %177 : vector<8x128xi32>
    %c-1_i32 = arith.constant -1 : i32
    %179 = vector.broadcast %c-1_i32 : i32 to vector<8x128xi32>
    %180 = arith.select %178, %176, %179 : vector<8x128xi1>, vector<8x128xi32>
    %c0_i32_62 = arith.constant 0 : i32
    %181 = vector.broadcast %c0_i32_62 : i32 to vector<8x128xi32>
    %182 = arith.cmpi eq, %180, %181 : vector<8x128xi32>
    %cst_63 = arith.constant 0.000000e+00 : f32
    %183 = vector.broadcast %95 : f32 to vector<8x128xf32>
    %184 = vector.broadcast %cst_63 : f32 to vector<8x128xf32>
    %185 = arith.select %182, %183, %184 : vector<8x128xi1>, vector<8x128xf32>
    %c1_i32 = arith.constant 1 : i32
    %186 = vector.broadcast %c1_i32 : i32 to vector<8x128xi32>
    %187 = arith.cmpi eq, %180, %186 : vector<8x128xi32>
    %cst_64 = arith.constant 0.000000e+00 : f32
    %188 = vector.broadcast %117 : f32 to vector<8x128xf32>
    %189 = vector.broadcast %cst_64 : f32 to vector<8x128xf32>
    %190 = arith.select %187, %188, %189 : vector<8x128xi1>, vector<8x128xf32>
    %191 = arith.addf %185, %190 : vector<8x128xf32>
    %c2_i32 = arith.constant 2 : i32
    %192 = vector.broadcast %c2_i32 : i32 to vector<8x128xi32>
    %193 = arith.cmpi eq, %180, %192 : vector<8x128xi32>
    %cst_65 = arith.constant 0.000000e+00 : f32
    %194 = vector.broadcast %156 : f32 to vector<8x128xf32>
    %195 = vector.broadcast %cst_65 : f32 to vector<8x128xf32>
    %196 = arith.select %193, %194, %195 : vector<8x128xi1>, vector<8x128xf32>
    %197 = arith.addf %191, %196 : vector<8x128xf32>
    %c3_i32 = arith.constant 3 : i32
    %198 = vector.broadcast %c3_i32 : i32 to vector<8x128xi32>
    %199 = arith.cmpi eq, %180, %198 : vector<8x128xi32>
    %cst_66 = arith.constant 0.000000e+00 : f32
    %200 = vector.broadcast %174 : f32 to vector<8x128xf32>
    %201 = vector.broadcast %cst_66 : f32 to vector<8x128xf32>
    %202 = arith.select %199, %200, %201 : vector<8x128xi1>, vector<8x128xf32>
    %203 = arith.addf %197, %202 : vector<8x128xf32>
    %c0_67 = arith.constant 0 : index
    %c0_68 = arith.constant 0 : index
    %204 = vector.load %arg13[%c0_67, %c0_68] : memref<8x128xf32, #tpu.memory_space<vmem>>, vector<8x128xf32>
    tpu.vector_store %arg13[%c0_67, %c0_68], %203 {strides = array<i32>} : memref<8x128xf32, #tpu.memory_space<vmem>>, vector<8x128xf32>,
    return
  }
  func.func @transform_0(%arg0: i32) -> (i32, i32) {
    %c0_i32 = arith.constant 0 : i32
    %c0_i32_0 = arith.constant 0 : i32
    return %arg0, %c0_i32 : i32, i32
  }
  func.func @transform_1(%arg0: i32) -> (i32, i32) {
    %c0_i32 = arith.constant 0 : i32
    %c0_i32_0 = arith.constant 0 : i32
    return %arg0, %c0_i32 : i32, i32
  }
  func.func @transform_2(%arg0: i32) -> (i32, i32) {
    %c0_i32 = arith.constant 0 : i32
    %c0_i32_0 = arith.constant 0 : i32
    return %arg0, %c0_i32 : i32, i32
  }
  func.func @transform_3(%arg0: i32) -> (i32, i32) {
    %c0_i32 = arith.constant 0 : i32
    %c0_i32_0 = arith.constant 0 : i32
    return %arg0, %c0_i32 : i32, i32
  }
  func.func @transform_4(%arg0: i32) -> (i32, i32) {
    %c0_i32 = arith.constant 0 : i32
    %c0_i32_0 = arith.constant 0 : i32
    return %arg0, %c0_i32 : i32, i32
  }
  func.func @transform_5(%arg0: i32) -> (i32, i32) {
    %c0_i32 = arith.constant 0 : i32
    %c0_i32_0 = arith.constant 0 : i32
    %c0_i32_1 = arith.constant 0 : i32
    return %c0_i32, %c0_i32_0 : i32, i32
  }
  func.func @transform_6(%arg0: i32) -> (i32, i32) {
    %c0_i32 = arith.constant 0 : i32
    %c0_i32_0 = arith.constant 0 : i32
    %c0_i32_1 = arith.constant 0 : i32
    return %c0_i32, %c0_i32_0 : i32, i32
  }
  func.func @transform_7(%arg0: i32) -> (i32, i32) {
    %c0_i32 = arith.constant 0 : i32
    %c0_i32_0 = arith.constant 0 : i32
    return %arg0, %c0_i32 : i32, i32
  }
  func.func @transform_8(%arg0: i32) -> (i32, i32) {
    %c0_i32 = arith.constant 0 : i32
    %c0_i32_0 = arith.constant 0 : i32
    return %arg0, %c0_i32 : i32, i32
  }
  func.func @transform_9(%arg0: i32) -> (i32, i32) {
    %c0_i32 = arith.constant 0 : i32
    %c0_i32_0 = arith.constant 0 : i32
    return %arg0, %c0_i32 : i32, i32
  }
  func.func @transform_10(%arg0: i32) -> (i32, i32) {
    %c0_i32 = arith.constant 0 : i32
    %c0_i32_0 = arith.constant 0 : i32
    return %arg0, %c0_i32 : i32, i32
  }
  func.func @transform_11(%arg0: i32) -> (i32, i32) {
    %c0_i32 = arith.constant 0 : i32
    %c0_i32_0 = arith.constant 0 : i32
    return %arg0, %c0_i32 : i32, i32
  }
  func.func @transform_12(%arg0: i32) -> (i32, i32) {
    %c0_i32 = arith.constant 0 : i32
    %c0_i32_0 = arith.constant 0 : i32
    return %arg0, %c0_i32 : i32, i32
  }
}

</mosaic_0001>

<bundles_post_ra>
// kernel: forward.2
= control target key start
LH: loop header
LB: loop body
LE: loop exit
PB: predicated region body
PF: predicated region fallthrough
CT: control target
= control target key end

     0   :  { %s9042_s29 = smov 0   ;;  %s13003_s0 = inlined_call_operand.vmem [shape: f32[32,128], index: 0, kind: input, shape index: {}]   ;;  %s13004_s1 = inlined_call_operand.vmem [shape: f32[128,16], index: 1, kind: input, shape index: {}]   ;;  %s13005_s2 = inlined_call_operand.vmem [shape: s32[312], index: 2, kind: input, shape index: {}]   ;;  %s13006_s3 = inlined_call_operand.vmem [shape: f32[312,32], index: 3, kind: input, shape index: {}]   ;;  %s13007_s4 = inlined_call_operand.vmem [shape: f32[312,32], index: 4, kind: input, shape index: {}]   ;;  %s13008_s5 = inlined_call_operand.vmem [shape: f32[312,32], index: 5, kind: input, shape index: {}]   ;;  %s13009_s6 = inlined_call_operand.vmem [shape: f32[312,16], index: 6, kind: input, shape index: {}]   ;;  %s13010_s7 = inlined_call_operand.vmem [shape: f32[216,32], index: 7, kind: input, shape index: {}]   ;;  %s13011_s8 = inlined_call_operand.vmem [shape: f32[216,32], index: 8, kind: input, shape index: {}]   ;;  %s13012_s9 = inlined_call_operand.vmem [shape: f32[216,32], index: 9, kind: input, shape index: {}]   ;;  %s13013_s10 = inlined_call_operand.vmem [shape: f32[216,32], index: 10, kind: input, shape index: {}]   ;;  %s13014_s11 = inlined_call_operand.vmem [shape: f32[216,32], index: 11, kind: input, shape index: {}]   ;;  %s13015_s12 = inlined_call_operand.<no memory space> [shape: f32[], index: 12, kind: input, shape index: {}]   ;;  %s13016_s13 = inlined_call_operand.vmem [shape: pred[312], index: 13, kind: input, shape index: {}]   ;;  %s13017_s14 = inlined_call_operand.vmem [shape: pred[312], index: 14, kind: input, shape index: {}]   ;;  %s13018_s15 = inlined_call_operand.vmem [shape: pred[312], index: 15, kind: input, shape index: {}]   ;;  %s13019_s16 = inlined_call_operand.vmem [shape: pred[312], index: 16, kind: input, shape index: {}]   ;;  %s13020_s17 = inlined_call_operand.vmem [shape: pred[216], index: 17, kind: input, shape index: {}]   ;;  %s13021_s18 = inlined_call_operand.vmem [shape: pred[216], index: 18, kind: input, shape index: {}]   ;;  %s13022_s19 = inlined_call_operand.vmem [shape: pred[216], index: 19, kind: input, shape index: {}]   ;;  %s13023_s20 = inlined_call_operand.vmem [shape: pred[216], index: 20, kind: input, shape index: {}]   ;;  %s13024_s21 = inlined_call_operand.vmem [shape: pred[216], index: 21, kind: input, shape index: {}]   ;;  %s13025_s22 = inlined_call_operand.vmem [shape: f32[24,128], index: 22, kind: output, shape index: {}]  }
   0x1   :  { %13265 = sst [smem:[#allocation138_spill]] %s13003_s0  ;;  %v9040_v0 = vstv %s13015_s12 }
   0x2   :  { %13266 = sst [smem:[#allocation139_spill]] %s13004_s1  ;;  %13287 = vst [vmem:[#allocation12_spill] sm:$0xff] %v9040_v0 }
   0x3   :  { %13267 = sst [smem:[#allocation140_spill]] %s13005_s2 }
   0x4   :  { %13268 = sst [smem:[#allocation141_spill]] %s13006_s3 }
   0x5   :  { %13269 = sst [smem:[#allocation142_spill]] %s13007_s4 }
   0x6   :  { %13270 = sst [smem:[#allocation143_spill]] %s13008_s5 }
   0x7   :  { %13271 = sst [smem:[#allocation144_spill]] %s13009_s6 }
   0x8   :  { %13272 = sst [smem:[#allocation145_spill]] %s13010_s7 }
   0x9   :  { %13273 = sst [smem:[#allocation146_spill]] %s13011_s8 }
   0xa   :  { %13274 = sst [smem:[#allocation147_spill]] %s13012_s9 }
   0xb   :  { %13275 = sst [smem:[#allocation148_spill]] %s13013_s10 }
   0xc   :  { %13276 = sst [smem:[#allocation149_spill]] %s13014_s11 }
   0xd   :  { %13277 = sst [smem:[#allocation150_spill]] %s13016_s13 }
   0xe   :  { %13278 = sst [smem:[#allocation151_spill]] %s13017_s14 }
   0xf   :  { %13279 = sst [smem:[#allocation152_spill]] %s13018_s15 }
  0x10   :  { %13280 = sst [smem:[#allocation153_spill]] %s13019_s16 }
  0x11   :  { %13281 = sst [smem:[#allocation154_spill]] %s13020_s17 }
  0x12   :  { %13282 = sst [smem:[#allocation155_spill]] %s13021_s18 }
  0x13   :  { %13283 = sst [smem:[#allocation156_spill]] %s13022_s19 }
  0x14   :  { %13284 = sst [smem:[#allocation157_spill]] %s13023_s20 }
  0x15   :  { %13285 = sst [smem:[#allocation158_spill]] %s13024_s21 }
  0x16   :  { %13286 = sst [smem:[#allocation159_spill]] %s13025_s22 }
  0x17 LB: > { %v13288_v0 = vld [vmem:[#allocation12_spill] sm:$0xff]  ;;  %13289 = sst [smem:[#allocation13_spill]] %s8917_s29  ;;  %s9048_s30 = sadd.s32 4294967295, %s8917_s29   ;;  %s8917_s29 = sphi %s9042_s29, %s41_s29  }
  0x18   : > { %13290 = sst [smem:[#allocation14_spill]] %s9048_s30  ;;  %p7844_p0 = scmp.ge.s32.totalorder %s8917_s29, 1 }
  0x19   : > { %p887_p1 = scmp.lt.s32.totalorder %s8917_s29, 4 }
  0x1b   : > { %p888_p2 = pnand %p7844_p0, %p887_p1 }
  0x1d   : > { %891 = sbr.rel (%p888_p2) target bundleno = 1638 (0x666), region = 104 }
  0x22   : > { %s9053_s4 = smul.u32 104, %s9048_s30  ;;  %s13292_s23 = sld [smem:[#allocation138_spill]]  ;;  %v13215_v2 = vmov 0.0   ;;  %vm8920_vm0 = vmmov 0   ;;  %v8921_v15 = vmov 0   ;;  %vm4925_vm1 = vcmask 261120  }
  0x23   : > { %8290 = vmatprep.subr.mxu0 %v13215_v2  ;;  %8644 = vmatprep.subr.mxu1 %v13215_v2  ;;  %s13295_s15 = sld [smem:[#allocation152_spill]] }
  0x24   : > { %13291 = sst [smem:[#allocation15_spill]] %s9053_s4  ;;  %s1238_s24 = sshrl.u32 %s9053_s4, 9  ;;  %8298 = vmatprep.mubr.msk.f32.mxu0 %vm8920_vm0, %v13215_v2  ;;  %8378 = vmatprep.mubr.msk.f32.mxu1 %vm8920_vm0, %v13215_v2 }
  0x25   : > { %s1241_s6 = sand.u32 511, %s9053_s4   ;;  %p7856_p3 = scmp.gt.s32.totalorder %s1238_s24, 0  ;;  %8697 = vset.pattern.permute.xlu1 %v8921_v15  ;;  %8698 = vset.pattern.permute.xlu0 %v8921_v15 }
  0x26   : > { %s9065_s25 = sshrl.u32 %s1241_s6, 7  ;;  %s1243_s27 = sand.u32 127, %s1241_s6  }
  0x27   : > { %s9072_s3 = sshrl.u32 %s9065_s25, 2  ;;  %s13780_s24 = smov (%p7856_p3, %s1238_s24), 0 }
  0x28   : > { %v4606_v1 = vld [vmem:[%s13292_s23 + $0x18] sm:$0xff]  ;;  %v4605_v3 = vld [vmem:[%s13292_s23 + $0x10] sm:$0xff]  ;;  %v4604_v4 = vld [vmem:[%s13292_s23 + $0x8] sm:$0xff]  ;;  %13293 = sst [smem:[#allocation16_spill]] %s9072_s3  ;;  %s1246_s28 = sand.u32 3, %s9065_s25  }
  0x29   : > { %8291 = vmatpush3.msra.mxu0 %v4606_v1  ;;  %13294 = sst [smem:[#allocation17_spill]] %s13780_s24  ;;  %s1253_s12 = sand.u32 255, %s1243_s27  ;;  %v1249_v5 = vstv %s1246_s28  ;;  %v4603_v8 = vld [vmem:[%s13292_s23] sm:$0xff] }
  0x2a   : > { %8292 = vmatprep.subr.mxu0 %v13215_v2  ;;  %s1244_s5 = scalar_lea.vmem %s13295_s15, %s13780_s24  ;;  %s9082_s26 = sor.u32 256, %s1253_s12  ;;  %v9086_v6 = vshll.u32 %v1249_v5, 3 }
  0x2b   : > { %8293 = vmatpush3.msra.mxu0 %v4605_v3  ;;  %13296 = sst [smem:[#allocation18_spill]] %s9082_s26  ;;  %s1247_s6 = scalar_lea.vmem %s1244_s5, %s9072_s3 }
  0x2c   : > { %8294 = vmatprep.subr.mxu0 %v13215_v2  ;;  %s1300_s2 = sadd.s32 16, %s9053_s4  ;;  %v1248_v7 = vld [vmem:[%s1247_s6] ss:$0 sm:$0xff]  ;;  %s7961_s18 = sshll.u32 %s13780_s24, 2 }
  0x2d   : > { %8295 = vmatpush3.msra.mxu0 %v4604_v4  ;;  %s1301_s29 = sshrl.u32 %s1300_s2, 9  ;;  %s1304_s22 = sand.u32 511, %s1300_s2   ;;  %v1251_v9 = vshra.s32 %v1248_v7, %v9086_v6 }
  0x2e   : > { %8296 = vmatprep.subr.mxu0 %v13215_v2  ;;  %p7860_p4 = scmp.gt.s32.totalorder %s1301_s29, 0  ;;  %s9093_s27 = sshrl.u32 %s1304_s22, 7 }
  0x2f   : > { %8297 = vmatpush3.msra.mxu0 %v4603_v8  ;;  %s1306_s28 = sand.u32 127, %s1304_s22   ;;  %s9098_s12 = sshrl.u32 %s9093_s27, 2  ;;  %v1252_v10 = vand.u32 255, %v1251_v9 }
  0x30   : > { %13297 = sst [smem:[#allocation19_spill]] %s9098_s12  ;;  %8337 = vmatprep.subr.mxu0 %v13215_v2  ;;  %s13782_s29 = smov (%p7860_p4, %s1301_s29), 0 }
  0x31   : > { %13298 = sst [smem:[#allocation20_spill]] %s13782_s29  ;;  %s1309_s7 = sand.u32 3, %s9093_s27   ;;  %1256 = vbcast.lane.b32.xlu0 %v1252_v10, %s9082_s26 }
  0x32   : > { %s1316_s9 = sand.u32 255, %s1306_s28  ;;  %s1307_s5 = scalar_lea.vmem %s13295_s15, %s13782_s29  ;;  %v1312_v11 = vstv %s1309_s7 }
  0x33   : > { %s9111_s22 = sor.u32 256, %s1316_s9  ;;  %s1310_s6 = scalar_lea.vmem %s1307_s5, %s9098_s12  ;;  %v9114_v12 = vshll.u32 %v1312_v11, 3 }
  0x34   : > { %13299 = sst [smem:[#allocation21_spill]] %s9111_s22  ;;  %s1268_s2 = sadd.s32 8, %s9053_s4  ;;  %v1311_v13 = vld [vmem:[%s1310_s6] ss:$0 sm:$0xff] }
  0x35   : > { %s1269_s11 = sshrl.u32 %s1268_s2, 9  ;;  %s1272_s8 = sand.u32 511, %s1268_s2   ;;  %v1314_v14 = vshra.s32 %v1311_v13, %v9114_v12 }
  0x36   : > { %p7858_p5 = scmp.gt.s32.totalorder %s1269_s11, 0  ;;  %s9118_s28 = sshrl.u32 %s1272_s8, 7 }
  0x37   : > { %s1274_s7 = sand.u32 127, %s1272_s8   ;;  %s9121_s9 = sshrl.u32 %s9118_s28, 2  ;;  %v1315_v16 = vand.u32 255, %v1314_v14 }
  0x38   : > { %13300 = sst [smem:[#allocation22_spill]] %s9121_s9  ;;  %s13784_s11 = smov (%p7858_p5, %s1269_s11), 0 }
  0x39   : > { %13301 = sst [smem:[#allocation23_spill]] %s13784_s11  ;;  %s1277_s0 = sand.u32 3, %s9118_s28   ;;  %1319 = vbcast.lane.b32.xlu1 %v1315_v16, %s9111_s22 }
  0x3a   : > { %s1284_s1 = sand.u32 255, %s1274_s7  ;;  %s1275_s2 = scalar_lea.vmem %s13295_s15, %s13784_s11  ;;  %v1280_v17 = vstv %s1277_s0 }
  0x3b   : > { %s9131_s8 = sor.u32 256, %s1284_s1  ;;  %s1278_s10 = scalar_lea.vmem %s1275_s2, %s9121_s9  ;;  %v9134_v18 = vshll.u32 %v1280_v17, 3 }
  0x3c   : > { %13302 = sst [smem:[#allocation24_spill]] %s9131_s8  ;;  %v1279_v19 = vld [vmem:[%s1278_s10] ss:$0 sm:$0xff]  ;;  %s7963_s17 = sshll.u32 %s13784_s11, 2 }
  0x3d   : > { %s13303_s20 = sld [smem:[#allocation140_spill]]  ;;  %v1282_v20 = vshra.s32 %v1279_v19, %v9134_v18  ;;  %s7965_s23 = sshll.u32 %s13782_s29, 2 }
  0x3e   : > { %s1396_s10 = sadd.s32 40, %s9053_s4  ;;  %s13346_s14 = sld [smem:[#allocation151_spill]] }
  0x3f   : > { %v1283_v22 = vand.u32 255, %v1282_v20 }
  0x41   : > { %1287 = vbcast.lane.b32.xlu0 %v1283_v22, %s9131_s8 }
  0x43   : > { %s2904_s21 = scalar_lea.vmem %s13303_s20, %s7961_s18  ;;  %s2924_s1 = scalar_lea.vmem %s13303_s20, %s7963_s17 }
  0x44   : > { %s2906_s5 = scalar_lea.vmem %s2904_s21, %s9065_s25  ;;  %s2926_s2 = scalar_lea.vmem %s2924_s1, %s9118_s28 }
  0x45   : > { %v2907_v21 = vld [vmem:[%s2906_s5] ss:$0 sm:$0xff]  ;;  %s2945_s19 = scalar_lea.vmem %s13303_s20, %s7965_s23  ;;  %s1332_s18 = sadd.s32 24, %s9053_s4 }
  0x46   : > { %2911 = vbcast.lane.b32.xlu1 %v2907_v21, %s9082_s26  ;;  %s2947_s7 = scalar_lea.vmem %s2945_s19, %s9093_s27  ;;  %s1333_s13 = sshrl.u32 %s1332_s18, 9  ;;  %v2927_v24 = vld [vmem:[%s2926_s2] ss:$0 sm:$0xff] }
  0x47   : > { %v2948_v23 = vld [vmem:[%s2947_s7] ss:$0 sm:$0xff]  ;;  %p7862_p6 = scmp.gt.s32.totalorder %s1333_s13, 0  ;;  %s1336_s21 = sand.u32 511, %s1332_s18   ;;  %2931 = vbcast.lane.b32.xlu0 %v2927_v24, %s9131_s8 }
  0x48   : > { %s9155_s17 = sshrl.u32 %s1336_s21, 7  ;;  %s1338_s25 = sand.u32 127, %s1336_s21  }
  0x49   : > { %13304 = sst [smem:[#allocation25_spill]] %s9155_s17  ;;  %s13786_s13 = smov (%p7862_p6, %s1333_s13), 0 }
  0x4a   : > { %2952 = vbcast.lane.b32.xlu1 %v2948_v23, %s9111_s22  ;;  %13305 = sst [smem:[#allocation26_spill]] %s13786_s13  ;;  %s9161_s16 = sshrl.u32 %s9155_s17, 2 }
  0x4b   : > { %13306 = sst [smem:[#allocation27_spill]] %s9161_s16  ;;  %s1341_s23 = sand.u32 3, %s9155_s17  }
  0x4c   : > { %s1339_s5 = scalar_lea.vmem %s13295_s15, %s13786_s13  ;;  %v1344_v25 = vstv %s1341_s23  ;;  %s1348_s6 = sand.u32 255, %s1338_s25 }
  0x4d   : > { %s1342_s0 = scalar_lea.vmem %s1339_s5, %s9161_s16  ;;  %v9170_v26 = vshll.u32 %v1344_v25, 3  ;;  %s9172_s1 = sor.u32 256, %s1348_s6 }
  0x4e   : > { %13307 = sst [smem:[#allocation28_spill]] %s9172_s1  ;;  %v1343_v27 = vld [vmem:[%s1342_s0] ss:$0 sm:$0xff]  ;;  %s1364_s2 = sadd.s32 32, %s9053_s4 }
  0x4f   : > { %v1346_v28 = vshra.s32 %v1343_v27, %v9170_v26  ;;  %s1365_s19 = sshrl.u32 %s1364_s2, 9  ;;  %s1368_s18 = sand.u32 511, %s1364_s2  }
  0x50   : > { %p7864_p7 = scmp.gt.s32.totalorder %s1365_s19, 0  ;;  %s9177_s7 = sshrl.u32 %s1368_s18, 7 }
  0x51   : > { %13308 = sst [smem:[#allocation29_spill]] %s9177_s7  ;;  %v1347_v29 = vand.u32 255, %v1346_v28  ;;  %s1370_s21 = sand.u32 127, %s1368_s18  }
  0x52   : > { %s9180_s25 = sshrl.u32 %s9177_s7, 2  ;;  %s13788_s19 = smov (%p7864_p7, %s1365_s19), 0 }
  0x53   : > { %13309 = sst [smem:[#allocation30_spill]] %s9180_s25  ;;  %1351 = vbcast.lane.b32.xlu0 %v1347_v29, %s9172_s1  ;;  %s1373_s23 = sand.u32 3, %s9177_s7  }
  0x54   : > { %13310 = sst [smem:[#allocation31_spill]] %s13788_s19  ;;  %s1380_s27 = sand.u32 255, %s1370_s21  ;;  %v1376_v30 = vstv %s1373_s23 }
  0x55   : > { %s1371_s6 = scalar_lea.vmem %s13295_s15, %s13788_s19  ;;  %s9190_s0 = sor.u32 256, %s1380_s27  ;;  %v9193_v31 = vshll.u32 %v1376_v30, 3 }
  0x56   : > { %13311 = sst [smem:[#allocation32_spill]] %s9190_s0  ;;  %s1374_s2 = scalar_lea.vmem %s1371_s6, %s9180_s25 }
  0x57   : > { %s1397_s18 = sshrl.u32 %s1396_s10, 9  ;;  %v1375_v32 = vld [vmem:[%s1374_s2] ss:$0 sm:$0xff]  ;;  %s1400_s17 = sand.u32 511, %s1396_s10  }
  0x58   : > { %p7866_p8 = scmp.gt.s32.totalorder %s1397_s18, 0  ;;  %v1378_v33 = vshra.s32 %v1375_v32, %v9193_v31  ;;  %s9196_s21 = sshrl.u32 %s1400_s17, 7 }
  0x59   : > { %13312 = sst [smem:[#allocation33_spill]] %s9196_s21  ;;  %s1402_s28 = sand.u32 127, %s1400_s17  }
  0x5a   : > { %s13790_s18 = smov (%p7866_p8, %s1397_s18), 0  ;;  %v1379_v34 = vand.u32 255, %v1378_v33  ;;  %s9201_s23 = sshrl.u32 %s9196_s21, 2 }
  0x5b   : > { %13313 = sst [smem:[#allocation34_spill]] %s13790_s18  ;;  %s1405_s27 = sand.u32 3, %s9196_s21  }
  0x5c   : > { %13314 = sst [smem:[#allocation35_spill]] %s9201_s23  ;;  %s1403_s10 = scalar_lea.vmem %s13295_s15, %s13790_s18  ;;  %v1408_v35 = vstv %s1405_s27  ;;  %1383 = vbcast.lane.b32.xlu1 %v1379_v34, %s9190_s0 }
  0x5d   : > { %s1412_s2 = sand.u32 255, %s1402_s28  ;;  %s1406_s7 = scalar_lea.vmem %s1403_s10, %s9201_s23  ;;  %v9210_v36 = vshll.u32 %v1408_v35, 3 }
  0x5e   : > { %s9212_s20 = sor.u32 256, %s1412_s2  ;;  %v1407_v37 = vld [vmem:[%s1406_s7] ss:$0 sm:$0xff]  ;;  %s1428_s17 = sadd.s32 48, %s9053_s4 }
  0x5f   : > { %13315 = sst [smem:[#allocation36_spill]] %s9212_s20  ;;  %s1460_s1 = sadd.s32 56, %s9053_s4  ;;  %v1410_v38 = vshra.s32 %v1407_v37, %v9210_v36 }
  0x60   : > { %s1429_s22 = sshrl.u32 %s1428_s17, 9  ;;  %s1432_s21 = sand.u32 511, %s1428_s17  }
  0x61   : > { %p7868_p9 = scmp.gt.s32.totalorder %s1429_s22, 0  ;;  %s9217_s8 = sshrl.u32 %s1432_s21, 7  ;;  %v1411_v39 = vand.u32 255, %v1410_v38 }
  0x62   : > { %13316 = sst [smem:[#allocation37_spill]] %s9217_s8  ;;  %s1434_s28 = sand.u32 127, %s1432_s21  }
  0x63   : > { %s9220_s27 = sshrl.u32 %s9217_s8, 2  ;;  %s13792_s22 = smov (%p7868_p9, %s1429_s22), 0  ;;  %1415 = vbcast.lane.b32.xlu0 %v1411_v39, %s9212_s20 }
  0x64   : > { %13317 = sst [smem:[#allocation38_spill]] %s9220_s27  ;;  %s1437_s7 = sand.u32 3, %s9217_s8  }
  0x65   : > { %13318 = sst [smem:[#allocation39_spill]] %s13792_s22  ;;  %s1444_s5 = sand.u32 255, %s1434_s28  ;;  %v1440_v40 = vstv %s1437_s7 }
  0x66   : > { %s1435_s2 = scalar_lea.vmem %s13295_s15, %s13792_s22  ;;  %s9230_s17 = sor.u32 256, %s1444_s5  ;;  %v9233_v41 = vshll.u32 %v1440_v40, 3 }
  0x67   : > { %13319 = sst [smem:[#allocation40_spill]] %s9230_s17  ;;  %s1438_s0 = scalar_lea.vmem %s1435_s2, %s9220_s27 }
  0x68   : > { %s1461_s21 = sshrl.u32 %s1460_s1, 9  ;;  %v1439_v42 = vld [vmem:[%s1438_s0] ss:$0 sm:$0xff]  ;;  %s1464_s26 = sand.u32 511, %s1460_s1  }
  0x69   : > { %p7870_p10 = scmp.gt.s32.totalorder %s1461_s21, 0  ;;  %v1442_v43 = vshra.s32 %v1439_v42, %v9233_v41  ;;  %s9236_s28 = sshrl.u32 %s1464_s26, 7 }
  0x6a   : > { %13320 = sst [smem:[#allocation41_spill]] %s9236_s28  ;;  %s1466_s6 = sand.u32 127, %s1464_s26  }
  0x6b   : > { %s13794_s21 = smov (%p7870_p10, %s1461_s21), 0  ;;  %v1443_v44 = vand.u32 255, %v1442_v43  ;;  %s9241_s7 = sshrl.u32 %s9236_s28, 2 }
  0x6c   : > { %13321 = sst [smem:[#allocation42_spill]] %s13794_s21  ;;  %s1469_s5 = sand.u32 3, %s9236_s28  }
  0x6d   : > { %13322 = sst [smem:[#allocation43_spill]] %s9241_s7  ;;  %s1467_s1 = scalar_lea.vmem %s13295_s15, %s13794_s21  ;;  %v1472_v45 = vstv %s1469_s5  ;;  %1447 = vbcast.lane.b32.xlu1 %v1443_v44, %s9230_s17 }
  0x6e   : > { %s1476_s2 = sand.u32 255, %s1466_s6  ;;  %s1470_s8 = scalar_lea.vmem %s1467_s1, %s9241_s7  ;;  %v9250_v46 = vshll.u32 %v1472_v45, 3 }
  0x6f   : > { %s9252_s20 = sor.u32 256, %s1476_s2  ;;  %v1471_v47 = vld [vmem:[%s1470_s8] ss:$0 sm:$0xff]  ;;  %s1492_s26 = sadd.s32 64, %s9053_s4 }
  0x70   : > { %13323 = sst [smem:[#allocation44_spill]] %s9252_s20  ;;  %s1524_s27 = sadd.s32 72, %s9053_s4  ;;  %v1474_v48 = vshra.s32 %v1471_v47, %v9250_v46 }
  0x71   : > { %s1493_s23 = sshrl.u32 %s1492_s26, 9  ;;  %s1496_s28 = sand.u32 511, %s1492_s26  }
  0x72   : > { %p7872_p11 = scmp.gt.s32.totalorder %s1493_s23, 0  ;;  %s9257_s22 = sshrl.u32 %s1496_s28, 7  ;;  %v1475_v49 = vand.u32 255, %v1474_v48 }
  0x73   : > { %13324 = sst [smem:[#allocation45_spill]] %s9257_s22  ;;  %s1498_s6 = sand.u32 127, %s1496_s28  }
  0x74   : > { %s9260_s5 = sshrl.u32 %s9257_s22, 2  ;;  %s13796_s23 = smov (%p7872_p11, %s1493_s23), 0  ;;  %1479 = vbcast.lane.b32.xlu0 %v1475_v49, %s9252_s20 }
  0x75   : > { %13325 = sst [smem:[#allocation46_spill]] %s9260_s5  ;;  %s1501_s8 = sand.u32 3, %s9257_s22  }
  0x76   : > { %13326 = sst [smem:[#allocation47_spill]] %s13796_s23  ;;  %s1508_s0 = sand.u32 255, %s1498_s6  ;;  %v1504_v50 = vstv %s1501_s8 }
  0x77   : > { %s1499_s2 = scalar_lea.vmem %s13295_s15, %s13796_s23  ;;  %s9270_s26 = sor.u32 256, %s1508_s0  ;;  %v9273_v51 = vshll.u32 %v1504_v50, 3 }
  0x78   : > { %13327 = sst [smem:[#allocation48_spill]] %s9270_s26  ;;  %s1502_s17 = scalar_lea.vmem %s1499_s2, %s9260_s5 }
  0x79   : > { %s1525_s28 = sshrl.u32 %s1524_s27, 9  ;;  %v1503_v52 = vld [vmem:[%s1502_s17] ss:$0 sm:$0xff]  ;;  %s1528_s7 = sand.u32 511, %s1524_s27  }
  0x7a   : > { %p7874_p12 = scmp.gt.s32.totalorder %s1525_s28, 0  ;;  %v1506_v53 = vshra.s32 %v1503_v52, %v9273_v51  ;;  %s9276_s6 = sshrl.u32 %s1528_s7, 7 }
  0x7b   : > { %13328 = sst [smem:[#allocation49_spill]] %s9276_s6  ;;  %s1530_s10 = sand.u32 127, %s1528_s7  }
  0x7c   : > { %s13798_s28 = smov (%p7874_p12, %s1525_s28), 0  ;;  %v1507_v54 = vand.u32 255, %v1506_v53  ;;  %s9281_s8 = sshrl.u32 %s9276_s6, 2 }
  0x7d   : > { %13329 = sst [smem:[#allocation50_spill]] %s13798_s28  ;;  %s1533_s0 = sand.u32 3, %s9276_s6  }
  0x7e   : > { %13330 = sst [smem:[#allocation51_spill]] %s9281_s8  ;;  %s1531_s27 = scalar_lea.vmem %s13295_s15, %s13798_s28  ;;  %v1536_v55 = vstv %s1533_s0  ;;  %1511 = vbcast.lane.b32.xlu1 %v1507_v54, %s9270_s26 }
  0x7f   : > { %s1540_s2 = sand.u32 255, %s1530_s10  ;;  %s1534_s22 = scalar_lea.vmem %s1531_s27, %s9281_s8  ;;  %v9290_v56 = vshll.u32 %v1536_v55, 3 }
  0x80   : > { %s9292_s20 = sor.u32 256, %s1540_s2  ;;  %v1535_v57 = vld [vmem:[%s1534_s22] ss:$0 sm:$0xff]  ;;  %s1556_s7 = sadd.s32 80, %s9053_s4 }
  0x81   : > { %13331 = sst [smem:[#allocation52_spill]] %s9292_s20  ;;  %s1588_s5 = sadd.s32 88, %s9053_s4  ;;  %v1538_v58 = vshra.s32 %v1535_v57, %v9290_v56 }
  0x82   : > { %s1557_s23 = sshrl.u32 %s1556_s7, 9  ;;  %s1560_s6 = sand.u32 511, %s1556_s7  }
  0x83   : > { %p7876_p13 = scmp.gt.s32.totalorder %s1557_s23, 0  ;;  %s9297_s21 = sshrl.u32 %s1560_s6, 7  ;;  %v1539_v59 = vand.u32 255, %v1538_v58 }
  0x84   : > { %13332 = sst [smem:[#allocation53_spill]] %s9297_s21  ;;  %s1562_s10 = sand.u32 127, %s1560_s6  }
  0x85   : > { %s9300_s0 = sshrl.u32 %s9297_s21, 2  ;;  %s13800_s23 = smov (%p7876_p13, %s1557_s23), 0  ;;  %1543 = vbcast.lane.b32.xlu0 %v1539_v59, %s9292_s20 }
  0x86   : > { %13333 = sst [smem:[#allocation54_spill]] %s9300_s0  ;;  %s1565_s22 = sand.u32 3, %s9297_s21  }
  0x87   : > { %13334 = sst [smem:[#allocation55_spill]] %s13800_s23  ;;  %s1572_s17 = sand.u32 255, %s1562_s10  ;;  %v1568_v60 = vstv %s1565_s22 }
  0x88   : > { %s1563_s2 = scalar_lea.vmem %s13295_s15, %s13800_s23  ;;  %s9310_s7 = sor.u32 256, %s1572_s17  ;;  %v9313_v61 = vshll.u32 %v1568_v60, 3 }
  0x89   : > { %13335 = sst [smem:[#allocation56_spill]] %s9310_s7  ;;  %s1566_s26 = scalar_lea.vmem %s1563_s2, %s9300_s0 }
  0x8a   : > { %s1589_s6 = sshrl.u32 %s1588_s5, 9  ;;  %v1567_v62 = vld [vmem:[%s1566_s26] ss:$0 sm:$0xff]  ;;  %s1592_s8 = sand.u32 511, %s1588_s5  }
  0x8b   : > { %p7878_p0 = scmp.gt.s32.totalorder %s1589_s6, 0  ;;  %v1570_v63 = vshra.s32 %v1567_v62, %v9313_v61  ;;  %s9316_s21 = sshrl.u32 %s1592_s8, 7 }
  0x8c   : > { %13336 = sst [smem:[#allocation57_spill]] %s9316_s21  ;;  %s1594_s10 = sand.u32 127, %s1592_s8  }
  0x8d   : > { %s13802_s6 = smov (%p7878_p0, %s1589_s6), 0  ;;  %v1571_v1 = vand.u32 255, %v1570_v63  ;;  %s9321_s22 = sshrl.u32 %s9316_s21, 2 }
  0x8e   : > { %13337 = sst [smem:[#allocation58_spill]] %s13802_s6  ;;  %s1597_s17 = sand.u32 3, %s9316_s21  }
  0x8f   : > { %13338 = sst [smem:[#allocation59_spill]] %s9321_s22  ;;  %s1595_s27 = scalar_lea.vmem %s13295_s15, %s13802_s6  ;;  %v1600_v3 = vstv %s1597_s17  ;;  %1575 = vbcast.lane.b32.xlu1 %v1571_v1, %s9310_s7 }
  0x90   : > { %s1598_s5 = scalar_lea.vmem %s1595_s27, %s9321_s22  ;;  %v9330_v4 = vshll.u32 %v1600_v3, 3  ;;  %s1604_s2 = sand.u32 255, %s1594_s10 }
  0x91   : > { %v1599_v5 = vld [vmem:[%s1598_s5] ss:$0 sm:$0xff]  ;;  %s1620_s8 = sadd.s32 96, %s9053_s4  ;;  %s9334_s23 = sor.u32 256, %s1604_s2 }
  0x92   : > { %v1602_v7 = vshra.s32 %v1599_v5, %v9330_v4  ;;  %s1621_s20 = sshrl.u32 %s1620_s8, 9  ;;  %s1624_s0 = sand.u32 511, %s1620_s8  }
  0x93   : > { %13339 = sst [smem:[#allocation60_spill]] %s9334_s23  ;;  %p7880_p1 = scmp.gt.s32.totalorder %s1621_s20, 0 }
  0x94   : > { %v1603_v8 = vand.u32 255, %v1602_v7  ;;  %s9336_s21 = sshrl.u32 %s1624_s0, 7  ;;  %s1626_s17 = sand.u32 127, %s1624_s0  }
  0x95   : > { %13340 = sst [smem:[#allocation61_spill]] %s9336_s21  ;;  %s9340_s1 = sshrl.u32 %s9336_s21, 2 }
  0x96   : > { %1607 = vbcast.lane.b32.xlu0 %v1603_v8, %s9334_s23  ;;  %13341 = sst [smem:[#allocation62_spill]] %s9340_s1  ;;  %s13804_s20 = smov (%p7880_p1, %s1621_s20), 0 }
  0x97   : > { %13342 = sst [smem:[#allocation63_spill]] %s13804_s20  ;;  %s1629_s10 = sand.u32 3, %s9336_s21  }
  0x98   : > { %s1627_s5 = scalar_lea.vmem %s13295_s15, %s13804_s20  ;;  %v1632_v9 = vstv %s1629_s10  ;;  %s1636_s8 = sand.u32 255, %s1626_s17 }
  0x99   : > { %s1630_s2 = scalar_lea.vmem %s1627_s5, %s9340_s1  ;;  %v9350_v10 = vshll.u32 %v1632_v9, 3  ;;  %s9353_s0 = sor.u32 256, %s1636_s8 }
  0x9a   : > { %v1631_v11 = vld [vmem:[%s1630_s2] ss:$0 sm:$0xff]  ;;  %13343 = sst [smem:[#allocation64_spill]] %s9353_s0  ;;  %s1057_s4 = smul.u32 13, %s9048_s30 }
  0x9b   : > { %v1634_v13 = vshra.s32 %v1631_v11, %v9350_v10  ;;  %s13345_s5 = sld [smem:[#allocation143_spill]]  ;;  %s1659_s8 = scalar_lea.vmem %s13346_s14, %s13780_s24 }
  0x9c   : > { %p1058_p2 = scmp.lt.s32.totalorder %s1057_s4, 38  ;;  %s1662_s15 = scalar_lea.vmem %s1659_s8, %s9072_s3 }
  0x9d   : > { %v1635_v14 = vand.u32 255, %v1634_v13  ;;  %s1722_s2 = scalar_lea.vmem %s13346_s14, %s13782_s29  ;;  %v1663_v30 = vld [vmem:[%s1662_s15] ss:$0 sm:$0xff]  ;;  %s13348_s15 = sld [smem:[#allocation35_spill]] }
  0x9e   : > { %s13806_s4 = smov (!%p1058_p2, %s1057_s4), 38  ;;  %s1725_s30 = scalar_lea.vmem %s1722_s2, %s9098_s12  ;;  %v1666_v38 = vshra.s32 %v1663_v30, %v9086_v6 }
  0x9f   : > { %1639 = vbcast.lane.b32.xlu1 %v1635_v14, %s9353_s0  ;;  %s9357_s26 = sshll.u32 %s13806_s4, 3  ;;  %s13347_s4 = sld [smem:[#allocation39_spill]]  ;;  %v1726_v39 = vld [vmem:[%s1725_s30] ss:$0 sm:$0xff] }
  0xa0   : > { %13344 = sst [smem:[#allocation65_spill]] %s9357_s26  ;;  %s1786_s0 = scalar_lea.vmem %s13346_s14, %s13788_s19  ;;  %v1667_v45 = vand.u32 255, %v1666_v38  ;;  %v1729_v47 = vshra.s32 %v1726_v39, %v9114_v12 }
  0xa1   : > { %s9363_s17 = scalar_lea.vmem %s13345_s5, %s9357_s26  ;;  %s1690_s5 = scalar_lea.vmem %s13346_s14, %s13784_s11 }
  0xa2   : > { %v1237_v15 = vld [vmem:[%s9363_s17] sm:$0xff]  ;;  %v7857_v21 = vld [vmem:[%s9363_s17 + $0x8] sm:$0xff]  ;;  %v7859_v28 = vld [vmem:[%s9363_s17 + $0x10] sm:$0xff]  ;;  %s1693_s10 = scalar_lea.vmem %s1690_s5, %s9121_s9  ;;  %s1754_s26 = scalar_lea.vmem %s13346_s14, %s13786_s13  ;;  %v1730_v55 = vand.u32 255, %v1729_v47 }
  0xa3   : > { %v1257_v16 = vpop.permute.xlu0 %1256  ;;  %v1694_v35 = vld [vmem:[%s1693_s10] ss:$0 sm:$0xff]  ;;  %s1757_s8 = scalar_lea.vmem %s1754_s26, %s9161_s16  ;;  %s13349_s23 = sld [smem:[#allocation42_spill]]  ;;  %v7861_v44 = vld [vmem:[%s9363_s17 + $0x18] sm:$0xff] }
  0xa4   : > { %vm1260_vm2 = vcmp.ne.s32.totalorder %v1257_v16, 0  ;;  %s1818_s7 = scalar_lea.vmem %s13346_s14, %s13790_s18  ;;  %v1697_v42 = vshra.s32 %v1694_v35, %v9134_v18  ;;  %s13350_s21 = sld [smem:[#allocation38_spill]]  ;;  %v1758_v43 = vld [vmem:[%s1757_s8] ss:$0 sm:$0xff]  ;;  %v7867_v35 = vld [vmem:[%s9363_s17 + $0x30] sm:$0xff] }
  0xa5   : > { %v1261_v17 = vsel %vm1260_vm2, %v1237_v15, %v13288_v0  ;;  %s1789_s10 = scalar_lea.vmem %s1786_s0, %s9180_s25  ;;  %s1850_s26 = scalar_lea.vmem %s13346_s14, %s13347_s4  ;;  %v1761_v52 = vshra.s32 %v1758_v43, %v9170_v26  ;;  %v7863_v63 = vld [vmem:[%s9363_s17 + $0x20] sm:$0xff] }
  0xa6   : > { %8299 = vmatmul.mubr.msk.f32.vlgmr.msra.gmra.mxu0 %vm4925_vm1, %v1261_v17  ;;  %s13351_s30 = sld [smem:[#allocation47_spill]]  ;;  %s1821_s2 = scalar_lea.vmem %s1818_s7, %s13348_s15  ;;  %v1790_v49 = vld [vmem:[%s1789_s10] ss:$0 sm:$0xff]  ;;  %v1698_v50 = vand.u32 255, %v1697_v42  ;;  %v7865_v17 = vld [vmem:[%s9363_s17 + $0x28] sm:$0xff] }
  0xa7   : > { %8301 = vmatprep.mubr.msk.f32.mxu0 %vm8920_vm0, %v13215_v2  ;;  %s13352_s27 = sld [smem:[#allocation18_spill]]  ;;  %v1822_v54 = vld [vmem:[%s1821_s2] ss:$0 sm:$0xff]  ;;  %v1793_v57 = vshra.s32 %v1790_v49, %v9193_v31  ;;  %s1946_s15 = scalar_lea.vmem %s13346_s14, %s13798_s28  ;;  %v1762_v59 = vand.u32 255, %v1761_v52 }
  0xa8   : > { %s13353_s18 = sld [smem:[#allocation43_spill]]  ;;  %v1825_v60 = vshra.s32 %v1822_v54, %v9210_v36 }
  0xa9   : > { %s1882_s0 = scalar_lea.vmem %s13346_s14, %s13349_s23  ;;  %s13354_s8 = sld [smem:[#allocation24_spill]]  ;;  %v1794_v1 = vand.u32 255, %v1793_v57 }
  0xaa   : > { %s13355_s19 = sld [smem:[#allocation46_spill]]  ;;  %s1853_s5 = scalar_lea.vmem %s1850_s26, %s13350_s21  ;;  %v1826_v8 = vand.u32 255, %v1825_v60 }
  0xab   : > { %v1320_v19 = vpop.permute.xlu1 %1319  ;;  %s13356_s4 = sld [smem:[#allocation55_spill]]  ;;  %v1854_v58 = vld [vmem:[%s1853_s5] ss:$0 sm:$0xff] }
  0xac   : > { %vm1323_vm4 = vcmp.ne.s32.totalorder %v1320_v19, 0  ;;  %s1914_s10 = scalar_lea.vmem %s13346_s14, %s13351_s30  ;;  %s13357_s12 = sld [smem:[#allocation21_spill]]  ;;  %v1857_v3 = vshra.s32 %v1854_v58, %v9233_v41 }
  0xad   : > { %v1324_v34 = vsel %vm1323_vm4, %v7859_v28, %v13288_v0  ;;  %s13358_s16 = sld [smem:[#allocation51_spill]] }
  0xae   : > { %s1885_s23 = scalar_lea.vmem %s1882_s0, %s13353_s18  ;;  %s13359_s7 = sld [smem:[#allocation28_spill]]  ;;  %v1858_v14 = vand.u32 255, %v1857_v3 }
  0xaf   : > { %v1886_v62 = vld [vmem:[%s1885_s23] ss:$0 sm:$0xff]  ;;  %s13361_s5 = sld [smem:[#allocation32_spill]] }
  0xb0   : > { %s1917_s30 = scalar_lea.vmem %s1914_s10, %s13355_s19  ;;  %s2010_s10 = scalar_lea.vmem %s13346_s14, %s13802_s6  ;;  %v1889_v9 = vshra.s32 %v1886_v62, %v9250_v46 }
  0xb1   : > { %s1978_s0 = scalar_lea.vmem %s13346_s14, %s13356_s4  ;;  %v1918_v7 = vld [vmem:[%s1917_s30] ss:$0 sm:$0xff]  ;;  %s13362_s25 = sld [smem:[#allocation36_spill]] }
  0xb2   : > { %s2042_s30 = scalar_lea.vmem %s13346_s14, %s13804_s20  ;;  %s13363_s28 = sld [smem:[#allocation40_spill]]  ;;  %v1921_v15 = vshra.s32 %v1918_v7, %v9273_v51  ;;  %v1890_v19 = vand.u32 255, %v1889_v9 }
  0xb3   : > { %v1288_v23 = vpop.permute.xlu0 %1287  ;;  %s1949_s26 = scalar_lea.vmem %s1946_s15, %s13358_s16  ;;  %s2013_s2 = scalar_lea.vmem %s2010_s10, %s9321_s22 }
  0xb4   : > { %vm1291_vm3 = vcmp.ne.s32.totalorder %v1288_v23, 0  ;;  %v1950_v13 = vld [vmem:[%s1949_s26] ss:$0 sm:$0xff]  ;;  %s13364_s6 = sld [smem:[#allocation150_spill]]  ;;  %s2045_s15 = scalar_lea.vmem %s2042_s30, %s9340_s1  ;;  %v1922_v23 = vand.u32 255, %v1921_v15 }
  0xb5   : > { %v1292_v25 = vsel %vm1291_vm3, %v7857_v21, %v13288_v0  ;;  %s13365_s21 = sld [smem:[#allocation44_spill]] }
  0xb6   : > { %8302 = vmatmul.mubr.msk.f32.gmra.mxu0 %vm4925_vm1, %v1292_v25  ;;  %s13369_s14 = sld [smem:[#allocation52_spill]] }
  0xb7   : > { %8304 = vmatprep.mubr.msk.f32.mxu0 %vm8920_vm0, %v13215_v2  ;;  %s13370_s10 = sld [smem:[#allocation27_spill]] }
  0xb8   : > { %v2912_v20 = vpop.permute.xlu1 %2911  ;;  %s13372_s30 = sld [smem:[#allocation56_spill]] }
  0xb9   : > { %v4638_v22 = vmul.u32 16, %v2912_v20  ;;  %v2932_v29 = vpop.permute.xlu0 %2931  ;;  %v1953_v20 = vshra.s32 %v1950_v13, %v9290_v56  ;;  %s13373_s22 = sld [smem:[#allocation30_spill]] }
  0xba   : > { %v4639_v32 = vmul.u32 16, %v2932_v29  ;;  %8305 = vmatmul.mubr.msk.f32.gmra.mxu0 %vm4925_vm1, %v1324_v34  ;;  %s2105_s20 = scalar_lea.vmem %s13364_s6, %s13784_s11  ;;  %s2169_s1 = scalar_lea.vmem %s13364_s6, %s13786_s13 }
  0xbb   : > { %v4703_v24 = vadd.s32 16, %v4638_v22  ;;  %4652 = vperm.xlu1 %8697, %v4638_v22   ;;  %8307 = vmatprep.mubr.msk.f32.mxu0 %vm8920_vm0, %v13215_v2  ;;  %v2014_v22 = vld [vmem:[%s2013_s2] ss:$0 sm:$0xff]  ;;  %s2137_s2 = scalar_lea.vmem %s13364_s6, %s13782_s29  ;;  %v1954_v28 = vand.u32 255, %v1953_v20  ;;  %s2108_s11 = scalar_lea.vmem %s2105_s20, %s9121_s9 }
  0xbc   : > { %v2953_v27 = vpop.permute.xlu1 %2952  ;;  %v4704_v37 = vadd.s32 16, %v4639_v32  ;;  %v2017_v29 = vshra.s32 %v2014_v22, %v9330_v4  ;;  %v2109_v34 = vld [vmem:[%s2108_s11] ss:$0 sm:$0xff]  ;;  %s13374_s9 = sld [smem:[#allocation39_spill]] }
  0xbd   : > { %4717 = vperm.xlu0 %8698, %v4703_v24   ;;  %v4640_v33 = vmul.u32 16, %v2953_v27  ;;  %v2046_v27 = vld [vmem:[%s2045_s15] ss:$0 sm:$0xff]  ;;  %s13379_s15 = sld [smem:[#allocation64_spill]] }
  0xbf   : > { %4655 = vperm.xlu1 %8697, %v4639_v32   ;;  %v4705_v40 = vadd.s32 16, %v4640_v33 }
  0xc1   : > { %4720 = vperm.xlu0 %8698, %v4704_v37   ;;  %v2018_v37 = vand.u32 255, %v2017_v29  ;;  %v7873_v29 = vld [vmem:[%s9363_s17 + $0x48] sm:$0xff] }
  0xc3   : > { %4658 = vperm.xlu1 %8697, %v4640_v33   ;;  %v2049_v33 = vshra.s32 %v2046_v27, %v9350_v10 }
  0xc5   : > { %v1352_v48 = vpop.permute.xlu0 %1351  ;;  %4723 = vperm.xlu0 %8698, %v4705_v40   ;;  %v2050_v43 = vand.u32 255, %v2049_v33 }
  0xc6   : > { %vm1355_vm5 = vcmp.ne.s32.totalorder %v1352_v48, 0 }
  0xc7   : > { %v1356_v53 = vsel %vm1355_vm5, %v7861_v44, %v13288_v0  ;;  %1671 = vbcast.lane.b32.xlu1 %v1667_v45, %s13352_s27  ;;  %s13360_s27 = sld [smem:[#allocation54_spill]]  ;;  %v2112_v44 = vshra.s32 %v2109_v34, %v9134_v18 }
  0xc8   : > { %8308 = vmatmul.mubr.msk.f32.gmra.mxu0 %vm4925_vm1, %v1356_v53  ;;  %v7869_v53 = vld [vmem:[%s9363_s17 + $0x38] sm:$0xff] }
  0xc9   : > { %8310 = vmatprep.mubr.msk.f32.mxu0 %vm8920_vm0, %v13215_v2  ;;  %1702 = vbcast.lane.b32.xlu0 %v1698_v50, %s13354_s8 }
  0xcb   : > { %1734 = vbcast.lane.b32.xlu1 %v1730_v55, %s13357_s12  ;;  %v2113_v55 = vand.u32 255, %v2112_v44 }
  0xcd   : > { %1766 = vbcast.lane.b32.xlu0 %v1762_v59, %s13359_s7  ;;  %s1981_s23 = scalar_lea.vmem %s1978_s0, %s13360_s27  ;;  %s2074_s27 = scalar_lea.vmem %s13364_s6, %s13780_s24 }
  0xce   : > { %v1384_v5 = vpop.permute.xlu1 %1383  ;;  %v1982_v16 = vld [vmem:[%s1981_s23] ss:$0 sm:$0xff]  ;;  %s13366_s23 = sld [smem:[#allocation48_spill]]  ;;  %s2077_s26 = scalar_lea.vmem %s2074_s27, %s9072_s3 }
  0xcf   : > { %vm1387_vm6 = vcmp.ne.s32.totalorder %v1384_v5, 0  ;;  %1798 = vbcast.lane.b32.xlu1 %v1794_v1, %s13361_s5  ;;  %v1985_v24 = vshra.s32 %v1982_v16, %v9313_v61  ;;  %s13367_s0 = sld [smem:[#allocation19_spill]]  ;;  %v2078_v30 = vld [vmem:[%s2077_s26] ss:$0 sm:$0xff]  ;;  %s2172_s3 = scalar_lea.vmem %s2169_s1, %s13370_s10 }
  0xd0   : > { %v1388_v11 = vsel %vm1387_vm6, %v7863_v63, %v13288_v0  ;;  %s13368_s24 = sld [smem:[#allocation31_spill]]  ;;  %v2081_v38 = vshra.s32 %v2078_v30, %v9086_v6  ;;  %v2173_v47 = vld [vmem:[%s2172_s3] ss:$0 sm:$0xff]  ;;  %s2265_s10 = scalar_lea.vmem %s13364_s6, %s13374_s9 }
  0xd1   : > { %8311 = vmatmul.mubr.msk.f32.gmra.mxu0 %vm4925_vm1, %v1388_v11  ;;  %1830 = vbcast.lane.b32.xlu0 %v1826_v8, %s13362_s25  ;;  %s13371_s27 = sld [smem:[#allocation34_spill]]  ;;  %v1986_v32 = vand.u32 255, %v1985_v24  ;;  %v2176_v57 = vshra.s32 %v2173_v47, %v9170_v26  ;;  %v7871_v16 = vld [vmem:[%s9363_s17 + $0x40] sm:$0xff]  ;;  %v7875_v47 = vld [vmem:[%s9363_s17 + $0x50] sm:$0xff] }
  0xd2   : > { %8313 = vmatprep.mubr.msk.f32.mxu0 %vm8920_vm0, %v13215_v2  ;;  %s13375_s26 = sld [smem:[#allocation60_spill]]  ;;  %v2082_v49 = vand.u32 255, %v2081_v38 }
  0xd3   : > { %1862 = vbcast.lane.b32.xlu1 %v1858_v14, %s13363_s28  ;;  %s13376_s25 = sld [smem:[#allocation139_spill]]  ;;  %v2177_v5 = vand.u32 255, %v2176_v57 }
  0xd4   : > { %s13377_s28 = sld [smem:[#allocation35_spill]] }
  0xd5   : > { %v1416_v21 = vpop.permute.xlu0 %1415  ;;  %1894 = vbcast.lane.b32.xlu0 %v1890_v19, %s13365_s21  ;;  %s2140_s29 = scalar_lea.vmem %s2137_s2, %s13367_s0  ;;  %s13378_s21 = sld [smem:[#allocation42_spill]] }
  0xd6   : > { %vm1419_vm7 = vcmp.ne.s32.totalorder %v1416_v21, 0  ;;  %s2201_s20 = scalar_lea.vmem %s13364_s6, %s13368_s24  ;;  %v2141_v40 = vld [vmem:[%s2140_s29] ss:$0 sm:$0xff]  ;;  %s13383_s0 = sld [smem:[#allocation50_spill]] }
  0xd7   : > { %v1420_v25 = vsel %vm1419_vm7, %v7865_v17, %v13288_v0  ;;  %1926 = vbcast.lane.b32.xlu1 %v1922_v23, %s13366_s23  ;;  %s2233_s2 = scalar_lea.vmem %s13364_s6, %s13371_s27  ;;  %s2204_s1 = scalar_lea.vmem %s2201_s20, %s13373_s22  ;;  %v2144_v50 = vshra.s32 %v2141_v40, %v9114_v12 }
  0xd8   : > { %8314 = vmatmul.mubr.msk.f32.gmra.mxu0 %vm4925_vm1, %v1420_v25  ;;  %s13381_s20 = sld [smem:[#allocation47_spill]]  ;;  %v2205_v52 = vld [vmem:[%s2204_s1] ss:$0 sm:$0xff] }
  0xd9   : > { %8316 = vmatprep.mubr.msk.f32.mxu0 %vm8920_vm0, %v13215_v2  ;;  %1958 = vbcast.lane.b32.xlu0 %v1954_v28, %s13369_s14  ;;  %v4622_v42 = vld [vmem:[%s13376_s25 + $0x78] sm:$0xff]  ;;  %v4621_v48 = vld [vmem:[%s13376_s25 + $0x70] sm:$0xff]  ;;  %s13382_s14 = sld [smem:[#allocation18_spill]]  ;;  %v4620_v54 = vld [vmem:[%s13376_s25 + $0x68] sm:$0xff]  ;;  %v2145_v60 = vand.u32 255, %v2144_v50  ;;  %v2208_v62 = vshra.s32 %v2205_v52, %v9193_v31 }
  0xda   : > { %8338 = vmatpush3.msra.mxu0 %v4622_v42  ;;  %s2236_s3 = scalar_lea.vmem %s2233_s2, %s13377_s28  ;;  %8660 = vmatpush3.msra.mxu1 %v4622_v42  ;;  %v4619_v1 = vld [vmem:[%s13376_s25 + $0x60] sm:$0xff]  ;;  %v4618_v8 = vld [vmem:[%s13376_s25 + $0x58] sm:$0xff]  ;;  %v9579_v14 = vld [vmem:[%s13376_s25 + $0x50] sm:$0xff] }
  0xdb   : > { %1990 = vbcast.lane.b32.xlu1 %v1986_v32, %s13372_s30  ;;  %8339 = vmatprep.subr.mxu0 %v13215_v2  ;;  %s13380_s30 = sld [smem:[#allocation38_spill]]  ;;  %s2297_s22 = scalar_lea.vmem %s13364_s6, %s13378_s21  ;;  %v2237_v59 = vld [vmem:[%s2236_s3] ss:$0 sm:$0xff]  ;;  %v2209_v11 = vand.u32 255, %v2208_v62  ;;  %v9600_v24 = vld [vmem:[%s13376_s25 + $0x48] sm:$0xff]  ;;  %v9661_v42 = vld [vmem:[%s13376_s25 + $0x30] sm:$0xff] }
  0xdc   : > { %8340 = vmatpush3.msra.mxu0 %v4621_v48  ;;  %8645 = vmatprep.subr.mxu1 %v13215_v2  ;;  %v2240_v7 = vshra.s32 %v2237_v59, %v9210_v36  ;;  %s2361_s11 = scalar_lea.vmem %s13364_s6, %s13383_s0  ;;  %s13384_s3 = sld [smem:[#allocation36_spill]]  ;;  %v9616_v28 = vld [vmem:[%s13376_s25 + $0x40] sm:$0xff]  ;;  %v9677_v44 = vld [vmem:[%s13376_s25 + $0x28] sm:$0xff]  ;;  %v9712_v59 = vld [vmem:[%s13376_s25 + $0x18] sm:$0xff] }
  0xdd   : > { %2022 = vbcast.lane.b32.xlu0 %v2018_v37, %s13375_s26  ;;  %8341 = vmatprep.subr.mxu0 %v13215_v2  ;;  %s2364_s29 = scalar_lea.vmem %s2361_s11, %s13358_s16  ;;  %s13388_s16 = sld [smem:[#allocation140_spill]]  ;;  %v9644_v37 = vld [vmem:[%s13376_s25 + $0x38] sm:$0xff] }
  0xde   : > { %s2329_s23 = scalar_lea.vmem %s13364_s6, %s13381_s20  ;;  %8342 = vmatpush3.msra.mxu0 %v4620_v54  ;;  %8661 = vmatpush3.msra.mxu1 %v4621_v48  ;;  %v2241_v17 = vand.u32 255, %v2240_v7  ;;  %v2365_v25 = vld [vmem:[%s2364_s29] ss:$0 sm:$0xff]  ;;  %s13395_s11 = sld [smem:[#allocation62_spill]]  ;;  %v4608_v7 = vld [vmem:[%s13376_s25 + $0x8] sm:$0xff] }
  0xdf   : > { %v1448_v39 = vpop.permute.xlu1 %1447  ;;  %2054 = vbcast.lane.b32.xlu1 %v2050_v43, %s13379_s15  ;;  %8343 = vmatprep.subr.mxu0 %v13215_v2  ;;  %s2332_s1 = scalar_lea.vmem %s2329_s23, %s13355_s19  ;;  %s2393_s23 = scalar_lea.vmem %s13364_s6, %s13356_s4  ;;  %v2368_v32 = vshra.s32 %v2365_v25, %v9290_v56 }
  0xe0   : > { %vm1451_vm8 = vcmp.ne.s32.totalorder %v1448_v39, 0  ;;  %8344 = vmatpush3.msra.mxu0 %v4619_v1  ;;  %8646 = vmatprep.subr.mxu1 %v13215_v2  ;;  %v2333_v15 = vld [vmem:[%s2332_s1] ss:$0 sm:$0xff]  ;;  %s13385_s1 = sld [smem:[#allocation54_spill]] }
  0xe1   : > { %v1452_v45 = vsel %vm1451_vm8, %v7867_v35, %v13288_v0  ;;  %s2268_s2 = scalar_lea.vmem %s2265_s10, %s13380_s30  ;;  %2086 = vbcast.lane.b32.xlu0 %v2082_v49, %s13382_s14  ;;  %s2300_s10 = scalar_lea.vmem %s2297_s22, %s13353_s18  ;;  %8345 = vmatprep.subr.mxu0 %v13215_v2  ;;  %v2336_v22 = vshra.s32 %v2333_v15, %v9273_v51  ;;  %v2369_v39 = vand.u32 255, %v2368_v32 }
  0xe2   : > { %8317 = vmatmul.mubr.msk.f32.gmra.mxu0 %vm4925_vm1, %v1452_v45  ;;  %v2269_v3 = vld [vmem:[%s2268_s2] ss:$0 sm:$0xff]  ;;  %8662 = vmatpush3.msra.mxu1 %v4620_v54  ;;  %s13386_s22 = sld [smem:[#allocation58_spill]]  ;;  %s7969_s30 = sshll.u32 %s13368_s24, 2 }
  0xe3   : > { %8319 = vmatprep.mubr.msk.f32.mxu0 %vm8920_vm0, %v13215_v2  ;;  %2117 = vbcast.lane.b32.xlu1 %v2113_v55, %s13354_s8  ;;  %v2301_v9 = vld [vmem:[%s2300_s10] ss:$0 sm:$0xff]  ;;  %v2272_v13 = vshra.s32 %v2269_v3, %v9233_v41  ;;  %s7967_s10 = sshll.u32 %s13786_s13, 2  ;;  %s13387_s2 = sld [smem:[#allocation40_spill]]  ;;  %v2337_v30 = vand.u32 255, %v2336_v22 }
  0xe4   : > { %8346 = vmatpush3.msra.mxu0 %v4618_v8  ;;  %v2304_v19 = vshra.s32 %v2301_v9, %v9250_v46  ;;  %8647 = vmatprep.subr.mxu1 %v13215_v2  ;;  %s13389_s19 = sld [smem:[#allocation25_spill]]  ;;  %s9605_s18 = scalar_lea.vmem %s13388_s16, %s7967_s10  ;;  %v9699_v54 = vld [vmem:[%s13376_s25 + $0x20] sm:$0xff] }
  0xe5   : > { %2149 = vbcast.lane.b32.xlu0 %v2145_v60, %s13357_s12  ;;  %8347 = vmatprep.subr.mxu0 %v13215_v2  ;;  %v2273_v21 = vand.u32 255, %v2272_v13  ;;  %s13390_s10 = sld [smem:[#allocation44_spill]]  ;;  %s9633_s14 = scalar_lea.vmem %s13388_s16, %s7969_s30  ;;  %v7877_v60 = vld [vmem:[%s9363_s17 + $0x58] sm:$0xff]  ;;  %v4607_v9 = vld [vmem:[%s13376_s25] sm:$0xff] }
  0xe6   : > { %v1480_v58 = vpop.permute.xlu0 %1479  ;;  %8348 = vmatpush3.msra.mxu0 %v9579_v14  ;;  %8663 = vmatpush3.msra.mxu1 %v4619_v1  ;;  %v2305_v27 = vand.u32 255, %v2304_v19  ;;  %s2396_s28 = scalar_lea.vmem %s2393_s23, %s13385_s1  ;;  %s13391_s13 = sld [smem:[#allocation59_spill]] }
  0xe7   : > { %vm1483_vm9 = vcmp.ne.s32.totalorder %v1480_v58, 0  ;;  %2181 = vbcast.lane.b32.xlu1 %v2177_v5, %s13359_s7  ;;  %8349 = vmatprep.subr.mxu0 %v13215_v2  ;;  %s13392_s1 = sld [smem:[#allocation63_spill]]  ;;  %v2397_v34 = vld [vmem:[%s2396_s28] ss:$0 sm:$0xff]  ;;  %v4609_v5 = vld [vmem:[%s13376_s25 + $0x10] sm:$0xff] }
  0xe8   : > { %v1484_v63 = vsel %vm1483_vm9, %v7869_v53, %v13288_v0  ;;  %s2425_s29 = scalar_lea.vmem %s13364_s6, %s13386_s22  ;;  %8350 = vmatpush3.msra.mxu0 %v9600_v24  ;;  %8648 = vmatprep.subr.mxu1 %v13215_v2  ;;  %s13393_s8 = sld [smem:[#allocation48_spill]]  ;;  %v2400_v40 = vshra.s32 %v2397_v34, %v9313_v61 }
  0xe9   : > { %8320 = vmatmul.mubr.msk.f32.gmra.mxu0 %vm4925_vm1, %v1484_v63  ;;  %2213 = vbcast.lane.b32.xlu0 %v2209_v11, %s13361_s5  ;;  %s13394_s24 = sld [smem:[#allocation29_spill]] }
  0xea   : > { %8322 = vmatprep.mubr.msk.f32.mxu0 %vm8920_vm0, %v13215_v2  ;;  %s2968_s23 = scalar_lea.vmem %s9605_s18, %s13389_s19  ;;  %8351 = vmatprep.subr.mxu0 %v13215_v2  ;;  %s7971_s18 = sshll.u32 %s13371_s27, 2  ;;  %v2401_v48 = vand.u32 255, %v2400_v40 }
  0xeb   : > { %2245 = vbcast.lane.b32.xlu1 %v2241_v17, %s13384_s3  ;;  %8352 = vmatpush3.msra.mxu0 %v9616_v28  ;;  %v2969_v38 = vld [vmem:[%s2968_s23] ss:$0 sm:$0xff]  ;;  %s13396_s15 = sld [smem:[#allocation52_spill]] }
  0xec   : > { %8664 = vmatpush3.msra.mxu1 %v4618_v8  ;;  %s2428_s19 = scalar_lea.vmem %s2425_s29, %s13391_s13  ;;  %8353 = vmatprep.subr.mxu0 %v13215_v2  ;;  %s13397_s30 = sld [smem:[#allocation33_spill]] }
  0xed   : > { %2277 = vbcast.lane.b32.xlu0 %v2273_v21, %s13387_s2  ;;  %s2457_s12 = scalar_lea.vmem %s13364_s6, %s13392_s1  ;;  %8649 = vmatprep.subr.mxu1 %v13215_v2  ;;  %s9666_s13 = scalar_lea.vmem %s13388_s16, %s7971_s18  ;;  %v2429_v43 = vld [vmem:[%s2428_s19] ss:$0 sm:$0xff] }
  0xee   : > { %8354 = vmatpush3.msra.mxu0 %v9644_v37  ;;  %8665 = vmatpush3.msra.mxu1 %v9579_v14  ;;  %v2432_v49 = vshra.s32 %v2429_v43, %v9330_v4  ;;  %s13398_s18 = sld [smem:[#allocation56_spill]]  ;;  %v7879_v14 = vld [vmem:[%s9363_s17 + $0x60] sm:$0xff] }
  0xef   : > { %2309 = vbcast.lane.b32.xlu1 %v2305_v27, %s13390_s10  ;;  %s2989_s29 = scalar_lea.vmem %s9633_s14, %s13394_s24  ;;  %s7973_s24 = sshll.u32 %s13374_s9, 2  ;;  %8355 = vmatprep.subr.mxu0 %v13215_v2 }
  0xf0   : > { %v1512_v20 = vpop.permute.xlu1 %1511  ;;  %s2460_s14 = scalar_lea.vmem %s2457_s12, %s13395_s11  ;;  %v2990_v45 = vld [vmem:[%s2989_s29] ss:$0 sm:$0xff]  ;;  %8356 = vmatpush3.msra.mxu0 %v9661_v42  ;;  %8650 = vmatprep.subr.mxu1 %v13215_v2  ;;  %s13399_s19 = sld [smem:[#allocation37_spill]]  ;;  %v2433_v57 = vand.u32 255, %v2432_v49 }
  0xf1   : > { %vm1515_vm10 = vcmp.ne.s32.totalorder %v1512_v20, 0  ;;  %2341 = vbcast.lane.b32.xlu0 %v2337_v30, %s13393_s8  ;;  %8357 = vmatprep.subr.mxu0 %v13215_v2  ;;  %s3029_s29 = scalar_lea.vmem %s13388_s16, %s7973_s24  ;;  %v2461_v52 = vld [vmem:[%s2460_s14] ss:$0 sm:$0xff]  ;;  %s7977_s14 = sshll.u32 %s13381_s20, 2 }
  0xf2   : > { %v1516_v23 = vsel %vm1515_vm10, %v7871_v16, %v13288_v0  ;;  %s3010_s6 = scalar_lea.vmem %s9666_s13, %s13397_s30  ;;  %8358 = vmatpush3.msra.mxu0 %v9677_v44  ;;  %8666 = vmatpush3.msra.mxu1 %v9600_v24  ;;  %s7975_s13 = sshll.u32 %s13378_s21, 2  ;;  %v2464_v58 = vshra.s32 %v2461_v52, %v9350_v10 }
  0xf3   : > { %8323 = vmatmul.mubr.msk.f32.gmra.mxu0 %vm4925_vm1, %v1516_v23  ;;  %2973 = vbcast.lane.b32.xlu1 %v2969_v38, %s13359_s7  ;;  %v3011_v55 = vld [vmem:[%s3010_s6] ss:$0 sm:$0xff]  ;;  %s13400_s28 = sld [smem:[#allocation41_spill]]  ;;  %s3050_s22 = scalar_lea.vmem %s13388_s16, %s7975_s13 }
  0xf4   : > { %8325 = vmatprep.mubr.msk.f32.mxu0 %vm8920_vm0, %v13215_v2  ;;  %8359 = vmatprep.subr.mxu0 %v13215_v2  ;;  %s13401_s12 = sld [smem:[#allocation45_spill]]  ;;  %v2465_v1 = vand.u32 255, %v2464_v58  ;;  %s7981_s30 = sshll.u32 %s13356_s4, 2 }
  0xf5   : > { %2373 = vbcast.lane.b32.xlu0 %v2369_v39, %s13396_s15  ;;  %8651 = vmatprep.subr.mxu1 %v13215_v2  ;;  %s13402_s6 = sld [smem:[#allocation58_spill]] }
  0xf6   : > { %s3031_s24 = scalar_lea.vmem %s3029_s29, %s13399_s19  ;;  %8360 = vmatpush3.msra.mxu0 %v9699_v54  ;;  %8667 = vmatpush3.msra.mxu1 %v9616_v28  ;;  %s7979_s19 = sshll.u32 %s13383_s0, 2 }
  0xf7   : > { %v1544_v33 = vpop.permute.xlu0 %1543  ;;  %2994 = vbcast.lane.b32.xlu1 %v2990_v45, %s13361_s5  ;;  %8361 = vmatprep.subr.mxu0 %v13215_v2  ;;  %v3032_v63 = vld [vmem:[%s3031_s24] ss:$0 sm:$0xff]  ;;  %s3071_s5 = scalar_lea.vmem %s13388_s16, %s7977_s14  ;;  %s13404_s24 = sld [smem:[#allocation49_spill]] }
  0xf8   : > { %vm1547_vm11 = vcmp.ne.s32.totalorder %v1544_v33, 0  ;;  %8362 = vmatpush3.msra.mxu0 %v9712_v59  ;;  %8652 = vmatprep.subr.mxu1 %v13215_v2  ;;  %s3092_s11 = scalar_lea.vmem %s13388_s16, %s7979_s19  ;;  %s13405_s7 = sld [smem:[#allocation53_spill]] }
  0xf9   : > { %v1548_v35 = vsel %vm1547_vm11, %v7873_v29, %v13288_v0  ;;  %2405 = vbcast.lane.b32.xlu0 %v2401_v48, %s13398_s18  ;;  %s3052_s13 = scalar_lea.vmem %s3050_s22, %s13400_s28  ;;  %8363 = vmatprep.subr.mxu0 %v13215_v2  ;;  %s3113_s19 = scalar_lea.vmem %s13388_s16, %s7981_s30  ;;  %v13160_v48 = vlaneseq }
  0xfa   : > { %8326 = vmatmul.mubr.msk.f32.gmra.mxu0 %vm4925_vm1, %v1548_v35  ;;  %8668 = vmatpush3.msra.mxu1 %v9644_v37  ;;  %s3073_s28 = scalar_lea.vmem %s3071_s5, %s13401_s12  ;;  %v3053_v8 = vld [vmem:[%s3052_s13] ss:$0 sm:$0xff]  ;;  %s7985_s12 = sshll.u32 %s13392_s1, 2 }
  0xfb   : > { %8328 = vmatprep.mubr.msk.f32.mxu0 %vm8920_vm0, %v13215_v2  ;;  %3015 = vbcast.lane.b32.xlu1 %v3011_v55, %s13384_s3  ;;  %s13403_s3 = sld [smem:[#allocation64_spill]]  ;;  %s7983_s22 = sshll.u32 %s13402_s6, 2  ;;  %v3074_v11 = vld [vmem:[%s3073_s28] ss:$0 sm:$0xff]  ;;  %v9838_v52 = vand.u32 127, %v13160_v48 }
  0xfc   : > { %8364 = vmatpush3.msra.mxu0 %v4609_v5  ;;  %8653 = vmatprep.subr.mxu1 %v13215_v2  ;;  %s13406_s23 = sld [smem:[#allocation57_spill]]  ;;  %s3134_s30 = scalar_lea.vmem %s13388_s16, %s7983_s22 }
  0xfd   : > { %2437 = vbcast.lane.b32.xlu0 %v2433_v57, %s13375_s26  ;;  %s3094_s5 = scalar_lea.vmem %s3092_s11, %s13404_s24  ;;  %8365 = vmatprep.subr.mxu0 %v13215_v2  ;;  %s13407_s11 = sld [smem:[#allocation61_spill]]  ;;  %13413 = vst [vmem:[#allocation66_spill] sm:$0xff] %v9838_v52 }
  0xfe   : > { %8366 = vmatpush3.msra.mxu0 %v4608_v7  ;;  %8669 = vmatpush3.msra.mxu1 %v9661_v42  ;;  %s3115_s24 = scalar_lea.vmem %s3113_s19, %s13405_s7  ;;  %v3095_v13 = vld [vmem:[%s3094_s5] ss:$0 sm:$0xff]  ;;  %s13408_s17 = sld [smem:[#allocation17_spill]] }
  0xff   : > { %3036 = vbcast.lane.b32.xlu1 %v3032_v63, %s13387_s2  ;;  %8367 = vmatprep.subr.mxu0 %v13215_v2  ;;  %s3155_s2 = scalar_lea.vmem %s13388_s16, %s7985_s12  ;;  %v3116_v16 = vld [vmem:[%s3115_s24] ss:$0 sm:$0xff]  ;;  %s13409_s7 = sld [smem:[#allocation65_spill]] }
 0x100   : > { %8368 = vmatpush3.msra.mxu0 %v4607_v9  ;;  %8654 = vmatprep.subr.mxu1 %v13215_v2  ;;  %s13410_s19 = sld [smem:[#allocation23_spill]] }
 0x101   : > { %v1576_v50 = vpop.permute.xlu1 %1575  ;;  %2469 = vbcast.lane.b32.xlu0 %v2465_v1, %s13403_s3  ;;  %8408 = vmatprep.subr.mxu0 %v13215_v2  ;;  %s13411_s5 = sld [smem:[#allocation20_spill]] }
 0x102   : > { %vm1579_vm12 = vcmp.ne.s32.totalorder %v1576_v50, 0  ;;  %s3136_s28 = scalar_lea.vmem %s3134_s30, %s13406_s23  ;;  %8670 = vmatpush3.msra.mxu1 %v9677_v44  ;;  %s13412_s12 = sld [smem:[#allocation16_spill]] }
 0x103   : > { %v1580_v53 = vsel %vm1579_vm12, %v7875_v47, %v13288_v0  ;;  %3057 = vbcast.lane.b32.xlu1 %v3053_v8, %s13390_s10  ;;  %s3157_s22 = scalar_lea.vmem %s3155_s2, %s13407_s11  ;;  %8655 = vmatprep.subr.mxu1 %v13215_v2  ;;  %v3137_v19 = vld [vmem:[%s3136_s28] ss:$0 sm:$0xff]  ;;  %s13414_s23 = sld [smem:[#allocation26_spill]] }
 0x104   : > { %8329 = vmatmul.mubr.msk.f32.gmra.mxu0 %vm4925_vm1, %v1580_v53  ;;  %8671 = vmatpush3.msra.mxu1 %v9699_v54  ;;  %v3158_v20 = vld [vmem:[%s3157_s22] ss:$0 sm:$0xff]  ;;  %s13415_s4 = sld [smem:[#allocation22_spill]] }
 0x105   : > { %8331 = vmatprep.mubr.msk.f32.mxu0 %vm8920_vm0, %v13215_v2  ;;  %3078 = vbcast.lane.b32.xlu0 %v3074_v11, %s13393_s8  ;;  %s13416_s0 = sld [smem:[#allocation31_spill]] }
 0x106   : > { %8656 = vmatprep.subr.mxu1 %v13215_v2  ;;  %s13417_s11 = sld [smem:[#allocation153_spill]] }
 0x107   : > { %3099 = vbcast.lane.b32.xlu1 %v3095_v13, %s13396_s15  ;;  %8672 = vmatpush3.msra.mxu1 %v9712_v59  ;;  %s13418_s2 = sld [smem:[#allocation142_spill]] }
 0x108   : > { %v1608_v62 = vpop.permute.xlu0 %1607  ;;  %8657 = vmatprep.subr.mxu1 %v13215_v2  ;;  %s13419_s28 = sld [smem:[#allocation19_spill]] }
 0x109   : > { %vm1611_vm13 = vcmp.ne.s32.totalorder %v1608_v62, 0  ;;  %3120 = vbcast.lane.b32.xlu0 %v3116_v16, %s13398_s18  ;;  %8673 = vmatpush3.msra.mxu1 %v4609_v5  ;;  %s13420_s15 = sld [smem:[#allocation141_spill]] }
 0x10a   : > { %v1612_v3 = vsel %vm1611_vm13, %v7877_v60, %v13288_v0  ;;  %8658 = vmatprep.subr.mxu1 %v13215_v2  ;;  %s13422_s30 = sld [smem:[#allocation27_spill]] }
 0x10b   : > { %8332 = vmatmul.mubr.msk.f32.gmra.mxu0 %vm4925_vm1, %v1612_v3  ;;  %3141 = vbcast.lane.b32.xlu1 %v3137_v19, %s13375_s26  ;;  %s13424_s13 = sld [smem:[#allocation35_spill]] }
 0x10c   : > { %8334 = vmatprep.mubr.msk.f32.mxu0 %vm8920_vm0, %v13215_v2  ;;  %8674 = vmatpush3.msra.mxu1 %v4608_v7  ;;  %s2489_s24 = scalar_lea.vmem %s13417_s11, %s13408_s17  ;;  %s2552_s29 = scalar_lea.vmem %s13417_s11, %s13411_s5 }
 0x10d   : > { %3162 = vbcast.lane.b32.xlu0 %v3158_v20, %s13403_s3  ;;  %8659 = vmatprep.subr.mxu1 %v13215_v2  ;;  %s9856_s22 = scalar_lea.vmem %s13418_s2, %s13409_s7  ;;  %s2520_s3 = scalar_lea.vmem %s13417_s11, %s13410_s19 }
 0x10e   : > { %8675 = vmatpush3.msra.mxu1 %v4607_v9  ;;  %s9878_s16 = scalar_lea.vmem %s2489_s24, %s13412_s12  ;;  %s2584_s26 = scalar_lea.vmem %s13417_s11, %s13414_s23 }
 0x10f   : > { %8455 = vmatprep.subr.mxu1 %v13215_v2  ;;  %s9866_s8 = scalar_lea.vmem %s13420_s15, %s13409_s7  ;;  %s13423_s15 = sld [smem:[#allocation30_spill]] }
 0x110   : > { %13421 = sst [smem:[#allocation34_spill]] %s9866_s8  ;;  %s9886_s18 = scalar_lea.vmem %s2520_s3, %s13415_s4 }
 0x111   : > { %v1640_v15 = vpop.permute.xlu1 %1639  ;;  %s2616_s2 = scalar_lea.vmem %s13417_s11, %s13416_s0  ;;  %s13425_s12 = sld [smem:[#allocation14_spill]] }
 0x112   : > { %vm1643_vm14 = vcmp.ne.s32.totalorder %v1640_v15, 0  ;;  %s9893_s24 = scalar_lea.vmem %s2552_s29, %s13419_s28  ;;  %s2648_s23 = scalar_lea.vmem %s13417_s11, %s13371_s27 }
 0x113   : > { %v1644_v17 = vsel %vm1643_vm14, %v7879_v14, %v13288_v0  ;;  %s13426_s19 = sld [smem:[#allocation38_spill]]  ;;  %s9902_s3 = scalar_lea.vmem %s2584_s26, %s13422_s30 }
 0x114   : > { %8335 = vmatmul.mubr.msk.f32.gmra.mxu0 %vm4925_vm1, %v1644_v17  ;;  %s2680_s0 = scalar_lea.vmem %s13417_s11, %s13374_s9  ;;  %s13427_s28 = sld [smem:[#allocation43_spill]] }
 0x115   : > { %8369 = vmatprep.mubr.msk.f32.mxu0 %vm8920_vm0, %v13215_v2  ;;  %s9911_s29 = scalar_lea.vmem %s2616_s2, %s13423_s15  ;;  %s13428_s5 = sld [smem:[#allocation50_spill]] }
 0x116   : > { %s2712_s17 = scalar_lea.vmem %s13417_s11, %s13378_s21  ;;  %s13429_s25 = sld [smem:[#allocation138_spill]] }
 0x117   : > { %s9924_s9 = scalar_lea.vmem %s2648_s23, %s13424_s13  ;;  %s13430_s7 = sld [smem:[#allocation55_spill]] }
 0x118   : > { %s9927_s4 = smul.u32 72, %s13425_s12  ;;  %s13432_s27 = sld [smem:[#allocation46_spill]] }
 0x119   : > { %s9931_s15 = scalar_lea.vmem %s2680_s0, %s13426_s19  ;;  %s2744_s14 = scalar_lea.vmem %s13417_s11, %s13381_s20 }
 0x11a   : > { %13431 = sst [smem:[#allocation39_spill]] %s9927_s4  ;;  %s9946_s30 = scalar_lea.vmem %s2712_s17, %s13427_s28 }
 0x11b   : > { %s2776_s0 = scalar_lea.vmem %s13417_s11, %s13428_s5  ;;  %s13433_s21 = sld [smem:[#allocation51_spill]] }
 0x11c   : > { %v9920_v8 = vld [vmem:[%s13429_s25 + $0x18] sm:$0xff]  ;;  %v9942_v13 = vld [vmem:[%s13429_s25 + $0x10] sm:$0xff]  ;;  %s3297_s23 = sadd.s32 32, %s9927_s4  ;;  %s13434_s28 = sld [smem:[#allocation54_spill]]  ;;  %v9963_v16 = vld [vmem:[%s13429_s25 + $0x8] sm:$0xff] }
 0x11d   : > { %s2808_s13 = scalar_lea.vmem %s13417_s11, %s13430_s7  ;;  %s13147_s26 = sshrl.u32 %s9927_s4, 9 }
 0x11e   : > { %s9967_s5 = scalar_lea.vmem %s2744_s14, %s13432_s27  ;;  %s13435_s7 = sld [smem:[#allocation59_spill]] }
 0x11f   : > { %s2840_s2 = scalar_lea.vmem %s13417_s11, %s13402_s6  ;;  %p10005_p3 = scmp.gt.s32.totalorder %s13147_s26, 0 }
 0x120   : > { %s10009_s17 = sand.u32 511, %s3297_s23  }
 0x121   : > { %s9974_s19 = scalar_lea.vmem %s2776_s0, %s13433_s21  ;;  %s9998_s21 = sshrl.u32 %s3297_s23, 9 }
 0x122   : > { %s9996_s0 = scalar_lea.vmem %s2808_s13, %s13434_s28  ;;  %13439 = sst [smem:[#allocation42_spill]] %s10009_s17 }
 0x123   : > { %p7995_p4 = scmp.gt.s32.totalorder %s9998_s21, 0  ;;  %s3329_s23 = sadd.s32 40, %s9927_s4 }
 0x124   : > { %s10012_s13 = scalar_lea.vmem %s2840_s2, %s13435_s7  ;;  %s13150_s20 = sshrl.u32 %s10009_s17, 7 }
 0x125   : > { %13440 = sst [smem:[#allocation47_spill]] %s10012_s13  ;;  %s10032_s12 = sand.u32 511, %s3329_s23  }
 0x126   : > { %13441 = sst [smem:[#allocation25_spill]] %s10032_s12  ;;  %s3361_s2 = sadd.s32 48, %s9927_s4 }
 0x127   : > { %s10035_s27 = sshrl.u32 %s3329_s23, 9  ;;  %s10037_s14 = sand.u32 511, %s3361_s2  }
 0x128   : > { %13442 = sst [smem:[#allocation63_spill]] %s10037_s14  ;;  %s13808_s21 = smov (%p7995_p4, %s9998_s21), 0 }
 0x129   : > { %13443 = sst [smem:[#allocation29_spill]] %s13808_s21  ;;  %s10051_s26 = sshrl.u32 %s3361_s2, 9 }
 0x12a   : > { %p7997_p5 = scmp.gt.s32.totalorder %s10035_s27, 0  ;;  %s13444_s28 = sshrl.u32 %s10032_s12, 7 }
 0x12b   : > { %s10069_s8 = sand.u32 3, %s13444_s28   ;;  %p7999_p6 = scmp.gt.s32.totalorder %s10051_s26, 0 }
 0x12c   : > { %s13445_s7 = sadd.s32 8, %s9927_s4  ;;  %s13446_s23 = sshrl.u32 %s10037_s14, 7 }
 0x12d   : > { %s10074_s2 = sshrl.u32 %s13445_s7, 9  ;;  %s13810_s27 = smov (%p7997_p5, %s10035_s27), 0 }
 0x12e   : > { %13447 = sst [smem:[#allocation33_spill]] %s13810_s27  ;;  %s13448_s28 = sshrl.u32 %s10009_s17, 7 }
 0x12f   : > { %s10091_s7 = sshrl.u32 %s13448_s28, 2  ;;  %s13812_s26 = smov (%p7999_p6, %s10051_s26), 0 }
 0x130   : > { %13449 = sst [smem:[#allocation37_spill]] %s10091_s7  ;;  %s13453_s17 = sshrl.u32 %s10037_s14, 7 }
 0x131   : > { %13451 = sst [smem:[#allocation41_spill]] %s13812_s26  ;;  %p7989_p7 = scmp.gt.s32.totalorder %s10074_s2, 0 }
 0x132   : > { %s13452_s28 = sld [smem:[#allocation154_spill]] }
 0x133   : > { %s13816_s2 = smov (%p7989_p7, %s10074_s2), 0 }
 0x134   : > { %13464 = sst [smem:[#allocation53_spill]] %s13816_s2 }
 0x136   : > { %v4653_v21 = vpop.permute.xlu1 %4652 }
 0x137   : > { %vm4690_vm2 = vcmp.ge.s32.totalorder %v9838_v52, %v4653_v21  ;;  %v9992_v21 = vld [vmem:[%s13429_s25] sm:$0xff]  ;;  %s10063_s25 = sand.u32 3, %s13150_s20   ;;  %s10078_s20 = sand.u32 3, %s13446_s23  }
 0x138   : > { %v4718_v22 = vpop.permute.xlu0 %4717  ;;  %s13450_s23 = sshrl.u32 %s10032_s12, 7  ;;  %s4484_s13 = scalar_lea.vmem %s13452_s28, %s13810_s27 }
 0x139   : > { %vm4755_vm15 = vcmp.lt.s32.totalorder %v9838_v52, %v4718_v22  ;;  %s10096_s10 = sshrl.u32 %s13450_s23, 2  ;;  %s4452_s23 = scalar_lea.vmem %s13452_s28, %s13808_s21 }
 0x13a   : > { %v9793_v23 = vpop.permute.xlu1 %4655  ;;  %vm4768_vm3 = vmand %vm4690_vm2, %vm4755_vm15  ;;  %s10133_s12 = sshrl.u32 %s13453_s17, 2  ;;  %s13455_s21 = sld [smem:[#allocation62_spill]] }
 0x13b   : > { %v9875_v58 = vsel %vm4768_vm3, 1.0, %v13215_v2  ;;  %vm4691_vm5 = vcmp.ge.s32.totalorder %v9838_v52, %v9793_v23  ;;  %13454 = sst [smem:[#allocation45_spill]] %s10133_s12 }
 0x13c   : > { %v9795_v24 = vpop.permute.xlu0 %4720 }
 0x13d   : > { %vm4756_vm4 = vcmp.lt.s32.totalorder %v9838_v52, %v9795_v24 }
 0x13e   : > { %v9797_v25 = vpop.permute.xlu1 %4658  ;;  %vm9983_vm6 = vmand %vm4691_vm5, %vm4756_vm4 }
 0x13f   : > { %vm4692_vm8 = vcmp.ge.s32.totalorder %v9838_v52, %v9797_v25 }
 0x140   : > { %v9799_v27 = vpop.permute.xlu0 %4723 }
 0x141   : > { %vm4757_vm7 = vcmp.lt.s32.totalorder %v9838_v52, %v9799_v27 }
 0x142   : > { %v9801_v28 = vpop.permute.xlu1 %1671  ;;  %vm4770_vm9 = vmand %vm4692_vm8, %vm4757_vm7 }
 0x143   : > { %vm1675_vm10 = vcmp.ne.s32.totalorder %v9801_v28, 0 }
 0x144   : > { %v9803_v29 = vpop.permute.xlu0 %1702 }
 0x145   : > { %vm1706_vm11 = vcmp.ne.s32.totalorder %v9803_v29, 0 }
 0x146   : > { %v9805_v30 = vpop.permute.xlu1 %1734 }
 0x147   : > { %vm1738_vm12 = vcmp.ne.s32.totalorder %v9805_v30, 0  ;;  %v2493_v30 = vld [vmem:[%s9878_s16] ss:$0 sm:$0xff] }
 0x148   : > { %v9807_v32 = vpop.permute.xlu0 %1766  ;;  %v2496_v48 = vshra.s32 %v2493_v30, %v9086_v6 }
 0x149   : > { %vm1770_vm13 = vcmp.ne.s32.totalorder %v9807_v32, 0 }
 0x14a   : > { %v9809_v33 = vpop.permute.xlu1 %1798 }
 0x14b   : > { %vm1802_vm14 = vcmp.ne.s32.totalorder %v9809_v33, 0  ;;  %v2588_v33 = vld [vmem:[%s9902_s3] ss:$0 sm:$0xff]  ;;  %s13471_s3 = sld [smem:[#allocation21_spill]] }
 0x14c   : > { %v9811_v34 = vpop.permute.xlu0 %1830 }
 0x14d   : > { %vm1834_vm15 = vcmp.ne.s32.totalorder %v9811_v34, 0  ;;  %v2591_v34 = vshra.s32 %v2588_v33, %v9170_v26 }
 0x14e   : > { %v9813_v35 = vpop.permute.xlu1 %1862 }
 0x14f   : > { %vm1866_vm2 = vcmp.ne.s32.totalorder %v9813_v35, 0  ;;  %v2716_v35 = vld [vmem:[%s9946_s30] ss:$0 sm:$0xff] }
 0x150   : > { %v9815_v37 = vpop.permute.xlu0 %1894 }
 0x151   : > { %vm1898_vm3 = vcmp.ne.s32.totalorder %v9815_v37, 0  ;;  %v2719_v37 = vshra.s32 %v2716_v35, %v9250_v46  ;;  %v7897_v46 = vld [vmem:[%s9856_s22 + $0x40] sm:$0xff] }
 0x152   : > { %v9817_v38 = vpop.permute.xlu1 %1926 }
 0x153   : > { %vm1930_vm4 = vcmp.ne.s32.totalorder %v9817_v38, 0 }
 0x154   : > { %v9819_v39 = vpop.permute.xlu0 %1958 }
 0x155   : > { %vm1962_vm5 = vcmp.ne.s32.totalorder %v9819_v39, 0 }
 0x156   : > { %v9821_v40 = vpop.permute.xlu1 %1990 }
 0x158   : > { %v9823_v42 = vpop.permute.xlu0 %2022 }
 0x159   : > { %vm2026_vm7 = vcmp.ne.s32.totalorder %v9823_v42, 0 }
 0x15a   : > { %v9825_v43 = vpop.permute.xlu1 %2054 }
 0x15b   : > { %vm2058_vm8 = vcmp.ne.s32.totalorder %v9825_v43, 0 }
 0x15c   : > { %v9827_v44 = vpop.permute.xlu0 %2086 }
 0x15e   : > { %v9829_v45 = vpop.permute.xlu1 %2117 }
 0x160   : > { %v9831_v47 = vpop.permute.xlu0 %2149 }
 0x162   : > { %v9833_v49 = vpop.permute.xlu1 %2181 }
 0x164   : > { %v9835_v50 = vpop.permute.xlu0 %2213 }
 0x166   : > { %v9840_v53 = vpop.permute.xlu1 %2245  ;;  %v5031_v59 = vpop.f32.mrf.mxu0 }
 0x167   : > { %v5095_v62 = vmul.f32 %v9875_v58, %v5031_v59  ;;  %v10020_v59 = vsel %vm9983_vm6, 1.0, %v13215_v2  ;;  %vm1994_vm6 = vcmp.ne.s32.totalorder %v9821_v40, 0 }
 0x168   : > { %v9843_v54 = vpop.permute.xlu0 %2277  ;;  %v8300_v1 = vpop.f32.mrf.mxu0 }
 0x169   : > { %8370 = vmatmul.mubr.f32.vlgmr.msra.gmra.mxu0 %v5095_v62 }
 0x16a   : > { %v9846_v55 = vpop.permute.xlu1 %2309  ;;  %8372 = vmatprep.mubr.msk.f32.mxu0 %vm8920_vm0, %v13215_v2  ;;  %8409 = vmatpush3.msra.mxu0 %v9920_v8 }
 0x16b   : > { %8410 = vmatprep.subr.mxu0 %v13215_v2 }
 0x16c   : > { %v9868_v57 = vpop.permute.xlu0 %2341  ;;  %8411 = vmatpush3.msra.mxu0 %v9942_v13 }
 0x16d   : > { %8412 = vmatprep.subr.mxu0 %v13215_v2 }
 0x16e   : > { %v2974_v60 = vpop.permute.xlu1 %2973  ;;  %8413 = vmatpush3.msra.mxu0 %v9963_v16 }
 0x16f   : > { %v4641_v63 = vmul.u32 16, %v2974_v60  ;;  %8414 = vmatprep.subr.mxu0 %v13215_v2 }
 0x170   : > { %v9899_v3 = vpop.permute.xlu0 %2373  ;;  %8415 = vmatpush3.msra.mxu0 %v9992_v21 }
 0x171   : > { %v4706_v5 = vadd.s32 16, %v4641_v63  ;;  %4661 = vperm.xlu1 %8697, %v4641_v63   ;;  %8526 = vmatprep.subr.mxu0 %v13215_v2 }
 0x172   : > { %v2995_v7 = vpop.permute.xlu1 %2994 }
 0x173   : > { %v4642_v9 = vmul.u32 16, %v2995_v7  ;;  %4726 = vperm.xlu0 %8698, %v4706_v5   ;;  %v10040_v7 = vsel %vm4770_vm9, 1.0, %v13215_v2  ;;  %vm2090_vm9 = vcmp.ne.s32.totalorder %v9827_v44, 0 }
 0x174   : > { %v9937_v11 = vpop.permute.xlu0 %2405 }
 0x175   : > { %v4707_v14 = vadd.s32 16, %v4642_v9  ;;  %4664 = vperm.xlu1 %8697, %v4642_v9  }
 0x176   : > { %v3016_v15 = vpop.permute.xlu1 %3015  ;;  %v5036_v60 = vpop.f32.mrf.mxu0 }
 0x177   : > { %v4643_v17 = vmul.u32 16, %v3016_v15  ;;  %4729 = vperm.xlu0 %8698, %v4707_v14   ;;  %v5096_v62 = vmul.f32 %v10020_v59, %v5036_v60 }
 0x178   : > { %v9987_v20 = vpop.permute.xlu0 %2437  ;;  %v8303_v1 = vpop.f32.mrf.mxu0 }
 0x179   : > { %v4708_v22 = vadd.s32 16, %v4643_v17  ;;  %4667 = vperm.xlu1 %8697, %v4643_v17   ;;  %8373 = vmatmul.mubr.f32.gmra.mxu0 %v5096_v62  ;;  %v7883_v1 = vld [vmem:[%s9856_s22 + $0x8] sm:$0xff] }
 0x17a   : > { %v3037_v23 = vpop.permute.xlu1 %3036  ;;  %v5041_v9 = vpop.f32.mrf.mxu0  ;;  %8375 = vmatprep.mubr.msk.f32.mxu0 %vm8920_vm0, %v13215_v2 }
 0x17b   : > { %v4644_v24 = vmul.u32 16, %v3037_v23  ;;  %4732 = vperm.xlu0 %8698, %v4708_v22   ;;  %v5097_v14 = vmul.f32 %v10040_v7, %v5041_v9  ;;  %v1652_v23 = vld [vmem:[%s9856_s22] sm:$0xff] }
 0x17c   : > { %v10028_v63 = vpop.permute.xlu0 %2469  ;;  %v8306_v19 = vpop.f32.mrf.mxu0 }
 0x17d   : > { %v4709_v25 = vadd.s32 16, %v4644_v24  ;;  %4670 = vperm.xlu1 %8697, %v4644_v24   ;;  %8376 = vmatmul.mubr.f32.gmra.mxu0 %v5097_v14 }
 0x17e   : > { %v3058_v5 = vpop.permute.xlu1 %3057  ;;  %8416 = vmatprep.mubr.msk.f32.mxu0 %vm8920_vm0, %v13215_v2 }
 0x17f   : > { %v4645_v27 = vmul.u32 16, %v3058_v5  ;;  %4735 = vperm.xlu0 %8698, %v4709_v25   ;;  %v1676_v25 = vsel %vm1675_vm10, %v1652_v23, %v13288_v0  ;;  %v3309_v5 = vstv %s10063_s25  ;;  %v7885_v23 = vld [vmem:[%s9856_s22 + $0x10] sm:$0xff]  ;;  %vm2121_vm10 = vcmp.ne.s32.totalorder %v9829_v45, 0 }
 0x180   : > { %v3079_v15 = vpop.permute.xlu0 %3078 }
 0x181   : > { %v4710_v17 = vadd.s32 16, %v4645_v27  ;;  %4673 = vperm.xlu1 %8697, %v4645_v27   ;;  %v4646_v22 = vmul.u32 16, %v3079_v15  ;;  %8417 = vmatmul.mubr.msk.f32.vlgmr.msra.gmra.mxu0 %vm4925_vm1, %v1676_v25  ;;  %v3341_v27 = vstv %s10069_s8  ;;  %s4487_s8 = scalar_lea.vmem %s4484_s13, %s10096_s10  ;;  %s4516_s13 = scalar_lea.vmem %s13452_s28, %s13812_s26 }
 0x182   : > { %v3100_v24 = vpop.permute.xlu1 %3099  ;;  %8419 = vmatprep.mubr.msk.f32.mxu0 %vm8920_vm0, %v13215_v2  ;;  %8527 = vmatpush3.msra.mxu0 %v9920_v8  ;;  %v10124_v8 = vshll.u32 %v3309_v5, 3  ;;  %s4519_s27 = scalar_lea.vmem %s4516_s13, %s10133_s12 }
 0x183   : > { %v4711_v60 = vadd.s32 16, %v4646_v22  ;;  %4738 = vperm.xlu0 %8698, %v4710_v17   ;;  %v4647_v28 = vmul.u32 16, %v3100_v24  ;;  %v3373_v17 = vstv %s10078_s20  ;;  %v1707_v24 = vsel %vm1706_vm11, %v7883_v1, %v13288_v0  ;;  %8528 = vmatprep.subr.mxu0 %v13215_v2  ;;  %s4455_s20 = scalar_lea.vmem %s4452_s23, %s10091_s7  ;;  %s13456_s23 = sand.u32 511, %s9927_s4  }
 0x184   : > { %v3121_v62 = vpop.permute.xlu0 %3120  ;;  %v10135_v29 = vshll.u32 %v3373_v17, 3  ;;  %s10149_s17 = sshrl.u32 %s13456_s23, 7  ;;  %8529 = vmatpush3.msra.mxu0 %v9942_v13  ;;  %s13459_s23 = scalar_lea.vmem %s13417_s11, %s13392_s1  ;;  %v7889_v13 = vld [vmem:[%s9856_s22 + $0x20] sm:$0xff]  ;;  %vm2153_vm11 = vcmp.ne.s32.totalorder %v9831_v47, 0 }
 0x185   : > { %4676 = vperm.xlu1 %8697, %v4646_v22   ;;  %v4712_v14 = vadd.s32 16, %v4647_v28  ;;  %v4648_v15 = vmul.u32 16, %v3121_v62  ;;  %8420 = vmatmul.mubr.msk.f32.gmra.mxu0 %vm4925_vm1, %v1707_v24  ;;  %v10139_v62 = vld [vmem:[%s4487_s8] ss:$0 sm:$0xff]  ;;  %s10174_s13 = scalar_lea.vmem %s13459_s23, %s13455_s21  ;;  %s13460_s1 = sand.u32 511, %s9927_s4  }
 0x186   : > { %v3142_v19 = vpop.permute.xlu1 %3141  ;;  %8422 = vmatprep.mubr.msk.f32.mxu0 %vm8920_vm0, %v13215_v2  ;;  %8530 = vmatprep.subr.mxu0 %v13215_v2  ;;  %s10186_s6 = sand.u32 127, %s13460_s1   ;;  %s13461_s21 = sadd.s32 8, %s9927_s4  ;;  %v2876_v38 = vld [vmem:[%s10174_s13] ss:$0 sm:$0xff] }
 0x187   : > { %4741 = vperm.xlu0 %8698, %v4711_v60   ;;  %v10126_v60 = vshll.u32 %v3341_v27, 3  ;;  %v4713_v25 = vadd.s32 16, %v4648_v15  ;;  %v4649_v1 = vmul.u32 16, %v3142_v19  ;;  %v1739_v19 = vsel %vm1738_vm12, %v7885_v23, %v13288_v0  ;;  %s10197_s8 = sshrl.u32 %s10149_s17, 2  ;;  %s13463_s1 = sld [smem:[#allocation158_spill]]  ;;  %8531 = vmatpush3.msra.mxu0 %v9963_v16 }
 0x188   : > { %v10099_v9 = vpop.f32.mrf.mxu0  ;;  %v3163_v17 = vpop.permute.xlu0 %3162  ;;  %13462 = sst [smem:[#allocation49_spill]] %s10197_s8  ;;  %s3233_s11 = sadd.s32 16, %s9927_s4  ;;  %8532 = vmatprep.subr.mxu0 %v13215_v2  ;;  %v2556_v16 = vld [vmem:[%s9893_s24] ss:$0 sm:$0xff]  ;;  %vm2185_vm12 = vcmp.ne.s32.totalorder %v9833_v49, 0 }
 0x189   : > { %4679 = vperm.xlu1 %8697, %v4647_v28   ;;  %v10137_v28 = vld [vmem:[%s4455_s20] ss:$0 sm:$0xff]  ;;  %v4491_v27 = vshra.s32 %v10139_v62, %v10126_v60  ;;  %s13457_s20 = sshrl.u32 %s9927_s4, 9  ;;  %8423 = vmatmul.mubr.msk.f32.gmra.mxu0 %vm4925_vm1, %v1739_v19  ;;  %v4714_v23 = vadd.s32 16, %v4649_v1  ;;  %v4650_v24 = vmul.u32 16, %v3163_v17  ;;  %s3186_s16 = sand.u32 255, %s10186_s6  ;;  %v2559_v30 = vshra.s32 %v2556_v16, %v9114_v12 }
 0x18a   : > { %v8309_v22 = vpop.f32.mrf.mxu0  ;;  %v4459_v5 = vshra.s32 %v10137_v28, %v10124_v8  ;;  %s13814_s20 = smov (%p10005_p3, %s13457_s20), 0  ;;  %8425 = vmatprep.mubr.msk.f32.mxu0 %vm8920_vm0, %v13215_v2  ;;  %v2524_v19 = vld [vmem:[%s9886_s18] ss:$0 sm:$0xff]  ;;  %s10231_s25 = sshrl.u32 %s3233_s11, 9  ;;  %8533 = vmatpush3.msra.mxu0 %v9992_v21  ;;  %v2592_v16 = vand.u32 255, %v2591_v34 }
 0x18b   : > { %4744 = vperm.xlu0 %8698, %v4712_v14   ;;  %13458 = sst [smem:[#allocation58_spill]] %s13814_s20  ;;  %v10163_v14 = vld [vmem:[%s4519_s27] ss:$0 sm:$0xff]  ;;  %v7887_v22 = vld [vmem:[%s9856_s22 + $0x18] sm:$0xff]  ;;  %s10190_s27 = sand.u32 511, %s13461_s21   ;;  %v4715_v32 = vadd.s32 16, %v4650_v24  ;;  %v2527_v6 = vshra.s32 %v2524_v19, %v9134_v18 }
 0x18c   : > { %v1771_v17 = vsel %vm1770_vm13, %v7887_v22, %v13288_v0  ;;  %s13162_s18 = sshrl.u32 %s10190_s27, 7  ;;  %s10234_s24 = sor.u32 256, %s3186_s16  ;;  %v1803_v22 = vsel %vm1802_vm14, %v7889_v13, %v13288_v0  ;;  %v2497_v18 = vand.u32 255, %v2496_v48  ;;  %v2620_v21 = vld [vmem:[%s9911_s29] ss:$0 sm:$0xff]  ;;  %v2560_v26 = vand.u32 255, %v2559_v30 }
 0x18d   : > { %4682 = vperm.xlu1 %8697, %v4648_v15   ;;  %s3177_s21 = scalar_lea.vmem %s13463_s1, %s13814_s20  ;;  %8426 = vmatmul.mubr.msk.f32.gmra.mxu0 %vm4925_vm1, %v1771_v17  ;;  %13465 = sst [smem:[#allocation57_spill]] %s10234_s24  ;;  %v2528_v48 = vand.u32 255, %v2527_v6  ;;  %v2652_v13 = vld [vmem:[%s9924_s9] ss:$0 sm:$0xff]  ;;  %v2623_v19 = vshra.s32 %v2620_v21, %v9193_v31  ;;  %vm2217_vm13 = vcmp.ne.s32.totalorder %v9835_v50, 0  ;;  %vm2249_vm14 = vcmp.ne.s32.totalorder %v9840_v53, 0 }
 0x18e   : > { %8428 = vmatprep.mubr.msk.f32.mxu0 %vm8920_vm0, %v13215_v2  ;;  %s10227_s6 = scalar_lea.vmem %s3177_s21, %s10197_s8  ;;  %s3207_s23 = sand.u32 127, %s10190_s27   ;;  %v2684_v17 = vld [vmem:[%s9931_s15] ss:$0 sm:$0xff]  ;;  %v2655_v31 = vshra.s32 %v2652_v13, %v9210_v36 }
 0x18f   : > { %4747 = vperm.xlu0 %8698, %v4713_v25   ;;  %s10244_s21 = sshrl.u32 %s13162_s18, 2  ;;  %s13467_s16 = sld [smem:[#allocation18_spill]]  ;;  %v2624_v36 = vand.u32 255, %v2623_v19  ;;  %v2687_v33 = vshra.s32 %v2684_v17, %v9233_v41  ;;  %v2812_v34 = vld [vmem:[%s9996_s0] ss:$0 sm:$0xff] }
 0x190   : > { %13466 = sst [smem:[#allocation61_spill]] %s10244_s21  ;;  %p7991_p8 = scmp.gt.s32.totalorder %s10231_s25, 0  ;;  %v2656_v30 = vand.u32 255, %v2655_v31  ;;  %v7899_v31 = vld [vmem:[%s9856_s22 + $0x48] sm:$0xff] }
 0x191   : > { %v10192_v15 = vpop.f32.mrf.mxu0  ;;  %4685 = vperm.xlu1 %8697, %v4649_v1   ;;  %8429 = vmatmul.mubr.msk.f32.gmra.mxu0 %vm4925_vm1, %v1803_v22  ;;  %s10254_s28 = sand.u32 511, %s3233_s11   ;;  %s3208_s29 = scalar_lea.vmem %s13463_s1, %s13816_s2  ;;  %v7895_v22 = vld [vmem:[%s9856_s22 + $0x38] sm:$0xff] }
 0x192   : > { %8431 = vmatprep.mubr.msk.f32.mxu0 %vm8920_vm0, %v13215_v2  ;;  %s13468_s11 = sshrl.u32 %s10190_s27, 7  ;;  %s13469_s8 = sld [smem:[#allocation24_spill]]  ;;  %v1899_v21 = vsel %vm1898_vm3, %v7895_v22, %v13288_v0  ;;  %vm2345_vm3 = vcmp.ne.s32.totalorder %v9868_v57, 0 }
 0x193   : > { %v8312_v25 = vpop.f32.mrf.mxu0  ;;  %4750 = vperm.xlu0 %8698, %v4714_v23   ;;  %v7891_v23 = vld [vmem:[%s9856_s22 + $0x28] sm:$0xff]  ;;  %s10265_s14 = sand.u32 3, %s13468_s11   ;;  %s3217_s20 = sand.u32 255, %s3207_s23 }
 0x194   : > { %s13470_s24 = sadd.s32 24, %s9927_s4  ;;  %s3238_s18 = sshrl.u32 %s10254_s28, 7  ;;  %v7893_v25 = vld [vmem:[%s9856_s22 + $0x30] sm:$0xff]  ;;  %v3213_v35 = vstv %s10265_s14 }
 0x195   : > { %4688 = vperm.xlu1 %8697, %v4650_v24   ;;  %s10270_s12 = sshrl.u32 %s13470_s24, 9  ;;  %v1835_v24 = vsel %vm1834_vm15, %v7891_v23, %v13288_v0  ;;  %s3239_s27 = sand.u32 127, %s10254_s28   ;;  %v1867_v6 = vsel %vm1866_vm2, %v7893_v25, %v13288_v0  ;;  %v2780_v23 = vld [vmem:[%s9974_s19] ss:$0 sm:$0xff]  ;;  %vm2281_vm15 = vcmp.ne.s32.totalorder %v9843_v54, 0  ;;  %vm2313_vm2 = vcmp.ne.s32.totalorder %v9846_v55, 0 }
 0x196   : > { %8432 = vmatmul.mubr.msk.f32.gmra.mxu0 %vm4925_vm1, %v1835_v24  ;;  %s13818_s25 = smov (%p7991_p8, %s10231_s25), 0  ;;  %p7993_p9 = scmp.gt.s32.totalorder %s10270_s12, 0  ;;  %v2783_v24 = vshra.s32 %v2780_v23, %v9290_v56  ;;  %v1931_v56 = vsel %vm1930_vm4, %v7897_v46, %v13288_v0  ;;  %vm2377_vm4 = vcmp.ne.s32.totalorder %v9899_v3, 0 }
 0x197   : > { %4753 = vperm.xlu0 %8698, %v4715_v32   ;;  %13472 = sst [smem:[#allocation17_spill]] %s13818_s25  ;;  %8434 = vmatprep.mubr.msk.f32.mxu0 %vm8920_vm0, %v13215_v2  ;;  %s13473_s9 = smov %s13470_s24 }
 0x198   : > { %v10238_v1 = vpop.f32.mrf.mxu0  ;;  %s10293_s24 = sand.u32 511, %s13473_s9   ;;  %s10297_s15 = scalar_lea.vmem %s3208_s29, %s10244_s21 }
 0x199   : > { %2501 = vbcast.lane.b32.xlu1 %v2497_v18, %s13467_s16  ;;  %s13474_s23 = sld [smem:[#allocation28_spill]]  ;;  %s10299_s16 = sor.u32 256, %s3217_s20  ;;  %v2748_v18 = vld [vmem:[%s9967_s5] ss:$0 sm:$0xff] }
 0x19a   : > { %v8315_v12 = vpop.f32.mrf.mxu0  ;;  %s3249_s30 = sand.u32 255, %s3239_s27  ;;  %s13476_s20 = sld [smem:[#allocation32_spill]]  ;;  %8435 = vmatmul.mubr.msk.f32.gmra.mxu0 %vm4925_vm1, %v1867_v6  ;;  %v3212_v39 = vld [vmem:[%s10297_s15] ss:$0 sm:$0xff] }
 0x19b   : > { %2532 = vbcast.lane.b32.xlu0 %v2528_v48, %s13469_s8  ;;  %s10308_s8 = sshrl.u32 %s3238_s18, 2  ;;  %s3270_s9 = sshrl.u32 %s10293_s24, 7  ;;  %8437 = vmatprep.mubr.msk.f32.mxu0 %vm8920_vm0, %v13215_v2  ;;  %v2688_v12 = vand.u32 255, %v2687_v33  ;;  %v2751_v48 = vshra.s32 %v2748_v18, %v9273_v51  ;;  %v2720_v51 = vand.u32 255, %v2719_v37  ;;  %v3181_v33 = vld [vmem:[%s10227_s6] ss:$0 sm:$0xff] }
 0x19c   : > { %13475 = sst [smem:[#allocation23_spill]] %s10308_s8  ;;  %s13820_s12 = smov (%p7993_p9, %s10270_s12), 0  ;;  %v7901_v37 = vld [vmem:[%s9856_s22 + $0x50] sm:$0xff] }
 0x19d   : > { %2564 = vbcast.lane.b32.xlu1 %v2560_v26, %s13471_s3  ;;  %s3240_s3 = scalar_lea.vmem %s13463_s1, %s13818_s25  ;;  %s13477_s5 = sld [smem:[#allocation36_spill]]  ;;  %v2752_v17 = vand.u32 255, %v2751_v48 }
 0x19e   : > { %s10331_s27 = sand.u32 3, %s3238_s18   ;;  %s10333_s29 = sor.u32 256, %s3249_s30  ;;  %8438 = vmatmul.mubr.msk.f32.gmra.mxu0 %vm4925_vm1, %v1899_v21 }
 0x19f   : > { %2596 = vbcast.lane.b32.xlu0 %v2592_v16, %s13474_s23  ;;  %13478 = sst [smem:[#allocation20_spill]] %s10333_s29  ;;  %s10339_s11 = scalar_lea.vmem %s3240_s3, %s10308_s8  ;;  %8440 = vmatprep.mubr.msk.f32.mxu0 %vm8920_vm0, %v13215_v2  ;;  %v2815_v16 = vshra.s32 %v2812_v34, %v9313_v61  ;;  %v2784_v61 = vand.u32 255, %v2783_v24  ;;  %v3245_v22 = vstv %s10331_s27 }
 0x1a0   : > { %s13479_s23 = sld [smem:[#allocation47_spill]]  ;;  %s3271_s21 = sand.u32 127, %s10293_s24   ;;  %v10435_v48 = vshll.u32 %v3245_v22, 3  ;;  %v3244_v46 = vld [vmem:[%s10339_s11] ss:$0 sm:$0xff] }
 0x1a1   : > { %2628 = vbcast.lane.b32.xlu1 %v2624_v36, %s13476_s20  ;;  %s13480_s25 = sld [smem:[#allocation42_spill]]  ;;  %s10346_s28 = sshrl.u32 %s3270_s9, 2  ;;  %v2816_v18 = vand.u32 255, %v2815_v16 }
 0x1a2   : > { %v10301_v32 = vpop.f32.mrf.mxu0  ;;  %s13481_s19 = sld [smem:[#allocation40_spill]]  ;;  %s3272_s20 = scalar_lea.vmem %s13463_s1, %s13820_s12  ;;  %8441 = vmatmul.mubr.msk.f32.gmra.mxu0 %vm4925_vm1, %v1931_v56 }
 0x1a3   : > { %13482 = sst [smem:[#allocation16_spill]] %s10346_s28  ;;  %2660 = vbcast.lane.b32.xlu0 %v2656_v30, %s13477_s5  ;;  %s10359_s0 = sand.u32 3, %s3270_s9   ;;  %8443 = vmatprep.mubr.msk.f32.mxu0 %vm8920_vm0, %v13215_v2  ;;  %v10413_v30 = vshll.u32 %v3213_v35, 3 }
 0x1a4   : > { %v8318_v41 = vpop.f32.mrf.mxu0  ;;  %s13483_s3 = sand.u32 3, %s10149_s17   ;;  %s13484_s5 = sld [smem:[#allocation29_spill]]  ;;  %v3277_v23 = vstv %s10359_s0 }
 0x1a5   : > { %v3182_v19 = vstv %s13483_s3  ;;  %s13485_s8 = sld [smem:[#allocation44_spill]]  ;;  %s3425_s29 = sadd.s32 64, %s9927_s4  ;;  %v2879_v41 = vshra.s32 %v2876_v38, %v9350_v10 }
 0x1a6   : > { %v2844_v26 = vld [vmem:[%s13479_s23] ss:$0 sm:$0xff]  ;;  %s10371_s9 = sand.u32 255, %s3271_s21  ;;  %s13486_s23 = sadd.s32 56, %s9927_s4  ;;  %v10393_v36 = vshll.u32 %v3182_v19, 3  ;;  %v10453_v19 = vshll.u32 %v3277_v23, 3 }
 0x1a7   : > { %s3303_s18 = sand.u32 127, %s13480_s25   ;;  %s10375_s17 = sshrl.u32 %s13486_s23, 9  ;;  %v2847_v6 = vshra.s32 %v2844_v26, %v9330_v4  ;;  %v1963_v4 = vsel %vm1962_vm5, %v7899_v31, %v13288_v0  ;;  %v2880_v24 = vand.u32 255, %v2879_v41  ;;  %v3215_v26 = vshra.s32 %v3212_v39, %v10413_v30 }
 0x1a8   : > { %2692 = vbcast.lane.b32.xlu1 %v2688_v12, %s13481_s19  ;;  %s13487_s25 = sld [smem:[#allocation48_spill]]  ;;  %s10383_s19 = scalar_lea.vmem %s3272_s20, %s10346_s28  ;;  %8444 = vmatmul.mubr.msk.f32.gmra.mxu0 %vm4925_vm1, %v1963_v4  ;;  %v3184_v12 = vshra.s32 %v3181_v33, %v10393_v36  ;;  %vm2409_vm5 = vcmp.ne.s32.totalorder %v9937_v11, 0 }
 0x1a9   : > { %v10349_v13 = vpop.f32.mrf.mxu0  ;;  %s13488_s3 = sld [smem:[#allocation25_spill]]  ;;  %s10395_s13 = sand.u32 255, %s3303_s18  ;;  %8446 = vmatprep.mubr.msk.f32.mxu0 %vm8920_vm0, %v13215_v2  ;;  %v2848_v21 = vand.u32 255, %v2847_v6  ;;  %v3276_v40 = vld [vmem:[%s10383_s19] ss:$0 sm:$0xff]  ;;  %v3216_v38 = vand.u32 255, %v3215_v26 }
 0x1aa   : > { %s3304_s30 = scalar_lea.vmem %s13463_s1, %s13484_s5  ;;  %s10399_s14 = sshrl.u32 %s3425_s29, 9  ;;  %v3185_v56 = vand.u32 255, %v3184_v12  ;;  %v3279_v35 = vshra.s32 %v3276_v40, %v10453_v19 }
 0x1ab   : > { %v8321_v25 = vpop.f32.mrf.mxu0  ;;  %2724 = vbcast.lane.b32.xlu0 %v2720_v51, %s13485_s8  ;;  %p8001_p10 = scmp.gt.s32.totalorder %s10375_s17, 0  ;;  %s13489_s8 = smov %s13486_s23  ;;  %v1995_v51 = vsel %vm1994_vm6, %v7901_v37, %v13288_v0  ;;  %vm2441_vm6 = vcmp.ne.s32.totalorder %v9987_v20, 0 }
 0x1ac   : > { %s10406_s20 = sand.u32 511, %s13489_s8   ;;  %s13490_s23 = sld [smem:[#allocation52_spill]]  ;;  %v7903_v25 = vld [vmem:[%s9856_s22 + $0x58] sm:$0xff]  ;;  %8447 = vmatmul.mubr.msk.f32.gmra.mxu0 %vm4925_vm1, %v1995_v51  ;;  %v3280_v23 = vand.u32 255, %v3279_v35 }
 0x1ad   : > { %s13491_s18 = sld [smem:[#allocation33_spill]]  ;;  %s10416_s6 = scalar_lea.vmem %s3304_s30, %s10091_s7  ;;  %8449 = vmatprep.mubr.msk.f32.mxu0 %vm8920_vm0, %v13215_v2  ;;  %v2027_v31 = vsel %vm2026_vm7, %v7903_v25, %v13288_v0  ;;  %vm2473_vm7 = vcmp.ne.s32.totalorder %v10028_v63, 0 }
 0x1ae   : > { %2756 = vbcast.lane.b32.xlu1 %v2752_v17, %s13487_s25  ;;  %s13492_s25 = sld [smem:[#allocation56_spill]]  ;;  %p8003_p11 = scmp.gt.s32.totalorder %s10399_s14, 0  ;;  %v3247_v17 = vshra.s32 %v3244_v46, %v10435_v48  ;;  %v3308_v42 = vld [vmem:[%s10416_s6] ss:$0 sm:$0xff] }
 0x1af   : > { %s10427_s24 = sand.u32 511, %s3425_s29   ;;  %s3398_s21 = sshrl.u32 %s10406_s20, 7 }
 0x1b0   : > { %s13493_s30 = sld [smem:[#allocation60_spill]]  ;;  %s13822_s17 = smov (%p8001_p10, %s10375_s17), 0  ;;  %8450 = vmatmul.mubr.msk.f32.gmra.mxu0 %vm4925_vm1, %v2027_v31  ;;  %v3248_v4 = vand.u32 255, %v3247_v17 }
 0x1b1   : > { %13494 = sst [smem:[#allocation26_spill]] %s13822_s17  ;;  %s3368_s11 = scalar_lea.vmem %s13463_s1, %s13812_s26  ;;  %8452 = vmatprep.mubr.msk.f32.mxu0 %vm8920_vm0, %v13215_v2 }
 0x1b2   : > { %2788 = vbcast.lane.b32.xlu0 %v2784_v61, %s13490_s23  ;;  %s3430_s15 = sshrl.u32 %s10427_s24, 7  ;;  %s13495_s0 = sld [smem:[#allocation64_spill]]  ;;  %v7905_v61 = vld [vmem:[%s9856_s22 + $0x60] sm:$0xff] }
 0x1b3   : > { %v10429_v10 = vpop.f32.mrf.mxu0  ;;  %s3336_s29 = scalar_lea.vmem %s13463_s1, %s13491_s18  ;;  %s13824_s14 = smov (%p8003_p11, %s10399_s14), 0  ;;  %v2059_v39 = vsel %vm2058_vm8, %v7905_v61, %v13288_v0 }
 0x1b4   : > { %2820 = vbcast.lane.b32.xlu1 %v2816_v18, %s13492_s25  ;;  %s13496_s25 = sld [smem:[#allocation45_spill]]  ;;  %s3339_s8 = scalar_lea.vmem %s3336_s29, %s10096_s10  ;;  %v3311_v18 = vshra.s32 %v3308_v42, %v10124_v8  ;;  %8453 = vmatmul.mubr.msk.f32.gmra.mxu0 %vm4925_vm1, %v2059_v39 }
 0x1b5   : > { %v8324_v34 = vpop.f32.mrf.mxu0  ;;  %13497 = sst [smem:[#allocation22_spill]] %s13824_s14  ;;  %s10474_s23 = sand.u32 3, %s3398_s21   ;;  %v3340_v6 = vld [vmem:[%s3339_s8] ss:$0 sm:$0xff]  ;;  %8534 = vmatprep.mubr.msk.f32.mxu0 %vm8920_vm0, %v13215_v2 }
 0x1b6   : > { %2852 = vbcast.lane.b32.xlu0 %v2848_v21, %s13493_s30  ;;  %s3400_s4 = scalar_lea.vmem %s13463_s1, %s13822_s17  ;;  %s10481_s26 = sshrl.u32 %s3398_s21, 2  ;;  %v3405_v33 = vstv %s10474_s23  ;;  %v3343_v21 = vshra.s32 %v3340_v6, %v10126_v60  ;;  %v3312_v34 = vand.u32 255, %v3311_v18 }
 0x1b7   : > { %13498 = sst [smem:[#allocation31_spill]] %s10481_s26  ;;  %s10489_s6 = sand.u32 3, %s3430_s15   ;;  %v10524_v12 = vshll.u32 %v3405_v33, 3 }
 0x1b8   : > { %s13499_s30 = sld [smem:[#allocation57_spill]]  ;;  %2884 = vbcast.lane.b32.xlu1 %v2880_v24, %s13495_s0  ;;  %s3432_s19 = scalar_lea.vmem %s13463_s1, %s13824_s14  ;;  %v3437_v37 = vstv %s10489_s6 }
 0x1b9   : > { %s13500_s27 = sld [smem:[#allocation58_spill]]  ;;  %s10499_s17 = sshrl.u32 %s3430_s15, 2  ;;  %v10541_v24 = vshll.u32 %v3437_v37, 3 }
 0x1ba   : > { %v10483_v16 = vpop.f32.mrf.mxu0  ;;  %s3371_s29 = scalar_lea.vmem %s3368_s11, %s13496_s25  ;;  %13501 = sst [smem:[#allocation19_spill]] %s10499_s17 }
 0x1bb   : > { %s13502_s22 = sld [smem:[#allocation34_spill]]  ;;  %s10505_s11 = sor.u32 256, %s10371_s9  ;;  %v3372_v41 = vld [vmem:[%s3371_s29] ss:$0 sm:$0xff] }
 0x1bc   : > { %v8327_v22 = vpop.f32.mrf.mxu0  ;;  %13503 = sst [smem:[#allocation27_spill]] %s10505_s11  ;;  %s3403_s23 = scalar_lea.vmem %s3400_s4, %s10481_s26  ;;  %3220 = vbcast.lane.b32.xlu1 %v3216_v38, %s10299_s16  ;;  %v3375_v51 = vshra.s32 %v3372_v41, %v10135_v29 }
 0x1bd   : > { %s13504_s8 = sld [smem:[#allocation63_spill]]  ;;  %s13505_s25 = sand.u32 127, %s13488_s3   ;;  %v3404_v43 = vld [vmem:[%s3403_s23] ss:$0 sm:$0xff] }
 0x1be   : > { %3189 = vbcast.lane.b32.xlu0 %v3185_v56, %s13499_s30  ;;  %s3345_s21 = sand.u32 255, %s13505_s25  ;;  %s13506_s15 = sld [smem:[#allocation20_spill]]  ;;  %v3344_v56 = vand.u32 255, %v3343_v21  ;;  %v3407_v17 = vshra.s32 %v3404_v43, %v10524_v12  ;;  %v3376_v38 = vand.u32 255, %v3375_v51 }
 0x1bf   : > { %s13507_s30 = sld [smem:[#allocation157_spill]]  ;;  %s10521_s9 = sor.u32 256, %s10395_s13 }
 0x1c0   : > { %13508 = sst [smem:[#allocation30_spill]] %s10521_s9  ;;  %s3435_s3 = scalar_lea.vmem %s3432_s19, %s10499_s17  ;;  %3284 = vbcast.lane.b32.xlu1 %v3280_v23, %s10505_s11  ;;  %v3408_v6 = vand.u32 255, %v3407_v17 }
 0x1c1   : > { %s13509_s4 = sld [smem:[#allocation49_spill]]  ;;  %v2067_v46 = vld [vmem:[%s13502_s22] sm:$0xff]  ;;  %s10538_s19 = sor.u32 256, %s3345_s21  ;;  %v7909_v42 = vld [vmem:[%s13502_s22 + $0x8] sm:$0xff]  ;;  %v7911_v22 = vld [vmem:[%s13502_s22 + $0x10] sm:$0xff] }
 0x1c2   : > { %s13510_s25 = sld [smem:[#allocation17_spill]]  ;;  %s3399_s23 = sand.u32 127, %s10406_s20   ;;  %v3436_v26 = vld [vmem:[%s3435_s3] ss:$0 sm:$0xff]  ;;  %v2091_v40 = vsel %vm2090_vm9, %v2067_v46, %v13288_v0  ;;  %v2122_v61 = vsel %vm2121_vm10, %v7909_v42, %v13288_v0  ;;  %v2154_v23 = vsel %vm2153_vm11, %v7911_v22, %v13288_v0  ;;  %v7913_v43 = vld [vmem:[%s13502_s22 + $0x18] sm:$0xff] }
 0x1c3   : > { %s3367_s1 = sand.u32 127, %s13504_s8   ;;  %s13511_s0 = sld [smem:[#allocation61_spill]]  ;;  %8535 = vmatmul.mubr.msk.f32.vlgmr.msra.gmra.mxu0 %vm4925_vm1, %v2091_v40  ;;  %v3439_v45 = vshra.s32 %v3436_v26, %v10541_v24  ;;  %v2186_v49 = vsel %vm2185_vm12, %v7913_v43, %v13288_v0  ;;  %v7915_v42 = vld [vmem:[%s13502_s22 + $0x20] sm:$0xff] }
 0x1c4   : > { %3252 = vbcast.lane.b32.xlu0 %v3248_v4, %s13506_s15  ;;  %13512 = sst [smem:[#allocation35_spill]] %s10538_s19  ;;  %v10549_v25 = vpop.f32.mrf.mxu0  ;;  %s3431_s20 = sand.u32 127, %s10427_s24   ;;  %8537 = vmatprep.mubr.msk.f32.mxu0 %vm8920_vm0, %v13215_v2 }
 0x1c5   : > { %s3464_s14 = scalar_lea.vmem %s13507_s30, %s13500_s27  ;;  %s3495_s13 = scalar_lea.vmem %s13507_s30, %s13816_s2  ;;  %3348 = vbcast.lane.b32.xlu1 %v3344_v56, %s10538_s19  ;;  %v3440_v41 = vand.u32 255, %v3439_v45 }
 0x1c6   : > { %s13513_s21 = sld [smem:[#allocation23_spill]]  ;;  %s3377_s2 = sand.u32 255, %s3367_s1  ;;  %v8330_v44 = vpop.f32.mrf.mxu0 }
 0x1c7   : > { %s3467_s8 = scalar_lea.vmem %s3464_s14, %s13509_s4  ;;  %s3559_s6 = scalar_lea.vmem %s13507_s30, %s13820_s12  ;;  %8538 = vmatmul.mubr.msk.f32.gmra.mxu0 %vm4925_vm1, %v2122_v61 }
 0x1c8   : > { %s3527_s15 = scalar_lea.vmem %s13507_s30, %s13510_s25  ;;  %v3468_v31 = vld [vmem:[%s3467_s8] ss:$0 sm:$0xff]  ;;  %3316 = vbcast.lane.b32.xlu0 %v3312_v34, %s10521_s9  ;;  %s3409_s1 = sand.u32 255, %s3399_s23  ;;  %8540 = vmatprep.mubr.msk.f32.mxu0 %vm8920_vm0, %v13215_v2 }
 0x1c9   : > { %s3498_s14 = scalar_lea.vmem %s3495_s13, %s13511_s0  ;;  %s10570_s0 = sor.u32 256, %s3377_s2  ;;  %v3471_v33 = vshra.s32 %v3468_v31, %v10393_v36 }
 0x1ca   : > { %13514 = sst [smem:[#allocation38_spill]] %s10570_s0  ;;  %v3499_v35 = vld [vmem:[%s3498_s14] ss:$0 sm:$0xff]  ;;  %s3591_s3 = scalar_lea.vmem %s13507_s30, %s13484_s5 }
 0x1cb   : > { %s3441_s29 = sand.u32 255, %s3431_s20  ;;  %s13515_s23 = sld [smem:[#allocation41_spill]]  ;;  %v10589_v18 = vpop.f32.mrf.mxu0  ;;  %v3502_v47 = vshra.s32 %v3499_v35, %v10413_v30  ;;  %v3472_v21 = vand.u32 255, %v3471_v33  ;;  %8541 = vmatmul.mubr.msk.f32.gmra.mxu0 %vm4925_vm1, %v2154_v23  ;;  %v2218_v35 = vsel %vm2217_vm13, %v7915_v42, %v13288_v0  ;;  %v7917_v33 = vld [vmem:[%s13502_s22 + $0x28] sm:$0xff] }
 0x1cc   : > { %s3530_s13 = scalar_lea.vmem %s3527_s15, %s13513_s21  ;;  %s3562_s9 = scalar_lea.vmem %s3559_s6, %s10346_s28  ;;  %3380 = vbcast.lane.b32.xlu0 %v3376_v38, %s10570_s0  ;;  %8543 = vmatprep.mubr.msk.f32.mxu0 %vm8920_vm0, %v13215_v2 }
 0x1cd   : > { %s10583_s2 = sor.u32 256, %s3409_s1  ;;  %v3531_v4 = vld [vmem:[%s3530_s13] ss:$0 sm:$0xff]  ;;  %s3623_s24 = scalar_lea.vmem %s13507_s30, %s13491_s18  ;;  %v8333_v39 = vpop.f32.mrf.mxu0  ;;  %v3503_v51 = vand.u32 255, %v3502_v47 }
 0x1ce   : > { %s13516_s20 = sld [smem:[#allocation26_spill]]  ;;  %s3594_s6 = scalar_lea.vmem %s3591_s3, %s10091_s7  ;;  %v3563_v37 = vld [vmem:[%s3562_s9] ss:$0 sm:$0xff]  ;;  %3412 = vbcast.lane.b32.xlu1 %v3408_v6, %s10583_s2  ;;  %v3534_v46 = vshra.s32 %v3531_v4, %v10435_v48 }
 0x1cf   : > { %s10596_s1 = sor.u32 256, %s3441_s29  ;;  %s13518_s14 = sld [smem:[#allocation45_spill]]  ;;  %v3595_v34 = vld [vmem:[%s3594_s6] ss:$0 sm:$0xff]  ;;  %v3566_v26 = vshra.s32 %v3563_v37, %v10453_v19  ;;  %8544 = vmatmul.mubr.msk.f32.gmra.mxu0 %vm4925_vm1, %v2186_v49  ;;  %v2250_v37 = vsel %vm2249_vm14, %v7917_v33, %v13288_v0  ;;  %v7921_v49 = vld [vmem:[%s13502_s22 + $0x38] sm:$0xff] }
 0x1d0   : > { %13517 = sst [smem:[#allocation43_spill]] %s10596_s1  ;;  %s3626_s28 = scalar_lea.vmem %s3623_s24, %s10096_s10  ;;  %3444 = vbcast.lane.b32.xlu0 %v3440_v41, %s10596_s1  ;;  %v3535_v56 = vand.u32 255, %v3534_v46  ;;  %v3598_v17 = vshra.s32 %v3595_v34, %v10124_v8  ;;  %8546 = vmatprep.mubr.msk.f32.mxu0 %vm8920_vm0, %v13215_v2  ;;  %v2314_v55 = vsel %vm2313_vm2, %v7921_v49, %v13288_v0  ;;  %v7929_v49 = vld [vmem:[%s13502_s22 + $0x58] sm:$0xff] }
 0x1d1   : > { %s3655_s15 = scalar_lea.vmem %s13507_s30, %s13515_s23  ;;  %s13519_s0 = sld [smem:[#allocation22_spill]]  ;;  %v3627_v40 = vld [vmem:[%s3626_s28] ss:$0 sm:$0xff]  ;;  %v3567_v44 = vand.u32 255, %v3566_v26  ;;  %v2442_v20 = vsel %vm2441_vm6, %v7929_v49, %v13288_v0 }
 0x1d2   : > { %s13520_s18 = sld [smem:[#allocation57_spill]]  ;;  %v3630_v38 = vshra.s32 %v3627_v40, %v10126_v60  ;;  %v3599_v61 = vand.u32 255, %v3598_v17 }
 0x1d3   : > { %s13521_s9 = sld [smem:[#allocation53_spill]]  ;;  %8547 = vmatmul.mubr.msk.f32.gmra.mxu0 %vm4925_vm1, %v2218_v35 }
 0x1d4   : > { %s3687_s29 = scalar_lea.vmem %s13507_s30, %s13516_s20  ;;  %s13522_s3 = sld [smem:[#allocation20_spill]]  ;;  %3507 = vbcast.lane.b32.xlu0 %v3503_v51, %s10299_s16  ;;  %v10642_v45 = vpop.f32.mrf.mxu0  ;;  %8549 = vmatprep.mubr.msk.f32.mxu0 %vm8920_vm0, %v13215_v2  ;;  %v3631_v41 = vand.u32 255, %v3630_v38 }
 0x1d5   : > { %s3658_s24 = scalar_lea.vmem %s3655_s15, %s13518_s14  ;;  %s3690_s1 = scalar_lea.vmem %s3687_s29, %s10481_s26 }
 0x1d6   : > { %v3659_v31 = vld [vmem:[%s3658_s24] ss:$0 sm:$0xff]  ;;  %s13523_s13 = sld [smem:[#allocation156_spill]]  ;;  %v8336_v4 = vpop.f32.mrf.mxu0 }
 0x1d7   : > { %s3719_s6 = scalar_lea.vmem %s13507_s30, %s13519_s0  ;;  %v3691_v50 = vld [vmem:[%s3690_s1] ss:$0 sm:$0xff]  ;;  %s13524_s24 = sld [smem:[#allocation61_spill]]  ;;  %v3662_v6 = vshra.s32 %v3659_v31, %v10135_v29  ;;  %8550 = vmatmul.mubr.msk.f32.gmra.mxu0 %vm4925_vm1, %v2250_v37 }
 0x1d8   : > { %3476 = vbcast.lane.b32.xlu1 %v3472_v21, %s13520_s18  ;;  %s3722_s29 = scalar_lea.vmem %s3719_s6, %s10499_s17  ;;  %s13525_s28 = sld [smem:[#allocation30_spill]]  ;;  %3571 = vbcast.lane.b32.xlu0 %v3567_v44, %s10505_s11  ;;  %v3694_v47 = vshra.s32 %v3691_v50, %v10524_v12  ;;  %v7919_v21 = vld [vmem:[%s13502_s22 + $0x30] sm:$0xff]  ;;  %v7923_v50 = vld [vmem:[%s13502_s22 + $0x40] sm:$0xff] }
 0x1d9   : > { %v3723_v22 = vld [vmem:[%s3722_s29] ss:$0 sm:$0xff]  ;;  %s13526_s29 = sld [smem:[#allocation16_spill]]  ;;  %v3663_v39 = vand.u32 255, %v3662_v6  ;;  %8552 = vmatprep.mubr.msk.f32.mxu0 %vm8920_vm0, %v13215_v2  ;;  %v2282_v54 = vsel %vm2281_vm15, %v7919_v21, %v13288_v0  ;;  %v2346_v57 = vsel %vm2345_vm3, %v7923_v50, %v13288_v0 }
 0x1da   : > { %s13527_s26 = sld [smem:[#allocation33_spill]]  ;;  %v3726_v23 = vshra.s32 %v3723_v22, %v10541_v24  ;;  %v3695_v43 = vand.u32 255, %v3694_v47 }
 0x1db   : > { %s13528_s30 = sld [smem:[#allocation38_spill]]  ;;  %8553 = vmatmul.mubr.msk.f32.gmra.mxu0 %vm4925_vm1, %v2282_v54 }
 0x1dc   : > { %s3751_s8 = scalar_lea.vmem %s13523_s13, %s13500_s27  ;;  %s3782_s18 = scalar_lea.vmem %s13523_s13, %s13521_s9  ;;  %3539 = vbcast.lane.b32.xlu1 %v3535_v56, %s13522_s3  ;;  %3635 = vbcast.lane.b32.xlu0 %v3631_v41, %s10538_s19  ;;  %v3727_v26 = vand.u32 255, %v3726_v23  ;;  %v7925_v41 = vld [vmem:[%s13502_s22 + $0x48] sm:$0xff] }
 0x1dd   : > { %s3754_s15 = scalar_lea.vmem %s3751_s8, %s13509_s4  ;;  %s3814_s1 = scalar_lea.vmem %s13523_s13, %s13510_s25  ;;  %8555 = vmatprep.mubr.msk.f32.mxu0 %vm8920_vm0, %v13215_v2  ;;  %v2378_v3 = vsel %vm2377_vm4, %v7925_v41, %v13288_v0 }
 0x1de   : > { %s3785_s6 = scalar_lea.vmem %s3782_s18, %s13524_s24  ;;  %v3755_v53 = vld [vmem:[%s3754_s15] ss:$0 sm:$0xff]  ;;  %s3846_s3 = scalar_lea.vmem %s13523_s13, %s13820_s12 }
 0x1df   : > { %s3817_s11 = scalar_lea.vmem %s3814_s1, %s13513_s21  ;;  %v3786_v46 = vld [vmem:[%s3785_s6] ss:$0 sm:$0xff]  ;;  %s3878_s15 = scalar_lea.vmem %s13523_s13, %s13484_s5  ;;  %v3758_v34 = vshra.s32 %v3755_v53, %v10393_v36  ;;  %8556 = vmatmul.mubr.msk.f32.gmra.mxu0 %vm4925_vm1, %v2314_v55 }
 0x1e0   : > { %3603 = vbcast.lane.b32.xlu1 %v3599_v61, %s13525_s28  ;;  %s3849_s1 = scalar_lea.vmem %s3846_s3, %s13526_s29  ;;  %v3818_v51 = vld [vmem:[%s3817_s11] ss:$0 sm:$0xff]  ;;  %s3910_s6 = scalar_lea.vmem %s13523_s13, %s13527_s26  ;;  %v3789_v40 = vshra.s32 %v3786_v46, %v10413_v30  ;;  %3699 = vbcast.lane.b32.xlu0 %v3695_v43, %s10583_s2  ;;  %v7927_v46 = vld [vmem:[%s13502_s22 + $0x50] sm:$0xff] }
 0x1e1   : > { %s13529_s18 = sld [smem:[#allocation43_spill]]  ;;  %s3881_s4 = scalar_lea.vmem %s3878_s15, %s10091_s7  ;;  %v3850_v56 = vld [vmem:[%s3849_s1] ss:$0 sm:$0xff]  ;;  %v3759_v17 = vand.u32 255, %v3758_v34  ;;  %v3821_v42 = vshra.s32 %v3818_v51, %v10435_v48  ;;  %8558 = vmatprep.mubr.msk.f32.mxu0 %vm8920_vm0, %v13215_v2  ;;  %v2410_v11 = vsel %vm2409_vm5, %v7927_v46, %v13288_v0 }
 0x1e2   : > { %s3942_s3 = scalar_lea.vmem %s13523_s13, %s13515_s23  ;;  %s13530_s8 = sld [smem:[#allocation57_spill]]  ;;  %v3882_v31 = vld [vmem:[%s3881_s4] ss:$0 sm:$0xff]  ;;  %v3790_v44 = vand.u32 255, %v3789_v40  ;;  %v3853_v38 = vshra.s32 %v3850_v56, %v10453_v19 }
 0x1e3   : > { %s3913_s15 = scalar_lea.vmem %s3910_s6, %s10096_s10  ;;  %s13531_s26 = sld [smem:[#allocation31_spill]]  ;;  %v3822_v61 = vand.u32 255, %v3821_v42  ;;  %v3885_v6 = vshra.s32 %v3882_v31, %v10124_v8  ;;  %8559 = vmatmul.mubr.msk.f32.gmra.mxu0 %vm4925_vm1, %v2346_v57 }
 0x1e4   : > { %3667 = vbcast.lane.b32.xlu1 %v3663_v39, %s13528_s30  ;;  %s3974_s1 = scalar_lea.vmem %s13523_s13, %s13516_s20  ;;  %s3945_s11 = scalar_lea.vmem %s3942_s3, %s13518_s14  ;;  %v3914_v35 = vld [vmem:[%s3913_s15] ss:$0 sm:$0xff]  ;;  %v3854_v22 = vand.u32 255, %v3853_v38  ;;  %8561 = vmatprep.mubr.msk.f32.mxu0 %vm8920_vm0, %v13215_v2 }
 0x1e5   : > { %s4006_s6 = scalar_lea.vmem %s13523_s13, %s13519_s0  ;;  %s13532_s4 = sld [smem:[#allocation20_spill]]  ;;  %v3946_v33 = vld [vmem:[%s3945_s11] ss:$0 sm:$0xff]  ;;  %v3917_v4 = vshra.s32 %v3914_v35, %v10126_v60  ;;  %v3886_v53 = vand.u32 255, %v3885_v6 }
 0x1e6   : > { %s13534_s20 = sld [smem:[#allocation49_spill]]  ;;  %s4009_s30 = scalar_lea.vmem %s4006_s6, %s10499_s17  ;;  %v3949_v37 = vshra.s32 %v3946_v33, %v10135_v29  ;;  %v7931_v38 = vld [vmem:[%s13502_s22 + $0x60] sm:$0xff] }
 0x1e7   : > { %s13535_s7 = sld [smem:[#allocation27_spill]]  ;;  %v4010_v39 = vld [vmem:[%s4009_s30] ss:$0 sm:$0xff]  ;;  %v3918_v23 = vand.u32 255, %v3917_v4  ;;  %8562 = vmatmul.mubr.msk.f32.gmra.mxu0 %vm4925_vm1, %v2378_v3  ;;  %v2474_v63 = vsel %vm2473_vm7, %v7931_v38, %v13288_v0 }
 0x1e8   : > { %3731 = vbcast.lane.b32.xlu1 %v3727_v26, %s13529_s18  ;;  %3763 = vbcast.lane.b32.xlu0 %v3759_v17, %s13530_s8  ;;  %s13533_s18 = sld [smem:[#allocation155_spill]]  ;;  %v3950_v34 = vand.u32 255, %v3949_v37  ;;  %v4013_v51 = vshra.s32 %v4010_v39, %v10541_v24 }
 0x1e9   : > { %s3977_s21 = scalar_lea.vmem %s3974_s1, %s13531_s26  ;;  %s13536_s17 = sld [smem:[#allocation23_spill]]  ;;  %8564 = vmatprep.mubr.msk.f32.mxu0 %vm8920_vm0, %v13215_v2 }
 0x1ea   : > { %v3978_v47 = vld [vmem:[%s3977_s21] ss:$0 sm:$0xff]  ;;  %s13537_s1 = sld [smem:[#allocation33_spill]]  ;;  %v4014_v17 = vand.u32 255, %v4013_v51 }
 0x1eb   : > { %v3981_v21 = vshra.s32 %v3978_v47, %v10524_v12  ;;  %s13538_s3 = sld [smem:[#allocation38_spill]]  ;;  %8565 = vmatmul.mubr.msk.f32.gmra.mxu0 %vm4925_vm1, %v2410_v11 }
 0x1ec   : > { %3794 = vbcast.lane.b32.xlu1 %v3790_v44, %s10299_s16  ;;  %3826 = vbcast.lane.b32.xlu0 %v3822_v61, %s13532_s4  ;;  %v4662_v47 = vpop.permute.xlu1 %4661 }
 0x1ed   : > { %v3982_v26 = vand.u32 255, %v3981_v21  ;;  %8567 = vmatprep.mubr.msk.f32.mxu0 %vm8920_vm0, %v13215_v2  ;;  %vm4693_vm8 = vcmp.ge.s32.totalorder %v9838_v52, %v4662_v47 }
 0x1ee   : > { %s4038_s15 = scalar_lea.vmem %s13533_s18, %s13500_s27  ;;  %s4069_s11 = scalar_lea.vmem %s13533_s18, %s13521_s9  ;;  %v4727_v3 = vpop.permute.xlu0 %4726 }
 0x1ef   : > { %s4041_s6 = scalar_lea.vmem %s4038_s15, %s13534_s20  ;;  %s4101_s21 = scalar_lea.vmem %s13533_s18, %s13510_s25  ;;  %8568 = vmatmul.mubr.msk.f32.gmra.mxu0 %vm4925_vm1, %v2442_v20  ;;  %vm4758_vm9 = vcmp.lt.s32.totalorder %v9838_v52, %v4727_v3  ;;  %v4492_v3 = vand.u32 255, %v4491_v27 }
 0x1f0   : > { %3858 = vbcast.lane.b32.xlu1 %v3854_v22, %s13535_s7  ;;  %s4072_s14 = scalar_lea.vmem %s4069_s11, %s13524_s24  ;;  %v4042_v43 = vld [vmem:[%s4041_s6] ss:$0 sm:$0xff]  ;;  %s4133_s30 = scalar_lea.vmem %s13533_s18, %s13820_s12  ;;  %3890 = vbcast.lane.b32.xlu0 %v3886_v53, %s13525_s28  ;;  %vm4771_vm10 = vmand %vm4693_vm8, %vm4758_vm9 }
 0x1f1   : > { %s4104_s11 = scalar_lea.vmem %s4101_s21, %s13536_s17  ;;  %v4073_v54 = vld [vmem:[%s4072_s14] ss:$0 sm:$0xff]  ;;  %s13539_s25 = sld [smem:[#allocation37_spill]]  ;;  %v4045_v40 = vshra.s32 %v4042_v43, %v10393_v36  ;;  %8570 = vmatprep.mubr.msk.f32.mxu0 %vm8920_vm0, %v13215_v2  ;;  %v4665_v43 = vpop.permute.xlu1 %4664  ;;  %v10837_v51 = vsel %vm4771_vm10, 1.0, %v13215_v2 }
 0x1f2   : > { %s4165_s6 = scalar_lea.vmem %s13533_s18, %s13484_s5  ;;  %s4136_s13 = scalar_lea.vmem %s4133_s30, %s13526_s29  ;;  %v4105_v56 = vld [vmem:[%s4104_s11] ss:$0 sm:$0xff]  ;;  %v4076_v42 = vshra.s32 %v4073_v54, %v10413_v30  ;;  %vm4694_vm11 = vcmp.ge.s32.totalorder %v9838_v52, %v4665_v43 }
 0x1f3   : > { %s4197_s5 = scalar_lea.vmem %s13533_s18, %s13537_s1  ;;  %s13540_s21 = sld [smem:[#allocation26_spill]]  ;;  %v4137_v31 = vld [vmem:[%s4136_s13] ss:$0 sm:$0xff]  ;;  %v4046_v55 = vand.u32 255, %v4045_v40  ;;  %v4108_v44 = vshra.s32 %v4105_v56, %v10435_v48  ;;  %8571 = vmatmul.mubr.msk.f32.gmra.mxu0 %vm4925_vm1, %v2474_v63  ;;  %v5098_v40 = vmul.f32 %v10837_v51, %v10099_v9 }
 0x1f4   : > { %3922 = vbcast.lane.b32.xlu1 %v3918_v23, %s10538_s19  ;;  %3954 = vbcast.lane.b32.xlu0 %v3950_v34, %s13538_s3  ;;  %s13541_s14 = sld [smem:[#allocation43_spill]]  ;;  %s4229_s11 = scalar_lea.vmem %s13533_s18, %s13515_s23  ;;  %v4077_v35 = vand.u32 255, %v4076_v42  ;;  %v4140_v61 = vshra.s32 %v4137_v31, %v10453_v19 }
 0x1f5   : > { %s13542_s19 = sld [smem:[#allocation45_spill]]  ;;  %s4200_s1 = scalar_lea.vmem %s4197_s5, %s10096_s10  ;;  %v4109_v33 = vand.u32 255, %v4108_v44  ;;  %v4668_v42 = vpop.permute.xlu1 %4667  ;;  %8379 = vmatmul.mubr.f32.vlgmr.msra.gmra.mxu1 %v5098_v40 }
 0x1f6   : > { %s13543_s10 = sld [smem:[#allocation19_spill]]  ;;  %v4201_v6 = vld [vmem:[%s4200_s1] ss:$0 sm:$0xff]  ;;  %s4293_s24 = scalar_lea.vmem %s13533_s18, %s13519_s0  ;;  %v4141_v4 = vand.u32 255, %v4140_v61  ;;  %8381 = vmatprep.mubr.msk.f32.mxu1 %vm8920_vm0, %v13215_v2  ;;  %vm4695_vm14 = vcmp.ge.s32.totalorder %v9838_v52, %v4668_v42 }
 0x1f7   : > { %s4168_s15 = scalar_lea.vmem %s4165_s6, %s13539_s25  ;;  %s13544_s5 = sld [smem:[#allocation17_spill]]  ;;  %v4204_v41 = vshra.s32 %v4201_v6, %v10126_v60  ;;  %v13551_v60 = vshra.s32 %v10163_v14, %v10135_v29 }
 0x1f8   : > { %3986 = vbcast.lane.b32.xlu1 %v3982_v26, %s10583_s2  ;;  %v4169_v50 = vld [vmem:[%s4168_s15] ss:$0 sm:$0xff]  ;;  %s13545_s30 = sld [smem:[#allocation154_spill]]  ;;  %v4730_v26 = vpop.permute.xlu0 %4729 }
 0x1f9   : > { %s4261_s23 = scalar_lea.vmem %s13533_s18, %s13540_s21  ;;  %v4172_v57 = vshra.s32 %v4169_v50, %v10124_v8  ;;  %s13546_s1 = sld [smem:[#allocation27_spill]]  ;;  %v4205_v21 = vand.u32 255, %v4204_v41  ;;  %vm4759_vm12 = vcmp.lt.s32.totalorder %v9838_v52, %v4730_v26  ;;  %v4524_v62 = vand.u32 255, %v13551_v60 }
 0x1fa   : > { %4018 = vbcast.lane.b32.xlu0 %v4014_v17, %s13541_s14  ;;  %s4264_s7 = scalar_lea.vmem %s4261_s23, %s13531_s26  ;;  %s13547_s29 = sld [smem:[#allocation61_spill]]  ;;  %vm4772_vm13 = vmand %vm4694_vm11, %vm4759_vm12 }
 0x1fb   : > { %s4232_s22 = scalar_lea.vmem %s4229_s11, %s13542_s19  ;;  %v4265_v53 = vld [vmem:[%s4264_s7] ss:$0 sm:$0xff]  ;;  %v4173_v37 = vand.u32 255, %v4172_v57  ;;  %v10850_v20 = vsel %vm4772_vm13, 1.0, %v13215_v2  ;;  %s13550_s6 = sld [smem:[#allocation139_spill]] }
 0x1fc   : > { %4050 = vbcast.lane.b32.xlu1 %v4046_v55, %s13530_s8  ;;  %v4233_v22 = vld [vmem:[%s4232_s22] ss:$0 sm:$0xff]  ;;  %s4296_s25 = scalar_lea.vmem %s4293_s24, %s13543_s10  ;;  %v4268_v46 = vshra.s32 %v4265_v53, %v10524_v12  ;;  %v4733_v44 = vpop.permute.xlu0 %4732 }
 0x1fd   : > { %v4236_v39 = vshra.s32 %v4233_v22, %v10135_v29  ;;  %v4297_v23 = vld [vmem:[%s4296_s25] ss:$0 sm:$0xff]  ;;  %vm4760_vm15 = vcmp.lt.s32.totalorder %v9838_v52, %v4733_v44 }
 0x1fe   : > { %s4325_s11 = scalar_lea.vmem %s13545_s30, %s13500_s27  ;;  %4081 = vbcast.lane.b32.xlu0 %v4077_v35, %s10299_s16  ;;  %s4356_s23 = scalar_lea.vmem %s13545_s30, %s13521_s9  ;;  %v4300_v11 = vshra.s32 %v4297_v23, %v10541_v24  ;;  %v4269_v56 = vand.u32 255, %v4268_v46  ;;  %vm4773_vm2 = vmand %vm4695_vm14, %vm4760_vm15 }
 0x1ff   : > { %s4328_s27 = scalar_lea.vmem %s4325_s11, %s13534_s20  ;;  %s4388_s24 = scalar_lea.vmem %s13545_s30, %s13544_s5  ;;  %v4237_v54 = vand.u32 255, %v4236_v39  ;;  %v10870_v61 = vsel %vm4773_vm2, 1.0, %v13215_v2 }
 0x200   : > { %4113 = vbcast.lane.b32.xlu1 %v4109_v33, %s13532_s4  ;;  %s13548_s9 = sld [smem:[#allocation35_spill]]  ;;  %s4359_s7 = scalar_lea.vmem %s4356_s23, %s13547_s29  ;;  %v4329_v34 = vld [vmem:[%s4328_s27] ss:$0 sm:$0xff]  ;;  %v4301_v9 = vand.u32 255, %v4300_v11  ;;  %v4736_v33 = vpop.permute.xlu0 %4735 }
 0x201   : > { %s13549_s20 = sld [smem:[#allocation16_spill]]  ;;  %s4420_s25 = scalar_lea.vmem %s13545_s30, %s13820_s12  ;;  %v4360_v49 = vld [vmem:[%s4359_s7] ss:$0 sm:$0xff]  ;;  %v4332_v17 = vshra.s32 %v4329_v34, %v10393_v36  ;;  %v5099_v36 = vmul.f32 %v10850_v20, %v10192_v15  ;;  %v10861_v50 = vld [vmem:[%s13550_s6 + $0x78] sm:$0xff]  ;;  %v4671_v15 = vpop.permute.xlu1 %4670  ;;  %v10881_v57 = vld [vmem:[%s13550_s6 + $0x70] sm:$0xff]  ;;  %vm4761_vm4 = vcmp.lt.s32.totalorder %v9838_v52, %v4736_v33 }
 0x202   : > { %4145 = vbcast.lane.b32.xlu0 %v4141_v4, %s13546_s1  ;;  %s4391_s5 = scalar_lea.vmem %s4388_s24, %s13536_s17  ;;  %v4363_v55 = vshra.s32 %v4360_v49, %v10413_v30  ;;  %8456 = vmatpush3.msra.mxu1 %v10861_v50  ;;  %vm4696_vm3 = vcmp.ge.s32.totalorder %v9838_v52, %v4671_v15  ;;  %v10899_v53 = vld [vmem:[%s13550_s6 + $0x68] sm:$0xff]  ;;  %v10944_v29 = vld [vmem:[%s13550_s6 + $0x58] sm:$0xff]  ;;  %v10982_v26 = vld [vmem:[%s13550_s6 + $0x40] sm:$0xff]  ;;  %s13552_s17 = sld [smem:[#allocation65_spill]] }
 0x203   : > { %v4392_v31 = vld [vmem:[%s4391_s5] ss:$0 sm:$0xff]  ;;  %v4333_v35 = vand.u32 255, %v4332_v17  ;;  %8457 = vmatprep.subr.mxu1 %v13215_v2  ;;  %8382 = vmatmul.mubr.f32.gmra.mxu1 %v5099_v36  ;;  %vm4774_vm5 = vmand %vm4696_vm3, %vm4761_vm4  ;;  %v11005_v42 = vld [vmem:[%s13550_s6 + $0x30] sm:$0xff]  ;;  %s4580_s15 = scalar_lea.vmem %s13545_s30, %s13519_s0  ;;  %s13570_s0 = sld [smem:[#allocation14_spill]] }
 0x204   : > { %4177 = vbcast.lane.b32.xlu1 %v4173_v37, %s13525_s28  ;;  %v4395_v30 = vshra.s32 %v4392_v31, %v10435_v48  ;;  %8384 = vmatprep.mubr.msk.f32.mxu1 %vm8920_vm0, %v13215_v2  ;;  %v4364_v6 = vand.u32 255, %v4363_v55  ;;  %v5100_v48 = vmul.f32 %v10870_v61, %v10238_v1  ;;  %v10889_v1 = vsel %vm4774_vm5, 1.0, %v13215_v2  ;;  %v4739_v41 = vpop.permute.xlu0 %4738  ;;  %v11016_v55 = vld [vmem:[%s13550_s6 + $0x28] sm:$0xff]  ;;  %v11028_v36 = vld [vmem:[%s13550_s6 + $0x20] sm:$0xff]  ;;  %s4583_s11 = scalar_lea.vmem %s4580_s15, %s13543_s10  ;;  %s4548_s5 = scalar_lea.vmem %s13545_s30, %s13540_s21 }
 0x205   : > { %8458 = vmatpush3.msra.mxu1 %v10881_v57  ;;  %v5101_v47 = vmul.f32 %v10889_v1, %v10301_v32  ;;  %vm4762_vm7 = vcmp.lt.s32.totalorder %v9838_v52, %v4739_v41  ;;  %v4460_v37 = vand.u32 255, %v4459_v5  ;;  %v10923_v5 = vld [vmem:[%s13550_s6 + $0x60] sm:$0xff]  ;;  %v11060_v33 = vld [vmem:[%s13550_s6 + $0x8] sm:$0xff]  ;;  %s13572_s29 = sld [smem:[#allocation148_spill]] }
 0x206   : > { %4209 = vbcast.lane.b32.xlu0 %v4205_v21, %s13548_s9  ;;  %v4396_v22 = vand.u32 255, %v4395_v30  ;;  %8459 = vmatprep.subr.mxu1 %v13215_v2  ;;  %v11037_v30 = vld [vmem:[%s13550_s6 + $0x18] sm:$0xff]  ;;  %s13574_s27 = sld [smem:[#allocation146_spill]] }
 0x207   : > { %s4423_s12 = scalar_lea.vmem %s4420_s25, %s13549_s20  ;;  %8385 = vmatmul.mubr.f32.gmra.mxu1 %v5100_v48  ;;  %s13578_s20 = sld [smem:[#allocation145_spill]] }
 0x208   : > { %4241 = vbcast.lane.b32.xlu1 %v4237_v54, %s13538_s3  ;;  %v4424_v38 = vld [vmem:[%s4423_s12] ss:$0 sm:$0xff]  ;;  %8387 = vmatprep.mubr.msk.f32.mxu1 %vm8920_vm0, %v13215_v2  ;;  %v4742_v8 = vpop.permute.xlu0 %4741  ;;  %v10970_v54 = vld [vmem:[%s13550_s6 + $0x48] sm:$0xff]  ;;  %s4551_s12 = scalar_lea.vmem %s4548_s5, %s13531_s26 }
 0x209   : > { %v4427_v63 = vshra.s32 %v4424_v38, %v10453_v19  ;;  %v4674_v19 = vpop.permute.xlu1 %4673  ;;  %8460 = vmatpush3.msra.mxu1 %v10899_v53  ;;  %vm4763_vm10 = vcmp.lt.s32.totalorder %v9838_v52, %v4742_v8  ;;  %p1231_p13 = scmp.lt.s32.totalorder %s13570_s0, 2 }
 0x20a   : > { %4273 = vbcast.lane.b32.xlu0 %v4269_v56, %s10583_s2  ;;  %vm4697_vm6 = vcmp.ge.s32.totalorder %v9838_v52, %v4674_v19  ;;  %8461 = vmatprep.subr.mxu1 %v13215_v2  ;;  %v10993_v56 = vld [vmem:[%s13550_s6 + $0x38] sm:$0xff]  ;;  %v11068_v19 = vld [vmem:[%s13550_s6] sm:$0xff] }
 0x20b   : > { %v4428_v4 = vand.u32 255, %v4427_v63  ;;  %vm4775_vm8 = vmand %vm4697_vm6, %vm4762_vm7  ;;  %8388 = vmatmul.mubr.f32.gmra.mxu1 %v5101_v47 }
 0x20c   : > { %4305 = vbcast.lane.b32.xlu1 %v4301_v9, %s13541_s14  ;;  %v10910_v39 = vsel %vm4775_vm8, 1.0, %v13215_v2  ;;  %8390 = vmatprep.mubr.msk.f32.mxu1 %vm8920_vm0, %v13215_v2  ;;  %v4745_v23 = vpop.permute.xlu0 %4744 }
 0x20d   : > { %v4677_v32 = vpop.permute.xlu1 %4676  ;;  %v5102_v28 = vmul.f32 %v10910_v39, %v10349_v13  ;;  %8462 = vmatpush3.msra.mxu1 %v10923_v5  ;;  %vm4764_vm13 = vcmp.lt.s32.totalorder %v9838_v52, %v4745_v23 }
 0x20e   : > { %4337 = vbcast.lane.b32.xlu0 %v4333_v35, %s13530_s8  ;;  %vm4698_vm9 = vcmp.ge.s32.totalorder %v9838_v52, %v4677_v32  ;;  %8463 = vmatprep.subr.mxu1 %v13215_v2 }
 0x20f   : > { %vm4776_vm11 = vmand %vm4698_vm9, %vm4763_vm10  ;;  %8391 = vmatmul.mubr.f32.gmra.mxu1 %v5102_v28 }
 0x210   : > { %4368 = vbcast.lane.b32.xlu1 %v4364_v6, %s10299_s16  ;;  %v10934_v13 = vsel %vm4776_vm11, 1.0, %v13215_v2  ;;  %8393 = vmatprep.mubr.msk.f32.mxu1 %vm8920_vm0, %v13215_v2  ;;  %v4748_v43 = vpop.permute.xlu0 %4747 }
 0x211   : > { %v4680_v27 = vpop.permute.xlu1 %4679  ;;  %v5103_v21 = vmul.f32 %v10934_v13, %v10429_v10  ;;  %8464 = vmatpush3.msra.mxu1 %v10944_v29  ;;  %v10959_v10 = vld [vmem:[%s13550_s6 + $0x50] sm:$0xff]  ;;  %vm4765_vm2 = vcmp.lt.s32.totalorder %v9838_v52, %v4748_v43 }
 0x212   : > { %4400 = vbcast.lane.b32.xlu0 %v4396_v22, %s13532_s4  ;;  %vm4699_vm12 = vcmp.ge.s32.totalorder %v9838_v52, %v4680_v27  ;;  %8465 = vmatprep.subr.mxu1 %v13215_v2  ;;  %s13553_s4 = sld [smem:[#allocation144_spill]] }
 0x213   : > { %vm4777_vm14 = vmand %vm4699_vm12, %vm4764_vm13  ;;  %8394 = vmatmul.mubr.f32.gmra.mxu1 %v5103_v21  ;;  %vm4833_vm13 = vcmask 130048  }
 0x214   : > { %4432 = vbcast.lane.b32.xlu1 %v4428_v4, %s13546_s1  ;;  %v10952_v46 = vsel %vm4777_vm14, 1.0, %v13215_v2  ;;  %8396 = vmatprep.mubr.msk.f32.mxu1 %vm8920_vm0, %v13215_v2  ;;  %v4751_v40 = vpop.permute.xlu0 %4750  ;;  %s13575_s1 = sld [smem:[#allocation149_spill]] }
 0x215   : > { %v4683_v14 = vpop.permute.xlu1 %4682  ;;  %8466 = vmatpush3.msra.mxu1 %v10959_v10  ;;  %v5104_v34 = vmul.f32 %v10952_v46, %v10483_v16  ;;  %vm4766_vm5 = vcmp.lt.s32.totalorder %v9838_v52, %v4751_v40 }
 0x216   : > { %4464 = vbcast.lane.b32.xlu0 %v4460_v37, %s13525_s28  ;;  %8467 = vmatprep.subr.mxu1 %v13215_v2  ;;  %vm4700_vm15 = vcmp.ge.s32.totalorder %v9838_v52, %v4683_v14 }
 0x217   : > { %8468 = vmatpush3.msra.mxu1 %v10970_v54  ;;  %vm4778_vm3 = vmand %vm4700_vm15, %vm4765_vm2 }
 0x218   : > { %4496 = vbcast.lane.b32.xlu1 %v4492_v3, %s13548_s9  ;;  %8397 = vmatmul.mubr.f32.gmra.mxu1 %v5104_v34  ;;  %v10975_v16 = vsel %vm4778_vm3, 1.0, %v13215_v2  ;;  %v4754_v31 = vpop.permute.xlu0 %4753  ;;  %s11044_s28 = scalar_lea.vmem %s13553_s4, %s13552_s17 }
 0x219   : > { %v4686_v11 = vpop.permute.xlu1 %4685  ;;  %8469 = vmatprep.subr.mxu1 %v13215_v2  ;;  %8399 = vmatprep.mubr.msk.f32.mxu1 %vm8920_vm0, %v13215_v2  ;;  %v5105_v49 = vmul.f32 %v10975_v16, %v10549_v25  ;;  %vm4767_vm8 = vcmp.lt.s32.totalorder %v9838_v52, %v4754_v31  ;;  %v7935_v63 = vld [vmem:[%s11044_s28 + $0x8] sm:$0xff]  ;;  %v7937_v22 = vld [vmem:[%s11044_s28 + $0x10] sm:$0xff]  ;;  %v2482_v4 = vld [vmem:[%s11044_s28] sm:$0xff] }
 0x21a   : > { %4528 = vbcast.lane.b32.xlu0 %v4524_v62, %s13538_s3  ;;  %8470 = vmatpush3.msra.mxu1 %v10982_v26  ;;  %vm4701_vm4 = vcmp.ge.s32.totalorder %v9838_v52, %v4686_v11  ;;  %v7939_v60 = vld [vmem:[%s11044_s28 + $0x18] sm:$0xff]  ;;  %v7941_v21 = vld [vmem:[%s11044_s28 + $0x20] sm:$0xff]  ;;  %s13577_s3 = sld [smem:[#allocation147_spill]] }
 0x21b   : > { %8471 = vmatprep.subr.mxu1 %v13215_v2  ;;  %vm4779_vm6 = vmand %vm4701_vm4, %vm4766_vm5 }
 0x21c   : > { %8472 = vmatpush3.msra.mxu1 %v10993_v56  ;;  %v10998_v25 = vsel %vm4779_vm6, 1.0, %v13215_v2  ;;  %v2533_v38 = vpop.permute.xlu0 %2532 }
 0x21d   : > { %v4689_v17 = vpop.permute.xlu1 %4688  ;;  %8400 = vmatmul.mubr.f32.gmra.mxu1 %v5105_v49  ;;  %8473 = vmatprep.subr.mxu1 %v13215_v2  ;;  %v5106_v9 = vmul.f32 %v10998_v25, %v10589_v18  ;;  %vm2536_vm10 = vcmp.ne.s32.totalorder %v2533_v38, 0 }
 0x21e   : > { %8402 = vmatprep.mubr.msk.f32.mxu1 %vm8920_vm0, %v13215_v2  ;;  %8474 = vmatpush3.msra.mxu1 %v11005_v42  ;;  %vm4702_vm7 = vcmp.ge.s32.totalorder %v9838_v52, %v4689_v17  ;;  %v11073_v41 = vsel %vm2536_vm10, %v7935_v63, %v13288_v0 }
 0x21f   : > { %8475 = vmatprep.subr.mxu1 %v13215_v2  ;;  %vm4780_vm9 = vmand %vm4702_vm7, %vm4767_vm8  ;;  %13554 = vst [vmem:[#allocation67_spill] sm:$0xff] %v11073_v41  ;;  %v4821_v8 = vmul.f32 %v11073_v41, %v11073_v41 }
 0x220   : > { %8476 = vmatpush3.msra.mxu1 %v11016_v55  ;;  %v11021_v18 = vsel %vm4780_vm9, 1.0, %v13215_v2  ;;  %v2597_v6 = vpop.permute.xlu0 %2596 }
 0x221   : > { %v2502_v44 = vpop.permute.xlu1 %2501  ;;  %8403 = vmatmul.mubr.f32.gmra.mxu1 %v5106_v9  ;;  %8477 = vmatprep.subr.mxu1 %v13215_v2  ;;  %v5107_v35 = vmul.f32 %v11021_v18, %v10642_v45  ;;  %v11050_v45 = vld [vmem:[%s13550_s6 + $0x10] sm:$0xff]  ;;  %vm2600_vm14 = vcmp.ne.s32.totalorder %v2597_v6, 0  ;;  %v4837_v14 = vsel %vm4833_vm13, %v4821_v8, 0.0 }
 0x222   : > { %8405 = vmatprep.mubr.msk.f32.mxu1 %vm8920_vm0, %v13215_v2  ;;  %8478 = vmatpush3.msra.mxu1 %v11028_v36  ;;  %vm2505_vm12 = vcmp.ne.s32.totalorder %v2502_v44, 0  ;;  %v11092_v43 = vsel %vm2600_vm14, %v7939_v60, %v13288_v0  ;;  %v7943_v44 = vld [vmem:[%s11044_s28 + $0x28] sm:$0xff] }
 0x223   : > { %8479 = vmatprep.subr.mxu1 %v13215_v2  ;;  %v11080_v3 = vsel %vm2505_vm12, %v2482_v4, %v13288_v0  ;;  %13556 = vst [vmem:[#allocation69_spill] sm:$0xff] %v11092_v43  ;;  %v4823_v31 = vmul.f32 %v11092_v43, %v11092_v43  ;;  %v4584_v4 = vld [vmem:[%s4583_s11] ss:$0 sm:$0xff]  ;;  %s13711_s11 = sld [smem:[#allocation39_spill]] }
 0x224   : > { %8480 = vmatpush3.msra.mxu1 %v11037_v30  ;;  %v2661_v47 = vpop.permute.xlu0 %2660  ;;  %v4820_v23 = vmul.f32 %v11080_v3, %v11080_v3 }
 0x225   : > { %v2565_v15 = vpop.permute.xlu1 %2564  ;;  %8406 = vmatmul.mubr.f32.gmra.mxu1 %v5107_v35  ;;  %8481 = vmatprep.subr.mxu1 %v13215_v2  ;;  %vm2664_vm2 = vcmp.ne.s32.totalorder %v2661_v47, 0  ;;  %v4843_v6 = vsel %vm4833_vm13, %v4823_v31, 0.0  ;;  %v7949_v31 = vld [vmem:[%s11044_s28 + $0x40] sm:$0xff] }
 0x226   : > { %8482 = vmatpush3.msra.mxu1 %v11050_v45  ;;  %8487 = vmatprep.mubr.msk.f32.mxu1 %vm8920_vm0, %v13215_v2  ;;  %vm2568_vm11 = vcmp.ne.s32.totalorder %v2565_v15, 0  ;;  %v4834_v17 = vsel %vm4833_vm13, %v4820_v23, 0.0  ;;  %v7945_v15 = vld [vmem:[%s11044_s28 + $0x30] sm:$0xff]  ;;  %v11116_v63 = vsel %vm2664_vm2, %v7943_v44, %v13288_v0 }
 0x227   : > { %8483 = vmatprep.subr.mxu1 %v13215_v2  ;;  %v11077_v37 = vsel %vm2568_vm11, %v7937_v22, %v13288_v0  ;;  %13558 = vst [vmem:[#allocation71_spill] sm:$0xff] %v11116_v63 }
 0x228   : > { %8484 = vmatpush3.msra.mxu1 %v11060_v33  ;;  %13555 = vst [vmem:[#allocation68_spill] sm:$0xff] %v11077_v37  ;;  %v2725_v28 = vpop.permute.xlu0 %2724  ;;  %v4822_v62 = vmul.f32 %v11077_v37, %v11077_v37 }
 0x229   : > { %v2629_v48 = vpop.permute.xlu1 %2628  ;;  %8485 = vmatprep.subr.mxu1 %v13215_v2  ;;  %v11126_v60 = vpop.f32.mrf.mxu0  ;;  %vm2728_vm4 = vcmp.ne.s32.totalorder %v2725_v28, 0 }
 0x22a   : > { %8486 = vmatpush3.msra.mxu1 %v11068_v19  ;;  %vm2632_vm15 = vcmp.ne.s32.totalorder %v2629_v48, 0  ;;  %v4840_v11 = vsel %vm4833_vm13, %v4822_v62, 0.0  ;;  %13560 = vst [vmem:[#allocation73_spill] sm:$0xff] %v11126_v60 }
 0x22b   : > { %8573 = vmatprep.subr.mxu1 %v13215_v2  ;;  %v11096_v40 = vsel %vm2632_vm15, %v7941_v21, %v13288_v0  ;;  %v8371_v23 = vpop.f32.mrf.mxu0  ;;  %v4587_v21 = vshra.s32 %v4584_v4, %v10541_v24 }
 0x22c   : > { %v2789_v34 = vpop.permute.xlu0 %2788  ;;  %13557 = vst [vmem:[#allocation70_spill] sm:$0xff] %v11096_v40  ;;  %v4824_v38 = vmul.f32 %v11096_v40, %v11096_v40 }
 0x22d   : > { %v2693_v32 = vpop.permute.xlu1 %2692  ;;  %v4588_v24 = vand.u32 255, %v4587_v21  ;;  %vm2792_vm6 = vcmp.ne.s32.totalorder %v2789_v34, 0 }
 0x22e   : > { %vm2696_vm3 = vcmp.ne.s32.totalorder %v2693_v32, 0  ;;  %v4846_v22 = vsel %vm4833_vm13, %v4824_v38, 0.0  ;;  %v4825_v32 = vmul.f32 %v11116_v63, %v11116_v63 }
 0x22f   : > { %v11122_v47 = vsel %vm2696_vm3, %v7945_v15, %v13288_v0 }
 0x230   : > { %v11105_v9 = vpop.permute.xlu0 %2852  ;;  %13559 = vst [vmem:[#allocation72_spill] sm:$0xff] %v11122_v47  ;;  %v4849_v44 = vsel %vm4833_vm13, %v4825_v32, 0.0  ;;  %v7951_v32 = vld [vmem:[%s11044_s28 + $0x48] sm:$0xff] }
 0x231   : > { %v2757_v27 = vpop.permute.xlu1 %2756  ;;  %vm2856_vm8 = vcmp.ne.s32.totalorder %v11105_v9, 0 }
 0x232   : > { %vm2760_vm5 = vcmp.ne.s32.totalorder %v2757_v27, 0 }
 0x234   : > { %v11118_v48 = vpop.permute.xlu0 %3189 }
 0x235   : > { %v2821_v49 = vpop.permute.xlu1 %2820  ;;  %vm3193_vm14 = vcmp.ne.s32.totalorder %v11118_v48, 0 }
 0x236   : > { %vm2824_vm7 = vcmp.ne.s32.totalorder %v2821_v49, 0 }
 0x238   : > { %v11130_v62 = vpop.permute.xlu0 %3252 }
 0x239   : > { %4838 = vadd.xlane.f32.xlu0 %v4837_v14  ;;  %v11110_v35 = vpop.permute.xlu1 %2884  ;;  %v7947_v14 = vld [vmem:[%s11044_s28 + $0x38] sm:$0xff]  ;;  %vm3256_vm15 = vcmp.ne.s32.totalorder %v11130_v62, 0 }
 0x23a   : > { %v11141_v38 = vsel %vm2728_vm4, %v7947_v14, %v13288_v0  ;;  %v7953_v14 = vld [vmem:[%s11044_s28 + $0x50] sm:$0xff]  ;;  %vm2888_vm9 = vcmp.ne.s32.totalorder %v11110_v35, 0 }
 0x23b   : > { %13561 = vst [vmem:[#allocation74_spill] sm:$0xff] %v11141_v38  ;;  %v4827_v27 = vmul.f32 %v11141_v38, %v11141_v38 }
 0x23c   : > { %4835 = vadd.xlane.f32.xlu1 %v4834_v17  ;;  %v11143_v15 = vpop.permute.xlu0 %3316 }
 0x23d   : > { %4841 = vadd.xlane.f32.xlu0 %v4840_v11  ;;  %v11124_v8 = vpop.permute.xlu1 %3220  ;;  %v4826_v11 = vmul.f32 %v11122_v47, %v11122_v47 }
 0x23e   : > { %vm3224_vm11 = vcmp.ne.s32.totalorder %v11124_v8, 0 }
 0x23f   : > { %v4852_v28 = vsel %vm4833_vm13, %v4826_v11, 0.0  ;;  %v4855_v11 = vsel %vm4833_vm13, %v4827_v27, 0.0 }
 0x240   : > { %v11153_v4 = vpop.permute.xlu0 %3380 }
 0x241   : > { %4844 = vadd.xlane.f32.xlu0 %v4843_v6  ;;  %v11136_v17 = vpop.permute.xlu1 %3284  ;;  %v11147_v6 = vsel %vm2760_vm5, %v7949_v31, %v13288_v0  ;;  %v11164_v31 = vsel %vm2792_vm6, %v7951_v32, %v13288_v0  ;;  %vm3320_vm6 = vcmp.ne.s32.totalorder %v11143_v15, 0 }
 0x242   : > { %13562 = vst [vmem:[#allocation75_spill] sm:$0xff] %v11147_v6  ;;  %v4828_v23 = vmul.f32 %v11147_v6, %v11147_v6  ;;  %13563 = vst [vmem:[#allocation76_spill] sm:$0xff] %v11164_v31  ;;  %v4829_v49 = vmul.f32 %v11164_v31, %v11164_v31  ;;  %vm3288_vm2 = vcmp.ne.s32.totalorder %v11136_v17, 0 }
 0x244   : > { %v11168_v2 = vpop.permute.xlu0 %3444  ;;  %v4858_v34 = vsel %vm4833_vm13, %v4828_v23, 0.0 }
 0x245   : > { %4847 = vadd.xlane.f32.xlu0 %v4846_v22  ;;  %v11149_v22 = vpop.permute.xlu1 %3348 }
 0x248   : > { %v11180_v32 = vpop.permute.xlu0 %3507 }
 0x249   : > { %4850 = vadd.xlane.f32.xlu0 %v4849_v44  ;;  %v11159_v21 = vpop.permute.xlu1 %3412  ;;  %v11166_v44 = vpop.f32.mrf.mxu0  ;;  %vm3511_vm10 = vcmp.ne.s32.totalorder %v11180_v32, 0 }
 0x24a   : > { %13564 = vst [vmem:[#allocation77_spill] sm:$0xff] %v11166_v44  ;;  %v7955_v44 = vld [vmem:[%s11044_s28 + $0x58] sm:$0xff] }
 0x24b   : > { %v11190_v60 = vsel %vm2856_vm8, %v7955_v44, %v13288_v0 }
 0x24c   : > { %13567 = vst [vmem:[#allocation80_spill] sm:$0xff] %v11190_v60  ;;  %v11192_v37 = vpop.permute.xlu0 %3571 }
 0x24d   : > { %4853 = vadd.xlane.f32.xlu0 %v4852_v28  ;;  %4592 = vbcast.lane.b32.xlu1 %v4588_v24, %s13541_s14  ;;  %v11172_v24 = vsel %vm2824_vm7, %v7953_v14, %v13288_v0  ;;  %v8374_v28 = vpop.f32.mrf.mxu0  ;;  %v11174_v52 = vpop.permute.xlu1 %3476  ;;  %s1141_s14 = smul.u32 9, %s13570_s0  ;;  %s13828_s0 = smov (!%p1231_p13, %s13570_s0), 2 }
 0x24e   : > { %13565 = vst [vmem:[#allocation78_spill] sm:$0xff] %v11172_v24  ;;  %v4830_v23 = vmul.f32 %v11172_v24, %v11172_v24  ;;  %v4861_v28 = vsel %vm4833_vm13, %v4829_v49, 0.0  ;;  %v4831_v49 = vmul.f32 %v11190_v60, %v11190_v60  ;;  %vm3480_vm3 = vcmp.ne.s32.totalorder %v11174_v52, 0 }
 0x24f   : > { %v11178_v27 = vpop.f32.mrf.mxu0  ;;  %p1142_p12 = scmp.lt.s32.totalorder %s1141_s14, 26 }
 0x250   : > { %13566 = vst [vmem:[#allocation79_spill] sm:$0xff] %v11178_v27  ;;  %v7957_v27 = vld [vmem:[%s11044_s28 + $0x60] sm:$0xff]  ;;  %v11205_v31 = vpop.permute.xlu0 %3635 }
 0x251   : > { %4856 = vadd.xlane.f32.xlu0 %v4855_v11  ;;  %v8377_v14 = vpop.f32.mrf.mxu0  ;;  %v11186_v11 = vpop.permute.xlu1 %3539  ;;  %v11203_v44 = vsel %vm2888_vm9, %v7957_v27, %v13288_v0  ;;  %v4867_v27 = vsel %vm4833_vm13, %v4831_v49, 0.0  ;;  %s13826_s14 = smov (!%p1142_p12, %s1141_s14), 26 }
 0x252   : > { %13568 = vst [vmem:[#allocation81_spill] sm:$0xff] %v11203_v44  ;;  %s11275_s26 = sshll.u32 %s13826_s14, 3  ;;  %s13734_s14 = sld [smem:[#allocation15_spill]] }
 0x253   : > { %v5447_v43 = vpop.f32.mrf.mxu0  ;;  %s11282_s13 = scalar_lea.vmem %s13572_s29, %s11275_s26  ;;  %s11297_s16 = scalar_lea.vmem %s13574_s27, %s11275_s26 }
 0x254   : > { %v5511_v9 = vmul.f32 %v9875_v58, %v5447_v43  ;;  %s11308_s22 = scalar_lea.vmem %s13575_s1, %s11275_s26  ;;  %s11369_s24 = scalar_lea.vmem %s13577_s3, %s11275_s26 }
 0x255   : > { %4859 = vadd.xlane.f32.xlu0 %v4858_v34  ;;  %v4864_v34 = vsel %vm4833_vm13, %v4830_v23, 0.0  ;;  %v8418_v24 = vpop.f32.mrf.mxu0  ;;  %v11198_v14 = vpop.permute.xlu1 %3603  ;;  %v4832_v23 = vmul.f32 %v11203_v44, %v11203_v44  ;;  %s11375_s15 = scalar_lea.vmem %s13578_s20, %s11275_s26  ;;  %v8026_v47 = vld [vmem:[%s11369_s24 + $0x10] sm:$0xff]  ;;  %v8028_v48 = vld [vmem:[%s11369_s24 + $0x18] sm:$0xff]  ;;  %s13777_s29 = sld [smem:[#allocation159_spill]] }
 0x256   : > { %8488 = vmatmul.mubr.f32.vlgmr.msra.gmra.mxu1 %v5511_v9  ;;  %v8062_v62 = vld [vmem:[%s11375_s15 + $0x10] sm:$0xff] }
 0x257   : > { %v5452_v41 = vpop.f32.mrf.mxu0  ;;  %8574 = vmatpush3.msra.mxu1 %v10861_v50  ;;  %v4870_v49 = vsel %vm4833_vm13, %v4832_v23, 0.0 }
 0x258   : > { %v5512_v43 = vmul.f32 %v10020_v59, %v5452_v41 }
 0x259   : > { %4862 = vadd.xlane.f32.xlu0 %v4861_v28  ;;  %v13569_v28 = vmov 0.0   ;;  %v8421_v35 = vpop.f32.mrf.mxu0  ;;  %v11211_v24 = vpop.permute.xlu1 %3667 }
 0x25a   : > { %8490 = vmatprep.mubr.msk.f32.mxu1 %vm8920_vm0, %v13569_v28  ;;  %8575 = vmatprep.subr.mxu1 %v13569_v28 }
 0x25b   : > { %8491 = vmatmul.mubr.f32.gmra.mxu1 %v5512_v43  ;;  %v5457_v9 = vpop.f32.mrf.mxu0 }
 0x25c   : > { %8493 = vmatprep.mubr.msk.f32.mxu1 %vm8920_vm0, %v13569_v28  ;;  %v5513_v50 = vmul.f32 %v10040_v7, %v5457_v9  ;;  %8576 = vmatpush3.msra.mxu1 %v10881_v57 }
 0x25d   : > { %4865 = vadd.xlane.f32.xlu0 %v4864_v34  ;;  %v11217_v34 = vpop.permute.xlu0 %3699  ;;  %v8424_v41 = vpop.f32.mrf.mxu0  ;;  %8577 = vmatprep.subr.mxu1 %v13569_v28 }
 0x25e   : > { %v11223_v35 = vpop.permute.xlu1 %3731  ;;  %8578 = vmatpush3.msra.mxu1 %v10899_v53 }
 0x25f   : > { %8494 = vmatmul.mubr.f32.gmra.mxu1 %v5513_v50  ;;  %v5462_v43 = vpop.f32.mrf.mxu0  ;;  %8579 = vmatprep.subr.mxu1 %v13569_v28 }
 0x260   : > { %8496 = vmatprep.mubr.msk.f32.mxu1 %vm8920_vm0, %v13569_v28  ;;  %8580 = vmatpush3.msra.mxu1 %v10923_v5 }
 0x261   : > { %4868 = vadd.xlane.f32.xlu0 %v4867_v27  ;;  %v11227_v44 = vpop.permute.xlu0 %3763  ;;  %v5514_v27 = vmul.f32 %v10837_v51, %v5462_v43  ;;  %v8427_v57 = vpop.f32.mrf.mxu0  ;;  %8581 = vmatprep.subr.mxu1 %v13569_v28 }
 0x262   : > { %v11233_v9 = vpop.permute.xlu1 %3794  ;;  %8582 = vmatpush3.msra.mxu1 %v10944_v29  ;;  %v4552_v29 = vld [vmem:[%s4551_s12] ss:$0 sm:$0xff]  ;;  %s7854_s12 = sshll.u32 %s13828_s0, 3 }
 0x263   : > { %8497 = vmatmul.mubr.f32.gmra.mxu1 %v5514_v27  ;;  %v5467_v23 = vpop.f32.mrf.mxu0  ;;  %8583 = vmatprep.subr.mxu1 %v13569_v28  ;;  %vm3798_vm4 = vcmp.ne.s32.totalorder %v11233_v9, 0 }
 0x264   : > { %8499 = vmatprep.mubr.msk.f32.mxu1 %vm8920_vm0, %v13569_v28  ;;  %v5515_v41 = vmul.f32 %v10850_v20, %v5467_v23  ;;  %8584 = vmatpush3.msra.mxu1 %v10959_v10 }
 0x265   : > { %4871 = vadd.xlane.f32.xlu0 %v4870_v49  ;;  %v11237_v50 = vpop.permute.xlu0 %3826  ;;  %v8430_v53 = vpop.f32.mrf.mxu0  ;;  %8585 = vmatprep.subr.mxu1 %v13569_v28 }
 0x266   : > { %v11248_v49 = vpop.permute.xlu1 %3858  ;;  %8586 = vmatpush3.msra.mxu1 %v10970_v54  ;;  %v4555_v54 = vshra.s32 %v4552_v29, %v10524_v12  ;;  %vm3830_vm7 = vcmp.ne.s32.totalorder %v11237_v50, 0  ;;  %v3744_v50 = vld [vmem:[%s11369_s24] sm:$0xff] }
 0x267   : > { %8500 = vmatmul.mubr.f32.gmra.mxu1 %v5515_v41  ;;  %v5472_v43 = vpop.f32.mrf.mxu0  ;;  %8587 = vmatprep.subr.mxu1 %v13569_v28  ;;  %vm3862_vm8 = vcmp.ne.s32.totalorder %v11248_v49, 0 }
 0x268   : > { %8502 = vmatprep.mubr.msk.f32.mxu1 %vm8920_vm0, %v13569_v28  ;;  %v5516_v5 = vmul.f32 %v10870_v61, %v5472_v43  ;;  %8588 = vmatpush3.msra.mxu1 %v10982_v26 }
 0x269   : > { %v11252_v27 = vpop.permute.xlu0 %3890  ;;  %v8433_v57 = vpop.f32.mrf.mxu0  ;;  %8589 = vmatprep.subr.mxu1 %v13569_v28 }
 0x26a   : > { %v11260_v23 = vpop.permute.xlu1 %3922  ;;  %8590 = vmatpush3.msra.mxu1 %v10993_v56 }
 0x26b   : > { %8503 = vmatmul.mubr.f32.gmra.mxu1 %v5516_v5  ;;  %v5477_v41 = vpop.f32.mrf.mxu0  ;;  %8591 = vmatprep.subr.mxu1 %v13569_v28 }
 0x26c   : > { %8505 = vmatprep.mubr.msk.f32.mxu1 %vm8920_vm0, %v13569_v28  ;;  %v5517_v10 = vmul.f32 %v10889_v1, %v5477_v41  ;;  %8592 = vmatpush3.msra.mxu1 %v11005_v42  ;;  %v4556_v41 = vand.u32 255, %v4555_v54  ;;  %v8042_v42 = vld [vmem:[%s11297_s16 + $0x8] sm:$0xff] }
 0x26d   : > { %v11264_v53 = vpop.permute.xlu0 %3954  ;;  %v8436_v43 = vpop.f32.mrf.mxu0  ;;  %8593 = vmatprep.subr.mxu1 %v13569_v28 }
 0x26e   : > { %v11271_v57 = vpop.permute.xlu1 %3986  ;;  %8594 = vmatpush3.msra.mxu1 %v11016_v55  ;;  %v7988_v55 = vld [vmem:[%s11308_s22 + $0x8] sm:$0xff] }
 0x26f   : > { %13571 = vst [vmem:[#allocation82_spill] sm:$0xff] %v11271_v57  ;;  %8506 = vmatmul.mubr.f32.gmra.mxu1 %v5517_v10  ;;  %v5482_v26 = vpop.f32.mrf.mxu0  ;;  %v8006_v10 = vld [vmem:[%s11282_s13 + $0x8] sm:$0xff]  ;;  %8595 = vmatprep.subr.mxu1 %v13569_v28 }
 0x270   : > { %8508 = vmatprep.mubr.msk.f32.mxu1 %vm8920_vm0, %v13569_v28  ;;  %v5518_v12 = vmul.f32 %v10910_v39, %v5482_v26  ;;  %8596 = vmatpush3.msra.mxu1 %v11028_v36  ;;  %v3512_v54 = vsel %vm3511_vm10, %v8006_v10, %v13288_v0  ;;  %v11327_v36 = vsel %vm3224_vm11, %v7988_v55, %v13288_v0 }
 0x271   : > { %v11284_v5 = vpop.permute.xlu0 %4018  ;;  %v8439_v56 = vpop.f32.mrf.mxu0  ;;  %8597 = vmatprep.subr.mxu1 %v13569_v28 }
 0x272   : > { %13573 = vst [vmem:[#allocation83_spill] sm:$0xff] %v11284_v5  ;;  %v11291_v29 = vpop.permute.xlu1 %4050  ;;  %8598 = vmatpush3.msra.mxu1 %v11037_v30 }
 0x273   : > { %8509 = vmatmul.mubr.f32.gmra.mxu1 %v5518_v12  ;;  %v5487_v43 = vpop.f32.mrf.mxu0  ;;  %8599 = vmatprep.subr.mxu1 %v13569_v28  ;;  %vm4054_vm5 = vcmp.ne.s32.totalorder %v11291_v29, 0  ;;  %v8064_v29 = vld [vmem:[%s11375_s15 + $0x18] sm:$0xff] }
 0x274   : > { %8511 = vmatprep.mubr.msk.f32.mxu1 %vm8920_vm0, %v13569_v28  ;;  %v5519_v32 = vmul.f32 %v10934_v13, %v5487_v43  ;;  %8600 = vmatpush3.msra.mxu1 %v11050_v45 }
 0x275   : > { %v4082_v26 = vpop.permute.xlu0 %4081  ;;  %v8442_v56 = vpop.f32.mrf.mxu0  ;;  %8601 = vmatprep.subr.mxu1 %v13569_v28 }
 0x276   : > { %vm4085_vm12 = vcmp.ne.s32.totalorder %v4082_v26, 0  ;;  %v11319_v60 = vpop.permute.xlu1 %4113  ;;  %8602 = vmatpush3.msra.mxu1 %v11060_v33 }
 0x277   : > { %v4086_v12 = vsel %vm4085_vm12, %v8042_v42, %v13288_v0  ;;  %8512 = vmatmul.mubr.f32.gmra.mxu1 %v5519_v32  ;;  %v5492_v8 = vpop.f32.mrf.mxu0  ;;  %8603 = vmatprep.subr.mxu1 %v13569_v28  ;;  %vm3767_vm12 = vcmp.ne.s32.totalorder %v11227_v44, 0 }
 0x278   : > { %v11323_v5 = vadd.f32 %v4086_v12, %v3512_v54  ;;  %8514 = vmatprep.mubr.msk.f32.mxu1 %vm8920_vm0, %v13569_v28  ;;  %8604 = vmatpush3.msra.mxu1 %v11068_v19  ;;  %v7990_v19 = vld [vmem:[%s11308_s22 + $0x10] sm:$0xff] }
 0x279   : > { %v11329_v43 = vpop.permute.xlu0 %4145  ;;  %v8445_v10 = vpop.f32.mrf.mxu0  ;;  %v11394_v6 = vsel %vm3256_vm15, %v7990_v19, %v13288_v0 }
 0x27a   : > { %13576 = vst [vmem:[#allocation84_spill] sm:$0xff] %v11323_v5  ;;  %v6934_v30 = vmul.f32 %v11323_v5, %v11327_v36  ;;  %v11338_v42 = vpop.permute.xlu1 %4177  ;;  %v3170_v10 = vld [vmem:[%s11308_s22] sm:$0xff]  ;;  %v8060_v5 = vld [vmem:[%s11375_s15 + $0x8] sm:$0xff] }
 0x27b   : > { %4560 = vbcast.lane.b32.xlu0 %v4556_v41, %s10583_s2  ;;  %v5520_v41 = vmul.f32 %v10952_v46, %v5492_v8  ;;  %v5497_v55 = vpop.f32.mrf.mxu0  ;;  %v11389_v57 = vsel %vm3193_vm14, %v3170_v10, %v13288_v0  ;;  %vm3894_vm14 = vcmp.ne.s32.totalorder %v11252_v27, 0 }
 0x27c   : > { %v6945_v26 = vsel %vm4925_vm1, %v6934_v30, 0.0  ;;  %v5521_v32 = vmul.f32 %v10975_v16, %v5497_v55  ;;  %v3457_v55 = vld [vmem:[%s11282_s13] sm:$0xff] }
 0x27d   : > { %8515 = vmatmul.mubr.f32.gmra.mxu1 %v5520_v41  ;;  %v11343_v45 = vpop.permute.xlu0 %4209  ;;  %6946 = vadd.xlane.f32.xlu1 %v6945_v26  ;;  %v8448_v33 = vpop.f32.mrf.mxu0  ;;  %v7992_v26 = vld [vmem:[%s11308_s22 + $0x18] sm:$0xff]  ;;  %v3481_v17 = vsel %vm3480_vm3, %v3457_v55, %v13288_v0  ;;  %v3863_v55 = vsel %vm3862_vm8, %v8028_v48, %v13288_v0  ;;  %vm3352_vm8 = vcmp.ne.s32.totalorder %v11149_v22, 0 }
 0x27e   : > { %8517 = vmatprep.mubr.msk.f32.mxu1 %vm8920_vm0, %v13569_v28  ;;  %v11349_v54 = vpop.permute.xlu1 %4241  ;;  %v11399_v38 = vsel %vm3288_vm2, %v7992_v26, %v13288_v0  ;;  %vm4117_vm2 = vcmp.ne.s32.totalorder %v11319_v60, 0 }
 0x27f   : > { %v5502_v12 = vpop.f32.mrf.mxu0 }
 0x280   : > { %v5522_v8 = vmul.f32 %v10998_v25, %v5502_v12  ;;  %v8024_v12 = vld [vmem:[%s11369_s24 + $0x8] sm:$0xff] }
 0x281   : > { %8518 = vmatmul.mubr.f32.gmra.mxu1 %v5521_v32  ;;  %v11351_v56 = vpop.permute.xlu0 %4273  ;;  %v8451_v41 = vpop.f32.mrf.mxu0 }
 0x282   : > { %8520 = vmatprep.mubr.msk.f32.mxu1 %vm8920_vm0, %v13569_v28  ;;  %v11356_v30 = vpop.permute.xlu1 %4305 }
 0x283   : > { %v5507_v32 = vpop.f32.mrf.mxu0 }
 0x284   : > { %v5523_v41 = vmul.f32 %v11021_v18, %v5507_v32 }
 0x285   : > { %8521 = vmatmul.mubr.f32.gmra.mxu1 %v5522_v8  ;;  %v4338_v33 = vpop.permute.xlu0 %4337  ;;  %v4031_v8 = vld [vmem:[%s11297_s16] sm:$0xff]  ;;  %v8454_v63 = vpop.f32.mrf.mxu0 }
 0x286   : > { %8523 = vmatprep.mubr.msk.f32.mxu1 %vm8920_vm0, %v13569_v28  ;;  %v4369_v32 = vpop.permute.xlu1 %4368  ;;  %v3799_v63 = vsel %vm3798_vm4, %v8024_v12, %v13288_v0  ;;  %v4055_v10 = vsel %vm4054_vm5, %v4031_v8, %v13288_v0  ;;  %vm4341_vm10 = vcmp.ne.s32.totalorder %v4338_v33, 0  ;;  %vm3543_vm4 = vcmp.ne.s32.totalorder %v11186_v11, 0  ;;  %v8010_v11 = vld [vmem:[%s11282_s13 + $0x18] sm:$0xff] }
 0x287   : > { %vm4372_vm9 = vcmp.ne.s32.totalorder %v4369_v32, 0  ;;  %v5863_v26 = vpop.f32.mrf.mxu0  ;;  %v11441_v49 = vadd.f32 %v4055_v10, %v3481_v17  ;;  %vm3926_vm5 = vcmp.ne.s32.totalorder %v11260_v23, 0 }
 0x288   : > { %v4373_v19 = vsel %vm4372_vm9, %v8060_v5, %v13288_v0  ;;  %v5927_v9 = vmul.f32 %v9875_v58, %v5863_v26  ;;  %v3831_v5 = vsel %vm3830_vm7, %v8026_v47, %v13288_v0  ;;  %vm4149_vm7 = vcmp.ne.s32.totalorder %v11329_v43, 0 }
 0x289   : > { %8524 = vmatmul.mubr.f32.gmra.mxu1 %v5523_v41  ;;  %v4401_v40 = vpop.permute.xlu0 %4400  ;;  %v4318_v41 = vld [vmem:[%s11375_s15] sm:$0xff]  ;;  %v11420_v52 = vadd.f32 %v4373_v19, %v3799_v63  ;;  %v8536_v8 = vpop.f32.mrf.mxu0  ;;  %v6933_v27 = vmul.f32 %v11441_v49, %v11389_v57  ;;  %vm3575_vm9 = vcmp.ne.s32.totalorder %v11192_v37, 0 }
 0x28a   : > { %8605 = vmatprep.mubr.msk.f32.mxu1 %vm8920_vm0, %v13569_v28  ;;  %vm4404_vm11 = vcmp.ne.s32.totalorder %v4401_v40, 0  ;;  %v4433_v32 = vpop.permute.xlu1 %4432  ;;  %v7994_v63 = vld [vmem:[%s11308_s22 + $0x20] sm:$0xff]  ;;  %v4342_v48 = vsel %vm4341_vm10, %v4318_v41, %v13288_v0  ;;  %vm3958_vm10 = vcmp.ne.s32.totalorder %v11264_v53, 0 }
 0x28b   : > { %v4405_v12 = vsel %vm4404_vm11, %v8062_v62, %v13288_v0  ;;  %vm4436_vm15 = vcmp.ne.s32.totalorder %v4433_v32, 0  ;;  %v8066_v40 = vld [vmem:[%s11375_s15 + $0x20] sm:$0xff]  ;;  %v6970_v47 = vmul.f32 %v11420_v52, %v11327_v36  ;;  %v5868_v26 = vpop.f32.mrf.mxu0  ;;  %v11457_v33 = vsel %vm3320_vm6, %v7994_v63, %v13288_v0  ;;  %v8068_v63 = vld [vmem:[%s11375_s15 + $0x28] sm:$0xff] }
 0x28c   : > { %v11434_v58 = vadd.f32 %v4405_v12, %v3831_v5  ;;  %v8030_v19 = vld [vmem:[%s11369_s24 + $0x20] sm:$0xff]  ;;  %v4437_v62 = vsel %vm4436_vm15, %v8064_v29, %v13288_v0  ;;  %v5928_v17 = vmul.f32 %v10020_v59, %v5868_v26  ;;  %v8008_v59 = vld [vmem:[%s11282_s13 + $0x10] sm:$0xff]  ;;  %v3768_v32 = vsel %vm3767_vm12, %v3744_v50, %v13288_v0 }
 0x28d   : > { %8606 = vmatmul.mubr.f32.vlgmr.msra.gmra.mxu1 %v5927_v9  ;;  %v4465_v5 = vpop.permute.xlu0 %4464  ;;  %v8044_v9 = vld [vmem:[%s11297_s16 + $0x10] sm:$0xff]  ;;  %v11450_v12 = vadd.f32 %v4437_v62, %v3863_v55  ;;  %v6981_v10 = vsel %vm4925_vm1, %v6970_v47, 0.0  ;;  %v8539_v29 = vpop.f32.mrf.mxu0  ;;  %v3895_v15 = vsel %vm3894_vm14, %v8030_v19, %v13288_v0  ;;  %v11477_v62 = vadd.f32 %v4342_v48, %v3768_v32  ;;  %v8046_v19 = vld [vmem:[%s11297_s16 + $0x18] sm:$0xff] }
 0x28e   : > { %8608 = vmatprep.mubr.msk.f32.mxu1 %vm8920_vm0, %v13569_v28  ;;  %vm4468_vm3 = vcmp.ne.s32.totalorder %v4465_v5, 0  ;;  %v4497_v8 = vpop.permute.xlu1 %4496  ;;  %6982 = vadd.xlane.f32.xlu1 %v6981_v10  ;;  %v6971_v55 = vmul.f32 %v11434_v58, %v11394_v6  ;;  %v4118_v47 = vsel %vm4117_vm2, %v8044_v9, %v13288_v0  ;;  %v3544_v9 = vsel %vm3543_vm4, %v8008_v59, %v13288_v0  ;;  %v8034_v59 = vld [vmem:[%s11369_s24 + $0x30] sm:$0xff] }
 0x28f   : > { %13579 = vst [vmem:[#allocation85_spill] sm:$0xff] %v11450_v12  ;;  %v4469_v41 = vsel %vm4468_vm3, %v8066_v40, %v13288_v0  ;;  %vm4500_vm6 = vcmp.ne.s32.totalorder %v4497_v8, 0  ;;  %v8032_v40 = vld [vmem:[%s11369_s24 + $0x28] sm:$0xff]  ;;  %v5873_v44 = vpop.f32.mrf.mxu0  ;;  %v6972_v48 = vmul.f32 %v11450_v12, %v11399_v38  ;;  %v11502_v29 = vadd.f32 %v4118_v47, %v3544_v9 }
 0x290   : > { %v11484_v26 = vadd.f32 %v4469_v41, %v3895_v15  ;;  %v5929_v60 = vmul.f32 %v10040_v7, %v5873_v44  ;;  %v6984_v5 = vsel %vm4925_vm1, %v6971_v55, 0.0  ;;  %v7996_v7 = vld [vmem:[%s11308_s22 + $0x28] sm:$0xff]  ;;  %v3927_v41 = vsel %vm3926_vm5, %v8032_v40, %v13288_v0  ;;  %v8070_v55 = vld [vmem:[%s11375_s15 + $0x30] sm:$0xff] }
 0x291   : > { %8609 = vmatmul.mubr.f32.gmra.mxu1 %v5928_v17  ;;  %v4529_v50 = vpop.permute.xlu0 %4528  ;;  %v4501_v17 = vsel %vm4500_vm6, %v8068_v63, %v13288_v0  ;;  %v8542_v10 = vpop.f32.mrf.mxu0  ;;  %v4150_v8 = vsel %vm4149_vm7, %v8046_v19, %v13288_v0  ;;  %vm4181_vm12 = vcmp.ne.s32.totalorder %v11338_v42, 0  ;;  %v6942_v15 = vsel %vm4925_vm1, %v6933_v27, 0.0  ;;  %v8048_v63 = vld [vmem:[%s11297_s16 + $0x20] sm:$0xff] }
 0x292   : > { %8611 = vmatprep.mubr.msk.f32.mxu1 %vm8920_vm0, %v13569_v28  ;;  %13580 = vst [vmem:[#allocation86_spill] sm:$0xff] %v11484_v26  ;;  %6985 = vadd.xlane.f32.xlu1 %v6984_v5  ;;  %vm4532_vm11 = vcmp.ne.s32.totalorder %v4529_v50, 0  ;;  %v6969_v23 = vmul.f32 %v11477_v62, %v11389_v57  ;;  %v11517_v40 = vadd.f32 %v4501_v17, %v3927_v41  ;;  %v6987_v43 = vsel %vm4925_vm1, %v6972_v48, 0.0  ;;  %v7998_v5 = vld [vmem:[%s11308_s22 + $0x30] sm:$0xff]  ;;  %v8012_v48 = vld [vmem:[%s11282_s13 + $0x20] sm:$0xff] }
 0x293   : > { %v5878_v32 = vpop.f32.mrf.mxu0  ;;  %v6973_v44 = vmul.f32 %v11484_v26, %v11457_v33  ;;  %v11526_v27 = vsel %vm3352_vm8, %v7996_v7, %v13288_v0  ;;  %v4533_v19 = vsel %vm4532_vm11, %v8070_v55, %v13288_v0  ;;  %vm3384_vm14 = vcmp.ne.s32.totalorder %v11153_v4, 0  ;;  %v8050_v55 = vld [vmem:[%s11297_s16 + $0x28] sm:$0xff] }
 0x294   : > { %13581 = vst [vmem:[#allocation87_spill] sm:$0xff] %v11517_v40  ;;  %v5930_v47 = vmul.f32 %v10837_v51, %v5878_v32  ;;  %13582 = vst [vmem:[#allocation88_spill] sm:$0xff] %v11526_v27  ;;  %v3576_v51 = vsel %vm3575_vm9, %v8010_v11, %v13288_v0  ;;  %vm3607_vm15 = vcmp.ne.s32.totalorder %v11198_v14, 0  ;;  %v3959_v22 = vsel %vm3958_vm10, %v8034_v59, %v13288_v0 }
 0x295   : > { %8612 = vmatmul.mubr.f32.gmra.mxu1 %v5929_v60  ;;  %v8545_v60 = vpop.f32.mrf.mxu0  ;;  %v11540_v50 = vadd.f32 %v4150_v8, %v3576_v51  ;;  %v4182_v9 = vsel %vm4181_vm12, %v8048_v63, %v13288_v0  ;;  %v6978_v37 = vsel %vm4925_vm1, %v6969_v23, 0.0  ;;  %v6935_v53 = vmul.f32 %v11502_v29, %v11394_v6  ;;  %v8014_v8 = vld [vmem:[%s11282_s13 + $0x28] sm:$0xff] }
 0x296   : > { %8614 = vmatprep.mubr.msk.f32.mxu1 %vm8920_vm0, %v13569_v28  ;;  %6988 = vadd.xlane.f32.xlu1 %v6987_v43  ;;  %v11550_v10 = vadd.f32 %v4533_v19, %v3959_v22  ;;  %v6990_v41 = vsel %vm4925_vm1, %v6973_v44, 0.0  ;;  %v6974_v42 = vmul.f32 %v11517_v40, %v11526_v27  ;;  %vm4213_vm2 = vcmp.ne.s32.totalorder %v11343_v45, 0  ;;  %v8016_v19 = vld [vmem:[%s11282_s13 + $0x30] sm:$0xff] }
 0x297   : > { %v5883_v17 = vpop.f32.mrf.mxu0  ;;  %v11561_v59 = vsel %vm3384_vm14, %v7998_v5, %v13288_v0  ;;  %vm3639_vm3 = vcmp.ne.s32.totalorder %v11205_v31, 0  ;;  %v6936_v4 = vmul.f32 %v11540_v50, %v11399_v38  ;;  %v4214_v23 = vsel %vm4213_vm2, %v8050_v55, %v13288_v0  ;;  %v8056_v55 = vld [vmem:[%s11297_s16 + $0x40] sm:$0xff] }
 0x298   : > { %13583 = vst [vmem:[#allocation89_spill] sm:$0xff] %v11550_v10  ;;  %v5931_v7 = vmul.f32 %v10850_v20, %v5883_v17  ;;  %13584 = vst [vmem:[#allocation90_spill] sm:$0xff] %v11561_v59  ;;  %v3608_v20 = vsel %vm3607_vm15, %v8012_v48, %v13288_v0  ;;  %v6993_v63 = vsel %vm4925_vm1, %v6974_v42, 0.0  ;;  %v6975_v31 = vmul.f32 %v11550_v10, %v11561_v59 }
 0x299   : > { %8615 = vmatmul.mubr.f32.gmra.mxu1 %v5930_v47  ;;  %v8548_v11 = vpop.f32.mrf.mxu0  ;;  %v11568_v32 = vadd.f32 %v4182_v9, %v3608_v20  ;;  %v8052_v47 = vld [vmem:[%s11297_s16 + $0x30] sm:$0xff]  ;;  %vm4245_vm4 = vcmp.ne.s32.totalorder %v11349_v54, 0  ;;  %v3640_v44 = vsel %vm3639_vm3, %v8014_v8, %v13288_v0  ;;  %vm3671_vm5 = vcmp.ne.s32.totalorder %v11211_v24, 0  ;;  %v8054_v24 = vld [vmem:[%s11297_s16 + $0x38] sm:$0xff]  ;;  %v8020_v8 = vld [vmem:[%s11282_s13 + $0x40] sm:$0xff] }
 0x29a   : > { %6943 = vadd.xlane.f32.xlu0 %v6942_v15  ;;  %8617 = vmatprep.mubr.msk.f32.mxu1 %vm8920_vm0, %v13569_v28  ;;  %v6948_v15 = vsel %vm4925_vm1, %v6935_v53, 0.0  ;;  %v6951_v51 = vsel %vm4925_vm1, %v6936_v4, 0.0  ;;  %v4246_v22 = vsel %vm4245_vm4, %v8052_v47, %v13288_v0  ;;  %v6996_v48 = vsel %vm4925_vm1, %v6975_v31, 0.0  ;;  %v8000_v20 = vld [vmem:[%s11308_s22 + $0x38] sm:$0xff] }
 0x29b   : > { %6991 = vadd.xlane.f32.xlu1 %v6990_v41  ;;  %13585 = vst [vmem:[#allocation91_spill] sm:$0xff] %v11568_v32  ;;  %v5888_v45 = vpop.f32.mrf.mxu0  ;;  %v6937_v54 = vmul.f32 %v11568_v32, %v11457_v33  ;;  %vm4277_vm6 = vcmp.ne.s32.totalorder %v11351_v56, 0  ;;  %v3672_v17 = vsel %vm3671_vm5, %v8016_v19, %v13288_v0  ;;  %vm3703_vm7 = vcmp.ne.s32.totalorder %v11217_v34, 0 }
 0x29c   : > { %v5932_v14 = vmul.f32 %v10870_v61, %v5888_v45  ;;  %v11585_v61 = vadd.f32 %v4214_v23, %v3640_v44  ;;  %v11600_v53 = vadd.f32 %v4246_v22, %v3672_v17  ;;  %v4278_v41 = vsel %vm4277_vm6, %v8054_v24, %v13288_v0 }
 0x29d   : > { %8618 = vmatmul.mubr.f32.gmra.mxu1 %v5931_v7  ;;  %v8551_v43 = vpop.f32.mrf.mxu0  ;;  %v6954_v7 = vsel %vm4925_vm1, %v6937_v54, 0.0  ;;  %vm4309_vm8 = vcmp.ne.s32.totalorder %v11356_v30, 0  ;;  %vm3416_vm9 = vcmp.ne.s32.totalorder %v11159_v21, 0  ;;  %vm3735_vm10 = vcmp.ne.s32.totalorder %v11223_v35, 0 }
 0x29e   : > { %6979 = vadd.xlane.f32.xlu0 %v6978_v37  ;;  %8620 = vmatprep.mubr.msk.f32.mxu1 %vm8920_vm0, %v13569_v28  ;;  %13586 = vst [vmem:[#allocation92_spill] sm:$0xff] %v11585_v61  ;;  %v8018_v37 = vld [vmem:[%s11282_s13 + $0x38] sm:$0xff]  ;;  %13587 = vst [vmem:[#allocation93_spill] sm:$0xff] %v11600_v53  ;;  %v6938_v56 = vmul.f32 %v11585_v61, %v11526_v27  ;;  %v6939_v30 = vmul.f32 %v11600_v53, %v11561_v59  ;;  %vm3448_vm11 = vcmp.ne.s32.totalorder %v11168_v2, 0  ;;  %s1234_s13 = scalar_lea.vmem %s13777_s29, %s7854_s12 }
 0x29f   : > { %6994 = vadd.xlane.f32.xlu1 %v6993_v63  ;;  %v5893_v60 = vpop.f32.mrf.mxu0  ;;  %v3704_v11 = vsel %vm3703_vm7, %v8018_v37, %v13288_v0  ;;  %v4310_v21 = vsel %vm4309_vm8, %v8056_v55, %v13288_v0  ;;  %v3736_v35 = vsel %vm3735_vm10, %v8020_v8, %v13288_v0  ;;  %v8002_v63 = vld [vmem:[%s11308_s22 + $0x40] sm:$0xff]  ;;  %vm6528_vm7 = vcmask 7168  }
 0x2a0   : > { %v5933_v5 = vmul.f32 %v10889_v1, %v5893_v60  ;;  %v11616_v45 = vadd.f32 %v4278_v41, %v3704_v11  ;;  %v11631_v31 = vadd.f32 %v4310_v21, %v3736_v35  ;;  %v6960_v43 = vsel %vm4925_vm1, %v6939_v30, 0.0 }
 0x2a1   : > { %8621 = vmatmul.mubr.f32.gmra.mxu1 %v5932_v14  ;;  %v8554_v9 = vpop.f32.mrf.mxu0  ;;  %v11626_v14 = vsel %vm3416_vm9, %v8000_v20, %v13288_v0  ;;  %v11640_v60 = vsel %vm3448_vm11, %v8002_v63, %v13288_v0 }
 0x2a2   : > { %6949 = vadd.xlane.f32.xlu0 %v6948_v15  ;;  %8623 = vmatprep.mubr.msk.f32.mxu1 %vm8920_vm0, %v13569_v28  ;;  %13588 = vst [vmem:[#allocation94_spill] sm:$0xff] %v11616_v45  ;;  %13589 = vst [vmem:[#allocation95_spill] sm:$0xff] %v11626_v14  ;;  %v6941_v54 = vmul.f32 %v11631_v31, %v11640_v60 }
 0x2a3   : > { %6997 = vadd.xlane.f32.xlu1 %v6996_v48  ;;  %v5898_v1 = vpop.f32.mrf.mxu0  ;;  %13590 = vst [vmem:[#allocation96_spill] sm:$0xff] %v11631_v31  ;;  %13591 = vst [vmem:[#allocation97_spill] sm:$0xff] %v11640_v60 }
 0x2a4   : > { %v5934_v42 = vmul.f32 %v10910_v39, %v5898_v1  ;;  %v6957_v39 = vsel %vm4925_vm1, %v6938_v56, 0.0  ;;  %v6966_v48 = vsel %vm4925_vm1, %v6941_v54, 0.0 }
 0x2a5   : > { %8624 = vmatmul.mubr.f32.gmra.mxu1 %v5933_v5  ;;  %v8557_v34 = vpop.f32.mrf.mxu0 }
 0x2a6   : > { %6952 = vadd.xlane.f32.xlu0 %v6951_v51  ;;  %8626 = vmatprep.mubr.msk.f32.mxu1 %vm8920_vm0, %v13569_v28 }
 0x2a7   : > { %v5903_v15 = vpop.f32.mrf.mxu0 }
 0x2a8   : > { %v5935_v4 = vmul.f32 %v10934_v13, %v5903_v15  ;;  %v6940_v13 = vmul.f32 %v11616_v45, %v11626_v14 }
 0x2a9   : > { %8627 = vmatmul.mubr.f32.gmra.mxu1 %v5934_v42  ;;  %v8560_v23 = vpop.f32.mrf.mxu0 }
 0x2aa   : > { %6955 = vadd.xlane.f32.xlu0 %v6954_v7  ;;  %8629 = vmatprep.mubr.msk.f32.mxu1 %vm8920_vm0, %v13569_v28  ;;  %v6963_v51 = vsel %vm4925_vm1, %v6940_v13, 0.0 }
 0x2ab   : > { %v5908_v47 = vpop.f32.mrf.mxu0 }
 0x2ac   : > { %v5936_v44 = vmul.f32 %v10952_v46, %v5908_v47 }
 0x2ad   : > { %8630 = vmatmul.mubr.f32.gmra.mxu1 %v5935_v4  ;;  %v8563_v19 = vpop.f32.mrf.mxu0 }
 0x2ae   : > { %6958 = vadd.xlane.f32.xlu0 %v6957_v39  ;;  %8632 = vmatprep.mubr.msk.f32.mxu1 %vm8920_vm0, %v13569_v28 }
 0x2af   : > { %v5913_v2 = vpop.f32.mrf.mxu0 }
 0x2b0   : > { %v5937_v22 = vmul.f32 %v10975_v16, %v5913_v2 }
 0x2b1   : > { %8633 = vmatmul.mubr.f32.gmra.mxu1 %v5936_v44  ;;  %v8566_v5 = vpop.f32.mrf.mxu0 }
 0x2b2   : > { %6961 = vadd.xlane.f32.xlu0 %v6960_v43  ;;  %8635 = vmatprep.mubr.msk.f32.mxu1 %vm8920_vm0, %v13569_v28 }
 0x2b3   : > { %v5918_v46 = vpop.f32.mrf.mxu0 }
 0x2b4   : > { %v5938_v24 = vmul.f32 %v10998_v25, %v5918_v46 }
 0x2b5   : > { %8636 = vmatmul.mubr.f32.gmra.mxu1 %v5937_v22  ;;  %v8569_v9 = vpop.f32.mrf.mxu0  ;;  %v11657_v42 = vpop.f32.mrf.mxu1 }
 0x2b6   : > { %6964 = vadd.xlane.f32.xlu0 %v6963_v51  ;;  %8638 = vmatprep.mubr.msk.f32.mxu1 %vm8920_vm0, %v13569_v28 }
 0x2b7   : > { %v5923_v17 = vpop.f32.mrf.mxu0  ;;  %v8380_v25 = vpop.f32.mrf.mxu1 }
 0x2b8   : > { %v5939_v16 = vmul.f32 %v11021_v18, %v5923_v17 }
 0x2b9   : > { %8639 = vmatmul.mubr.f32.gmra.mxu1 %v5938_v24  ;;  %v8572_v37 = vpop.f32.mrf.mxu0  ;;  %v13592_v24 = vld [vmem:[#allocation70_spill] sm:$0xff] }
 0x2ba   : > { %6967 = vadd.xlane.f32.xlu0 %v6966_v48  ;;  %8641 = vmatprep.mubr.msk.f32.mxu1 %vm8920_vm0, %v13569_v28 }
 0x2bd   : > { %8642 = vmatmul.mubr.f32.gmra.mxu1 %v5939_v16 }
 0x2c2   : > { %v4839_v1 = vpop.xlane.xlu0 %4838 }
 0x2c3   : > { %v11661_v34 = vpop.f32.mrf.mxu1 }
 0x2c5   : > { %v4836_v7 = vpop.xlane.xlu1 %4835  ;;  %v8383_v11 = vpop.f32.mrf.mxu1 }
 0x2c6   : > { %v4873_v56 = vmax.f32 %v4836_v7, 1e-24  ;;  %v11655_v41 = vpop.xlane.xlu0 %4841 }
 0x2c7   : > { %v11663_v15 = vpop.f32.mrf.mxu1 }
 0x2c8   : > { %8699 = vrsqrt.f32 %v4873_v56 }
 0x2c9   : > { %v8386_v18 = vpop.f32.mrf.mxu1 }
 0x2ca   : > { %v11659_v55 = vpop.xlane.xlu0 %4844  ;;  %v4874_v18 = vmax.f32 %v4839_v1, 1e-24 }
 0x2cb   : > { %v11665_v21 = vpop.f32.mrf.mxu1 }
 0x2cd   : > { %v8389_v23 = vpop.f32.mrf.mxu1 }
 0x2ce   : > { %v4848_v20 = vpop.xlane.xlu0 %4847 }
 0x2cf   : > { %v4877_v8 = vmax.f32 %v4848_v20, 1e-24  ;;  %v11670_v43 = vpop.f32.mrf.mxu1  ;;  %v13593_v20 = vld [vmem:[#allocation71_spill] sm:$0xff] }
 0x2d1   : > { %8701 = vrsqrt.f32 %v4877_v8  ;;  %v8392_v44 = vpop.f32.mrf.mxu1 }
 0x2d2   : > { %v4851_v39 = vpop.xlane.xlu0 %4850 }
 0x2d3   : > { %v4878_v30 = vmax.f32 %v4851_v39, 1e-24  ;;  %v11675_v54 = vpop.f32.mrf.mxu1 }
 0x2d5   : > { %v8700_v4 = vpop.eup %8699  ;;  %8703 = vrsqrt.f32 %v4878_v30  ;;  %v8395_v22 = vpop.f32.mrf.mxu1 }
 0x2d6   : > { %v4854_v35 = vpop.xlane.xlu0 %4853  ;;  %v11668_v63 = vmul.f32 %v8700_v4, %v11080_v3 }
 0x2d7   : > { %v4879_v47 = vmax.f32 %v4854_v35, 1e-24 }
 0x2d8   : > { %v6615_v13 = vmul.f32 %v11668_v63, %v11668_v63  ;;  %v11677_v48 = vpop.f32.mrf.mxu1 }
 0x2d9   : > { %8705 = vrsqrt.f32 %v4879_v47 }
 0x2da   : > { %v4857_v19 = vpop.xlane.xlu0 %4856  ;;  %v6628_v2 = vsel %vm4833_vm13, %v6615_v13, 0.0  ;;  %v8398_v17 = vpop.f32.mrf.mxu1  ;;  %v13595_v13 = vld [vmem:[#allocation72_spill] sm:$0xff] }
 0x2db   : > { %v4880_v51 = vmax.f32 %v4857_v19, 1e-24  ;;  %6629 = vadd.xlane.f32.xlu0 %v6628_v2  ;;  %v4875_v19 = vmax.f32 %v11655_v41, 1e-24  ;;  %v4593_v17 = vpop.permute.xlu1 %4592  ;;  %v4876_v41 = vmax.f32 %v11659_v55, 1e-24 }
 0x2dc   : > { %vm4596_vm0 = vcmp.ne.s32.totalorder %v4593_v17, 0  ;;  %v13604_v55 = vld [vmem:[#allocation83_spill] sm:$0xff] }
 0x2dd   : > { %8707 = vrsqrt.f32 %v4880_v51  ;;  %v11684_v25 = vpop.f32.mrf.mxu1  ;;  %vm4022_vm14 = vcmp.ne.s32.totalorder %v13604_v55, 0  ;;  %v13608_v55 = vld [vmem:[#allocation76_spill] sm:$0xff] }
 0x2de   : > { %v8702_v5 = vpop.eup %8701  ;;  %v4860_v3 = vpop.xlane.xlu0 %4859 }
 0x2df   : > { %v4881_v46 = vmax.f32 %v4860_v3, 1e-24  ;;  %v11680_v9 = vmul.f32 %v8702_v5, %v13592_v24  ;;  %v8401_v39 = vpop.f32.mrf.mxu1 }
 0x2e1   : > { %8709 = vrsqrt.f32 %v4881_v46  ;;  %v6619_v16 = vmul.f32 %v11680_v9, %v11680_v9  ;;  %v11694_v35 = vpop.f32.mrf.mxu1  ;;  %v13598_v46 = vld [vmem:[#allocation74_spill] sm:$0xff] }
 0x2e2   : > { %v8704_v37 = vpop.eup %8703  ;;  %v4863_v7 = vpop.xlane.xlu0 %4862  ;;  %v5249_v31 = vmul.f32 %v11694_v35, %v11694_v35 }
 0x2e3   : > { %v4882_v56 = vmax.f32 %v4863_v7, 1e-24  ;;  %v6640_v11 = vsel %vm4833_vm13, %v6619_v16, 0.0  ;;  %v11688_v8 = vmul.f32 %v8704_v37, %v13593_v20  ;;  %v8404_v1 = vpop.f32.mrf.mxu1 }
 0x2e4   : > { %6641 = vadd.xlane.f32.xlu0 %v6640_v11  ;;  %v8074_v11 = vld [vmem:[%s11375_s15 + $0x40] sm:$0xff] }
 0x2e5   : > { %13594 = vst [vmem:[#allocation70_spill] sm:$0xff] %v11688_v8  ;;  %v6620_v30 = vmul.f32 %v11688_v8, %v11688_v8  ;;  %8711 = vrsqrt.f32 %v4882_v56  ;;  %v11705_v5 = vpop.f32.mrf.mxu1  ;;  %v4597_v1 = vsel %vm4596_vm0, %v8074_v11, %v13288_v0 }
 0x2e6   : > { %v8706_v4 = vpop.eup %8705  ;;  %v11692_v23 = vpop.xlane.xlu0 %4865  ;;  %8713 = vrsqrt.f32 %v4874_v18  ;;  %13597 = vst [vmem:[#allocation72_spill] sm:$0xff] %v11705_v5  ;;  %v13601_v18 = vld [vmem:[#allocation75_spill] sm:$0xff]  ;;  %v5250_v10 = vmul.f32 %v11705_v5, %v11705_v5 }
 0x2e7   : > { %v6643_v47 = vsel %vm4833_vm13, %v6620_v30, 0.0  ;;  %v11698_v44 = vmul.f32 %v8706_v4, %v13595_v13  ;;  %8715 = vrsqrt.f32 %v4875_v19  ;;  %v8407_v16 = vpop.f32.mrf.mxu1  ;;  %v8036_v30 = vld [vmem:[%s11369_s24 + $0x38] sm:$0xff]  ;;  %v13603_v4 = vld [vmem:[#allocation82_spill] sm:$0xff] }
 0x2e8   : > { %6644 = vadd.xlane.f32.xlu0 %v6643_v47  ;;  %vm3990_vm12 = vcmp.ne.s32.totalorder %v13603_v4, 0  ;;  %v8038_v47 = vld [vmem:[%s11369_s24 + $0x40] sm:$0xff]  ;;  %8717 = vrsqrt.f32 %v4876_v41  ;;  %v8072_v13 = vld [vmem:[%s11375_s15 + $0x38] sm:$0xff] }
 0x2e9   : > { %13596 = vst [vmem:[#allocation71_spill] sm:$0xff] %v11698_v44  ;;  %v6621_v2 = vmul.f32 %v11698_v44, %v11698_v44  ;;  %v3991_v17 = vsel %vm3990_vm12, %v8036_v30, %v13288_v0  ;;  %v4023_v16 = vsel %vm4022_vm14, %v8038_v47, %v13288_v0  ;;  %v13607_v4 = vld [vmem:[#allocation84_spill] sm:$0xff] }
 0x2ea   : > { %v8708_v51 = vpop.eup %8707  ;;  %v11703_v22 = vpop.xlane.xlu0 %4868 }
 0x2eb   : > { %v6646_v3 = vsel %vm4833_vm13, %v6621_v2, 0.0  ;;  %v11709_v24 = vmul.f32 %v8708_v51, %v13598_v46 }
 0x2ec   : > { %6647 = vadd.xlane.f32.xlu0 %v6646_v3  ;;  %v7178_v3 = vmul.f32 %v11327_v36, %v11327_v36  ;;  %v7214_v36 = vmul.f32 %v13607_v4, %v13607_v4 }
 0x2ed   : > { %13599 = vst [vmem:[#allocation74_spill] sm:$0xff] %v11709_v24  ;;  %v6622_v37 = vmul.f32 %v11709_v24, %v11709_v24 }
 0x2ee   : > { %v8710_v7 = vpop.eup %8709  ;;  %v11714_v56 = vpop.xlane.xlu0 %4871 }
 0x2ef   : > { %13600 = vst [vmem:[#allocation98_spill] sm:$0xff] %v11714_v56  ;;  %v6649_v20 = vsel %vm4833_vm13, %v6622_v37, 0.0  ;;  %v11719_v39 = vmul.f32 %v8710_v7, %v13601_v18  ;;  %v11735_v37 = vadd.f32 %v4597_v1, %v4023_v16  ;;  %v13611_v16 = vld [vmem:[#allocation68_spill] sm:$0xff] }
 0x2f0   : > { %6650 = vadd.xlane.f32.xlu0 %v6649_v20  ;;  %v7189_v20 = vsel %vm4925_vm1, %v7178_v3, 0.0 }
 0x2f1   : > { %13602 = vst [vmem:[#allocation75_spill] sm:$0xff] %v11719_v39  ;;  %v6623_v19 = vmul.f32 %v11719_v39, %v11719_v39  ;;  %13605 = vst [vmem:[#allocation82_spill] sm:$0xff] %v11735_v37 }
 0x2f2   : > { %v4561_v2 = vpop.permute.xlu0 %4560  ;;  %v8712_v46 = vpop.eup %8711 }
 0x2f3   : > { %vm4564_vm15 = vcmp.ne.s32.totalorder %v4561_v2, 0  ;;  %v6652_v51 = vsel %vm4833_vm13, %v6623_v19, 0.0  ;;  %v8714_v11 = vpop.eup %8713  ;;  %v11745_v30 = vmul.f32 %v8712_v46, %v13608_v55  ;;  %v13610_v19 = vld [vmem:[#allocation67_spill] sm:$0xff]  ;;  %v13612_v55 = vld [vmem:[#allocation69_spill] sm:$0xff] }
 0x2f4   : > { %v4565_v41 = vsel %vm4564_vm15, %v8072_v13, %v13288_v0  ;;  %6653 = vadd.xlane.f32.xlu0 %v6652_v51  ;;  %v6977_v13 = vmul.f32 %v11735_v37, %v11640_v60  ;;  %v11751_v1 = vmul.f32 %v8714_v11, %v13610_v19  ;;  %v8716_v2 = vpop.eup %8715  ;;  %v7225_v51 = vsel %vm4925_vm1, %v7214_v36, 0.0 }
 0x2f5   : > { %v11737_v7 = vadd.f32 %v4565_v41, %v3991_v17  ;;  %13609 = vst [vmem:[#allocation84_spill] sm:$0xff] %v11745_v30  ;;  %v6624_v3 = vmul.f32 %v11745_v30, %v11745_v30  ;;  %v11760_v41 = vmul.f32 %v8716_v2, %v13611_v16  ;;  %v5247_v0 = vmul.f32 %v11677_v48, %v11677_v48 }
 0x2f6   : > { %v7002_v46 = vsel %vm4925_vm1, %v6977_v13, 0.0  ;;  %v6616_v17 = vmul.f32 %v11751_v1, %v11751_v1  ;;  %v13613_v13 = vld [vmem:[#allocation73_spill] sm:$0xff]  ;;  %v5248_v37 = vmul.f32 %v11684_v25, %v11684_v25 }
 0x2f7   : > { %13606 = vst [vmem:[#allocation83_spill] sm:$0xff] %v11737_v7  ;;  %v6976_v18 = vmul.f32 %v11737_v7, %v11626_v14  ;;  %v6655_v11 = vsel %vm4833_vm13, %v6624_v3, 0.0  ;;  %v6617_v36 = vmul.f32 %v11760_v41, %v11760_v41  ;;  %v5238_v19 = vmul.f32 %v13613_v13, %v13613_v13 }
 0x2f8   : > { %7190 = vadd.xlane.f32.xlu0 %v7189_v20  ;;  %v8718_v20 = vpop.eup %8717  ;;  %v6631_v4 = vsel %vm4833_vm13, %v6616_v17, 0.0  ;;  %v7177_v17 = vmul.f32 %v11389_v57, %v11389_v57  ;;  %v13614_v57 = vld [vmem:[#allocation77_spill] sm:$0xff]  ;;  %v5287_v14 = vsel %vm4833_vm13, %v5250_v10, 0.0 }
 0x2f9   : > { %v6999_v47 = vsel %vm4925_vm1, %v6976_v18, 0.0  ;;  %v7215_v18 = vmul.f32 %v11502_v29, %v11502_v29  ;;  %v5251_v3 = vsel %vm4833_vm13, %v5238_v19, 0.0 }
 0x2fa   : > { %7000 = vadd.xlane.f32.xlu1 %v6999_v47  ;;  %v11769_v47 = vmul.f32 %v8718_v20, %v13612_v55  ;;  %v7186_v16 = vsel %vm4925_vm1, %v7177_v17, 0.0  ;;  %v7213_v20 = vmul.f32 %v11441_v49, %v11441_v49  ;;  %v5239_v55 = vmul.f32 %v13614_v57, %v13614_v57 }
 0x2fb   : > { %v7228_v2 = vsel %vm4925_vm1, %v7215_v18, 0.0  ;;  %v7179_v18 = vmul.f32 %v11394_v6, %v11394_v6 }
 0x2fc   : > { %7226 = vadd.xlane.f32.xlu0 %v7225_v51  ;;  %v6634_v51 = vsel %vm4833_vm13, %v6617_v36, 0.0  ;;  %v6618_v29 = vmul.f32 %v11769_v47, %v11769_v47  ;;  %v7258_v36 = vmul.f32 %v11477_v62, %v11477_v62  ;;  %v5254_v6 = vsel %vm4833_vm13, %v5239_v55, 0.0 }
 0x2fd   : > { %v5241_v62 = vmul.f32 %v11657_v42, %v11657_v42 }
 0x2fe   : > { %7003 = vadd.xlane.f32.xlu1 %v7002_v46  ;;  %v6637_v46 = vsel %vm4833_vm13, %v6618_v29, 0.0  ;;  %v7267_v19 = vsel %vm4925_vm1, %v7258_v36, 0.0  ;;  %v5243_v36 = vmul.f32 %v11663_v15, %v11663_v15 }
 0x300   : > { %6656 = vadd.xlane.f32.xlu0 %v6655_v11  ;;  %v7222_v11 = vsel %vm4925_vm1, %v7213_v20, 0.0  ;;  %v5242_v20 = vmul.f32 %v11661_v34, %v11661_v34 }
 0x302   : > { %6632 = vadd.xlane.f32.xlu1 %v6631_v4  ;;  %v7192_v4 = vsel %vm4925_vm1, %v7179_v18, 0.0  ;;  %v5263_v55 = vsel %vm4833_vm13, %v5242_v20, 0.0 }
 0x304   : > { %7229 = vadd.xlane.f32.xlu0 %v7228_v2  ;;  %v13615_v2 = vld [vmem:[#allocation79_spill] sm:$0xff] }
 0x306   : > { %6635 = vadd.xlane.f32.xlu1 %v6634_v51  ;;  %v5240_v51 = vmul.f32 %v13615_v2, %v13615_v2 }
 0x308   : > { %5252 = vadd.xlane.f32.xlu0 %v5251_v3 }
 0x30a   : > { %6638 = vadd.xlane.f32.xlu1 %v6637_v46  ;;  %v5257_v46 = vsel %vm4833_vm13, %v5240_v51, 0.0 }
 0x30e   : > { %7187 = vadd.xlane.f32.xlu1 %v7186_v16 }
 0x312   : > { %7223 = vadd.xlane.f32.xlu1 %v7222_v11  ;;  %v5260_v11 = vsel %vm4833_vm13, %v5241_v62, 0.0 }
 0x316   : > { %7193 = vadd.xlane.f32.xlu1 %v7192_v4  ;;  %v11793_v49 = vpop.f32.mrf.mxu1 }
 0x318   : > { %v8489_v29 = vpop.f32.mrf.mxu1 }
 0x319   : > { %v5266_v29 = vsel %vm4833_vm13, %v5243_v36, 0.0 }
 0x31a   : > { %7268 = vadd.xlane.f32.xlu1 %v7267_v19 }
 0x31b   : > { %v11798_v3 = vpop.f32.mrf.mxu1 }
 0x31d   : > { %v8492_v17 = vpop.f32.mrf.mxu1 }
 0x31e   : > { %5255 = vadd.xlane.f32.xlu1 %v5254_v6  ;;  %v5244_v6 = vmul.f32 %v11665_v21, %v11665_v21  ;;  %v5245_v17 = vmul.f32 %v11670_v43, %v11670_v43 }
 0x31f   : > { %v11803_v16 = vpop.f32.mrf.mxu1 }
 0x320   : > { %v5272_v36 = vsel %vm4833_vm13, %v5245_v17, 0.0  ;;  %v5278_v17 = vsel %vm4833_vm13, %v5247_v0, 0.0  ;;  %v5284_v0 = vsel %vm4833_vm13, %v5249_v31, 0.0 }
 0x321   : > { %v8495_v18 = vpop.f32.mrf.mxu1 }
 0x322   : > { %5258 = vadd.xlane.f32.xlu1 %v5257_v46 }
 0x323   : > { %v11808_v4 = vpop.f32.mrf.mxu1 }
 0x325   : > { %v8498_v19 = vpop.f32.mrf.mxu1 }
 0x326   : > { %5261 = vadd.xlane.f32.xlu1 %v5260_v11  ;;  %v5269_v11 = vsel %vm4833_vm13, %v5244_v6, 0.0  ;;  %v11827_v19 = vpop.xlane.xlu0 %6943 }
 0x327   : > { %v11813_v51 = vpop.f32.mrf.mxu1  ;;  %13616 = vst [vmem:[#allocation76_spill] sm:$0xff] %v11827_v19 }
 0x329   : > { %v8501_v46 = vpop.f32.mrf.mxu1 }
 0x32a   : > { %5264 = vadd.xlane.f32.xlu1 %v5263_v55  ;;  %v5246_v55 = vmul.f32 %v11675_v54, %v11675_v54 }
 0x32b   : > { %v11818_v62 = vpop.f32.mrf.mxu1 }
 0x32c   : > { %v5275_v6 = vsel %vm4833_vm13, %v5246_v55, 0.0  ;;  %v5281_v55 = vsel %vm4833_vm13, %v5248_v37, 0.0 }
 0x32d   : > { %v8504_v18 = vpop.f32.mrf.mxu1 }
 0x32e   : > { %5267 = vadd.xlane.f32.xlu1 %v5266_v29 }
 0x32f   : > { %v11823_v20 = vpop.f32.mrf.mxu1 }
 0x331   : > { %v8507_v46 = vpop.f32.mrf.mxu1 }
 0x332   : > { %5270 = vadd.xlane.f32.xlu1 %v5269_v11  ;;  %v11835_v11 = vpop.xlane.xlu0 %6979 }
 0x333   : > { %v11830_v29 = vpop.f32.mrf.mxu1  ;;  %13617 = vst [vmem:[#allocation67_spill] sm:$0xff] %v11835_v11 }
 0x335   : > { %v8510_v18 = vpop.f32.mrf.mxu1 }
 0x336   : > { %5273 = vadd.xlane.f32.xlu1 %v5272_v36  ;;  %v11846_v7 = vpop.xlane.xlu0 %6949 }
 0x337   : > { %v11837_v28 = vpop.f32.mrf.mxu1  ;;  %13618 = vst [vmem:[#allocation68_spill] sm:$0xff] %v11846_v7 }
 0x339   : > { %v8513_v46 = vpop.f32.mrf.mxu1 }
 0x33a   : > { %5276 = vadd.xlane.f32.xlu1 %v5275_v6 }
 0x33d   : > { %v11842_v36 = vpop.f32.mrf.mxu1 }
 0x33e   : > { %5279 = vadd.xlane.f32.xlu1 %v5278_v17  ;;  %v11854_v17 = vpop.xlane.xlu0 %6952 }
 0x33f   : > { %v8516_v6 = vpop.f32.mrf.mxu1  ;;  %13619 = vst [vmem:[#allocation69_spill] sm:$0xff] %v11854_v17 }
 0x341   : > { %v11849_v18 = vpop.f32.mrf.mxu1 }
 0x342   : > { %5282 = vadd.xlane.f32.xlu1 %v5281_v55  ;;  %v11861_v55 = vpop.xlane.xlu0 %6955 }
 0x343   : > { %v8519_v46 = vpop.f32.mrf.mxu1  ;;  %13620 = vst [vmem:[#allocation73_spill] sm:$0xff] %v11861_v55 }
 0x345   : > { %v11856_v60 = vpop.f32.mrf.mxu1 }
 0x346   : > { %5285 = vadd.xlane.f32.xlu1 %v5284_v0  ;;  %v11865_v53 = vpop.xlane.xlu0 %6958 }
 0x347   : > { %v8522_v45 = vpop.f32.mrf.mxu1  ;;  %13621 = vst [vmem:[#allocation77_spill] sm:$0xff] %v11865_v53 }
 0x349   : > { %v11859_v37 = vpop.f32.mrf.mxu1 }
 0x34a   : > { %5288 = vadd.xlane.f32.xlu1 %v5287_v14  ;;  %v11871_v17 = vpop.xlane.xlu0 %6961  ;;  %v11875_v14 = vpop.xlane.xlu1 %6946 }
 0x34b   : > { %v8525_v6 = vpop.f32.mrf.mxu1  ;;  %13622 = vst [vmem:[#allocation79_spill] sm:$0xff] %v11871_v17  ;;  %13623 = vst [vmem:[#allocation99_spill] sm:$0xff] %v11875_v14 }
 0x34d   : > { %v11863_v40 = vpop.f32.mrf.mxu1 }
 0x34e   : > { %v11877_v55 = vpop.xlane.xlu0 %6964 }
 0x34f   : > { %v8607_v59 = vpop.f32.mrf.mxu1  ;;  %13624 = vst [vmem:[#allocation100_spill] sm:$0xff] %v11877_v55 }
 0x350   : > { %v11881_v59 = vpop.xlane.xlu1 %6982 }
 0x351   : > { %v11867_v31 = vpop.f32.mrf.mxu1  ;;  %13625 = vst [vmem:[#allocation101_spill] sm:$0xff] %v11881_v59 }
 0x353   : > { %v8610_v0 = vpop.f32.mrf.mxu1 }
 0x354   : > { %v11885_v0 = vpop.xlane.xlu0 %6967  ;;  %v11887_v61 = vpop.xlane.xlu1 %6985 }
 0x355   : > { %v11869_v46 = vpop.f32.mrf.mxu1  ;;  %13626 = vst [vmem:[#allocation102_spill] sm:$0xff] %v11885_v0  ;;  %13627 = vst [vmem:[#allocation103_spill] sm:$0xff] %v11887_v61 }
 0x357   : > { %v8613_v10 = vpop.f32.mrf.mxu1 }
 0x358   : > { %v11895_v55 = vpop.xlane.xlu1 %6988 }
 0x359   : > { %v11873_v45 = vpop.f32.mrf.mxu1  ;;  %13629 = vst [vmem:[#allocation105_spill] sm:$0xff] %v11895_v55 }
 0x35b   : > { %v8616_v7 = vpop.f32.mrf.mxu1 }
 0x35d   : > { %v11879_v6 = vpop.f32.mrf.mxu1 }
 0x35f   : > { %v8619_v53 = vpop.f32.mrf.mxu1 }
 0x361   : > { %v11883_v19 = vpop.f32.mrf.mxu1 }
 0x363   : > { %v8622_v11 = vpop.f32.mrf.mxu1 }
 0x364   : > { %v11891_v17 = vpop.xlane.xlu0 %6629  ;;  %v11903_v11 = vpop.xlane.xlu1 %6991 }
 0x365   : > { %v11889_v10 = vpop.f32.mrf.mxu1  ;;  %13628 = vst [vmem:[#allocation104_spill] sm:$0xff] %v11891_v17  ;;  %13632 = vst [vmem:[#allocation108_spill] sm:$0xff] %v11903_v11 }
 0x367   : > { %v8625_v14 = vpop.f32.mrf.mxu1 }
 0x368   : > { %v11911_v32 = vpop.xlane.xlu1 %6994 }
 0x369   : > { %v11893_v7 = vpop.f32.mrf.mxu1  ;;  %13634 = vst [vmem:[#allocation110_spill] sm:$0xff] %v11911_v32 }
 0x36b   : > { %v8628_v59 = vpop.f32.mrf.mxu1 }
 0x36d   : > { %v11897_v26 = vpop.xlane.xlu0 %6641  ;;  %v11899_v53 = vpop.f32.mrf.mxu1 }
 0x36e   : > { %13630 = vst [vmem:[#allocation106_spill] sm:$0xff] %v11897_v26 }
 0x36f   : > { %v8631_v0 = vpop.f32.mrf.mxu1 }
 0x370   : > { %v11919_v0 = vpop.xlane.xlu1 %6997 }
 0x371   : > { %v11901_v27 = vpop.xlane.xlu0 %6644  ;;  %v11905_v61 = vpop.f32.mrf.mxu1  ;;  %13637 = vst [vmem:[#allocation113_spill] sm:$0xff] %v11919_v0 }
 0x372   : > { %13631 = vst [vmem:[#allocation107_spill] sm:$0xff] %v11901_v27 }
 0x373   : > { %v8634_v17 = vpop.f32.mrf.mxu1 }
 0x375   : > { %v11907_v12 = vpop.xlane.xlu0 %6647  ;;  %v11909_v14 = vpop.f32.mrf.mxu1 }
 0x376   : > { %13633 = vst [vmem:[#allocation109_spill] sm:$0xff] %v11907_v12 }
 0x377   : > { %v8637_v26 = vpop.f32.mrf.mxu1 }
 0x379   : > { %v11913_v55 = vpop.xlane.xlu0 %6650  ;;  %v11915_v59 = vpop.f32.mrf.mxu1 }
 0x37a   : > { %13635 = vst [vmem:[#allocation111_spill] sm:$0xff] %v11913_v55 }
 0x37b   : > { %v8640_v27 = vpop.f32.mrf.mxu1 }
 0x37d   : > { %v11917_v5 = vpop.xlane.xlu0 %6653  ;;  %v11921_v11 = vpop.f32.mrf.mxu1 }
 0x37e   : > { %13636 = vst [vmem:[#allocation112_spill] sm:$0xff] %v11917_v5 }
 0x37f   : > { %v8643_v12 = vpop.f32.mrf.mxu1 }
 0x381   : > { %v11923_v30 = vpop.xlane.xlu0 %7190 }
 0x382   : > { %13638 = vst [vmem:[#allocation114_spill] sm:$0xff] %v11923_v30 }
 0x383   : > { %v11925_v17 = vpop.xlane.xlu1 %7000 }
 0x384   : > { %13639 = vst [vmem:[#allocation115_spill] sm:$0xff] %v11925_v17 }
 0x385   : > { %v11927_v39 = vpop.xlane.xlu0 %7226 }
 0x386   : > { %13640 = vst [vmem:[#allocation116_spill] sm:$0xff] %v11927_v39 }
 0x387   : > { %v11929_v32 = vpop.xlane.xlu1 %7003 }
 0x388   : > { %13641 = vst [vmem:[#allocation117_spill] sm:$0xff] %v11929_v32 }
 0x389   : > { %v11931_v55 = vpop.xlane.xlu0 %6656 }
 0x38a   : > { %13642 = vst [vmem:[#allocation118_spill] sm:$0xff] %v11931_v55 }
 0x38b   : > { %v11933_v26 = vpop.xlane.xlu1 %6632 }
 0x38c   : > { %13643 = vst [vmem:[#allocation119_spill] sm:$0xff] %v11933_v26 }
 0x38d   : > { %v11935_v56 = vpop.xlane.xlu0 %7229 }
 0x38e   : > { %13644 = vst [vmem:[#allocation120_spill] sm:$0xff] %v11935_v56 }
 0x38f   : > { %v11937_v27 = vpop.xlane.xlu1 %6635 }
 0x390   : > { %13645 = vst [vmem:[#allocation121_spill] sm:$0xff] %v11937_v27 }
 0x391   : > { %v5253_v5 = vpop.xlane.xlu0 %5252 }
 0x392   : > { %v5290_v0 = vmax.f32 %v5253_v5, 1e-24 }
 0x393   : > { %v11939_v24 = vpop.xlane.xlu1 %6638 }
 0x394   : > { %13646 = vst [vmem:[#allocation122_spill] sm:$0xff] %v11939_v24  ;;  %8719 = vrsqrt.f32 %v5290_v0 }
 0x397   : > { %v11941_v12 = vpop.xlane.xlu1 %7187 }
 0x398   : > { %13647 = vst [vmem:[#allocation123_spill] sm:$0xff] %v11941_v12 }
 0x39b   : > { %v11943_v30 = vpop.xlane.xlu1 %7223 }
 0x39c   : > { %13648 = vst [vmem:[#allocation124_spill] sm:$0xff] %v11943_v30 }
 0x39f   : > { %v11945_v39 = vpop.xlane.xlu1 %7193 }
 0x3a0   : > { %13649 = vst [vmem:[#allocation125_spill] sm:$0xff] %v11945_v39 }
 0x3a1   : > { %v8720_v32 = vpop.eup %8719 }
 0x3a2   : > { %v11948_v55 = vmul.f32 %v8720_v32, %v13613_v13 }
 0x3a3   : > { %v11950_v26 = vpop.xlane.xlu1 %7268 }
 0x3a4   : > { %13650 = vst [vmem:[#allocation126_spill] sm:$0xff] %v11950_v26  ;;  %v6563_v27 = vmul.f32 %v11948_v55, %v11948_v55 }
 0x3a6   : > { %v6576_v5 = vsel %vm4833_vm13, %v6563_v27, 0.0 }
 0x3a7   : > { %6577 = vadd.xlane.f32.xlu0 %v6576_v5  ;;  %v5256_v24 = vpop.xlane.xlu1 %5255 }
 0x3a8   : > { %v5291_v0 = vmax.f32 %v5256_v24, 1e-24 }
 0x3aa   : > { %8721 = vrsqrt.f32 %v5291_v0 }
 0x3ab   : > { %v5259_v56 = vpop.xlane.xlu1 %5258 }
 0x3ac   : > { %v5292_v12 = vmax.f32 %v5259_v56, 1e-24 }
 0x3ae   : > { %8723 = vrsqrt.f32 %v5292_v12 }
 0x3af   : > { %v5262_v30 = vpop.xlane.xlu1 %5261 }
 0x3b0   : > { %v5293_v39 = vmax.f32 %v5262_v30, 1e-24 }
 0x3b2   : > { %8725 = vrsqrt.f32 %v5293_v39 }
 0x3b3   : > { %v5265_v17 = vpop.xlane.xlu1 %5264 }
 0x3b4   : > { %v5294_v32 = vmax.f32 %v5265_v17, 1e-24 }
 0x3b6   : > { %8727 = vrsqrt.f32 %v5294_v32 }
 0x3b7   : > { %v8722_v13 = vpop.eup %8721  ;;  %v5268_v26 = vpop.xlane.xlu1 %5267 }
 0x3b8   : > { %v5295_v44 = vmax.f32 %v5268_v26, 1e-24  ;;  %v11956_v8 = vmul.f32 %v8722_v13, %v13614_v57 }
 0x3ba   : > { %8729 = vrsqrt.f32 %v5295_v44  ;;  %v6564_v24 = vmul.f32 %v11956_v8, %v11956_v8 }
 0x3bb   : > { %v8724_v27 = vpop.eup %8723  ;;  %v5271_v5 = vpop.xlane.xlu1 %5270 }
 0x3bc   : > { %v5296_v56 = vmax.f32 %v5271_v5, 1e-24  ;;  %v6579_v12 = vsel %vm4833_vm13, %v6564_v24, 0.0  ;;  %v11962_v39 = vmul.f32 %v8724_v27, %v13615_v2  ;;  %v5654_v24 = vmul.f32 %v11793_v49, %v11793_v49 }
 0x3bd   : > { %6580 = vadd.xlane.f32.xlu1 %v6579_v12 }
 0x3be   : > { %8731 = vrsqrt.f32 %v5296_v56  ;;  %v6565_v30 = vmul.f32 %v11962_v39, %v11962_v39 }
 0x3bf   : > { %v8726_v17 = vpop.eup %8725  ;;  %v5274_v57 = vpop.xlane.xlu1 %5273 }
 0x3c0   : > { %v5297_v26 = vmax.f32 %v5274_v57, 1e-24  ;;  %v6582_v44 = vsel %vm4833_vm13, %v6565_v30, 0.0  ;;  %v11968_v0 = vmul.f32 %v8726_v17, %v11657_v42  ;;  %v5656_v30 = vmul.f32 %v11803_v16, %v11803_v16 }
 0x3c1   : > { %6583 = vadd.xlane.f32.xlu0 %v6582_v44  ;;  %v5667_v44 = vsel %vm4833_vm13, %v5654_v24, 0.0 }
 0x3c2   : > { %8733 = vrsqrt.f32 %v5297_v26  ;;  %v6566_v32 = vmul.f32 %v11968_v0, %v11968_v0 }
 0x3c3   : > { %v8728_v2 = vpop.eup %8727  ;;  %v5277_v13 = vpop.xlane.xlu1 %5276 }
 0x3c4   : > { %v5298_v27 = vmax.f32 %v5277_v13, 1e-24  ;;  %v6585_v5 = vsel %vm4833_vm13, %v6566_v32, 0.0  ;;  %v11976_v56 = vmul.f32 %v8728_v2, %v11661_v34 }
 0x3c5   : > { %6586 = vadd.xlane.f32.xlu0 %v6585_v5  ;;  %v5657_v5 = vmul.f32 %v11808_v4, %v11808_v4 }
 0x3c6   : > { %8735 = vrsqrt.f32 %v5298_v27  ;;  %v6567_v42 = vmul.f32 %v11976_v56, %v11976_v56  ;;  %v5673_v27 = vsel %vm4833_vm13, %v5656_v30, 0.0 }
 0x3c7   : > { %v8730_v12 = vpop.eup %8729  ;;  %v5280_v17 = vpop.xlane.xlu1 %5279 }
 0x3c8   : > { %v5299_v57 = vmax.f32 %v5280_v17, 1e-24  ;;  %v6588_v26 = vsel %vm4833_vm13, %v6567_v42, 0.0  ;;  %v11985_v32 = vmul.f32 %v8730_v12, %v11663_v15 }
 0x3c9   : > { %6589 = vadd.xlane.f32.xlu1 %v6588_v26  ;;  %5668 = vadd.xlane.f32.xlu0 %v5667_v44  ;;  %v5676_v26 = vsel %vm4833_vm13, %v5657_v5, 0.0 }
 0x3ca   : > { %8737 = vrsqrt.f32 %v5299_v57  ;;  %v6568_v34 = vmul.f32 %v11985_v32, %v11985_v32  ;;  %v5658_v57 = vmul.f32 %v11813_v51, %v11813_v51 }
 0x3cb   : > { %v8732_v2 = vpop.eup %8731  ;;  %v5283_v13 = vpop.xlane.xlu1 %5282 }
 0x3cc   : > { %v5300_v17 = vmax.f32 %v5283_v13, 1e-24  ;;  %v6591_v42 = vsel %vm4833_vm13, %v6568_v34, 0.0  ;;  %v11994_v24 = vmul.f32 %v8732_v2, %v11665_v21  ;;  %v4884_v2 = vmax.f32 %v11703_v22, 1e-24 }
 0x3cd   : > { %6592 = vadd.xlane.f32.xlu1 %v6591_v42  ;;  %5674 = vadd.xlane.f32.xlu0 %v5673_v27  ;;  %v5659_v13 = vmul.f32 %v11818_v62, %v11818_v62  ;;  %v5660_v22 = vmul.f32 %v11823_v20, %v11823_v20 }
 0x3ce   : > { %8739 = vrsqrt.f32 %v5300_v17  ;;  %v6569_v15 = vmul.f32 %v11994_v24, %v11994_v24  ;;  %v5679_v17 = vsel %vm4833_vm13, %v5658_v57, 0.0 }
 0x3cf   : > { %v8734_v12 = vpop.eup %8733  ;;  %8741 = vrsqrt.f32 %v4884_v2  ;;  %v5685_v2 = vsel %vm4833_vm13, %v5660_v22, 0.0 }
 0x3d0   : > { %v6594_v30 = vsel %vm4833_vm13, %v6569_v15, 0.0  ;;  %v12003_v44 = vmul.f32 %v8734_v12, %v11670_v43  ;;  %v5682_v12 = vsel %vm4833_vm13, %v5659_v13, 0.0 }
 0x3d1   : > { %6595 = vadd.xlane.f32.xlu1 %v6594_v30  ;;  %5677 = vadd.xlane.f32.xlu0 %v5676_v26  ;;  %v5655_v26 = vmul.f32 %v11798_v3, %v11798_v3 }
 0x3d2   : > { %v6570_v21 = vmul.f32 %v12003_v44, %v12003_v44 }
 0x3d3   : > { %v8736_v34 = vpop.eup %8735 }
 0x3d4   : > { %v6597_v27 = vsel %vm4833_vm13, %v6570_v21, 0.0  ;;  %v12013_v5 = vmul.f32 %v8736_v34, %v11675_v54  ;;  %v5661_v21 = vmul.f32 %v11830_v29, %v11830_v29 }
 0x3d5   : > { %6598 = vadd.xlane.f32.xlu1 %v6597_v27  ;;  %5680 = vadd.xlane.f32.xlu0 %v5679_v17  ;;  %v5670_v27 = vsel %vm4833_vm13, %v5655_v26, 0.0  ;;  %v13651_v26 = vld [vmem:[#allocation80_spill] sm:$0xff] }
 0x3d6   : > { %v6571_v43 = vmul.f32 %v12013_v5, %v12013_v5  ;;  %v5688_v17 = vsel %vm4833_vm13, %v5661_v21, 0.0 }
 0x3d7   : > { %v8738_v42 = vpop.eup %8737 }
 0x3d8   : > { %v6600_v15 = vsel %vm4833_vm13, %v6571_v43, 0.0  ;;  %v12022_v30 = vmul.f32 %v8738_v42, %v11677_v48  ;;  %v5662_v48 = vmul.f32 %v11837_v28, %v11837_v28  ;;  %v7180_v42 = vmul.f32 %v11399_v38, %v11399_v38 }
 0x3d9   : > { %6601 = vadd.xlane.f32.xlu1 %v6600_v15  ;;  %5683 = vadd.xlane.f32.xlu0 %v5682_v12  ;;  %v5663_v15 = vmul.f32 %v11842_v36, %v11842_v36  ;;  %v5664_v38 = vmul.f32 %v11849_v18, %v11849_v18 }
 0x3da   : > { %v6572_v54 = vmul.f32 %v12022_v30, %v12022_v30 }
 0x3db   : > { %v8740_v57 = vpop.eup %8739 }
 0x3dc   : > { %v6603_v34 = vsel %vm4833_vm13, %v6572_v54, 0.0  ;;  %v12033_v13 = vmul.f32 %v8740_v57, %v11684_v25  ;;  %v8742_v22 = vpop.eup %8741  ;;  %v4883_v25 = vmax.f32 %v11692_v23, 1e-24  ;;  %v5691_v54 = vsel %vm4833_vm13, %v5662_v48, 0.0 }
 0x3dd   : > { %6604 = vadd.xlane.f32.xlu1 %v6603_v34  ;;  %5686 = vadd.xlane.f32.xlu0 %v5685_v2  ;;  %v7195_v57 = vsel %vm4925_vm1, %v7180_v42, 0.0  ;;  %v12050_v21 = vmul.f32 %v8742_v22, %v13651_v26  ;;  %v5694_v23 = vsel %vm4833_vm13, %v5663_v15, 0.0  ;;  %v7260_v34 = vmul.f32 %v11434_v58, %v11434_v58  ;;  %v5286_v2 = vpop.xlane.xlu1 %5285 }
 0x3de   : > { %v6573_v43 = vmul.f32 %v12033_v13, %v12033_v13  ;;  %8743 = vrsqrt.f32 %v4883_v25  ;;  %v5697_v42 = vsel %vm4833_vm13, %v5664_v38, 0.0  ;;  %v5666_v58 = vmul.f32 %v11859_v37, %v11859_v37 }
 0x3df   : > { %v6626_v48 = vmul.f32 %v12050_v21, %v12050_v21  ;;  %v6071_v25 = vmul.f32 %v11867_v31, %v11867_v31 }
 0x3e0   : > { %v6606_v12 = vsel %vm4833_vm13, %v6573_v43, 0.0  ;;  %v7273_v43 = vsel %vm4925_vm1, %v7260_v34, 0.0  ;;  %v6073_v34 = vmul.f32 %v11873_v45, %v11873_v45 }
 0x3e1   : > { %5671 = vadd.xlane.f32.xlu1 %v5670_v27  ;;  %5689 = vadd.xlane.f32.xlu0 %v5688_v17  ;;  %v5665_v27 = vmul.f32 %v11856_v60, %v11856_v60  ;;  %v5301_v17 = vmax.f32 %v5286_v2, 1e-24  ;;  %v6661_v22 = vsel %vm4833_vm13, %v6626_v48, 0.0  ;;  %v6086_v26 = vsel %vm4833_vm13, %v6071_v25, 0.0 }
 0x3e2   : > { %v7216_v25 = vmul.f32 %v11540_v50, %v11540_v50 }
 0x3e3   : > { %8745 = vrsqrt.f32 %v5301_v17  ;;  %v5700_v15 = vsel %vm4833_vm13, %v5665_v27, 0.0  ;;  %v13652_v27 = vld [vmem:[#allocation78_spill] sm:$0xff] }
 0x3e5   : > { %6607 = vadd.xlane.f32.xlu1 %v6606_v12  ;;  %5692 = vadd.xlane.f32.xlu0 %v5691_v54  ;;  %v6070_v12 = vmul.f32 %v11863_v40, %v11863_v40  ;;  %v6072_v54 = vmul.f32 %v11869_v46, %v11869_v46 }
 0x3e7   : > { %v6083_v2 = vsel %vm4833_vm13, %v6070_v12, 0.0  ;;  %v6089_v48 = vsel %vm4833_vm13, %v6072_v54, 0.0 }
 0x3e9   : > { %7196 = vadd.xlane.f32.xlu1 %v7195_v57  ;;  %5695 = vadd.xlane.f32.xlu0 %v5694_v23  ;;  %v5703_v57 = vsel %vm4833_vm13, %v5666_v58, 0.0  ;;  %v7259_v23 = vmul.f32 %v11420_v52, %v11420_v52 }
 0x3eb   : > { %v8744_v38 = vpop.eup %8743 }
 0x3ec   : > { %v12082_v17 = vmul.f32 %v8744_v38, %v13652_v27  ;;  %v7231_v38 = vsel %vm4925_vm1, %v7216_v25, 0.0  ;;  %v6078_v27 = vmul.f32 %v11899_v53, %v11899_v53  ;;  %v6081_v25 = vmul.f32 %v11915_v59, %v11915_v59 }
 0x3ed   : > { %7274 = vadd.xlane.f32.xlu1 %v7273_v43  ;;  %5698 = vadd.xlane.f32.xlu0 %v5697_v42  ;;  %v6074_v43 = vmul.f32 %v11879_v6, %v11879_v6  ;;  %v7270_v42 = vsel %vm4925_vm1, %v7259_v23, 0.0 }
 0x3ee   : > { %v6625_v52 = vmul.f32 %v12082_v17, %v12082_v17 }
 0x3ef   : > { %v6095_v54 = vsel %vm4833_vm13, %v6074_v43, 0.0 }
 0x3f0   : > { %v8746_v58 = vpop.eup %8745  ;;  %v6658_v12 = vsel %vm4833_vm13, %v6625_v52, 0.0  ;;  %v6107_v52 = vsel %vm4833_vm13, %v6078_v27, 0.0 }
 0x3f1   : > { %6662 = vadd.xlane.f32.xlu1 %v6661_v22  ;;  %5701 = vadd.xlane.f32.xlu0 %v5700_v15  ;;  %v6092_v22 = vsel %vm4833_vm13, %v6073_v34, 0.0  ;;  %v6075_v15 = vmul.f32 %v11883_v19, %v11883_v19  ;;  %v6077_v34 = vmul.f32 %v11893_v7, %v11893_v7 }
 0x3f3   : > { %v6098_v23 = vsel %vm4833_vm13, %v6075_v15, 0.0 }
 0x3f5   : > { %5704 = vadd.xlane.f32.xlu0 %v5703_v57  ;;  %6087 = vadd.xlane.f32.xlu1 %v6086_v26  ;;  %v12097_v57 = vmul.f32 %v8746_v58, %v11694_v35  ;;  %v6076_v26 = vmul.f32 %v11889_v10, %v11889_v10 }
 0x3f7   : > { %v6574_v50 = vmul.f32 %v12097_v57, %v12097_v57 }
 0x3f9   : > { %6084 = vadd.xlane.f32.xlu0 %v6083_v2  ;;  %6090 = vadd.xlane.f32.xlu1 %v6089_v48  ;;  %v6609_v35 = vsel %vm4833_vm13, %v6574_v50, 0.0  ;;  %v6101_v2 = vsel %vm4833_vm13, %v6076_v26, 0.0  ;;  %v7181_v48 = vmul.f32 %v11457_v33, %v11457_v33  ;;  %v6080_v33 = vmul.f32 %v11909_v14, %v11909_v14 }
 0x3fb   : > { %v7198_v43 = vsel %vm4925_vm1, %v7181_v48, 0.0  ;;  %v6113_v15 = vsel %vm4833_vm13, %v6080_v33, 0.0 }
 0x3fd   : > { %7271 = vadd.xlane.f32.xlu0 %v7270_v42  ;;  %6093 = vadd.xlane.f32.xlu1 %v6092_v22  ;;  %v6104_v42 = vsel %vm4833_vm13, %v6077_v34, 0.0  ;;  %v6079_v22 = vmul.f32 %v11905_v61, %v11905_v61 }
 0x3ff   : > { %v6110_v58 = vsel %vm4833_vm13, %v6079_v22, 0.0 }
 0x401   : > { %6659 = vadd.xlane.f32.xlu0 %v6658_v12  ;;  %6096 = vadd.xlane.f32.xlu1 %v6095_v54  ;;  %v6082_v12 = vmul.f32 %v11921_v11, %v11921_v11  ;;  %v6116_v54 = vsel %vm4833_vm13, %v6081_v25, 0.0 }
 0x403   : > { %v6119_v26 = vsel %vm4833_vm13, %v6082_v12, 0.0 }
 0x405   : > { %7232 = vadd.xlane.f32.xlu0 %v7231_v38  ;;  %6099 = vadd.xlane.f32.xlu1 %v6098_v23  ;;  %v12130_v23 = vpop.xlane.xlu1 %5288 }
 0x409   : > { %6610 = vadd.xlane.f32.xlu0 %v6609_v35  ;;  %6102 = vadd.xlane.f32.xlu1 %v6101_v2 }
 0x40d   : > { %7199 = vadd.xlane.f32.xlu0 %v7198_v43  ;;  %6105 = vadd.xlane.f32.xlu1 %v6104_v42 }
 0x411   : > { %6108 = vadd.xlane.f32.xlu1 %v6107_v52 }
 0x415   : > { %6111 = vadd.xlane.f32.xlu1 %v6110_v58 }
 0x419   : > { %6114 = vadd.xlane.f32.xlu1 %v6113_v15 }
 0x41d   : > { %6117 = vadd.xlane.f32.xlu1 %v6116_v54 }
 0x421   : > { %6120 = vadd.xlane.f32.xlu1 %v6119_v26  ;;  %v12151_v26 = vadd.f32 %v11948_v55, %v11668_v63 }
 0x430   : > { %v12128_v38 = vpop.xlane.xlu0 %6577 }
 0x431   : > { %13653 = vst [vmem:[#allocation80_spill] sm:$0xff] %v12128_v38 }
 0x446   : > { %v12134_v34 = vpop.xlane.xlu1 %6580 }
 0x447   : > { %13655 = vst [vmem:[#allocation127_spill] sm:$0xff] %v12134_v34 }
 0x44a   : > { %v12132_v50 = vpop.xlane.xlu0 %6583 }
 0x44b   : > { %13654 = vst [vmem:[#allocation78_spill] sm:$0xff] %v12132_v50 }
 0x44e   : > { %v12136_v35 = vpop.xlane.xlu0 %6586 }
 0x44f   : > { %13656 = vst [vmem:[#allocation128_spill] sm:$0xff] %v12136_v35 }
 0x452   : > { %v12138_v2 = vpop.xlane.xlu1 %6589  ;;  %v5669_v48 = vpop.xlane.xlu0 %5668 }
 0x453   : > { %13657 = vst [vmem:[#allocation129_spill] sm:$0xff] %v12138_v2  ;;  %v5706_v27 = vmax.f32 %v5669_v48, 1e-24 }
 0x455   : > { %8747 = vrsqrt.f32 %v5706_v27 }
 0x456   : > { %v12140_v43 = vpop.xlane.xlu1 %6592  ;;  %v5675_v42 = vpop.xlane.xlu0 %5674 }
 0x457   : > { %13658 = vst [vmem:[#allocation130_spill] sm:$0xff] %v12140_v43  ;;  %v5708_v50 = vmax.f32 %v5675_v42, 1e-24 }
 0x45a   : > { %v12142_v22 = vpop.xlane.xlu1 %6595  ;;  %v5678_v52 = vpop.xlane.xlu0 %5677 }
 0x45b   : > { %13659 = vst [vmem:[#allocation131_spill] sm:$0xff] %v12142_v22  ;;  %v5709_v43 = vmax.f32 %v5678_v52, 1e-24 }
 0x45d   : > { %8749 = vrsqrt.f32 %v5709_v43 }
 0x45e   : > { %v12144_v33 = vpop.xlane.xlu1 %6598  ;;  %v5681_v58 = vpop.xlane.xlu0 %5680  ;;  %8751 = vrsqrt.f32 %v5708_v50 }
 0x45f   : > { %13660 = vst [vmem:[#allocation132_spill] sm:$0xff] %v12144_v33 }
 0x462   : > { %v8748_v25 = vpop.eup %8747  ;;  %v12146_v15 = vpop.xlane.xlu1 %6601 }
 0x463   : > { %13661 = vst [vmem:[#allocation133_spill] sm:$0xff] %v12146_v15  ;;  %v5684_v12 = vpop.xlane.xlu0 %5683  ;;  %v5732_v54 = vmul.f32 %v8748_v25, %v11793_v49  ;;  %v5710_v49 = vmax.f32 %v5681_v58, 1e-24 }
 0x465   : > { %v6680_v48 = vmul.f32 %v5732_v54, %v5732_v54  ;;  %v6174_v27 = vsub.f32 %v12151_v26, %v5732_v54  ;;  %v5711_v54 = vmax.f32 %v5684_v12, 1e-24 }
 0x466   : > { %v12154_v2 = vpop.xlane.xlu1 %6604 }
 0x467   : > { %13662 = vst [vmem:[#allocation134_spill] sm:$0xff] %v12154_v2  ;;  %v5687_v22 = vpop.xlane.xlu0 %5686  ;;  %v6693_v33 = vsel %vm4833_vm13, %v6680_v48, 0.0  ;;  %v6187_v35 = vmul.f32 %v6174_v27, %v6174_v27 }
 0x468   : > { %6694 = vadd.xlane.f32.xlu0 %v6693_v33  ;;  %v5712_v42 = vmax.f32 %v5687_v22, 1e-24 }
 0x469   : > { %v6200_v15 = vsel %vm4833_vm13, %v6187_v35, 0.0 }
 0x46a   : > { %v5672_v25 = vpop.xlane.xlu1 %5671  ;;  %6201 = vadd.xlane.f32.xlu1 %v6200_v15  ;;  %v8750_v58 = vpop.eup %8749 }
 0x46b   : > { %v5690_v34 = vpop.xlane.xlu0 %5689  ;;  %v5707_v63 = vmax.f32 %v5672_v25, 1e-24  ;;  %v8752_v15 = vpop.eup %8751  ;;  %v5735_v12 = vmul.f32 %v8750_v58, %v11808_v4  ;;  %v12183_v4 = vadd.f32 %v11962_v39, %v11760_v41  ;;  %v12191_v41 = vadd.f32 %v11968_v0, %v11769_v47 }
 0x46c   : > { %v5713_v33 = vmax.f32 %v5690_v34, 1e-24  ;;  %v12174_v34 = vadd.f32 %v11956_v8, %v11751_v1  ;;  %v12200_v47 = vadd.f32 %v11976_v56, %v11680_v9  ;;  %v13666_v56 = vld [vmem:[#allocation70_spill] sm:$0xff] }
 0x46d   : > { %8753 = vrsqrt.f32 %v5707_v63 }
 0x46e   : > { %8755 = vrsqrt.f32 %v5710_v49  ;;  %v12158_v55 = vpop.xlane.xlu1 %6607 }
 0x46f   : > { %13663 = vst [vmem:[#allocation135_spill] sm:$0xff] %v12158_v55  ;;  %v5693_v52 = vpop.xlane.xlu0 %5692  ;;  %8757 = vrsqrt.f32 %v5711_v54 }
 0x470   : > { %8759 = vrsqrt.f32 %v5712_v42  ;;  %v5714_v63 = vmax.f32 %v5693_v52, 1e-24 }
 0x471   : > { %8761 = vrsqrt.f32 %v5713_v33 }
 0x472   : > { %v12160_v2 = vpop.xlane.xlu1 %7196  ;;  %8763 = vrsqrt.f32 %v5714_v63 }
 0x473   : > { %13664 = vst [vmem:[#allocation136_spill] sm:$0xff] %v12160_v2  ;;  %v5696_v48 = vpop.xlane.xlu0 %5695  ;;  %v5734_v2 = vmul.f32 %v8752_v15, %v11803_v16 }
 0x475   : > { %v6682_v16 = vmul.f32 %v5734_v2, %v5734_v2  ;;  %v6176_v15 = vsub.f32 %v12183_v4, %v5734_v2 }
 0x476   : > { %v12162_v35 = vpop.xlane.xlu1 %7274 }
 0x477   : > { %13665 = vst [vmem:[#allocation137_spill] sm:$0xff] %v12162_v35  ;;  %v12164_v43 = vpop.xlane.xlu0 %5698  ;;  %v6683_v35 = vmul.f32 %v5735_v12, %v5735_v12  ;;  %v6189_v2 = vmul.f32 %v6176_v15, %v6176_v15 }
 0x47a   : > { %v8754_v50 = vpop.eup %8753  ;;  %v12166_v27 = vpop.xlane.xlu1 %6662 }
 0x47b   : > { %v12168_v49 = vpop.xlane.xlu0 %5701  ;;  %v8756_v25 = vpop.eup %8755  ;;  %v5733_v22 = vmul.f32 %v8754_v50, %v11798_v3  ;;  %v5715_v3 = vmax.f32 %v5696_v48, 1e-24 }
 0x47c   : > { %v5736_v55 = vmul.f32 %v8756_v25, %v11813_v51  ;;  %v8758_v52 = vpop.eup %8757  ;;  %v6702_v25 = vsel %vm4833_vm13, %v6683_v35, 0.0 }
 0x47d   : > { %v6681_v54 = vmul.f32 %v5733_v22, %v5733_v22  ;;  %v6175_v42 = vsub.f32 %v12174_v34, %v5733_v22  ;;  %8765 = vrsqrt.f32 %v5715_v3  ;;  %v5737_v63 = vmul.f32 %v8758_v52, %v11818_v62 }
 0x47e   : > { %v6088_v38 = vpop.xlane.xlu1 %6087  ;;  %v6684_v48 = vmul.f32 %v5736_v55, %v5736_v55 }
 0x47f   : > { %v12178_v33 = vpop.xlane.xlu0 %5704  ;;  %v6696_v8 = vsel %vm4833_vm13, %v6681_v54, 0.0  ;;  %v6188_v1 = vmul.f32 %v6175_v42, %v6175_v42  ;;  %v6123_v50 = vmax.f32 %v6088_v38, 1e-24  ;;  %v8760_v54 = vpop.eup %8759  ;;  %v6699_v42 = vsel %vm4833_vm13, %v6682_v16, 0.0 }
 0x480   : > { %6697 = vadd.xlane.f32.xlu1 %v6696_v8  ;;  %v6177_v38 = vsub.f32 %v12191_v41, %v5735_v12  ;;  %v8762_v0 = vpop.eup %8761  ;;  %v6705_v62 = vsel %vm4833_vm13, %v6684_v48, 0.0  ;;  %v6685_v3 = vmul.f32 %v5737_v63, %v5737_v63  ;;  %v5738_v52 = vmul.f32 %v8760_v54, %v11823_v20 }
 0x481   : > { %v6203_v58 = vsel %vm4833_vm13, %v6188_v1, 0.0  ;;  %8767 = vrsqrt.f32 %v6123_v50  ;;  %v6206_v12 = vsel %vm4833_vm13, %v6189_v2, 0.0  ;;  %v6178_v16 = vsub.f32 %v12200_v47, %v5736_v55 }
 0x482   : > { %6204 = vadd.xlane.f32.xlu0 %v6203_v58  ;;  %v6091_v51 = vpop.xlane.xlu1 %6090  ;;  %v6190_v58 = vmul.f32 %v6177_v38, %v6177_v38  ;;  %v5739_v9 = vmul.f32 %v8762_v0, %v11830_v29  ;;  %v6708_v20 = vsel %vm4833_vm13, %v6685_v3, 0.0  ;;  %v5716_v55 = vmax.f32 %v12164_v43, 1e-24 }
 0x483   : > { %v6085_v22 = vpop.xlane.xlu0 %6084  ;;  %v6124_v8 = vmax.f32 %v6091_v51, 1e-24  ;;  %v5302_v43 = vmax.f32 %v12130_v23, 1e-24 }
 0x484   : > { %v6122_v39 = vmax.f32 %v6085_v22, 1e-24  ;;  %6703 = vadd.xlane.f32.xlu1 %v6702_v25  ;;  %v12211_v22 = vadd.f32 %v11985_v32, %v13666_v56  ;;  %v6686_v25 = vmul.f32 %v5738_v52, %v5738_v52  ;;  %v6209_v54 = vsel %vm4833_vm13, %v6190_v58, 0.0  ;;  %v13667_v32 = vld [vmem:[#allocation71_spill] sm:$0xff] }
 0x485   : > { %v6687_v38 = vmul.f32 %v5739_v9, %v5739_v9 }
 0x486   : > { %6700 = vadd.xlane.f32.xlu0 %v6699_v42  ;;  %v6094_v1 = vpop.xlane.xlu1 %6093  ;;  %8769 = vrsqrt.f32 %v6122_v39  ;;  %v8764_v39 = vpop.eup %8763  ;;  %v6179_v48 = vsub.f32 %v12211_v22, %v5737_v63  ;;  %v6191_v42 = vmul.f32 %v6178_v16, %v6178_v16  ;;  %v6711_v0 = vsel %vm4833_vm13, %v6686_v25, 0.0 }
 0x487   : > { %v12196_v35 = vpop.xlane.xlu0 %7271  ;;  %8771 = vrsqrt.f32 %v6124_v8  ;;  %v6125_v51 = vmax.f32 %v6094_v1, 1e-24  ;;  %v12221_v8 = vadd.f32 %v11994_v24, %v13667_v32  ;;  %v5740_v63 = vmul.f32 %v8764_v39, %v11837_v28 }
 0x488   : > { %6706 = vadd.xlane.f32.xlu1 %v6705_v62  ;;  %v6192_v3 = vmul.f32 %v6179_v48, %v6179_v48  ;;  %v6212_v58 = vsel %vm4833_vm13, %v6191_v42, 0.0  ;;  %v5718_v42 = vmax.f32 %v12178_v33, 1e-24 }
 0x489   : > { %8773 = vrsqrt.f32 %v6125_v51  ;;  %v6180_v16 = vsub.f32 %v12221_v8, %v5738_v52  ;;  %v6714_v51 = vsel %vm4833_vm13, %v6687_v38, 0.0  ;;  %v13670_v52 = vld [vmem:[#allocation98_spill] sm:$0xff] }
 0x48a   : > { %6207 = vadd.xlane.f32.xlu0 %v6206_v12  ;;  %v6097_v50 = vpop.xlane.xlu1 %6096  ;;  %v8766_v62 = vpop.eup %8765  ;;  %8775 = vrsqrt.f32 %v5716_v55  ;;  %v5717_v12 = vmax.f32 %v12168_v49, 1e-24  ;;  %v6688_v49 = vmul.f32 %v5740_v63, %v5740_v63  ;;  %v4885_v55 = vmax.f32 %v13670_v52, 1e-24 }
 0x48b   : > { %v12206_v15 = vpop.xlane.xlu0 %6659  ;;  %v6126_v1 = vmax.f32 %v6097_v50, 1e-24  ;;  %v5741_v39 = vmul.f32 %v8766_v62, %v11842_v36 }
 0x48c   : > { %6709 = vadd.xlane.f32.xlu1 %v6708_v20  ;;  %v13668_v20 = vld [vmem:[#allocation74_spill] sm:$0xff] }
 0x48d   : > { %v12232_v28 = vadd.f32 %v12003_v44, %v13668_v20  ;;  %8777 = vrsqrt.f32 %v6126_v1  ;;  %v6193_v44 = vmul.f32 %v6180_v16, %v6180_v16  ;;  %v6717_v1 = vsel %vm4833_vm13, %v6688_v49, 0.0 }
 0x48e   : > { %6210 = vadd.xlane.f32.xlu0 %v6209_v54  ;;  %v6100_v29 = vpop.xlane.xlu1 %6099  ;;  %v8768_v23 = vpop.eup %8767  ;;  %8779 = vrsqrt.f32 %v5302_v43  ;;  %v6215_v54 = vsel %vm4833_vm13, %v6192_v3, 0.0  ;;  %v13671_v43 = vld [vmem:[#allocation75_spill] sm:$0xff] }
 0x48f   : > { %v12217_v2 = vpop.xlane.xlu0 %7232  ;;  %v6127_v24 = vmax.f32 %v6100_v29, 1e-24  ;;  %8781 = vrsqrt.f32 %v5717_v12  ;;  %v6181_v29 = vsub.f32 %v12232_v28, %v5739_v9  ;;  %v12243_v32 = vmul.f32 %v8768_v23, %v11867_v31 }
 0x490   : > { %6712 = vadd.xlane.f32.xlu1 %v6711_v0  ;;  %v6689_v0 = vmul.f32 %v5741_v39, %v5741_v39  ;;  %v12251_v33 = vadd.f32 %v12013_v5, %v13671_v43  ;;  %v6218_v9 = vsel %vm4833_vm13, %v6193_v44, 0.0 }
 0x491   : > { %8783 = vrsqrt.f32 %v6127_v24  ;;  %v6194_v3 = vmul.f32 %v6181_v29, %v6181_v29 }
 0x492   : > { %6213 = vadd.xlane.f32.xlu0 %v6212_v58  ;;  %v6103_v50 = vpop.xlane.xlu1 %6102  ;;  %8785 = vrsqrt.f32 %v4885_v55  ;;  %v6182_v31 = vsub.f32 %v12251_v33, %v5740_v63  ;;  %v6240_v58 = vsub.f32 %v12174_v34, %v12243_v32  ;;  %v6720_v5 = vsel %vm4833_vm13, %v6689_v0, 0.0 }
 0x493   : > { %v6611_v56 = vpop.xlane.xlu0 %6610  ;;  %v8770_v48 = vpop.eup %8769  ;;  %v6128_v38 = vmax.f32 %v6103_v50, 1e-24  ;;  %8787 = vrsqrt.f32 %v5718_v42 }
 0x494   : > { %v12235_v25 = vadd.f32 %v12166_v27, %v6611_v56  ;;  %6715 = vadd.xlane.f32.xlu1 %v6714_v51  ;;  %v8772_v36 = vpop.eup %8771  ;;  %v12247_v62 = vmul.f32 %v8770_v48, %v11863_v40  ;;  %v13672_v56 = vld [vmem:[#allocation84_spill] sm:$0xff]  ;;  %v6221_v51 = vsel %vm4833_vm13, %v6194_v3, 0.0  ;;  %v6195_v20 = vmul.f32 %v6182_v31, %v6182_v31 }
 0x495   : > { %8789 = vrsqrt.f32 %v6128_v38  ;;  %v12258_v40 = vmul.f32 %v8772_v36, %v11869_v46  ;;  %v12265_v50 = vadd.f32 %v12022_v30, %v13672_v56  ;;  %v6253_v49 = vmul.f32 %v6240_v58, %v6240_v58 }
 0x496   : > { %13669 = vst [vmem:[#allocation70_spill] sm:$0xff] %v12235_v25  ;;  %6216 = vadd.xlane.f32.xlu0 %v6215_v54  ;;  %v6106_v27 = vpop.xlane.xlu1 %6105  ;;  %v6745_v24 = vmul.f32 %v12247_v62, %v12247_v62  ;;  %v8774_v63 = vpop.eup %8773  ;;  %v6224_v44 = vsel %vm4833_vm13, %v6195_v20, 0.0 }
 0x497   : > { %v6129_v16 = vmax.f32 %v6106_v27, 1e-24  ;;  %v6183_v34 = vsub.f32 %v12265_v50, %v5741_v39  ;;  %v8776_v23 = vpop.eup %8775  ;;  %v6241_v48 = vsub.f32 %v12183_v4, %v12258_v40  ;;  %v12273_v30 = vmul.f32 %v8774_v63, %v11873_v45  ;;  %v13674_v63 = vld [vmem:[#allocation81_spill] sm:$0xff] }
 0x498   : > { %6718 = vadd.xlane.f32.xlu1 %v6717_v1  ;;  %v6758_v55 = vsel %vm4833_vm13, %v6745_v24, 0.0  ;;  %v5742_v29 = vmul.f32 %v8776_v23, %v11849_v18  ;;  %v6268_v27 = vsel %vm4833_vm13, %v6253_v49, 0.0  ;;  %v12280_v4 = vadd.f32 %v12033_v13, %v12082_v17 }
 0x499   : > { %8791 = vrsqrt.f32 %v6129_v16  ;;  %v6196_v39 = vmul.f32 %v6183_v34, %v6183_v34  ;;  %v6254_v45 = vmul.f32 %v6241_v48, %v6241_v48  ;;  %v6242_v1 = vsub.f32 %v12191_v41, %v12273_v30  ;;  %v13673_v41 = vld [vmem:[#allocation72_spill] sm:$0xff] }
 0x49a   : > { %6219 = vadd.xlane.f32.xlu0 %v6218_v9  ;;  %v6109_v12 = vpop.xlane.xlu1 %6108  ;;  %v8778_v54 = vpop.eup %8777  ;;  %v6690_v3 = vmul.f32 %v5742_v29, %v5742_v29  ;;  %v6184_v31 = vsub.f32 %v12280_v4, %v5742_v29 }
 0x49b   : > { %v6130_v52 = vmax.f32 %v6109_v12, 1e-24  ;;  %v8780_v42 = vpop.eup %8779  ;;  %v12285_v0 = vmul.f32 %v8778_v54, %v11879_v6  ;;  %v6227_v9 = vsel %vm4833_vm13, %v6196_v39, 0.0  ;;  %v12294_v12 = vadd.f32 %v12097_v57, %v12050_v21 }
 0x49c   : > { %6721 = vadd.xlane.f32.xlu1 %v6720_v5  ;;  %v8782_v38 = vpop.eup %8781  ;;  %v12300_v58 = vmul.f32 %v8780_v42, %v13673_v41  ;;  %v6271_v24 = vsel %vm4833_vm13, %v6254_v45, 0.0  ;;  %v6255_v56 = vmul.f32 %v6242_v1, %v6242_v1  ;;  %v6723_v21 = vsel %vm4833_vm13, %v6690_v3, 0.0 }
 0x49d   : > { %8793 = vrsqrt.f32 %v6130_v52  ;;  %v12290_v13 = vmul.f32 %v8782_v38, %v11856_v60  ;;  %v6243_v60 = vsub.f32 %v12200_v47, %v12285_v0  ;;  %v6197_v57 = vmul.f32 %v6184_v31, %v6184_v31 }
 0x49e   : > { %6222 = vadd.xlane.f32.xlu0 %v6221_v51  ;;  %v6112_v46 = vpop.xlane.xlu1 %6111  ;;  %v8784_v36 = vpop.eup %8783  ;;  %v6274_v48 = vsel %vm4833_vm13, %v6255_v56, 0.0  ;;  %v6239_v1 = vsub.f32 %v12151_v26, %v12247_v62 }
 0x49f   : > { %v8786_v18 = vpop.eup %8785  ;;  %v12297_v6 = vmul.f32 %v8784_v36, %v11883_v19  ;;  %v6131_v5 = vmax.f32 %v6112_v46, 1e-24  ;;  %v6185_v19 = vsub.f32 %v12294_v12, %v12290_v13  ;;  %v6256_v52 = vmul.f32 %v6243_v60, %v6243_v60 }
 0x4a0   : > { %6759 = vadd.xlane.f32.xlu1 %v6758_v55  ;;  %v8788_v17 = vpop.eup %8787  ;;  %v12306_v51 = vmul.f32 %v8786_v18, %v13674_v63  ;;  %v6252_v31 = vmul.f32 %v6239_v1, %v6239_v1  ;;  %v6575_v1 = vmul.f32 %v12300_v58, %v12300_v58 }
 0x4a1   : > { %v12312_v20 = vmul.f32 %v8788_v17, %v11859_v37  ;;  %v6244_v23 = vsub.f32 %v12211_v22, %v12297_v6  ;;  %8795 = vrsqrt.f32 %v6131_v5  ;;  %v6230_v37 = vsel %vm4833_vm13, %v6197_v57, 0.0 }
 0x4a2   : > { %6225 = vadd.xlane.f32.xlu0 %v6224_v44  ;;  %v6115_v43 = vpop.xlane.xlu1 %6114  ;;  %v8790_v16 = vpop.eup %8789  ;;  %v12318_v47 = vadd.f32 %v12300_v58, %v12306_v51  ;;  %v6198_v54 = vmul.f32 %v6185_v19, %v6185_v19  ;;  %v6277_v39 = vsel %vm4833_vm13, %v6256_v52, 0.0 }
 0x4a3   : > { %v12321_v46 = vmul.f32 %v8790_v16, %v11889_v10  ;;  %v6132_v49 = vmax.f32 %v6115_v43, 1e-24  ;;  %v6257_v42 = vmul.f32 %v6244_v23, %v6244_v23  ;;  %v6265_v16 = vsel %vm4833_vm13, %v6252_v31, 0.0  ;;  %v13677_v31 = vld [vmem:[#allocation88_spill] sm:$0xff] }
 0x4a4   : > { %6269 = vadd.xlane.f32.xlu1 %v6268_v27  ;;  %v6186_v22 = vsub.f32 %v12318_v47, %v12312_v20  ;;  %v6233_v36 = vsel %vm4833_vm13, %v6198_v54, 0.0 }
 0x4a5   : > { %v6245_v44 = vsub.f32 %v12221_v8, %v12321_v46  ;;  %8797 = vrsqrt.f32 %v6132_v49  ;;  %v6280_v43 = vsel %vm4833_vm13, %v6257_v42, 0.0 }
 0x4a6   : > { %6228 = vadd.xlane.f32.xlu0 %v6227_v9  ;;  %v6118_v34 = vpop.xlane.xlu1 %6117  ;;  %v8792_v55 = vpop.eup %8791  ;;  %v6199_v45 = vmul.f32 %v6186_v22, %v6186_v22 }
 0x4a7   : > { %v6133_v10 = vmax.f32 %v6118_v34, 1e-24  ;;  %v12331_v29 = vmul.f32 %v8792_v55, %v11893_v7  ;;  %v6258_v8 = vmul.f32 %v6245_v44, %v6245_v44 }
 0x4a8   : > { %6272 = vadd.xlane.f32.xlu1 %v6271_v24  ;;  %v6236_v3 = vsel %vm4833_vm13, %v6199_v45, 0.0 }
 0x4a9   : > { %8799 = vrsqrt.f32 %v6133_v10  ;;  %v6246_v9 = vsub.f32 %v12232_v28, %v12331_v29  ;;  %v6283_v26 = vsel %vm4833_vm13, %v6258_v8, 0.0 }
 0x4aa   : > { %6724 = vadd.xlane.f32.xlu0 %v6723_v21  ;;  %v8794_v38 = vpop.eup %8793  ;;  %v6121_v27 = vpop.xlane.xlu1 %6120 }
 0x4ab   : > { %v6134_v18 = vmax.f32 %v6121_v27, 1e-24  ;;  %v12340_v7 = vmul.f32 %v8794_v38, %v11899_v53  ;;  %v6259_v62 = vmul.f32 %v6246_v9, %v6246_v9  ;;  %v6746_v53 = vmul.f32 %v12243_v32, %v12243_v32 }
 0x4ac   : > { %6275 = vadd.xlane.f32.xlu1 %v6274_v48  ;;  %v6691_v9 = vmul.f32 %v12290_v13, %v12290_v13  ;;  %v13678_v13 = vld [vmem:[#allocation86_spill] sm:$0xff] }
 0x4ad   : > { %8801 = vrsqrt.f32 %v6134_v18  ;;  %v6247_v17 = vsub.f32 %v12251_v33, %v12340_v7  ;;  %v6286_v28 = vsel %vm4833_vm13, %v6259_v62, 0.0  ;;  %v6761_v60 = vsel %vm4833_vm13, %v6746_v53, 0.0 }
 0x4ae   : > { %6231 = vadd.xlane.f32.xlu0 %v6230_v37  ;;  %v8796_v41 = vpop.eup %8795  ;;  %v6747_v33 = vmul.f32 %v12258_v40, %v12258_v40  ;;  %v6612_v18 = vsel %vm4833_vm13, %v6575_v1, 0.0  ;;  %v6726_v58 = vsel %vm4833_vm13, %v6691_v9, 0.0 }
 0x4af   : > { %v6260_v5 = vmul.f32 %v6247_v17, %v6247_v17  ;;  %v6157_v24 = vmul.f32 %v8796_v41, %v11905_v61  ;;  %v6748_v61 = vmul.f32 %v12273_v30, %v12273_v30 }
 0x4b0   : > { %6278 = vadd.xlane.f32.xlu1 %v6277_v39  ;;  %v6764_v34 = vsel %vm4833_vm13, %v6747_v33, 0.0  ;;  %v6752_v39 = vmul.f32 %v12331_v29, %v12331_v29 }
 0x4b1   : > { %v6289_v63 = vsel %vm4833_vm13, %v6260_v5, 0.0  ;;  %v6754_v21 = vmul.f32 %v6157_v24, %v6157_v24  ;;  %v6248_v57 = vsub.f32 %v12265_v50, %v6157_v24  ;;  %v6767_v50 = vsel %vm4833_vm13, %v6748_v61, 0.0  ;;  %v13685_v61 = vld [vmem:[#allocation68_spill] sm:$0xff] }
 0x4b2   : > { %6234 = vadd.xlane.f32.xlu0 %v6233_v36  ;;  %v8798_v56 = vpop.eup %8797  ;;  %v6779_v36 = vsel %vm4833_vm13, %v6752_v39, 0.0  ;;  %v13692_v39 = vld [vmem:[#allocation87_spill] sm:$0xff] }
 0x4b3   : > { %v6158_v32 = vmul.f32 %v8798_v56, %v11909_v14  ;;  %v6785_v23 = vsel %vm4833_vm13, %v6754_v21, 0.0  ;;  %v6261_v49 = vmul.f32 %v6248_v57, %v6248_v57  ;;  %v6749_v14 = vmul.f32 %v12285_v0, %v12285_v0  ;;  %v13680_v56 = vld [vmem:[#allocation67_spill] sm:$0xff]  ;;  %v13682_v57 = vld [vmem:[#allocation101_spill] sm:$0xff] }
 0x4b4   : > { %6281 = vadd.xlane.f32.xlu1 %v6280_v43  ;;  %v13676_v43 = vld [vmem:[#allocation85_spill] sm:$0xff]  ;;  %v6692_v21 = vmul.f32 %v12312_v20, %v12312_v20 }
 0x4b5   : > { %v6249_v40 = vsub.f32 %v12280_v4, %v6158_v32  ;;  %v6292_v55 = vsel %vm4833_vm13, %v6261_v49, 0.0  ;;  %v6770_v4 = vsel %vm4833_vm13, %v6749_v14, 0.0  ;;  %v7261_v8 = vmul.f32 %v13676_v43, %v13676_v43  ;;  %v13688_v14 = vld [vmem:[#allocation69_spill] sm:$0xff]  ;;  %v13694_v43 = vld [vmem:[#allocation110_spill] sm:$0xff] }
 0x4b6   : > { %6237 = vadd.xlane.f32.xlu0 %v6236_v3  ;;  %v8800_v19 = vpop.eup %8799  ;;  %v6627_v3 = vmul.f32 %v12306_v51, %v12306_v51  ;;  %v6755_v17 = vmul.f32 %v6158_v32, %v6158_v32  ;;  %v13679_v51 = vld [vmem:[#allocation92_spill] sm:$0xff]  ;;  %v13683_v32 = vld [vmem:[#allocation99_spill] sm:$0xff]  ;;  %v6729_v20 = vsel %vm4833_vm13, %v6692_v21, 0.0  ;;  %v13700_v21 = vld [vmem:[#allocation113_spill] sm:$0xff] }
 0x4b7   : > { %v6159_v48 = vmul.f32 %v8800_v19, %v11915_v59  ;;  %v6262_v37 = vmul.f32 %v6249_v40, %v6249_v40  ;;  %v6750_v59 = vmul.f32 %v12297_v6, %v12297_v6  ;;  %v12422_v19 = vsub.f32 %v13683_v32, %v13682_v57  ;;  %v13686_v40 = vld [vmem:[#allocation93_spill] sm:$0xff]  ;;  %v13701_v57 = vld [vmem:[#allocation79_spill] sm:$0xff] }
 0x4b8   : > { %6284 = vadd.xlane.f32.xlu1 %v6283_v26  ;;  %v7182_v26 = vmul.f32 %v13677_v31, %v13677_v31  ;;  %v6664_v62 = vsel %vm4833_vm13, %v6627_v3, 0.0  ;;  %v6788_v53 = vsel %vm4833_vm13, %v6755_v17, 0.0  ;;  %v12475_v32 = vsub.f32 %v13701_v57, %v13700_v21 }
 0x4b9   : > { %v6250_v30 = vsub.f32 %v12294_v12, %v6159_v48  ;;  %v6295_v22 = vsel %vm4833_vm13, %v6262_v37, 0.0  ;;  %v6773_v44 = vsel %vm4833_vm13, %v6750_v59, 0.0  ;;  %v6756_v24 = vmul.f32 %v6159_v48, %v6159_v48  ;;  %v13689_v37 = vld [vmem:[#allocation90_spill] sm:$0xff] }
 0x4ba   : > { %6266 = vadd.xlane.f32.xlu0 %v6265_v16  ;;  %v8802_v52 = vpop.eup %8801  ;;  %v7201_v41 = vsel %vm4925_vm1, %v7182_v26, 0.0  ;;  %v7262_v16 = vmul.f32 %v13678_v13, %v13678_v13  ;;  %v7219_v48 = vmul.f32 %v13686_v40, %v13686_v40 }
 0x4bb   : > { %v12369_v54 = vmul.f32 %v8802_v52, %v11921_v11  ;;  %v6263_v42 = vmul.f32 %v6250_v30, %v6250_v30  ;;  %v6751_v11 = vmul.f32 %v12321_v46, %v12321_v46  ;;  %v6753_v46 = vmul.f32 %v12340_v7, %v12340_v7 }
 0x4bc   : > { %6287 = vadd.xlane.f32.xlu1 %v6286_v28  ;;  %v7276_v7 = vsel %vm4925_vm1, %v7261_v8, 0.0  ;;  %v7218_v28 = vmul.f32 %v13679_v51, %v13679_v51  ;;  %v7279_v5 = vsel %vm4925_vm1, %v7262_v16, 0.0  ;;  %v6791_v49 = vsel %vm4833_vm13, %v6756_v24, 0.0  ;;  %v13695_v8 = vld [vmem:[#allocation77_spill] sm:$0xff]  ;;  %v13699_v24 = vld [vmem:[#allocation83_spill] sm:$0xff] }
 0x4bd   : > { %v6251_v0 = vsub.f32 %v12318_v47, %v12369_v54  ;;  %v6298_v12 = vsel %vm4833_vm13, %v6263_v42, 0.0  ;;  %v6776_v6 = vsel %vm4833_vm13, %v6751_v11, 0.0  ;;  %v13675_v47 = vld [vmem:[#allocation91_spill] sm:$0xff]  ;;  %v6782_v29 = vsel %vm4833_vm13, %v6753_v46, 0.0  ;;  %v13690_v11 = vld [vmem:[#allocation108_spill] sm:$0xff]  ;;  %v13693_v46 = vld [vmem:[#allocation94_spill] sm:$0xff] }
 0x4be   : > { %6762 = vadd.xlane.f32.xlu0 %v6761_v60  ;;  %v7217_v27 = vmul.f32 %v13675_v47, %v13675_v47  ;;  %v13681_v60 = vld [vmem:[#allocation76_spill] sm:$0xff]  ;;  %v7183_v30 = vmul.f32 %v13689_v37, %v13689_v37  ;;  %v6757_v42 = vmul.f32 %v12369_v54, %v12369_v54  ;;  %v7220_v54 = vmul.f32 %v13693_v46, %v13693_v46  ;;  %v13698_v51 = vld [vmem:[#allocation89_spill] sm:$0xff]  ;;  %v13704_v37 = vld [vmem:[#allocation115_spill] sm:$0xff] }
 0x4bf   : > { %v6264_v10 = vmul.f32 %v6251_v0, %v6251_v0  ;;  %v12415_v33 = vsub.f32 %v13681_v60, %v13680_v56  ;;  %v7265_v56 = vmul.f32 %v13699_v24, %v13699_v24 }
 0x4c0   : > { %6290 = vadd.xlane.f32.xlu1 %v6289_v63  ;;  %v7234_v45 = vsel %vm4925_vm1, %v7217_v27, 0.0  ;;  %v7237_v63 = vsel %vm4925_vm1, %v7218_v28, 0.0  ;;  %v7243_v26 = vsel %vm4925_vm1, %v7220_v54, 0.0  ;;  %v7264_v28 = vmul.f32 %v13698_v51, %v13698_v51 }
 0x4c1   : > { %v6301_v38 = vsel %vm4833_vm13, %v6264_v10, 0.0  ;;  %v7061_v52 = vand.u32 2147483647, %v12415_v33  ;;  %v7288_v40 = vsel %vm4925_vm1, %v7265_v56, 0.0 }
 0x4c2   : > { %6765 = vadd.xlane.f32.xlu0 %v6764_v34  ;;  %v13684_v34 = vld [vmem:[#allocation103_spill] sm:$0xff] }
 0x4c3   : > { %v7070_v0 = vsub.f32 0.0, %v7061_v52  ;;  %v7067_v52 = vand.u32 2147483647, %v12475_v32 }
 0x4c4   : > { %6786 = vadd.xlane.f32.xlu1 %v6785_v23  ;;  %v12426_v23 = vsub.f32 %v13685_v61, %v13684_v34  ;;  %v7285_v34 = vsel %vm4925_vm1, %v7264_v28, 0.0  ;;  %v13702_v61 = vld [vmem:[#allocation96_spill] sm:$0xff] }
 0x4c6   : > { %6768 = vadd.xlane.f32.xlu0 %v6767_v50  ;;  %v13687_v50 = vld [vmem:[#allocation105_spill] sm:$0xff]  ;;  %v7063_v59 = vand.u32 2147483647, %v12426_v23 }
 0x4c8   : > { %6293 = vadd.xlane.f32.xlu1 %v6292_v55  ;;  %v12434_v55 = vsub.f32 %v13688_v14, %v13687_v50  ;;  %v7072_v27 = vsub.f32 0.0, %v7063_v59  ;;  %v13703_v14 = vld [vmem:[#allocation82_spill] sm:$0xff]  ;;  %v13707_v59 = vld [vmem:[#allocation117_spill] sm:$0xff] }
 0x4ca   : > { %6771 = vadd.xlane.f32.xlu0 %v6770_v4  ;;  %v7062_v4 = vand.u32 2147483647, %v12422_v19  ;;  %v7083_v31 = vmul.f32 1.442695, %v7072_v27 }
 0x4cc   : > { %6296 = vadd.xlane.f32.xlu1 %v6295_v22  ;;  %v7240_v22 = vsel %vm4925_vm1, %v7219_v48, 0.0  ;;  %v7071_v47 = vsub.f32 0.0, %v7062_v4 }
 0x4ce   : > { %6774 = vadd.xlane.f32.xlu0 %v6773_v44  ;;  %v7064_v44 = vand.u32 2147483647, %v12434_v55 }
 0x4d0   : > { %6299 = vadd.xlane.f32.xlu1 %v6298_v12  ;;  %v13691_v12 = vld [vmem:[#allocation73_spill] sm:$0xff]  ;;  %v7073_v1 = vsub.f32 0.0, %v7064_v44 }
 0x4d1   : > { %v12447_v10 = vsub.f32 %v13691_v12, %v13690_v11  ;;  %v7076_v11 = vsub.f32 0.0, %v7067_v52 }
 0x4d2   : > { %6777 = vadd.xlane.f32.xlu0 %v6776_v6  ;;  %v7204_v6 = vsel %vm4925_vm1, %v7183_v30, 0.0  ;;  %v13705_v30 = vld [vmem:[#allocation100_spill] sm:$0xff] }
 0x4d3   : > { %v12487_v4 = vsub.f32 %v13705_v30, %v13704_v37 }
 0x4d4   : > { %6302 = vadd.xlane.f32.xlu1 %v6301_v38  ;;  %v7263_v38 = vmul.f32 %v13692_v39, %v13692_v39 }
 0x4d5   : > { %13706 = vst [vmem:[#allocation71_spill] sm:$0xff] %v12487_v4  ;;  %v7068_v39 = vand.u32 2147483647, %v12487_v4 }
 0x4d6   : > { %6780 = vadd.xlane.f32.xlu0 %v6779_v36  ;;  %v6794_v36 = vsel %vm4833_vm13, %v6757_v42, 0.0  ;;  %v7282_v9 = vsel %vm4925_vm1, %v7263_v38, 0.0 }
 0x4d8   : > { %7235 = vadd.xlane.f32.xlu1 %v7234_v45  ;;  %v7079_v45 = vmul.f32 1.442695, %v7070_v0  ;;  %v12493_v0 = vpop.xlane.xlu0 %7199 }
 0x4d9   : > { %13710 = vst [vmem:[#allocation98_spill] sm:$0xff] %v12493_v0 }
 0x4da   : > { %6783 = vadd.xlane.f32.xlu0 %v6782_v29  ;;  %v7065_v29 = vand.u32 2147483647, %v12447_v10  ;;  %8803 = vpow2.f32 %v7079_v45  ;;  %v7091_v45 = vmul.f32 1.442695, %v7076_v11 }
 0x4dc   : > { %6613 = vadd.xlane.f32.xlu1 %v6612_v18  ;;  %v12458_v18 = vsub.f32 %v13695_v8, %v13694_v43  ;;  %v7074_v13 = vsub.f32 0.0, %v7065_v29  ;;  %v7077_v43 = vsub.f32 0.0, %v7068_v39 }
 0x4de   : > { %7277 = vadd.xlane.f32.xlu0 %v7276_v7  ;;  %v13696_v7 = vld [vmem:[#allocation95_spill] sm:$0xff]  ;;  %v7066_v16 = vand.u32 2147483647, %v12458_v18  ;;  %v7087_v60 = vmul.f32 1.442695, %v7074_v13 }
 0x4df   : > { %v7184_v3 = vmul.f32 %v13696_v7, %v13696_v7 }
 0x4e0   : > { %6727 = vadd.xlane.f32.xlu1 %v6726_v58  ;;  %v7081_v58 = vmul.f32 1.442695, %v7071_v47 }
 0x4e2   : > { %6665 = vadd.xlane.f32.xlu0 %v6664_v62  ;;  %v13697_v62 = vld [vmem:[#allocation97_spill] sm:$0xff]  ;;  %8805 = vpow2.f32 %v7081_v58 }
 0x4e3   : > { %v7185_v17 = vmul.f32 %v13697_v62, %v13697_v62  ;;  %8807 = vpow2.f32 %v7083_v31 }
 0x4e4   : > { %7202 = vadd.xlane.f32.xlu1 %v7201_v41  ;;  %v7085_v41 = vmul.f32 1.442695, %v7073_v1 }
 0x4e6   : > { %6789 = vadd.xlane.f32.xlu0 %v6788_v53  ;;  %v7207_v53 = vsel %vm4925_vm1, %v7184_v3, 0.0  ;;  %8809 = vpow2.f32 %v7085_v41 }
 0x4e7   : > { %8811 = vpow2.f32 %v7087_v60  ;;  %v8804_v44 = vpop.eup %8803  ;;  %v12523_v60 = vstv %s13711_s11 }
 0x4e8   : > { %7280 = vadd.xlane.f32.xlu1 %v7279_v5  ;;  %v7210_v5 = vsel %vm4925_vm1, %v7185_v17, 0.0  ;;  %v7097_v46 = vadd.f32 1.0, %v8804_v44 }
 0x4ea   : > { %7238 = vadd.xlane.f32.xlu0 %v7237_v63  ;;  %v7075_v63 = vsub.f32 0.0, %v7066_v16 }
 0x4ec   : > { %6792 = vadd.xlane.f32.xlu1 %v6791_v49  ;;  %v7221_v49 = vmul.f32 %v13702_v61, %v13702_v61  ;;  %v7089_v48 = vmul.f32 1.442695, %v7075_v63 }
 0x4ee   : > { %6730 = vadd.xlane.f32.xlu0 %v6729_v20  ;;  %v7246_v50 = vsel %vm4925_vm1, %v7221_v49, 0.0  ;;  %v7266_v20 = vmul.f32 %v13703_v14, %v13703_v14  ;;  %8813 = vpow2.f32 %v7089_v48 }
 0x4ef   : > { %v8806_v38 = vpop.eup %8805  ;;  %8815 = vlog2.f32 %v7097_v46 }
 0x4f0   : > { %7241 = vadd.xlane.f32.xlu1 %v7240_v22  ;;  %v13708_v22 = vld [vmem:[#allocation102_spill] sm:$0xff]  ;;  %v7098_v29 = vadd.f32 1.0, %v8806_v38  ;;  %8817 = vpow2.f32 %v7091_v45 }
 0x4f1   : > { %v12491_v42 = vsub.f32 %v13708_v22, %v13707_v59  ;;  %v12500_v27 = vpop.xlane.xlu0 %6694 }
 0x4f2   : > { %7205 = vadd.xlane.f32.xlu0 %v7204_v6  ;;  %v7291_v6 = vsel %vm4925_vm1, %v7266_v20, 0.0  ;;  %8819 = vlog2.f32 %v7098_v29 }
 0x4f3   : > { %13709 = vst [vmem:[#allocation74_spill] sm:$0xff] %v12491_v42  ;;  %v12495_v12 = vpop.xlane.xlu1 %6201  ;;  %v7069_v47 = vand.u32 2147483647, %v12491_v42 }
 0x4f4   : > { %6795 = vadd.xlane.f32.xlu1 %v6794_v36  ;;  %v8808_v36 = vpop.eup %8807 }
 0x4f5   : > { %v8810_v54 = vpop.eup %8809  ;;  %v7099_v8 = vadd.f32 1.0, %v8808_v36 }
 0x4f6   : > { %7283 = vadd.xlane.f32.xlu0 %v7282_v9  ;;  %v7078_v9 = vsub.f32 0.0, %v7069_v47  ;;  %v7100_v3 = vadd.f32 1.0, %v8810_v54  ;;  %v8812_v58 = vpop.eup %8811 }
 0x4f7   : > { %8821 = vlog2.f32 %v7099_v8  ;;  %v7101_v41 = vadd.f32 1.0, %v8812_v58  ;;  %v7055_v58 = vmin.f32 %v12434_v55, 0.0 }
 0x4f8   : > { %7244 = vadd.xlane.f32.xlu1 %v7243_v26  ;;  %v7093_v26 = vmul.f32 1.442695, %v7077_v43  ;;  %v7095_v62 = vmul.f32 1.442695, %v7078_v9  ;;  %8823 = vlog2.f32 %v7100_v3  ;;  %v7054_v9 = vmin.f32 %v12426_v23, 0.0 }
 0x4fa   : > { %7208 = vadd.xlane.f32.xlu0 %v7207_v53  ;;  %8825 = vpow2.f32 %v7093_v26  ;;  %v13712_v53 = vlaneseq }
 0x4fb   : > { %v8814_v16 = vpop.eup %8813  ;;  %8827 = vpow2.f32 %v7095_v62  ;;  %v13714_v62 = vmov 0.0  }
 0x4fc   : > { %7211 = vadd.xlane.f32.xlu1 %v7210_v5  ;;  %v12513_v51 = vshrl.u32 %v13712_v53, 7  ;;  %8829 = vlog2.f32 %v7101_v41  ;;  %v7102_v5 = vadd.f32 1.0, %v8814_v16  ;;  %v8816_v21 = vpop.eup %8815 }
 0x4fd   : > { %v7107_v37 = vmul.f32 0.6931472, %v8816_v21 }
 0x4fe   : > { %7286 = vadd.xlane.f32.xlu0 %v7285_v34  ;;  %v12520_v56 = vadd.s32 8, %v12513_v51  ;;  %8831 = vlog2.f32 %v7102_v5  ;;  %v8818_v34 = vpop.eup %8817  ;;  %v7007_v61 = vadd.s32 %v12523_v60, %v12513_v51  ;;  %v12532_v49 = vadd.s32 16, %v12513_v51 }
 0x4ff   : > { %v8820_v48 = vpop.eup %8819  ;;  %v12539_v14 = vadd.s32 24, %v12513_v51  ;;  %v7103_v30 = vadd.f32 1.0, %v8818_v34  ;;  %v12549_v47 = vadd.s32 32, %v12513_v51  ;;  %v12552_v54 = vadd.s32 40, %v12513_v51 }
 0x500   : > { %7289 = vadd.xlane.f32.xlu1 %v7288_v40  ;;  %v7008_v40 = vadd.s32 %v12523_v60, %v12520_v56  ;;  %vm7016_vm1 = vcmp.lt.s32.totalorder %v7007_v61, 200  ;;  %v7009_v22 = vadd.s32 %v12523_v60, %v12532_v49  ;;  %v7109_v11 = vmul.f32 0.6931472, %v8820_v48 }
 0x501   : > { %v12555_v45 = vadd.s32 48, %v12513_v51  ;;  %v7010_v29 = vadd.s32 %v12523_v60, %v12539_v14  ;;  %8833 = vlog2.f32 %v7103_v30  ;;  %v12570_v21 = vsel %vm7016_vm1, 1.0, %v13714_v62 }
 0x502   : > { %7247 = vadd.xlane.f32.xlu0 %v7246_v50  ;;  %vm7017_vm13 = vcmp.lt.s32.totalorder %v7008_v40, 200  ;;  %vm7018_vm2 = vcmp.lt.s32.totalorder %v7009_v22, 200  ;;  %v7011_v55 = vadd.s32 %v12523_v60, %v12549_v47  ;;  %v7012_v40 = vadd.s32 %v12523_v60, %v12552_v54 }
 0x503   : > { %v12566_v41 = vsel %vm7017_vm13, 1.0, %v13714_v62  ;;  %vm7019_vm3 = vcmp.lt.s32.totalorder %v7010_v29, 200  ;;  %v7013_v61 = vadd.s32 %v12523_v60, %v12555_v45  ;;  %v12584_v30 = vadd.s32 56, %v12513_v51 }
 0x504   : > { %v8822_v50 = vpop.eup %8821  ;;  %v12587_v22 = vadd.s32 64, %v12513_v51  ;;  %v12595_v29 = vsel %vm7019_vm3, 1.0, %v13714_v62  ;;  %vm7020_vm4 = vcmp.lt.s32.totalorder %v7011_v55, 200  ;;  %vm7021_vm5 = vcmp.lt.s32.totalorder %v7012_v40, 200 }
 0x505   : > { %v8824_v20 = vpop.eup %8823  ;;  %v7111_v39 = vmul.f32 0.6931472, %v8822_v50  ;;  %13716 = vst [vmem:[#allocation72_spill] sm:$0xff] %v12595_v29  ;;  %vm7022_vm6 = vcmp.lt.s32.totalorder %v7013_v61, 200 }
 0x506   : > { %7292 = vadd.xlane.f32.xlu0 %v7291_v6  ;;  %v7052_v6 = vmin.f32 %v12415_v33, 0.0  ;;  %v7113_v46 = vmul.f32 0.6931472, %v8824_v20  ;;  %v7053_v33 = vmin.f32 %v12422_v19, 0.0 }
 0x507   : > { %v8826_v44 = vpop.eup %8825  ;;  %v7126_v53 = vsub.f32 %v7054_v9, %v7111_v39 }
 0x508   : > { %v8828_v36 = vpop.eup %8827  ;;  %v7124_v8 = vsub.f32 %v7052_v6, %v7107_v37  ;;  %v7104_v26 = vadd.f32 1.0, %v8826_v44  ;;  %v7125_v16 = vsub.f32 %v7053_v33, %v7109_v11  ;;  %v7127_v23 = vsub.f32 %v7055_v58, %v7113_v46  ;;  %v13718_v33 = vld [vmem:[#allocation124_spill] sm:$0xff] }
 0x509   : > { %v12502_v1 = vpop.xlane.xlu1 %6697  ;;  %v8830_v43 = vpop.eup %8829  ;;  %v7105_v5 = vadd.f32 1.0, %v8828_v36  ;;  %v7056_v37 = vmin.f32 %v12447_v10, 0.0  ;;  %v7135_v11 = vsub.f32 0.0, %v7126_v53  ;;  %v12590_v6 = vsel %vm7018_vm2, 1.0, %v13714_v62 }
 0x50a   : > { %v7115_v34 = vmul.f32 0.6931472, %v8830_v43  ;;  %v7133_v48 = vsub.f32 0.0, %v7124_v8  ;;  %8835 = vlog2.f32 %v7104_v26  ;;  %v7134_v44 = vsub.f32 0.0, %v7125_v16  ;;  %v13717_v43 = vld [vmem:[#allocation123_spill] sm:$0xff] }
 0x50b   : > { %v12504_v7 = vpop.xlane.xlu0 %6204  ;;  %v8832_v20 = vpop.eup %8831  ;;  %8837 = vlog2.f32 %v7105_v5  ;;  %v7136_v36 = vsub.f32 0.0, %v7127_v23  ;;  %v7249_v8 = vadd.f32 %v13718_v33, %v13717_v43  ;;  %v7057_v26 = vmin.f32 %v12458_v18, 0.0  ;;  %v13719_v5 = vld [vmem:[#allocation114_spill] sm:$0xff]  ;;  %v13720_v23 = vld [vmem:[#allocation116_spill] sm:$0xff] }
 0x50c   : > { %v7128_v46 = vsub.f32 %v7056_v37, %v7115_v34  ;;  %v7117_v10 = vmul.f32 0.6931472, %v8832_v20  ;;  %v7142_v9 = vmul.f32 %v12570_v21, %v7133_v48  ;;  %v7014_v16 = vadd.s32 %v12523_v60, %v12584_v30  ;;  %v13721_v20 = vld [vmem:[#allocation126_spill] sm:$0xff] }
 0x50d   : > { %v12506_v31 = vpop.xlane.xlu1 %6703  ;;  %v7015_v53 = vadd.s32 %v12523_v60, %v12587_v22  ;;  %v7250_v34 = vadd.f32 %v13720_v23, %v13719_v5  ;;  %v7294_v37 = vadd.f32 %v13721_v20, %v7249_v8  ;;  %v7144_v43 = vmul.f32 %v12590_v6, %v7135_v11  ;;  %v13725_v23 = vld [vmem:[#allocation125_spill] sm:$0xff] }
 0x50e   : > { %v7143_v48 = vmul.f32 %v12566_v41, %v7134_v44  ;;  %v7137_v42 = vsub.f32 0.0, %v7128_v46  ;;  %v7145_v18 = vmul.f32 %v12595_v29, %v7136_v36  ;;  %v7129_v0 = vsub.f32 %v7057_v26, %v7117_v10  ;;  %v8834_v8 = vpop.eup %8833 }
 0x50f   : > { %v12508_v17 = vpop.xlane.xlu0 %6700  ;;  %v7151_v25 = vsel %vm6528_vm7, %v7142_v9, 0.0  ;;  %v7295_v60 = vadd.f32 %v12196_v35, %v7250_v34  ;;  %v12619_v5 = vsel %vm7020_vm4, 1.0, %v13714_v62  ;;  %v12626_v44 = vsel %vm7021_vm5, 1.0, %v13714_v62  ;;  %v13726_v34 = vld [vmem:[#allocation120_spill] sm:$0xff] }
 0x510   : > { %13722 = vst [vmem:[#allocation81_spill] sm:$0xff] %v12619_v5  ;;  %13723 = vst [vmem:[#allocation91_spill] sm:$0xff] %v12626_v44  ;;  %v12630_v36 = vsel %vm7022_vm6, 1.0, %v13714_v62  ;;  %vm7023_vm8 = vcmp.lt.s32.totalorder %v7014_v16, 200  ;;  %v7303_v46 = vmul.f32 0.5, %v7294_v37  ;;  %v7154_v35 = vsel %vm6528_vm7, %v7144_v43, 0.0 }
 0x511   : > { %v12510_v13 = vpop.xlane.xlu1 %6706  ;;  %13724 = vst [vmem:[#allocation85_spill] sm:$0xff] %v12630_v36  ;;  %v7152_v55 = vsel %vm6528_vm7, %v7143_v48, 0.0  ;;  %vm7024_vm9 = vcmp.lt.s32.totalorder %v7015_v53, 200  ;;  %v7146_v40 = vmul.f32 %v12619_v5, %v7137_v42  ;;  %v7138_v26 = vsub.f32 0.0, %v7129_v0  ;;  %v13727_v43 = vld [vmem:[#allocation135_spill] sm:$0xff]  ;;  %v13728_v0 = vld [vmem:[#allocation137_spill] sm:$0xff] }
 0x512   : > { %v7153_v9 = vadd.f32 %v7152_v55, %v7151_v25  ;;  %v7119_v61 = vmul.f32 0.6931472, %v8834_v8  ;;  %v7251_v20 = vadd.f32 %v13726_v34, %v13725_v23  ;;  %v7304_v37 = vmul.f32 0.5, %v7295_v60 }
 0x513   : > { %v12515_v28 = vpop.xlane.xlu0 %6207  ;;  %v6677_v48 = vadd.f32 %v12206_v15, %v13727_v43  ;;  %v7312_v42 = vmul.f32 %v12570_v21, %v7303_v46  ;;  %v12651_v60 = vsel %vm7023_vm8, 1.0, %v13714_v62  ;;  %v12666_v16 = vsel %vm6528_vm7, %v7146_v40, 0.0 }
 0x514   : > { %v7155_v25 = vadd.f32 %v7154_v35, %v7153_v9  ;;  %v7296_v8 = vadd.f32 %v13728_v0, %v7251_v20  ;;  %13729 = vst [vmem:[#allocation88_spill] sm:$0xff] %v12651_v60  ;;  %v7313_v21 = vmul.f32 %v12566_v41, %v7304_v37  ;;  %13732 = vst [vmem:[#allocation67_spill] sm:$0xff] %v12666_v16  ;;  %v13737_v37 = vld [vmem:[#allocation80_spill] sm:$0xff]  ;;  %v13741_v0 = vld [vmem:[#allocation78_spill] sm:$0xff] }
 0x515   : > { %v12517_v24 = vpop.xlane.xlu1 %6709  ;;  %v12669_v35 = vmul.f32 %v12626_v44, %v7138_v26  ;;  %v7321_v41 = vsel %vm6528_vm7, %v7312_v42, 0.0  ;;  %v13738_v26 = vld [vmem:[#allocation104_spill] sm:$0xff] }
 0x516   : > { %v7305_v20 = vmul.f32 0.5, %v7296_v8  ;;  %v6667_v43 = vadd.f32 %v13738_v26, %v13737_v37  ;;  %v7322_v8 = vsel %vm6528_vm7, %v7313_v21, 0.0  ;;  %v13745_v26 = vld [vmem:[#allocation129_spill] sm:$0xff] }
 0x517   : > { %v12525_v63 = vpop.xlane.xlu0 %6210  ;;  %v8836_v55 = vpop.eup %8835  ;;  %13733 = vst [vmem:[#allocation76_spill] sm:$0xff] %v12669_v35 }
 0x518   : > { %v8838_v23 = vpop.eup %8837  ;;  %v12675_v34 = vmul.f32 0.6931472, %v8836_v55  ;;  %v13742_v55 = vld [vmem:[#allocation121_spill] sm:$0xff]  ;;  %v7314_v21 = vmul.f32 %v12590_v6, %v7305_v20  ;;  %v13755_v6 = vld [vmem:[#allocation134_spill] sm:$0xff] }
 0x519   : > { %v12527_v57 = vpop.xlane.xlu1 %6712  ;;  %v13756_v20 = vld [vmem:[#allocation118_spill] sm:$0xff] }
 0x51a   : > { %13735 = vst [vmem:[#allocation101_spill] sm:$0xff] %v12675_v34 }
 0x51b   : > { %v12536_v52 = vpop.xlane.xlu0 %6213 }
 0x51d   : > { %v12541_v59 = vpop.xlane.xlu1 %6715 }
 0x51f   : > { %v12546_v38 = vpop.xlane.xlu0 %6216 }
 0x521   : > { %v12561_v3 = vpop.xlane.xlu1 %6718 }
 0x522   : > { %13713 = vst [vmem:[#allocation75_spill] sm:$0xff] %v12561_v3 }
 0x523   : > { %v12572_v19 = vpop.xlane.xlu0 %6219 }
 0x525   : > { %v12576_v50 = vpop.xlane.xlu1 %6721 }
 0x526   : > { %13715 = vst [vmem:[#allocation84_spill] sm:$0xff] %v12576_v50 }
 0x527   : > { %v12592_v39 = vpop.xlane.xlu0 %6222 }
 0x529   : > { %v12600_v58 = vpop.xlane.xlu1 %6759 }
 0x52b   : > { %v12612_v33 = vpop.xlane.xlu0 %6225 }
 0x52d   : > { %v6270_v50 = vpop.xlane.xlu1 %6269 }
 0x52e   : > { %v12622_v11 = vsub.f32 %v6270_v50, %v12504_v7  ;;  %v7156_v50 = vsel %vm6528_vm7, %v7145_v18, 0.0  ;;  %v7058_v18 = vmin.f32 %v12475_v32, 0.0 }
 0x52f   : > { %v12634_v10 = vpop.xlane.xlu0 %6228 }
 0x530   : > { %v6399_v7 = vand.u32 2147483647, %v12622_v11  ;;  %v12662_v32 = vsub.f32 %v7058_v18, %v7119_v61  ;;  %v12677_v61 = vmul.f32 0.6931472, %v8838_v23  ;;  %v13743_v23 = vld [vmem:[#allocation128_spill] sm:$0xff] }
 0x531   : > { %v6273_v36 = vpop.xlane.xlu1 %6272 }
 0x532   : > { %v6412_v29 = vsub.f32 0.0, %v6399_v7  ;;  %v12644_v3 = vsub.f32 %v6273_v36, %v12515_v28  ;;  %v12656_v28 = vadd.f32 %v7156_v50, %v7155_v25  ;;  %v12660_v36 = vsel %vm7024_vm9, 1.0, %v13714_v62  ;;  %13736 = vst [vmem:[#allocation99_spill] sm:$0xff] %v12677_v61  ;;  %v13740_v25 = vld [vmem:[#allocation119_spill] sm:$0xff] }
 0x533   : > { %v6725_v5 = vpop.xlane.xlu0 %6724  ;;  %13731 = vst [vmem:[#allocation92_spill] sm:$0xff] %v12660_v36  ;;  %v13746_v36 = vld [vmem:[#allocation106_spill] sm:$0xff] }
 0x534   : > { %v6400_v15 = vand.u32 2147483647, %v12644_v3  ;;  %v12654_v7 = vadd.f32 %v6725_v5, %v6677_v48  ;;  %13730 = vst [vmem:[#allocation86_spill] sm:$0xff] %v12656_v28  ;;  %v6426_v9 = vmul.f32 1.442695, %v6412_v29  ;;  %v13739_v48 = vld [vmem:[#allocation127_spill] sm:$0xff]  ;;  %v12699_v5 = vstv %s13734_s14 }
 0x535   : > { %v6276_v46 = vpop.xlane.xlu1 %6275  ;;  %v12686_v18 = vadd.f32 %v13740_v25, %v13739_v48  ;;  %v12703_v48 = vadd.f32 %v13746_v36, %v13745_v26  ;;  %v6315_v36 = vadd.s32 72, %v12513_v51  ;;  %v7323_v26 = vadd.f32 %v7322_v8, %v7321_v41 }
 0x536   : > { %v6413_v50 = vsub.f32 0.0, %v6400_v15  ;;  %v12673_v53 = vsub.f32 %v6276_v46, %v12525_v63  ;;  %v12691_v15 = vadd.f32 %v13742_v55, %v13741_v0  ;;  %v13744_v46 = vld [vmem:[#allocation122_spill] sm:$0xff]  ;;  %8839 = vpow2.f32 %v6426_v9  ;;  %v13748_v55 = vld [vmem:[#allocation107_spill] sm:$0xff] }
 0x537   : > { %v12680_v40 = vpop.xlane.xlu0 %6231  ;;  %v12695_v42 = vadd.f32 %v13744_v46, %v13743_v23  ;;  %v13747_v0 = vld [vmem:[#allocation130_spill] sm:$0xff]  ;;  %v13749_v23 = vld [vmem:[#allocation131_spill] sm:$0xff]  ;;  %v13750_v46 = vld [vmem:[#allocation109_spill] sm:$0xff]  ;;  %v6320_v9 = vadd.s32 %v12699_v5, %v12513_v51  ;;  %v12733_v28 = vadd.f32 %v13756_v20, %v13755_v6  ;;  %v6321_v41 = vadd.s32 %v12699_v5, %v12520_v56 }
 0x538   : > { %v6428_v29 = vmul.f32 1.442695, %v6413_v50  ;;  %v6401_v63 = vand.u32 2147483647, %v12673_v53  ;;  %v12710_v60 = vadd.f32 %v13748_v55, %v13747_v0  ;;  %v12714_v35 = vadd.f32 %v13750_v46, %v13749_v23  ;;  %v13753_v55 = vld [vmem:[#allocation133_spill] sm:$0xff]  ;;  %v13754_v23 = vld [vmem:[#allocation112_spill] sm:$0xff] }
 0x539   : > { %v6279_v37 = vpop.xlane.xlu1 %6278  ;;  %v12729_v46 = vadd.f32 %v13754_v23, %v13753_v55  ;;  %v13757_v55 = vld [vmem:[#allocation136_spill] sm:$0xff]  ;;  %v6329_v20 = vadd.s32 %v12699_v5, %v6315_v36  ;;  %v6323_v56 = vadd.s32 %v12699_v5, %v12539_v14  ;;  %vm6333_vm10 = vcmp.lt.s32.totalorder %v6320_v9, 300 }
 0x53a   : > { %v6414_v50 = vsub.f32 0.0, %v6401_v63  ;;  %v12706_v25 = vsub.f32 %v6279_v37, %v12536_v52  ;;  %8841 = vpow2.f32 %v6428_v29  ;;  %v13751_v63 = vld [vmem:[#allocation132_spill] sm:$0xff]  ;;  %v13752_v37 = vld [vmem:[#allocation111_spill] sm:$0xff]  ;;  %v12745_v23 = vadd.f32 %v12217_v2, %v13757_v55 }
 0x53b   : > { %v12717_v16 = vpop.xlane.xlu0 %6234  ;;  %v12725_v0 = vadd.f32 %v13752_v37, %v13751_v63  ;;  %v6322_v63 = vadd.s32 %v12699_v5, %v12532_v49  ;;  %v7324_v37 = vsel %vm6528_vm7, %v7314_v21, 0.0  ;;  %v6732_v49 = vadd.f32 %v12500_v27, %v6667_v43 }
 0x53c   : > { %v6402_v52 = vand.u32 2147483647, %v12706_v25  ;;  %v6430_v8 = vmul.f32 1.442695, %v6414_v50  ;;  %vm6334_vm11 = vcmp.lt.s32.totalorder %v6321_v41, 300  ;;  %v6324_v2 = vadd.s32 %v12699_v5, %v12549_v47 }
 0x53d   : > { %v6282_v44 = vpop.xlane.xlu1 %6281  ;;  %vm6335_vm0 = vcmp.lt.s32.totalorder %v6322_v63, 300  ;;  %vm6342_vm12 = vcmp.lt.s32.totalorder %v6329_v20, 300  ;;  %vm6336_vm14 = vcmp.lt.s32.totalorder %v6323_v56, 300  ;;  %v12766_v27 = vsel %vm6333_vm10, 1.0, %v13714_v62 }
 0x53e   : > { %v6415_v29 = vsub.f32 0.0, %v6402_v52  ;;  %v12738_v61 = vsub.f32 %v6282_v44, %v12546_v38  ;;  %v12753_v44 = vadd.f32 %v7324_v37, %v7323_v26  ;;  %v6325_v52 = vadd.s32 %v12699_v5, %v12552_v54 }
 0x53f   : > { %v12747_v6 = vpop.xlane.xlu0 %6237  ;;  %8843 = vpow2.f32 %v6430_v8  ;;  %v12770_v54 = vsel %vm6334_vm11, 1.0, %v13714_v62  ;;  %vm6337_vm15 = vcmp.lt.s32.totalorder %v6324_v2, 300  ;;  %v12782_v63 = vsel %vm6342_vm12, 1.0, %v13714_v62 }
 0x540   : > { %v6432_v50 = vmul.f32 1.442695, %v6415_v29  ;;  %v6403_v38 = vand.u32 2147483647, %v12738_v61  ;;  %v6797_v29 = vadd.f32 %v12600_v58, %v6732_v49  ;;  %v12776_v58 = vsel %vm6335_vm0, 1.0, %v13714_v62 }
 0x541   : > { %v6285_v21 = vpop.xlane.xlu1 %6284  ;;  %vm6338_vm1 = vcmp.lt.s32.totalorder %v6325_v52, 300  ;;  %v12785_v37 = vsel %vm6336_vm14, 1.0, %v13714_v62 }
 0x542   : > { %v6416_v36 = vsub.f32 0.0, %v6403_v38  ;;  %v12761_v14 = vsub.f32 %v6285_v21, %v12572_v19  ;;  %8845 = vpow2.f32 %v6432_v50  ;;  %v6810_v20 = vmul.f32 0.5, %v6797_v29 }
 0x543   : > { %v6267_v26 = vpop.xlane.xlu0 %6266  ;;  %v8840_v55 = vpop.eup %8839  ;;  %v12795_v21 = vsel %vm6338_vm1, 1.0, %v13714_v62  ;;  %v6734_v29 = vadd.f32 %v12508_v17, %v12691_v15 }
 0x544   : > { %v6434_v47 = vmul.f32 1.442695, %v6416_v36  ;;  %v6404_v43 = vand.u32 2147483647, %v12761_v14  ;;  %v12773_v19 = vsub.f32 %v6267_v26, %v12495_v12  ;;  %v6733_v12 = vadd.f32 %v12502_v1, %v12686_v18 }
 0x545   : > { %v6288_v41 = vpop.xlane.xlu1 %6287  ;;  %v6326_v1 = vadd.s32 %v12699_v5, %v12555_v45  ;;  %v6327_v18 = vadd.s32 %v12699_v5, %v12584_v30  ;;  %v6328_v30 = vadd.s32 %v12699_v5, %v12587_v22 }
 0x546   : > { %v6417_v8 = vsub.f32 0.0, %v6404_v43  ;;  %v12779_v9 = vsub.f32 %v6288_v41, %v12592_v39  ;;  %8847 = vpow2.f32 %v6434_v47  ;;  %v6398_v56 = vand.u32 2147483647, %v12773_v19 }
 0x547   : > { %v6763_v50 = vpop.xlane.xlu0 %6762  ;;  %v12792_v39 = vsel %vm6337_vm15, 1.0, %v13714_v62  ;;  %v8842_v2 = vpop.eup %8841  ;;  %v6451_v47 = vadd.f32 1.0, %v8840_v55  ;;  %vm6339_vm13 = vcmp.lt.s32.totalorder %v6326_v1, 300  ;;  %vm6340_vm2 = vcmp.lt.s32.totalorder %v6327_v18, 300 }
 0x548   : > { %v6436_v38 = vmul.f32 1.442695, %v6417_v8  ;;  %v6405_v49 = vand.u32 2147483647, %v12779_v9  ;;  %v6411_v52 = vsub.f32 0.0, %v6398_v56  ;;  %v6798_v36 = vadd.f32 %v6763_v50, %v6733_v12 }
 0x549   : > { %v6291_v26 = vpop.xlane.xlu1 %6290  ;;  %v6823_v8 = vmul.f32 %v12766_v27, %v6810_v20  ;;  %v6452_v4 = vadd.f32 1.0, %v8842_v2  ;;  %v6735_v20 = vadd.f32 %v12506_v31, %v12695_v42  ;;  %vm6341_vm3 = vcmp.lt.s32.totalorder %v6328_v30, 300 }
 0x54a   : > { %v6418_v43 = vsub.f32 0.0, %v6405_v49  ;;  %v12804_v41 = vsub.f32 %v6291_v26, %v12612_v33  ;;  %8849 = vpow2.f32 %v6436_v38  ;;  %v6424_v56 = vmul.f32 1.442695, %v6411_v52 }
 0x54b   : > { %v6811_v12 = vmul.f32 0.5, %v6798_v36  ;;  %v6766_v50 = vpop.xlane.xlu0 %6765  ;;  %v6316_v33 = vadd.s32 80, %v12513_v51  ;;  %v6836_v2 = vsel %vm6528_vm7, %v6823_v8, 0.0  ;;  %v6318_v18 = vadd.s32 96, %v12513_v51 }
 0x54c   : > { %v6438_v34 = vmul.f32 1.442695, %v6418_v43  ;;  %v6406_v45 = vand.u32 2147483647, %v12804_v41  ;;  %8851 = vpow2.f32 %v6424_v56  ;;  %v6799_v15 = vadd.f32 %v6766_v50, %v6734_v29  ;;  %v8844_v49 = vpop.eup %8843 }
 0x54d   : > { %v6824_v17 = vmul.f32 %v12770_v54, %v6811_v12  ;;  %v12811_v55 = vpop.xlane.xlu1 %6786  ;;  %8853 = vlog2.f32 %v6451_v47  ;;  %v6330_v42 = vadd.s32 %v12699_v5, %v6316_v33  ;;  %v6736_v47 = vadd.f32 %v12510_v13, %v12703_v48 }
 0x54e   : > { %v6419_v38 = vsub.f32 0.0, %v6406_v45  ;;  %8855 = vpow2.f32 %v6438_v34  ;;  %v6812_v52 = vmul.f32 0.5, %v6799_v15  ;;  %v6453_v34 = vadd.f32 1.0, %v8844_v49 }
 0x54f   : > { %v6837_v22 = vsel %vm6528_vm7, %v6824_v17, 0.0  ;;  %v6769_v36 = vpop.xlane.xlu0 %6768  ;;  %v8846_v26 = vpop.eup %8845  ;;  %8857 = vlog2.f32 %v6452_v4  ;;  %v12827_v4 = vsel %vm6339_vm13, 1.0, %v13714_v62  ;;  %v12832_v33 = vsel %vm6340_vm2, 1.0, %v13714_v62 }
 0x550   : > { %v6838_v29 = vadd.f32 %v6837_v22, %v6836_v2  ;;  %v6440_v43 = vmul.f32 1.442695, %v6419_v38  ;;  %v6825_v56 = vmul.f32 %v12776_v58, %v6812_v52  ;;  %v6800_v12 = vadd.f32 %v6769_v36, %v6735_v20 }
 0x551   : > { %v6294_v31 = vpop.xlane.xlu1 %6293  ;;  %v6454_v50 = vadd.f32 1.0, %v8846_v26  ;;  %v12835_v13 = vsel %vm6341_vm3, 1.0, %v13714_v62  ;;  %vm6343_vm4 = vcmp.lt.s32.totalorder %v6330_v42, 300 }
 0x552   : > { %v12823_v8 = vsub.f32 %v6294_v31, %v12634_v10  ;;  %8859 = vpow2.f32 %v6440_v43  ;;  %v6839_v45 = vsel %vm6528_vm7, %v6825_v56, 0.0  ;;  %v6813_v17 = vmul.f32 0.5, %v6800_v12 }
 0x553   : > { %v6772_v15 = vpop.xlane.xlu0 %6771  ;;  %v8848_v30 = vpop.eup %8847  ;;  %v6840_v20 = vadd.f32 %v6839_v45, %v6838_v29  ;;  %v6317_v10 = vadd.s32 88, %v12513_v51  ;;  %8861 = vlog2.f32 %v6453_v34  ;;  %v6737_v56 = vadd.f32 %v12517_v24, %v12710_v60 }
 0x554   : > { %v6826_v48 = vmul.f32 %v12785_v37, %v6813_v17  ;;  %v6407_v1 = vand.u32 2147483647, %v12823_v8  ;;  %v6801_v38 = vadd.f32 %v6772_v15, %v6736_v47  ;;  %v6455_v2 = vadd.f32 1.0, %v8848_v30 }
 0x555   : > { %v6297_v49 = vpop.xlane.xlu1 %6296  ;;  %8863 = vlog2.f32 %v6454_v50  ;;  %v12848_v31 = vsel %vm6343_vm4, 1.0, %v13714_v62  ;;  %v12851_v42 = vadd.s32 %v12699_v5, %v6317_v10  ;;  %v12859_v24 = vadd.s32 %v12699_v5, %v6318_v18 }
 0x556   : > { %v12841_v22 = vsub.f32 %v6297_v49, %v12680_v40  ;;  %v6841_v52 = vsel %vm6528_vm7, %v6826_v48, 0.0  ;;  %v6420_v36 = vsub.f32 0.0, %v6407_v1  ;;  %v6814_v26 = vmul.f32 0.5, %v6801_v38 }
 0x557   : > { %v6775_v29 = vpop.xlane.xlu0 %6774  ;;  %v8850_v43 = vpop.eup %8849  ;;  %v6842_v12 = vadd.f32 %v6841_v52, %v6840_v20  ;;  %8865 = vlog2.f32 %v6455_v2  ;;  %v6738_v49 = vadd.f32 %v12527_v57, %v12714_v35  ;;  %v6739_v2 = vadd.f32 %v12541_v59, %v12725_v0 }
 0x558   : > { %v6456_v40 = vadd.f32 1.0, %v8850_v43  ;;  %v6442_v47 = vmul.f32 1.442695, %v6420_v36  ;;  %v6827_v34 = vmul.f32 %v12792_v39, %v6814_v26  ;;  %v6408_v50 = vand.u32 2147483647, %v12841_v22  ;;  %v13759_v43 = vld [vmem:[#allocation84_spill] sm:$0xff] }
 0x559   : > { %v6300_v45 = vpop.xlane.xlu1 %6299  ;;  %v8852_v17 = vpop.eup %8851  ;;  %v6802_v15 = vadd.f32 %v6775_v29, %v6737_v56  ;;  %v6741_v56 = vadd.f32 %v13759_v43, %v12733_v28  ;;  %v6387_v57 = vmin.f32 %v12644_v3, 0.0  ;;  %vm6344_vm5 = vcmp.lt.s32.totalorder %v12851_v42, 300 }
 0x55a   : > { %v12856_v30 = vsub.f32 %v6300_v45, %v12717_v16  ;;  %v8854_v60 = vpop.eup %8853  ;;  %8867 = vlog2.f32 %v6456_v40  ;;  %v6450_v20 = vadd.f32 1.0, %v8852_v17  ;;  %v6843_v10 = vsel %vm6528_vm7, %v6827_v34, 0.0  ;;  %v13758_v16 = vld [vmem:[#allocation75_spill] sm:$0xff] }
 0x55b   : > { %v6421_v48 = vsub.f32 0.0, %v6408_v50  ;;  %v6778_v1 = vpop.xlane.xlu0 %6777  ;;  %v8856_v38 = vpop.eup %8855  ;;  %v6740_v52 = vadd.f32 %v13758_v16, %v12729_v46  ;;  %8869 = vpow2.f32 %v6442_v47  ;;  %v6844_v36 = vadd.f32 %v6843_v10, %v6842_v12 }
 0x55c   : > { %v8858_v5 = vpop.eup %8857  ;;  %8871 = vlog2.f32 %v6450_v20  ;;  %v6457_v18 = vadd.f32 1.0, %v8856_v38  ;;  %v6386_v40 = vmin.f32 %v12622_v11, 0.0  ;;  %v6815_v35 = vmul.f32 0.5, %v6802_v15 }
 0x55d   : > { %v6444_v26 = vmul.f32 1.442695, %v6421_v48  ;;  %v6303_v29 = vpop.xlane.xlu1 %6302  ;;  %v6409_v59 = vand.u32 2147483647, %v12856_v30  ;;  %v6803_v0 = vadd.f32 %v6778_v1, %v6738_v49  ;;  %v6466_v12 = vmul.f32 0.6931472, %v8854_v60 }
 0x55e   : > { %8873 = vlog2.f32 %v6457_v18  ;;  %v12874_v46 = vsub.f32 %v6303_v29, %v12747_v6  ;;  %v6468_v50 = vmul.f32 0.6931472, %v8858_v5  ;;  %v6388_v45 = vmin.f32 %v12673_v53, 0.0 }
 0x55f   : > { %v6781_v47 = vpop.xlane.xlu0 %6780  ;;  %v8860_v34 = vpop.eup %8859  ;;  %8875 = vpow2.f32 %v6444_v26  ;;  %v6828_v11 = vmul.f32 %v12795_v21, %v6815_v35  ;;  %v6422_v17 = vsub.f32 0.0, %v6409_v59  ;;  %v6816_v3 = vmul.f32 0.5, %v6803_v0 }
 0x560   : > { %v6458_v28 = vadd.f32 1.0, %v8860_v34  ;;  %v6389_v20 = vmin.f32 %v12706_v25, 0.0  ;;  %v6390_v10 = vmin.f32 %v12738_v61, 0.0  ;;  %v6806_v6 = vadd.f32 %v12811_v55, %v6741_v56  ;;  %v8862_v60 = vpop.eup %8861 }
 0x561   : > { %v12878_v15 = vpop.xlane.xlu1 %7235  ;;  %v6410_v48 = vand.u32 2147483647, %v12874_v46  ;;  %v6845_v53 = vsel %vm6528_vm7, %v6828_v11, 0.0  ;;  %v6446_v1 = vmul.f32 1.442695, %v6422_v17  ;;  %v6829_v38 = vmul.f32 %v12827_v4, %v6816_v3 }
 0x562   : > { %8877 = vlog2.f32 %v6458_v28  ;;  %v8864_v16 = vpop.eup %8863  ;;  %v6490_v5 = vsub.f32 %v6386_v40, %v6466_v12  ;;  %v6391_v18 = vmin.f32 %v12761_v14, 0.0  ;;  %v6846_v26 = vadd.f32 %v6845_v53, %v6844_v36 }
 0x563   : > { %v6784_v49 = vpop.xlane.xlu0 %6783  ;;  %v6423_v25 = vsub.f32 0.0, %v6410_v48  ;;  %v6491_v29 = vsub.f32 %v6387_v57, %v6468_v50  ;;  %8879 = vpow2.f32 %v6446_v1  ;;  %v6847_v55 = vsel %vm6528_vm7, %v6829_v38, 0.0 }
 0x564   : > { %v6804_v43 = vadd.f32 %v6781_v47, %v6739_v2  ;;  %v6470_v35 = vmul.f32 0.6931472, %v8862_v60  ;;  %v6819_v59 = vmul.f32 0.5, %v6806_v6  ;;  %v6848_v0 = vadd.f32 %v6847_v55, %v6846_v26  ;;  %v8866_v28 = vpop.eup %8865 }
 0x565   : > { %v12888_v56 = vpop.xlane.xlu1 %6613  ;;  %v6448_v34 = vmul.f32 1.442695, %v6423_v25  ;;  %v6472_v11 = vmul.f32 0.6931472, %v8864_v16  ;;  %v6385_v17 = vmin.f32 %v12773_v19, 0.0  ;;  %v6805_v12 = vadd.f32 %v6784_v49, %v6740_v52 }
 0x566   : > { %v6817_v40 = vmul.f32 0.5, %v6804_v43  ;;  %v6392_v57 = vmin.f32 %v12779_v9, 0.0  ;;  %v6393_v50 = vmin.f32 %v12804_v41, 0.0  ;;  %v6503_v48 = vsub.f32 0.0, %v6490_v5 }
 0x567   : > { %v7278_v3 = vpop.xlane.xlu0 %7277  ;;  %v8868_v36 = vpop.eup %8867  ;;  %8881 = vpow2.f32 %v6448_v34  ;;  %v6504_v6 = vsub.f32 0.0, %v6491_v29  ;;  %v6818_v53 = vmul.f32 0.5, %v6805_v12  ;;  %v6492_v19 = vsub.f32 %v6388_v45, %v6470_v35  ;;  %v13760_v34 = vld [vmem:[#allocation72_spill] sm:$0xff] }
 0x568   : > { %v7297_v2 = vadd.f32 %v7278_v3, %v12745_v23  ;;  %v8870_v47 = vpop.eup %8869  ;;  %v6830_v60 = vmul.f32 %v12832_v33, %v6817_v40  ;;  %v6832_v52 = vmul.f32 %v12782_v63, %v6819_v59  ;;  %v6493_v26 = vsub.f32 %v6389_v20, %v6472_v11 }
 0x569   : > { %v6728_v1 = vpop.xlane.xlu1 %6727  ;;  %v8872_v38 = vpop.eup %8871  ;;  %v6459_v49 = vadd.f32 1.0, %v8870_v47  ;;  %v6474_v9 = vmul.f32 0.6931472, %v8866_v28  ;;  %v6831_v29 = vmul.f32 %v12835_v13, %v6818_v53  ;;  %v6476_v45 = vmul.f32 0.6931472, %v8868_v36 }
 0x56a   : > { %v7306_v16 = vmul.f32 0.5, %v7297_v2  ;;  %v6464_v25 = vmul.f32 0.6931472, %v8872_v38  ;;  %v6849_v55 = vsel %vm6528_vm7, %v6830_v60, 0.0  ;;  %v6516_v59 = vmul.f32 %v12770_v54, %v6503_v48 }
 0x56b   : > { %v12897_v43 = vpop.xlane.xlu0 %6665  ;;  %v8874_v23 = vpop.eup %8873  ;;  %8883 = vlog2.f32 %v6459_v49  ;;  %v6850_v5 = vadd.f32 %v6849_v55, %v6848_v0  ;;  %v6517_v20 = vmul.f32 %v12776_v58, %v6504_v6  ;;  %v6505_v11 = vsub.f32 0.0, %v6492_v19 }
 0x56c   : > { %v7315_v40 = vmul.f32 %v13760_v34, %v7306_v16  ;;  %v8876_v12 = vpop.eup %8875  ;;  %v6489_v35 = vsub.f32 %v6385_v17, %v6464_v25  ;;  %v6851_v2 = vsel %vm6528_vm7, %v6831_v29, 0.0  ;;  %v6494_v47 = vsub.f32 %v6390_v10, %v6474_v9 }
 0x56d   : > { %v12903_v28 = vpop.xlane.xlu1 %7202  ;;  %v6460_v3 = vadd.f32 1.0, %v8876_v12  ;;  %v6478_v36 = vmul.f32 0.6931472, %v8874_v23  ;;  %v6852_v17 = vadd.f32 %v6851_v2, %v6850_v5  ;;  %v6506_v48 = vsub.f32 0.0, %v6493_v26  ;;  %v13761_v12 = vld [vmem:[#allocation70_spill] sm:$0xff] }
 0x56e   : > { %v7326_v0 = vsel %vm6528_vm7, %v7315_v40, 0.0  ;;  %v6502_v60 = vsub.f32 0.0, %v6489_v35  ;;  %v6495_v38 = vsub.f32 %v6391_v18, %v6476_v45  ;;  %v6853_v61 = vsel %vm6528_vm7, %v6832_v52, 0.0 }
 0x56f   : > { %v6790_v53 = vpop.xlane.xlu0 %6789  ;;  %v8878_v54 = vpop.eup %8877  ;;  %8885 = vlog2.f32 %v6460_v3  ;;  %v12911_v58 = vadd.f32 %v7326_v0, %v12753_v44  ;;  %v6530_v9 = vsel %vm6528_vm7, %v6516_v59, 0.0  ;;  %v6518_v26 = vmul.f32 %v12785_v37, %v6505_v11 }
 0x570   : > { %v6807_v6 = vadd.f32 %v6790_v53, %v12654_v7  ;;  %v6515_v19 = vmul.f32 %v12766_v27, %v6502_v60  ;;  %v6480_v49 = vmul.f32 0.6931472, %v8878_v54  ;;  %v8880_v16 = vpop.eup %8879  ;;  %v6854_v55 = vadd.f32 %v6853_v61, %v6852_v17 }
 0x571   : > { %v7281_v10 = vpop.xlane.xlu1 %7280  ;;  %v6507_v44 = vsub.f32 0.0, %v6494_v47  ;;  %v6496_v23 = vsub.f32 %v6392_v57, %v6478_v36  ;;  %v6461_v5 = vadd.f32 1.0, %v8880_v16  ;;  %v6532_v27 = vsel %vm6528_vm7, %v6517_v20, 0.0 }
 0x572   : > { %v6820_v25 = vmul.f32 0.5, %v6807_v6  ;;  %v6529_v7 = vsel %vm6528_vm7, %v6515_v19, 0.0  ;;  %v6519_v29 = vmul.f32 %v12792_v39, %v6506_v48  ;;  %v6508_v40 = vsub.f32 0.0, %v6495_v38 }
 0x573   : > { %v7239_v14 = vpop.xlane.xlu0 %7238  ;;  %v6531_v18 = vadd.f32 %v6530_v9, %v6529_v7  ;;  %v6497_v37 = vsub.f32 %v6393_v50, %v6480_v49  ;;  %8887 = vlog2.f32 %v6461_v5  ;;  %v6743_v45 = vadd.f32 %v6728_v1, %v13761_v12  ;;  %v13762_v49 = vld [vmem:[#allocation98_spill] sm:$0xff]  ;;  %v13763_v12 = vld [vmem:[#allocation101_spill] sm:$0xff] }
 0x574   : > { %v6833_v52 = vmul.f32 %v12848_v31, %v6820_v25  ;;  %v8882_v34 = vpop.eup %8881  ;;  %v6534_v59 = vsel %vm6528_vm7, %v6518_v26, 0.0  ;;  %v6509_v20 = vsub.f32 0.0, %v6496_v23  ;;  %v6520_v39 = vmul.f32 %v12795_v21, %v6507_v44 }
 0x575   : > { %v6793_v57 = vpop.xlane.xlu1 %6792  ;;  %v6533_v35 = vadd.f32 %v6532_v27, %v6531_v18  ;;  %v6462_v11 = vadd.f32 1.0, %v8882_v34  ;;  %v12933_v41 = vsel %vm6344_vm5, 1.0, %v13714_v62  ;;  %vm6345_vm6 = vcmp.lt.s32.totalorder %v12859_v24, 300 }
 0x576   : > { %v6855_v3 = vsel %vm6528_vm7, %v6833_v52, 0.0  ;;  %v6808_v0 = vadd.f32 %v6793_v57, %v6743_v45  ;;  %v6510_v1 = vsub.f32 0.0, %v6497_v37  ;;  %v6536_v36 = vsel %vm6528_vm7, %v6519_v29, 0.0  ;;  %v13764_v45 = vld [vmem:[#allocation71_spill] sm:$0xff] }
 0x577   : > { %v6856_v2 = vadd.f32 %v6855_v3, %v6854_v55  ;;  %v6731_v47 = vpop.xlane.xlu0 %6730  ;;  %v6535_v60 = vadd.f32 %v6534_v59, %v6533_v35  ;;  %8889 = vlog2.f32 %v6462_v11  ;;  %v6521_v17 = vmul.f32 %v12827_v4, %v6508_v40  ;;  %v13766_v59 = vld [vmem:[#allocation74_spill] sm:$0xff] }
 0x578   : > { %v8884_v50 = vpop.eup %8883  ;;  %v6821_v53 = vmul.f32 0.5, %v6808_v0  ;;  %v6394_v54 = vmin.f32 %v12823_v8, 0.0  ;;  %v6679_v38 = vadd.f32 %v12897_v43, %v12888_v56  ;;  %v6538_v42 = vsel %vm6528_vm7, %v6520_v39, 0.0 }
 0x579   : > { %v7242_v21 = vpop.xlane.xlu1 %7241  ;;  %v6482_v48 = vmul.f32 0.6931472, %v8884_v50  ;;  %v6537_v6 = vadd.f32 %v6536_v36, %v6535_v60  ;;  %v6522_v19 = vmul.f32 %v12832_v33, %v6509_v20  ;;  %v7253_v61 = vadd.f32 %v12878_v15, %v13762_v49 }
 0x57a   : > { %v6834_v16 = vmul.f32 %v12933_v41, %v6821_v53  ;;  %v6395_v26 = vmin.f32 %v12841_v22, 0.0  ;;  %v6744_v8 = vadd.f32 %v6731_v47, %v6679_v38  ;;  %v6540_v44 = vsel %vm6528_vm7, %v6521_v17, 0.0  ;;  %v13768_v53 = vld [vmem:[#allocation85_spill] sm:$0xff] }
 0x57b   : > { %v7206_v9 = vpop.xlane.xlu0 %7205  ;;  %v6498_v4 = vsub.f32 %v6394_v54, %v6482_v48  ;;  %v6539_v25 = vadd.f32 %v6538_v42, %v6537_v6  ;;  %v6523_v56 = vmul.f32 %v12835_v13, %v6510_v1  ;;  %v7298_v43 = vadd.f32 %v7281_v10, %v7253_v61 }
 0x57c   : > { %v8886_v55 = vpop.eup %8885  ;;  %v6857_v23 = vsel %vm6528_vm7, %v6834_v16, 0.0  ;;  %v6542_v27 = vsel %vm6528_vm7, %v6522_v19, 0.0  ;;  %v7254_v29 = vadd.f32 %v7239_v14, %v12903_v28  ;;  %v8140_v22 = vsel %vm6345_vm6, 1.0, %v13714_v62  ;;  %v13769_v16 = vld [vmem:[#allocation81_spill] sm:$0xff] }
 0x57d   : > { %v6796_v33 = vpop.xlane.xlu1 %6795  ;;  %v6511_v7 = vsub.f32 0.0, %v6498_v4  ;;  %v6484_v5 = vmul.f32 0.6931472, %v8886_v55  ;;  %v6541_v15 = vadd.f32 %v6540_v44, %v6539_v25  ;;  %v6858_v34 = vadd.f32 %v6857_v23, %v6856_v2  ;;  %v13770_v23 = vld [vmem:[#allocation91_spill] sm:$0xff] }
 0x57e   : > { %v6809_v18 = vadd.f32 %v6796_v33, %v6744_v8  ;;  %v7139_v13 = vsub.f32 0.0, %v12662_v32  ;;  %v13765_v57 = vmin.f32 %v13764_v45, 0.0  ;;  %v7060_v11 = vmin.f32 %v13766_v59, 0.0  ;;  %v13767_v32 = vld [vmem:[#allocation99_spill] sm:$0xff]  ;;  %v13775_v45 = vld [vmem:[#allocation92_spill] sm:$0xff] }
 0x57f   : > { %v7284_v52 = vpop.xlane.xlu0 %7283  ;;  %v6499_v10 = vsub.f32 %v6395_v26, %v6484_v5  ;;  %v6543_v40 = vadd.f32 %v6542_v27, %v6541_v15  ;;  %v7307_v3 = vmul.f32 0.5, %v7298_v43  ;;  %v6524_v24 = vmul.f32 %v12782_v63, %v6511_v7  ;;  %v13771_v7 = vld [vmem:[#allocation86_spill] sm:$0xff]  ;;  %v13772_v5 = vld [vmem:[#allocation67_spill] sm:$0xff]  ;;  %v13773_v27 = vld [vmem:[#allocation76_spill] sm:$0xff] }
 0x580   : > { %v6822_v37 = vmul.f32 0.5, %v6809_v18  ;;  %v7131_v35 = vsub.f32 %v13765_v57, %v13763_v12  ;;  %v7299_v20 = vadd.f32 %v7284_v52, %v7254_v29  ;;  %v8888_v14 = vpop.eup %8887  ;;  %v6544_v39 = vsel %vm6528_vm7, %v6523_v56, 0.0 }
 0x581   : > { %v7245_v28 = vpop.xlane.xlu1 %7244  ;;  %v6512_v62 = vsub.f32 0.0, %v6499_v10  ;;  %v7132_v0 = vsub.f32 %v7060_v11, %v13767_v32  ;;  %v6396_v47 = vmin.f32 %v12856_v30, 0.0  ;;  %v6486_v60 = vmul.f32 0.6931472, %v8888_v14 }
 0x582   : > { %v6835_v2 = vmul.f32 %v8140_v22, %v6822_v37  ;;  %v6545_v50 = vadd.f32 %v6544_v39, %v6543_v40  ;;  %v7308_v17 = vmul.f32 0.5, %v7299_v20  ;;  %v7148_v54 = vmul.f32 %v13768_v53, %v7139_v13 }
 0x583   : > { %v7209_v1 = vpop.xlane.xlu0 %7208  ;;  %v6525_v36 = vmul.f32 %v12848_v31, %v6512_v62  ;;  %v7140_v63 = vsub.f32 0.0, %v7131_v35  ;;  %v6500_v38 = vsub.f32 %v6396_v47, %v6486_v60  ;;  %v6397_v42 = vmin.f32 %v12874_v46, 0.0 }
 0x584   : > { %v6859_v48 = vsel %vm6528_vm7, %v6835_v2, 0.0  ;;  %v8890_v6 = vpop.eup %8889  ;;  %v6546_v61 = vsel %vm6528_vm7, %v6524_v24, 0.0  ;;  %v7316_v4 = vmul.f32 %v13769_v16, %v7307_v3  ;;  %v7255_v26 = vadd.f32 %v7242_v21, %v7206_v9  ;;  %v13774_v9 = vld [vmem:[#allocation88_spill] sm:$0xff] }
 0x585   : > { %v7212_v19 = vpop.xlane.xlu1 %7211  ;;  %v6860_v49 = vadd.f32 %v6859_v48, %v6858_v34  ;;  %v6488_v30 = vmul.f32 0.6931472, %v8890_v6  ;;  %v7141_v25 = vsub.f32 0.0, %v7132_v0  ;;  %v6513_v31 = vsub.f32 0.0, %v6500_v38 }
 0x586   : > { %v7256_v8 = vadd.f32 %v7245_v28, %v7209_v1  ;;  %v6547_v44 = vadd.f32 %v6546_v61, %v6545_v50  ;;  %v6548_v43 = vsel %vm6528_vm7, %v6525_v36, 0.0  ;;  %v7317_v33 = vmul.f32 %v13770_v23, %v7308_v17 }
 0x587   : > { %v7287_v55 = vpop.xlane.xlu0 %7286  ;;  %6861 = vadd.xlane.f32.xlu0 %v6860_v49  ;;  %v6501_v56 = vsub.f32 %v6397_v42, %v6488_v30  ;;  %v7159_v15 = vadd.f32 %v13772_v5, %v13771_v7  ;;  %v6526_v18 = vmul.f32 %v12933_v41, %v6513_v31  ;;  %v7160_v21 = vsel %vm6528_vm7, %v13773_v27, 0.0 }
 0x588   : > { %v7300_v46 = vadd.f32 %v7287_v55, %v7255_v26  ;;  %v7149_v29 = vmul.f32 %v13774_v9, %v7140_v63  ;;  %v7328_v13 = vsel %vm6528_vm7, %v7316_v4, 0.0  ;;  %v7162_v37 = vsel %vm6528_vm7, %v7148_v54, 0.0 }
 0x589   : > { %v7290_v52 = vpop.xlane.xlu1 %7289  ;;  %v6514_v34 = vsub.f32 0.0, %v6501_v56  ;;  %v7150_v57 = vmul.f32 %v13775_v45, %v7141_v25  ;;  %v6549_v35 = vadd.f32 %v6548_v43, %v6547_v44  ;;  %v6550_v59 = vsel %vm6528_vm7, %v6526_v18, 0.0 }
 0x58a   : > { %v7309_v10 = vmul.f32 0.5, %v7300_v46  ;;  %v7301_v40 = vadd.f32 %v7290_v52, %v7256_v8  ;;  %v7330_v11 = vsel %vm6528_vm7, %v7317_v33, 0.0  ;;  %v7329_v28 = vadd.f32 %v7328_v13, %v12911_v58 }
 0x58b   : > { %v7248_v12 = vpop.xlane.xlu0 %7247  ;;  %v6527_v41 = vmul.f32 %v8140_v22, %v6514_v34  ;;  %v7161_v14 = vadd.f32 %v7160_v21, %v7159_v15  ;;  %v6551_v24 = vadd.f32 %v6550_v59, %v6549_v35  ;;  %v7164_v62 = vsel %vm6528_vm7, %v7149_v29, 0.0 }
 0x58c   : > { %v7318_v3 = vmul.f32 %v13768_v53, %v7309_v10  ;;  %v7310_v20 = vmul.f32 0.5, %v7301_v40  ;;  %v7257_v32 = vadd.f32 %v7248_v12, %v7212_v19  ;;  %v7331_v47 = vadd.f32 %v7330_v11, %v7329_v28  ;;  %v13776_v10 = vld [vmem:[#allocation66_spill] sm:$0xff] }
 0x58d   : > { %v6552_v0 = vsel %vm6528_vm7, %v6527_v41, 0.0  ;;  %v7163_v50 = vadd.f32 %v7162_v37, %v7161_v14  ;;  %v7166_v36 = vsel %vm6528_vm7, %v7150_v57, 0.0 }
 0x58e   : > { %v7332_v39 = vsel %vm6528_vm7, %v7318_v3, 0.0  ;;  %v7319_v2 = vmul.f32 %v13774_v9, %v7310_v20  ;;  %v6553_v60 = vadd.f32 %v6552_v0, %v6551_v24 }
 0x58f   : > { %v7293_v22 = vpop.xlane.xlu0 %7292  ;;  %v7333_v17 = vadd.f32 %v7332_v39, %v7331_v47  ;;  %v7165_v58 = vadd.f32 %v7164_v62, %v7163_v50 }
 0x590   : > { %v7302_v1 = vadd.f32 %v7293_v22, %v7257_v32  ;;  %6554 = vadd.xlane.f32.xlu1 %v6553_v60  ;;  %v7334_v53 = vsel %vm6528_vm7, %v7319_v2, 0.0 }
 0x591   : > { %v7167_v48 = vadd.f32 %v7166_v36, %v7165_v58  ;;  %v7335_v63 = vadd.f32 %v7334_v53, %v7333_v17 }
 0x592   : > { %v7311_v54 = vmul.f32 0.5, %v7302_v1 }
 0x594   : > { %v7320_v6 = vmul.f32 %v13775_v45, %v7311_v54  ;;  %7168 = vadd.xlane.f32.xlu1 %v7167_v48 }
 0x596   : > { %v7336_v38 = vsel %vm6528_vm7, %v7320_v6, 0.0  ;;  %vm7347_vm7 = vcmp.eq.s32.totalorder %v12513_v51, 0 }
 0x597   : > { %v7337_v42 = vadd.f32 %v7336_v38, %v7335_v63  ;;  %v7348_v40 = vsel %vm7347_vm7, %v13776_v10, 4294967295 }
 0x598   : > { %vm7349_vm8 = vcmp.eq.s32.totalorder %v7348_v40, 0  ;;  %vm7352_vm9 = vcmp.eq.s32.totalorder %v7348_v40, 1  ;;  %vm7356_vm10 = vcmp.eq.s32.totalorder %v7348_v40, 2  ;;  %vm7360_vm11 = vcmp.eq.s32.totalorder %v7348_v40, 3 }
 0x599   : > { %7338 = vadd.xlane.f32.xlu0 %v7337_v42 }
 0x610   : > { %v6862_v19 = vpop.xlane.xlu0 %6861 }
 0x611   : > { %v6863_v49 = vrot.slane %v6862_v19, 4 }
 0x613   : > { %v6864_v61 = vadd.f32 %v6863_v49, %v6862_v19 }
 0x615   : > { %v6865_v30 = vrot.slane %v6864_v61, 2 }
 0x617   : > { %v6866_v31 = vadd.f32 %v6865_v30, %v6864_v61 }
 0x619   : > { %v6555_v16 = vpop.xlane.xlu1 %6554  ;;  %v6867_v23 = vrot.slane %v6866_v31, 1 }
 0x61a   : > { %v6556_v4 = vrot.slane %v6555_v16, 4 }
 0x61b   : > { %v6868_v27 = vadd.f32 %v6867_v23, %v6866_v31 }
 0x61c   : > { %v6557_v26 = vadd.f32 %v6556_v4, %v6555_v16 }
 0x61d   : > { %v7169_v25 = vpop.xlane.xlu1 %7168 }
 0x61e   : > { %v6558_v8 = vrot.slane %v6557_v26, 2  ;;  %v7170_v55 = vrot.slane %v7169_v25, 4 }
 0x620   : > { %v7171_v44 = vadd.f32 %v7170_v55, %v7169_v25  ;;  %v6559_v56 = vadd.f32 %v6558_v8, %v6557_v26 }
 0x622   : > { %v7339_v43 = vpop.xlane.xlu0 %7338  ;;  %v7172_v33 = vrot.slane %v7171_v44, 2  ;;  %v6560_v7 = vrot.slane %v6559_v56, 1 }
 0x623   : > { %v7340_v46 = vrot.slane %v7339_v43, 4 }
 0x624   : > { %v7173_v5 = vadd.f32 %v7172_v33, %v7171_v44  ;;  %v6561_v18 = vadd.f32 %v6560_v7, %v6559_v56 }
 0x625   : > { %v7341_v15 = vadd.f32 %v7340_v46, %v7339_v43 }
 0x626   : > { %8678 = vpush %v6561_v18  ;;  %v7174_v9 = vrot.slane %v7173_v5, 1 }
 0x627   : > { %v7342_v21 = vrot.slane %v7341_v15, 2  ;;  %8680 = vpush %v6868_v27 }
 0x628   : > { %v7175_v52 = vadd.f32 %v7174_v9, %v7173_v5 }
 0x629   : > { %v7343_v29 = vadd.f32 %v7342_v21, %v7341_v15 }
 0x62a   : > { %8682 = vpush %v7175_v52 }
 0x62b   : > { %v7344_v34 = vrot.slane %v7343_v29, 1 }
 0x62d   : > { %v7345_v13 = vadd.f32 %v7344_v34, %v7343_v29 }
 0x62f   : > { %8684 = vpush %v7345_v13 }
 0x657   : > { %s8679_s10 = spop %8678 }
 0x658   : > { %v7350_v37 = vstv %s8679_s10  ;;  %s8681_s25 = spop %8680 }
 0x659   : > { %v7353_v12 = vstv %s8681_s25  ;;  %v7351_v45 = vsel %vm7349_vm8, %v7350_v37, 0.0 }
 0x65a   : > { %v7354_v57 = vsel %vm7352_vm9, %v7353_v12, 0.0 }
 0x65b   : > { %s8683_s5 = spop %8682  ;;  %v7355_v41 = vadd.f32 %v7354_v57, %v7351_v45 }
 0x65c   : > { %v7357_v35 = vstv %s8683_s5 }
 0x65d   : > { %v7358_v59 = vsel %vm7356_vm10, %v7357_v35, 0.0 }
 0x65e   : > { %v7359_v51 = vadd.f32 %v7358_v59, %v7355_v41 }
 0x660   : > { %s8685_s26 = spop %8684 }
 0x661   : > { %v7361_v11 = vstv %s8685_s26 }
 0x662   : > { %v7362_v3 = vsel %vm7360_vm11, %v7361_v11, 0.0 }
 0x663   : > { %v7363_v20 = vadd.f32 %v7362_v3, %v7359_v51 }
 0x665   : > { %7364 = vst [vmem:[%s1234_s13] sm:$0xff] %v7363_v20 }
 0x666 PF: > { %s13778_s23 = sld [smem:[#allocation13_spill]] }
 0x66c   : > { %s41_s29 = sadd.s32 1, %s13778_s23  }
 0x66d   : > { %p38_p0 = scmp.ge.s32.totalorder %s41_s29, 5  }
 0x66f   :  { %40 = sbr.rel (!%p38_p0) target bundleno = 23 (0x17), region = 596 }

</bundles_post_ra>
